<compile_context>
chip_gen: v5e
topology: v5e:2x2
jax: 0.10.0
libtpu: 0.0.40
codegen_flags: <defaults>
</compile_context>

<pallas_src>
import functools

import jax
import jax.numpy as jnp
import numpy as np
from jax import lax
from jax.experimental import pallas as pl
from jax.experimental.pallas import tpu as pltpu

_RW = 10   # column halo added by the wrapper (max (1,k) reach: k=21 -> 10)
_RH = 10   # row halo kept inside the staging scratch (max (k,1) reach: 10)


def _tree_sum(terms):
    """Balanced pairwise sum (shorter serial add chain than a running sum)."""
    terms = list(terms)
    while len(terms) > 1:
        nxt = [terms[i] + terms[i + 1] for i in range(0, len(terms) - 1, 2)]
        if len(terms) % 2:
            nxt.append(terms[-1])
        terms = nxt
    return terms[0]


def msca_kernel(x_ref,
                w5, b5,
                w7a, b7a, w7b, b7b,
                w11a, b11a, w11b, b11b,
                w21a, b21a, w21b, b21b,
                fcw, fcb,
                o_ref, stage, *, H, W):
    C = x_ref.shape[1]
    Wp = W + 2 * _RW
    HWp = H * Wp
    base = _RH * Wp                      # start of the staged interior

    # Halo rows of the staging scratch model the conv's zero padding along H.
    # Re-zero them every grid step: cheap, and safe if the parallel batch axis
    # is split across TensorCores (no reliance on program_id == 0 running).
    stage[:, 0:base] = jnp.zeros((C, base), dtype=stage.dtype)
    top = base + HWp
    stage[:, top:top + base] = jnp.zeros((C, base), dtype=stage.dtype)

    def put(plane):                      # stage a (C, HWp) plane into the interior
        stage[:, base:base + HWp] = plane

    def shifted(dh, dw):                 # zero-padded (dh, dw) shift == static slice
        off = base + dh * Wp + dw
        return stage[:, off:off + HWp]

    # 0/1 mask of the real (interior) columns; applied ONCE to out5 so the
    # (1, k) column shifts see zero padding (u's halo columns are already zero).
    j = lax.broadcasted_iota(jnp.int32, (1, HWp), 1) % Wp
    col_keep = jnp.logical_and(j >= _RW, j < _RW + W).astype(jnp.float32)

    u = x_ref[0]                         # (C, HWp); residual / gate input

    # ---- 5x5 depthwise conv: stage u once, every tap is one shifted slice ----
    put(u)
    taps = []
    for dh in range(-2, 3):
        for dw in range(-2, 3):
            t = (dh + 2) * 5 + (dw + 2)
            taps.append(w5[:, t:t + 1] * shifted(dh, dw))
    out5 = _tree_sum(taps) + b5[...]
    out5 = out5 * col_keep               # restore zero column halo

    # ---- (1, k) stages of the 7/11/21 branches share one staging of out5 ----
    put(out5)
    t7s, t11s, t21s = [], [], []
    for dw in range(-10, 11):
        sc = shifted(0, dw)              # one slice serves all three branches
        if abs(dw) <= 3:
            t7s.append(w7a[:, dw + 3:dw + 4] * sc)
        if abs(dw) <= 5:
            t11s.append(w11a[:, dw + 5:dw + 6] * sc)
        t21s.append(w21a[:, dw + 10:dw + 11] * sc)
    t7 = _tree_sum(t7s) + b7a[...]
    t11 = _tree_sum(t11s) + b11a[...]
    t21 = _tree_sum(t21s) + b21a[...]

    # ---- (k, 1) stages: stage the intermediate, row shifts = row-offset slices ----
    def col_conv(v, wref, bref, pad):
        put(v)
        terms = [wref[:, dh + pad:dh + pad + 1] * shifted(dh, 0)
                 for dh in range(-pad, pad + 1)]
        return _tree_sum(terms) + bref[...]

    br1 = col_conv(t7, w7b, b7b, 3)
    br2 = col_conv(t11, w11b, b11b, 5)
    br3 = col_conv(t21, w21b, b21b, 10)

    mix = out5 + br1 + br2 + br3         # (C, HWp)

    # ---- 1x1 channel mix on the MXU: bf16 operands, f32 accumulation ----
    y = jnp.dot(fcw[...], mix.astype(jnp.bfloat16),
                preferred_element_type=jnp.float32) + fcb[...]
    o_ref[0] = y * u                     # gate with the residual (lane-dense store)


def msca_pallas(x, p, *, vmem_limit_bytes=None):
    B, C, H, W = x.shape
    Wp = W + 2 * _RW
    HWp = H * Wp

    # Zero-pad the width so every column shift inside the kernel is a mask-free
    # static slice (the halo columns carry the conv's zero padding).
    xpad = jnp.pad(x.astype(jnp.float32), ((0, 0), (0, 0), (0, 0), (_RW, _RW)))
    x2 = xpad.reshape(B, C, HWp)         # lane-dense flattened spatial layout

    def c1(a):                           # (C,) bias -> (C, 1): broadcasts over lanes
        return a.reshape(C, 1).astype(jnp.float32)

    args = (x2,
            p["w5"].astype(jnp.float32), c1(p["b5"]),
            p["w7a"].astype(jnp.float32), c1(p["b7a"]),
            p["w7b"].astype(jnp.float32), c1(p["b7b"]),
            p["w11a"].astype(jnp.float32), c1(p["b11a"]),
            p["w11b"].astype(jnp.float32), c1(p["b11b"]),
            p["w21a"].astype(jnp.float32), c1(p["b21a"]),
            p["w21b"].astype(jnp.float32), c1(p["b21b"]),
            p["fcw"].astype(jnp.bfloat16),   # bf16 MXU operand (f32 accumulation)
            c1(p["fcb"]))

    def full_vmem(a):                    # whole (small) array resident in VMEM
        nd = a.ndim
        return pl.BlockSpec(a.shape, lambda b, _nd=nd: (0,) * _nd)

    x_spec = pl.BlockSpec((1, C, HWp), lambda b: (b, 0, 0))
    in_specs = [x_spec] + [full_vmem(a) for a in args[1:]]

    cp = dict(dimension_semantics=("parallel",))   # batches independent -> megacore
    if vmem_limit_bytes is not None:
        cp["vmem_limit_bytes"] = vmem_limit_bytes

    out = pl.pallas_call(
        functools.partial(msca_kernel, H=H, W=W),
        out_shape=jax.ShapeDtypeStruct((B, C, HWp), jnp.float32),
        grid=(B,),
        in_specs=in_specs,
        out_specs=x_spec,
        scratch_shapes=[pltpu.VMEM((C, (H + 2 * _RH) * Wp), jnp.float32)],
        compiler_params=pltpu.CompilerParams(**cp),
    )(*args)

    # crop the column halo back off
    return out.reshape(B, C, H, Wp)[:, :, :, _RW:_RW + W]


def init_params(key, C):
    keys = jax.random.split(key, 16)

    def nrm(k, shape, scale=0.1):
        return (scale * jax.random.normal(k, shape)).astype(jnp.float32)

    p = {}
    p["w5"] = nrm(keys[0], (C, 25))      # flattened (C, 5, 5)
    p["b5"] = nrm(keys[1], (C,))
    p["w7a"] = nrm(keys[2], (C, 7));    p["b7a"] = nrm(keys[3], (C,))
    p["w7b"] = nrm(keys[4], (C, 7));    p["b7b"] = nrm(keys[5], (C,))
    p["w11a"] = nrm(keys[6], (C, 11));  p["b11a"] = nrm(keys[7], (C,))
    p["w11b"] = nrm(keys[8], (C, 11));  p["b11b"] = nrm(keys[9], (C,))
    p["w21a"] = nrm(keys[10], (C, 21)); p["b21a"] = nrm(keys[11], (C,))
    p["w21b"] = nrm(keys[12], (C, 21)); p["b21b"] = nrm(keys[13], (C,))
    p["fcw"] = nrm(keys[14], (C, C));   p["fcb"] = nrm(keys[15], (C,))
    return p


# ---- pure-JAX f32 reference (for correctness check only) ----
def _dw_ref(x, w, b, pad):
    y = lax.conv_general_dilated(
        x, w, window_strides=(1, 1), padding=pad,
        dimension_numbers=("NCHW", "OIHW", "NCHW"),
        feature_group_count=x.shape[1])
    return y + b[None, :, None, None]


def msca_ref(x, p):
    B, C, H, W = x.shape
    out = _dw_ref(x, p["w5"].reshape(C, 1, 5, 5), p["b5"], [(2, 2), (2, 2)])

    def branch(wa, ba, wb, bb, k, pad):
        t = _dw_ref(out, wa.reshape(C, 1, 1, k), ba, [(0, 0), (pad, pad)])
        return _dw_ref(t, wb.reshape(C, 1, k, 1), bb, [(pad, pad), (0, 0)])

    b1 = branch(p["w7a"], p["b7a"], p["w7b"], p["b7b"], 7, 3)
    b2 = branch(p["w11a"], p["b11a"], p["w11b"], p["b11b"], 11, 5)
    b3 = branch(p["w21a"], p["b21a"], p["w21b"], p["b21b"], 21, 10)
    s = out + b1 + b2 + b3
    y = jnp.einsum("oc,bchw->bohw", p["fcw"], s) + p["fcb"][None, :, None, None]
    return y * x


if __name__ == "__main__":
    B, C, H, W = 2, 8, 16, 16
    key = jax.random.PRNGKey(0)
    kx, kp = jax.random.split(key)
    x = jax.random.normal(kx, (B, C, H, W), dtype=jnp.float32)
    params = init_params(kp, C)

    y = msca_pallas(x, params)
    y = jax.block_until_ready(y)

    y_ref = msca_ref(x, params)
    # Tolerance is loosened (vs the old 1e-4) because the fc channel mix now
    # runs with bf16 MXU operands (f32 accumulation), per the perf review.
    np.testing.assert_allclose(np.asarray(y), np.asarray(y_ref), rtol=2e-2, atol=2e-2)
    print("KERNEL_OK")
</pallas_src>

<mosaic_0001>
module attributes {stable_mosaic.version = 11 : i64} {
  func.func @msca_kernel(%arg0: i32, %arg1: memref<1x8x576xf32, #tpu.memory_space<vmem>>, %arg2: memref<8x25xf32, #tpu.memory_space<vmem>>, %arg3: memref<8x1xf32, #tpu.memory_space<vmem>>, %arg4: memref<8x7xf32, #tpu.memory_space<vmem>>, %arg5: memref<8x1xf32, #tpu.memory_space<vmem>>, %arg6: memref<8x7xf32, #tpu.memory_space<vmem>>, %arg7: memref<8x1xf32, #tpu.memory_space<vmem>>, %arg8: memref<8x11xf32, #tpu.memory_space<vmem>>, %arg9: memref<8x1xf32, #tpu.memory_space<vmem>>, %arg10: memref<8x11xf32, #tpu.memory_space<vmem>>, %arg11: memref<8x1xf32, #tpu.memory_space<vmem>>, %arg12: memref<8x21xf32, #tpu.memory_space<vmem>>, %arg13: memref<8x1xf32, #tpu.memory_space<vmem>>, %arg14: memref<8x21xf32, #tpu.memory_space<vmem>>, %arg15: memref<8x1xf32, #tpu.memory_space<vmem>>, %arg16: memref<8x8xbf16, #tpu.memory_space<vmem>>, %arg17: memref<8x1xf32, #tpu.memory_space<vmem>>, %arg18: memref<1x8x576xf32, #tpu.memory_space<vmem>>, %arg19: memref<8x1296xf32, #tpu.memory_space<vmem>>) attributes {dimension_semantics = [#tpu.dimension_semantics<parallel>], iteration_bounds = array<i64: 2>, scalar_prefetch = 0 : i64, scratch_operands = 1 : i64, tpu.core_type = #tpu.core_type<tc>, window_params = [{transform_indices = @transform_0, window_bounds = array<i64: 1, 8, 576>}, {pipeline_mode = #tpu.pipeline_mode<synchronous>, transform_indices = @transform_1, window_bounds = array<i64: 8, 25>}, {pipeline_mode = #tpu.pipeline_mode<synchronous>, transform_indices = @transform_2, window_bounds = array<i64: 8, 1>}, {pipeline_mode = #tpu.pipeline_mode<synchronous>, transform_indices = @transform_3, window_bounds = array<i64: 8, 7>}, {pipeline_mode = #tpu.pipeline_mode<synchronous>, transform_indices = @transform_4, window_bounds = array<i64: 8, 1>}, {pipeline_mode = #tpu.pipeline_mode<synchronous>, transform_indices = @transform_5, window_bounds = array<i64: 8, 7>}, {pipeline_mode = #tpu.pipeline_mode<synchronous>, transform_indices = @transform_6, window_bounds = array<i64: 8, 1>}, {pipeline_mode = #tpu.pipeline_mode<synchronous>, transform_indices = @transform_7, window_bounds = array<i64: 8, 11>}, {pipeline_mode = #tpu.pipeline_mode<synchronous>, transform_indices = @transform_8, window_bounds = array<i64: 8, 1>}, {pipeline_mode = #tpu.pipeline_mode<synchronous>, transform_indices = @transform_9, window_bounds = array<i64: 8, 11>}, {pipeline_mode = #tpu.pipeline_mode<synchronous>, transform_indices = @transform_10, window_bounds = array<i64: 8, 1>}, {pipeline_mode = #tpu.pipeline_mode<synchronous>, transform_indices = @transform_11, window_bounds = array<i64: 8, 21>}, {pipeline_mode = #tpu.pipeline_mode<synchronous>, transform_indices = @transform_12, window_bounds = array<i64: 8, 1>}, {pipeline_mode = #tpu.pipeline_mode<synchronous>, transform_indices = @transform_13, window_bounds = array<i64: 8, 21>}, {pipeline_mode = #tpu.pipeline_mode<synchronous>, transform_indices = @transform_14, window_bounds = array<i64: 8, 1>}, {pipeline_mode = #tpu.pipeline_mode<synchronous>, transform_indices = @transform_15, window_bounds = array<i64: 8, 8>}, {pipeline_mode = #tpu.pipeline_mode<synchronous>, transform_indices = @transform_16, window_bounds = array<i64: 8, 1>}, {transform_indices = @transform_17, window_bounds = array<i64: 1, 8, 576>}]} {
    %cst = arith.constant 0.000000e+00 : f32
    %0 = vector.broadcast %cst : f32 to vector<8x360xf32>
    %c0 = arith.constant 0 : index
    %c0_0 = arith.constant 0 : index
    %1 = vector.load %arg19[%c0, %c0_0] : memref<8x1296xf32, #tpu.memory_space<vmem>>, vector<8x360xf32>
    tpu.vector_store %arg19[%c0, %c0_0], %0 {strides = array<i32>} : memref<8x1296xf32, #tpu.memory_space<vmem>>, vector<8x360xf32>,
    %cst_1 = arith.constant 0.000000e+00 : f32
    %2 = vector.broadcast %cst_1 : f32 to vector<8x360xf32>
    %c0_2 = arith.constant 0 : index
    %c936 = arith.constant 936 : index
    %3 = vector.load %arg19[%c0_2, %c936] : memref<8x1296xf32, #tpu.memory_space<vmem>>, vector<8x360xf32>
    tpu.vector_store %arg19[%c0_2, %c936], %2 {strides = array<i32>} : memref<8x1296xf32, #tpu.memory_space<vmem>>, vector<8x360xf32>,
    %4 = tpu.iota {dimensions = array<i32: 1>} : vector<1x576xi32>
    %c36_i32 = arith.constant 36 : i32
    %c0_i32 = arith.constant 0 : i32
    %5 = arith.cmpi eq, %c36_i32, %c0_i32 : i32
    %c1_i32 = arith.constant 1 : i32
    %6 = arith.select %5, %c1_i32, %c36_i32 : i32
    %7 = vector.broadcast %6 : i32 to vector<1x576xi32>
    %8 = arith.remsi %4, %7 : vector<1x576xi32>
    %c0_i32_3 = arith.constant 0 : i32
    %9 = vector.broadcast %c0_i32_3 : i32 to vector<1x576xi32>
    %10 = arith.cmpi ne, %8, %9 : vector<1x576xi32>
    %c0_i32_4 = arith.constant 0 : i32
    %11 = vector.broadcast %c0_i32_4 : i32 to vector<1x576xi32>
    %12 = arith.cmpi slt, %8, %11 : vector<1x576xi32>
    %c0_i32_5 = arith.constant 0 : i32
    %13 = arith.cmpi slt, %6, %c0_i32_5 : i32
    %14 = vector.broadcast %13 : i1 to vector<1x576xi1>
    %15 = vector.broadcast %14 : vector<1x576xi1> to vector<1x576xi1>
    %16 = arith.xori %12, %15 : vector<1x576xi1>
    %17 = arith.andi %16, %10 : vector<1x576xi1>
    %18 = vector.broadcast %6 : i32 to vector<1x576xi32>
    %19 = arith.addi %8, %18 : vector<1x576xi32>
    %20 = arith.select %17, %19, %8 : vector<1x576xi1>, vector<1x576xi32>
    %c10_i32 = arith.constant 10 : i32
    %21 = vector.broadcast %c10_i32 : i32 to vector<1x576xi32>
    %22 = arith.cmpi sge, %20, %21 : vector<1x576xi32>
    %c26_i32 = arith.constant 26 : i32
    %23 = vector.broadcast %c26_i32 : i32 to vector<1x576xi32>
    %24 = arith.cmpi slt, %20, %23 : vector<1x576xi32>
    %25 = arith.andi %22, %24 : vector<1x576xi1>
    %26 = arith.extui %25 : vector<1x576xi1> to vector<1x576xi32>
    %27 = arith.sitofp %26 : vector<1x576xi32> to vector<1x576xf32>
    %c0_6 = arith.constant 0 : index
    %c0_7 = arith.constant 0 : index
    %c0_8 = arith.constant 0 : index
    %28 = vector.load %arg1[%c0_6, %c0_7, %c0_8] : memref<1x8x576xf32, #tpu.memory_space<vmem>>, vector<1x8x576xf32>
    %29 = vector.shape_cast %28 : vector<1x8x576xf32> to vector<8x576xf32>
    %c0_9 = arith.constant 0 : index
    %c360 = arith.constant 360 : index
    %30 = vector.load %arg19[%c0_9, %c360] : memref<8x1296xf32, #tpu.memory_space<vmem>>, vector<8x576xf32>
    tpu.vector_store %arg19[%c0_9, %c360], %29 {strides = array<i32>} : memref<8x1296xf32, #tpu.memory_space<vmem>>, vector<8x576xf32>,
    %c0_10 = arith.constant 0 : index
    %c0_11 = arith.constant 0 : index
    %31 = vector.load %arg2[%c0_10, %c0_11] : memref<8x25xf32, #tpu.memory_space<vmem>>, vector<8x1xf32>
    %c0_12 = arith.constant 0 : index
    %c286 = arith.constant 286 : index
    %32 = vector.load %arg19[%c0_12, %c286] : memref<8x1296xf32, #tpu.memory_space<vmem>>, vector<8x576xf32>
    %33 = vector.broadcast %31 : vector<8x1xf32> to vector<8x576xf32>
    %34 = arith.mulf %33, %32 : vector<8x576xf32>
    %c0_13 = arith.constant 0 : index
    %c1 = arith.constant 1 : index
    %35 = vector.load %arg2[%c0_13, %c1] : memref<8x25xf32, #tpu.memory_space<vmem>>, vector<8x1xf32>
    %c0_14 = arith.constant 0 : index
    %c287 = arith.constant 287 : index
    %36 = vector.load %arg19[%c0_14, %c287] : memref<8x1296xf32, #tpu.memory_space<vmem>>, vector<8x576xf32>
    %37 = vector.broadcast %35 : vector<8x1xf32> to vector<8x576xf32>
    %38 = arith.mulf %37, %36 : vector<8x576xf32>
    %c0_15 = arith.constant 0 : index
    %c2 = arith.constant 2 : index
    %39 = vector.load %arg2[%c0_15, %c2] : memref<8x25xf32, #tpu.memory_space<vmem>>, vector<8x1xf32>
    %c0_16 = arith.constant 0 : index
    %c288 = arith.constant 288 : index
    %40 = vector.load %arg19[%c0_16, %c288] : memref<8x1296xf32, #tpu.memory_space<vmem>>, vector<8x576xf32>
    %41 = vector.broadcast %39 : vector<8x1xf32> to vector<8x576xf32>
    %42 = arith.mulf %41, %40 : vector<8x576xf32>
    %c0_17 = arith.constant 0 : index
    %c3 = arith.constant 3 : index
    %43 = vector.load %arg2[%c0_17, %c3] : memref<8x25xf32, #tpu.memory_space<vmem>>, vector<8x1xf32>
    %c0_18 = arith.constant 0 : index
    %c289 = arith.constant 289 : index
    %44 = vector.load %arg19[%c0_18, %c289] : memref<8x1296xf32, #tpu.memory_space<vmem>>, vector<8x576xf32>
    %45 = vector.broadcast %43 : vector<8x1xf32> to vector<8x576xf32>
    %46 = arith.mulf %45, %44 : vector<8x576xf32>
    %c0_19 = arith.constant 0 : index
    %c4 = arith.constant 4 : index
    %47 = vector.load %arg2[%c0_19, %c4] : memref<8x25xf32, #tpu.memory_space<vmem>>, vector<8x1xf32>
    %c0_20 = arith.constant 0 : index
    %c290 = arith.constant 290 : index
    %48 = vector.load %arg19[%c0_20, %c290] : memref<8x1296xf32, #tpu.memory_space<vmem>>, vector<8x576xf32>
    %49 = vector.broadcast %47 : vector<8x1xf32> to vector<8x576xf32>
    %50 = arith.mulf %49, %48 : vector<8x576xf32>
    %c0_21 = arith.constant 0 : index
    %c5 = arith.constant 5 : index
    %51 = vector.load %arg2[%c0_21, %c5] : memref<8x25xf32, #tpu.memory_space<vmem>>, vector<8x1xf32>
    %c0_22 = arith.constant 0 : index
    %c322 = arith.constant 322 : index
    %52 = vector.load %arg19[%c0_22, %c322] : memref<8x1296xf32, #tpu.memory_space<vmem>>, vector<8x576xf32>
    %53 = vector.broadcast %51 : vector<8x1xf32> to vector<8x576xf32>
    %54 = arith.mulf %53, %52 : vector<8x576xf32>
    %c0_23 = arith.constant 0 : index
    %c6 = arith.constant 6 : index
    %55 = vector.load %arg2[%c0_23, %c6] : memref<8x25xf32, #tpu.memory_space<vmem>>, vector<8x1xf32>
    %c0_24 = arith.constant 0 : index
    %c323 = arith.constant 323 : index
    %56 = vector.load %arg19[%c0_24, %c323] : memref<8x1296xf32, #tpu.memory_space<vmem>>, vector<8x576xf32>
    %57 = vector.broadcast %55 : vector<8x1xf32> to vector<8x576xf32>
    %58 = arith.mulf %57, %56 : vector<8x576xf32>
    %c0_25 = arith.constant 0 : index
    %c7 = arith.constant 7 : index
    %59 = vector.load %arg2[%c0_25, %c7] : memref<8x25xf32, #tpu.memory_space<vmem>>, vector<8x1xf32>
    %c0_26 = arith.constant 0 : index
    %c324 = arith.constant 324 : index
    %60 = vector.load %arg19[%c0_26, %c324] : memref<8x1296xf32, #tpu.memory_space<vmem>>, vector<8x576xf32>
    %61 = vector.broadcast %59 : vector<8x1xf32> to vector<8x576xf32>
    %62 = arith.mulf %61, %60 : vector<8x576xf32>
    %c0_27 = arith.constant 0 : index
    %c8 = arith.constant 8 : index
    %63 = vector.load %arg2[%c0_27, %c8] : memref<8x25xf32, #tpu.memory_space<vmem>>, vector<8x1xf32>
    %c0_28 = arith.constant 0 : index
    %c325 = arith.constant 325 : index
    %64 = vector.load %arg19[%c0_28, %c325] : memref<8x1296xf32, #tpu.memory_space<vmem>>, vector<8x576xf32>
    %65 = vector.broadcast %63 : vector<8x1xf32> to vector<8x576xf32>
    %66 = arith.mulf %65, %64 : vector<8x576xf32>
    %c0_29 = arith.constant 0 : index
    %c9 = arith.constant 9 : index
    %67 = vector.load %arg2[%c0_29, %c9] : memref<8x25xf32, #tpu.memory_space<vmem>>, vector<8x1xf32>
    %c0_30 = arith.constant 0 : index
    %c326 = arith.constant 326 : index
    %68 = vector.load %arg19[%c0_30, %c326] : memref<8x1296xf32, #tpu.memory_space<vmem>>, vector<8x576xf32>
    %69 = vector.broadcast %67 : vector<8x1xf32> to vector<8x576xf32>
    %70 = arith.mulf %69, %68 : vector<8x576xf32>
    %c0_31 = arith.constant 0 : index
    %c10 = arith.constant 10 : index
    %71 = vector.load %arg2[%c0_31, %c10] : memref<8x25xf32, #tpu.memory_space<vmem>>, vector<8x1xf32>
    %c0_32 = arith.constant 0 : index
    %c358 = arith.constant 358 : index
    %72 = vector.load %arg19[%c0_32, %c358] : memref<8x1296xf32, #tpu.memory_space<vmem>>, vector<8x576xf32>
    %73 = vector.broadcast %71 : vector<8x1xf32> to vector<8x576xf32>
    %74 = arith.mulf %73, %72 : vector<8x576xf32>
    %c0_33 = arith.constant 0 : index
    %c11 = arith.constant 11 : index
    %75 = vector.load %arg2[%c0_33, %c11] : memref<8x25xf32, #tpu.memory_space<vmem>>, vector<8x1xf32>
    %c0_34 = arith.constant 0 : index
    %c359 = arith.constant 359 : index
    %76 = vector.load %arg19[%c0_34, %c359] : memref<8x1296xf32, #tpu.memory_space<vmem>>, vector<8x576xf32>
    %77 = vector.broadcast %75 : vector<8x1xf32> to vector<8x576xf32>
    %78 = arith.mulf %77, %76 : vector<8x576xf32>
    %c0_35 = arith.constant 0 : index
    %c12 = arith.constant 12 : index
    %79 = vector.load %arg2[%c0_35, %c12] : memref<8x25xf32, #tpu.memory_space<vmem>>, vector<8x1xf32>
    %c0_36 = arith.constant 0 : index
    %c360_37 = arith.constant 360 : index
    %80 = vector.load %arg19[%c0_36, %c360_37] : memref<8x1296xf32, #tpu.memory_space<vmem>>, vector<8x576xf32>
    %81 = vector.broadcast %79 : vector<8x1xf32> to vector<8x576xf32>
    %82 = arith.mulf %81, %80 : vector<8x576xf32>
    %c0_38 = arith.constant 0 : index
    %c13 = arith.constant 13 : index
    %83 = vector.load %arg2[%c0_38, %c13] : memref<8x25xf32, #tpu.memory_space<vmem>>, vector<8x1xf32>
    %c0_39 = arith.constant 0 : index
    %c361 = arith.constant 361 : index
    %84 = vector.load %arg19[%c0_39, %c361] : memref<8x1296xf32, #tpu.memory_space<vmem>>, vector<8x576xf32>
    %85 = vector.broadcast %83 : vector<8x1xf32> to vector<8x576xf32>
    %86 = arith.mulf %85, %84 : vector<8x576xf32>
    %c0_40 = arith.constant 0 : index
    %c14 = arith.constant 14 : index
    %87 = vector.load %arg2[%c0_40, %c14] : memref<8x25xf32, #tpu.memory_space<vmem>>, vector<8x1xf32>
    %c0_41 = arith.constant 0 : index
    %c362 = arith.constant 362 : index
    %88 = vector.load %arg19[%c0_41, %c362] : memref<8x1296xf32, #tpu.memory_space<vmem>>, vector<8x576xf32>
    %89 = vector.broadcast %87 : vector<8x1xf32> to vector<8x576xf32>
    %90 = arith.mulf %89, %88 : vector<8x576xf32>
    %c0_42 = arith.constant 0 : index
    %c15 = arith.constant 15 : index
    %91 = vector.load %arg2[%c0_42, %c15] : memref<8x25xf32, #tpu.memory_space<vmem>>, vector<8x1xf32>
    %c0_43 = arith.constant 0 : index
    %c394 = arith.constant 394 : index
    %92 = vector.load %arg19[%c0_43, %c394] : memref<8x1296xf32, #tpu.memory_space<vmem>>, vector<8x576xf32>
    %93 = vector.broadcast %91 : vector<8x1xf32> to vector<8x576xf32>
    %94 = arith.mulf %93, %92 : vector<8x576xf32>
    %c0_44 = arith.constant 0 : index
    %c16 = arith.constant 16 : index
    %95 = vector.load %arg2[%c0_44, %c16] : memref<8x25xf32, #tpu.memory_space<vmem>>, vector<8x1xf32>
    %c0_45 = arith.constant 0 : index
    %c395 = arith.constant 395 : index
    %96 = vector.load %arg19[%c0_45, %c395] : memref<8x1296xf32, #tpu.memory_space<vmem>>, vector<8x576xf32>
    %97 = vector.broadcast %95 : vector<8x1xf32> to vector<8x576xf32>
    %98 = arith.mulf %97, %96 : vector<8x576xf32>
    %c0_46 = arith.constant 0 : index
    %c17 = arith.constant 17 : index
    %99 = vector.load %arg2[%c0_46, %c17] : memref<8x25xf32, #tpu.memory_space<vmem>>, vector<8x1xf32>
    %c0_47 = arith.constant 0 : index
    %c396 = arith.constant 396 : index
    %100 = vector.load %arg19[%c0_47, %c396] : memref<8x1296xf32, #tpu.memory_space<vmem>>, vector<8x576xf32>
    %101 = vector.broadcast %99 : vector<8x1xf32> to vector<8x576xf32>
    %102 = arith.mulf %101, %100 : vector<8x576xf32>
    %c0_48 = arith.constant 0 : index
    %c18 = arith.constant 18 : index
    %103 = vector.load %arg2[%c0_48, %c18] : memref<8x25xf32, #tpu.memory_space<vmem>>, vector<8x1xf32>
    %c0_49 = arith.constant 0 : index
    %c397 = arith.constant 397 : index
    %104 = vector.load %arg19[%c0_49, %c397] : memref<8x1296xf32, #tpu.memory_space<vmem>>, vector<8x576xf32>
    %105 = vector.broadcast %103 : vector<8x1xf32> to vector<8x576xf32>
    %106 = arith.mulf %105, %104 : vector<8x576xf32>
    %c0_50 = arith.constant 0 : index
    %c19 = arith.constant 19 : index
    %107 = vector.load %arg2[%c0_50, %c19] : memref<8x25xf32, #tpu.memory_space<vmem>>, vector<8x1xf32>
    %c0_51 = arith.constant 0 : index
    %c398 = arith.constant 398 : index
    %108 = vector.load %arg19[%c0_51, %c398] : memref<8x1296xf32, #tpu.memory_space<vmem>>, vector<8x576xf32>
    %109 = vector.broadcast %107 : vector<8x1xf32> to vector<8x576xf32>
    %110 = arith.mulf %109, %108 : vector<8x576xf32>
    %c0_52 = arith.constant 0 : index
    %c20 = arith.constant 20 : index
    %111 = vector.load %arg2[%c0_52, %c20] : memref<8x25xf32, #tpu.memory_space<vmem>>, vector<8x1xf32>
    %c0_53 = arith.constant 0 : index
    %c430 = arith.constant 430 : index
    %112 = vector.load %arg19[%c0_53, %c430] : memref<8x1296xf32, #tpu.memory_space<vmem>>, vector<8x576xf32>
    %113 = vector.broadcast %111 : vector<8x1xf32> to vector<8x576xf32>
    %114 = arith.mulf %113, %112 : vector<8x576xf32>
    %c0_54 = arith.constant 0 : index
    %c21 = arith.constant 21 : index
    %115 = vector.load %arg2[%c0_54, %c21] : memref<8x25xf32, #tpu.memory_space<vmem>>, vector<8x1xf32>
    %c0_55 = arith.constant 0 : index
    %c431 = arith.constant 431 : index
    %116 = vector.load %arg19[%c0_55, %c431] : memref<8x1296xf32, #tpu.memory_space<vmem>>, vector<8x576xf32>
    %117 = vector.broadcast %115 : vector<8x1xf32> to vector<8x576xf32>
    %118 = arith.mulf %117, %116 : vector<8x576xf32>
    %c0_56 = arith.constant 0 : index
    %c22 = arith.constant 22 : index
    %119 = vector.load %arg2[%c0_56, %c22] : memref<8x25xf32, #tpu.memory_space<vmem>>, vector<8x1xf32>
    %c0_57 = arith.constant 0 : index
    %c432 = arith.constant 432 : index
    %120 = vector.load %arg19[%c0_57, %c432] : memref<8x1296xf32, #tpu.memory_space<vmem>>, vector<8x576xf32>
    %121 = vector.broadcast %119 : vector<8x1xf32> to vector<8x576xf32>
    %122 = arith.mulf %121, %120 : vector<8x576xf32>
    %c0_58 = arith.constant 0 : index
    %c23 = arith.constant 23 : index
    %123 = vector.load %arg2[%c0_58, %c23] : memref<8x25xf32, #tpu.memory_space<vmem>>, vector<8x1xf32>
    %c0_59 = arith.constant 0 : index
    %c433 = arith.constant 433 : index
    %124 = vector.load %arg19[%c0_59, %c433] : memref<8x1296xf32, #tpu.memory_space<vmem>>, vector<8x576xf32>
    %125 = vector.broadcast %123 : vector<8x1xf32> to vector<8x576xf32>
    %126 = arith.mulf %125, %124 : vector<8x576xf32>
    %c0_60 = arith.constant 0 : index
    %c24 = arith.constant 24 : index
    %127 = vector.load %arg2[%c0_60, %c24] : memref<8x25xf32, #tpu.memory_space<vmem>>, vector<8x1xf32>
    %c0_61 = arith.constant 0 : index
    %c434 = arith.constant 434 : index
    %128 = vector.load %arg19[%c0_61, %c434] : memref<8x1296xf32, #tpu.memory_space<vmem>>, vector<8x576xf32>
    %129 = vector.broadcast %127 : vector<8x1xf32> to vector<8x576xf32>
    %130 = arith.mulf %129, %128 : vector<8x576xf32>
    %131 = arith.addf %34, %38 : vector<8x576xf32>
    %132 = arith.addf %42, %46 : vector<8x576xf32>
    %133 = arith.addf %50, %54 : vector<8x576xf32>
    %134 = arith.addf %58, %62 : vector<8x576xf32>
    %135 = arith.addf %66, %70 : vector<8x576xf32>
    %136 = arith.addf %74, %78 : vector<8x576xf32>
    %137 = arith.addf %82, %86 : vector<8x576xf32>
    %138 = arith.addf %90, %94 : vector<8x576xf32>
    %139 = arith.addf %98, %102 : vector<8x576xf32>
    %140 = arith.addf %106, %110 : vector<8x576xf32>
    %141 = arith.addf %114, %118 : vector<8x576xf32>
    %142 = arith.addf %122, %126 : vector<8x576xf32>
    %143 = arith.addf %131, %132 : vector<8x576xf32>
    %144 = arith.addf %133, %134 : vector<8x576xf32>
    %145 = arith.addf %135, %136 : vector<8x576xf32>
    %146 = arith.addf %137, %138 : vector<8x576xf32>
    %147 = arith.addf %139, %140 : vector<8x576xf32>
    %148 = arith.addf %141, %142 : vector<8x576xf32>
    %149 = arith.addf %143, %144 : vector<8x576xf32>
    %150 = arith.addf %145, %146 : vector<8x576xf32>
    %151 = arith.addf %147, %148 : vector<8x576xf32>
    %152 = arith.addf %149, %150 : vector<8x576xf32>
    %153 = arith.addf %151, %130 : vector<8x576xf32>
    %154 = arith.addf %152, %153 : vector<8x576xf32>
    %c0_62 = arith.constant 0 : index
    %c0_63 = arith.constant 0 : index
    %155 = vector.load %arg3[%c0_62, %c0_63] : memref<8x1xf32, #tpu.memory_space<vmem>>, vector<8x1xf32>
    %156 = vector.broadcast %155 : vector<8x1xf32> to vector<8x576xf32>
    %157 = arith.addf %154, %156 : vector<8x576xf32>
    %158 = vector.broadcast %27 : vector<1x576xf32> to vector<8x576xf32>
    %159 = arith.mulf %157, %158 : vector<8x576xf32>
    %c0_64 = arith.constant 0 : index
    %c360_65 = arith.constant 360 : index
    %160 = vector.load %arg19[%c0_64, %c360_65] : memref<8x1296xf32, #tpu.memory_space<vmem>>, vector<8x576xf32>
    tpu.vector_store %arg19[%c0_64, %c360_65], %159 {strides = array<i32>} : memref<8x1296xf32, #tpu.memory_space<vmem>>, vector<8x576xf32>,
    %c0_66 = arith.constant 0 : index
    %c350 = arith.constant 350 : index
    %161 = vector.load %arg19[%c0_66, %c350] : memref<8x1296xf32, #tpu.memory_space<vmem>>, vector<8x576xf32>
    %c0_67 = arith.constant 0 : index
    %c0_68 = arith.constant 0 : index
    %162 = vector.load %arg12[%c0_67, %c0_68] : memref<8x21xf32, #tpu.memory_space<vmem>>, vector<8x1xf32>
    %163 = vector.broadcast %162 : vector<8x1xf32> to vector<8x576xf32>
    %164 = arith.mulf %163, %161 : vector<8x576xf32>
    %c0_69 = arith.constant 0 : index
    %c351 = arith.constant 351 : index
    %165 = vector.load %arg19[%c0_69, %c351] : memref<8x1296xf32, #tpu.memory_space<vmem>>, vector<8x576xf32>
    %c0_70 = arith.constant 0 : index
    %c1_71 = arith.constant 1 : index
    %166 = vector.load %arg12[%c0_70, %c1_71] : memref<8x21xf32, #tpu.memory_space<vmem>>, vector<8x1xf32>
    %167 = vector.broadcast %166 : vector<8x1xf32> to vector<8x576xf32>
    %168 = arith.mulf %167, %165 : vector<8x576xf32>
    %c0_72 = arith.constant 0 : index
    %c352 = arith.constant 352 : index
    %169 = vector.load %arg19[%c0_72, %c352] : memref<8x1296xf32, #tpu.memory_space<vmem>>, vector<8x576xf32>
    %c0_73 = arith.constant 0 : index
    %c2_74 = arith.constant 2 : index
    %170 = vector.load %arg12[%c0_73, %c2_74] : memref<8x21xf32, #tpu.memory_space<vmem>>, vector<8x1xf32>
    %171 = vector.broadcast %170 : vector<8x1xf32> to vector<8x576xf32>
    %172 = arith.mulf %171, %169 : vector<8x576xf32>
    %c0_75 = arith.constant 0 : index
    %c353 = arith.constant 353 : index
    %173 = vector.load %arg19[%c0_75, %c353] : memref<8x1296xf32, #tpu.memory_space<vmem>>, vector<8x576xf32>
    %c0_76 = arith.constant 0 : index
    %c3_77 = arith.constant 3 : index
    %174 = vector.load %arg12[%c0_76, %c3_77] : memref<8x21xf32, #tpu.memory_space<vmem>>, vector<8x1xf32>
    %175 = vector.broadcast %174 : vector<8x1xf32> to vector<8x576xf32>
    %176 = arith.mulf %175, %173 : vector<8x576xf32>
    %c0_78 = arith.constant 0 : index
    %c354 = arith.constant 354 : index
    %177 = vector.load %arg19[%c0_78, %c354] : memref<8x1296xf32, #tpu.memory_space<vmem>>, vector<8x576xf32>
    %c0_79 = arith.constant 0 : index
    %c4_80 = arith.constant 4 : index
    %178 = vector.load %arg12[%c0_79, %c4_80] : memref<8x21xf32, #tpu.memory_space<vmem>>, vector<8x1xf32>
    %179 = vector.broadcast %178 : vector<8x1xf32> to vector<8x576xf32>
    %180 = arith.mulf %179, %177 : vector<8x576xf32>
    %c0_81 = arith.constant 0 : index
    %c355 = arith.constant 355 : index
    %181 = vector.load %arg19[%c0_81, %c355] : memref<8x1296xf32, #tpu.memory_space<vmem>>, vector<8x576xf32>
    %c0_82 = arith.constant 0 : index
    %c0_83 = arith.constant 0 : index
    %182 = vector.load %arg8[%c0_82, %c0_83] : memref<8x11xf32, #tpu.memory_space<vmem>>, vector<8x1xf32>
    %183 = vector.broadcast %182 : vector<8x1xf32> to vector<8x576xf32>
    %184 = arith.mulf %183, %181 : vector<8x576xf32>
    %c0_84 = arith.constant 0 : index
    %c5_85 = arith.constant 5 : index
    %185 = vector.load %arg12[%c0_84, %c5_85] : memref<8x21xf32, #tpu.memory_space<vmem>>, vector<8x1xf32>
    %186 = vector.broadcast %185 : vector<8x1xf32> to vector<8x576xf32>
    %187 = arith.mulf %186, %181 : vector<8x576xf32>
    %c0_86 = arith.constant 0 : index
    %c356 = arith.constant 356 : index
    %188 = vector.load %arg19[%c0_86, %c356] : memref<8x1296xf32, #tpu.memory_space<vmem>>, vector<8x576xf32>
    %c0_87 = arith.constant 0 : index
    %c1_88 = arith.constant 1 : index
    %189 = vector.load %arg8[%c0_87, %c1_88] : memref<8x11xf32, #tpu.memory_space<vmem>>, vector<8x1xf32>
    %190 = vector.broadcast %189 : vector<8x1xf32> to vector<8x576xf32>
    %191 = arith.mulf %190, %188 : vector<8x576xf32>
    %c0_89 = arith.constant 0 : index
    %c6_90 = arith.constant 6 : index
    %192 = vector.load %arg12[%c0_89, %c6_90] : memref<8x21xf32, #tpu.memory_space<vmem>>, vector<8x1xf32>
    %193 = vector.broadcast %192 : vector<8x1xf32> to vector<8x576xf32>
    %194 = arith.mulf %193, %188 : vector<8x576xf32>
    %c0_91 = arith.constant 0 : index
    %c357 = arith.constant 357 : index
    %195 = vector.load %arg19[%c0_91, %c357] : memref<8x1296xf32, #tpu.memory_space<vmem>>, vector<8x576xf32>
    %c0_92 = arith.constant 0 : index
    %c0_93 = arith.constant 0 : index
    %196 = vector.load %arg4[%c0_92, %c0_93] : memref<8x7xf32, #tpu.memory_space<vmem>>, vector<8x1xf32>
    %197 = vector.broadcast %196 : vector<8x1xf32> to vector<8x576xf32>
    %198 = arith.mulf %197, %195 : vector<8x576xf32>
    %c0_94 = arith.constant 0 : index
    %c2_95 = arith.constant 2 : index
    %199 = vector.load %arg8[%c0_94, %c2_95] : memref<8x11xf32, #tpu.memory_space<vmem>>, vector<8x1xf32>
    %200 = vector.broadcast %199 : vector<8x1xf32> to vector<8x576xf32>
    %201 = arith.mulf %200, %195 : vector<8x576xf32>
    %c0_96 = arith.constant 0 : index
    %c7_97 = arith.constant 7 : index
    %202 = vector.load %arg12[%c0_96, %c7_97] : memref<8x21xf32, #tpu.memory_space<vmem>>, vector<8x1xf32>
    %203 = vector.broadcast %202 : vector<8x1xf32> to vector<8x576xf32>
    %204 = arith.mulf %203, %195 : vector<8x576xf32>
    %c0_98 = arith.constant 0 : index
    %c358_99 = arith.constant 358 : index
    %205 = vector.load %arg19[%c0_98, %c358_99] : memref<8x1296xf32, #tpu.memory_space<vmem>>, vector<8x576xf32>
    %c0_100 = arith.constant 0 : index
    %c1_101 = arith.constant 1 : index
    %206 = vector.load %arg4[%c0_100, %c1_101] : memref<8x7xf32, #tpu.memory_space<vmem>>, vector<8x1xf32>
    %207 = vector.broadcast %206 : vector<8x1xf32> to vector<8x576xf32>
    %208 = arith.mulf %207, %205 : vector<8x576xf32>
    %c0_102 = arith.constant 0 : index
    %c3_103 = arith.constant 3 : index
    %209 = vector.load %arg8[%c0_102, %c3_103] : memref<8x11xf32, #tpu.memory_space<vmem>>, vector<8x1xf32>
    %210 = vector.broadcast %209 : vector<8x1xf32> to vector<8x576xf32>
    %211 = arith.mulf %210, %205 : vector<8x576xf32>
    %c0_104 = arith.constant 0 : index
    %c8_105 = arith.constant 8 : index
    %212 = vector.load %arg12[%c0_104, %c8_105] : memref<8x21xf32, #tpu.memory_space<vmem>>, vector<8x1xf32>
    %213 = vector.broadcast %212 : vector<8x1xf32> to vector<8x576xf32>
    %214 = arith.mulf %213, %205 : vector<8x576xf32>
    %c0_106 = arith.constant 0 : index
    %c359_107 = arith.constant 359 : index
    %215 = vector.load %arg19[%c0_106, %c359_107] : memref<8x1296xf32, #tpu.memory_space<vmem>>, vector<8x576xf32>
    %c0_108 = arith.constant 0 : index
    %c2_109 = arith.constant 2 : index
    %216 = vector.load %arg4[%c0_108, %c2_109] : memref<8x7xf32, #tpu.memory_space<vmem>>, vector<8x1xf32>
    %217 = vector.broadcast %216 : vector<8x1xf32> to vector<8x576xf32>
    %218 = arith.mulf %217, %215 : vector<8x576xf32>
    %c0_110 = arith.constant 0 : index
    %c4_111 = arith.constant 4 : index
    %219 = vector.load %arg8[%c0_110, %c4_111] : memref<8x11xf32, #tpu.memory_space<vmem>>, vector<8x1xf32>
    %220 = vector.broadcast %219 : vector<8x1xf32> to vector<8x576xf32>
    %221 = arith.mulf %220, %215 : vector<8x576xf32>
    %c0_112 = arith.constant 0 : index
    %c9_113 = arith.constant 9 : index
    %222 = vector.load %arg12[%c0_112, %c9_113] : memref<8x21xf32, #tpu.memory_space<vmem>>, vector<8x1xf32>
    %223 = vector.broadcast %222 : vector<8x1xf32> to vector<8x576xf32>
    %224 = arith.mulf %223, %215 : vector<8x576xf32>
    %c0_114 = arith.constant 0 : index
    %c360_115 = arith.constant 360 : index
    %225 = vector.load %arg19[%c0_114, %c360_115] : memref<8x1296xf32, #tpu.memory_space<vmem>>, vector<8x576xf32>
    %c0_116 = arith.constant 0 : index
    %c3_117 = arith.constant 3 : index
    %226 = vector.load %arg4[%c0_116, %c3_117] : memref<8x7xf32, #tpu.memory_space<vmem>>, vector<8x1xf32>
    %227 = vector.broadcast %226 : vector<8x1xf32> to vector<8x576xf32>
    %228 = arith.mulf %227, %225 : vector<8x576xf32>
    %c0_118 = arith.constant 0 : index
    %c5_119 = arith.constant 5 : index
    %229 = vector.load %arg8[%c0_118, %c5_119] : memref<8x11xf32, #tpu.memory_space<vmem>>, vector<8x1xf32>
    %230 = vector.broadcast %229 : vector<8x1xf32> to vector<8x576xf32>
    %231 = arith.mulf %230, %225 : vector<8x576xf32>
    %c0_120 = arith.constant 0 : index
    %c10_121 = arith.constant 10 : index
    %232 = vector.load %arg12[%c0_120, %c10_121] : memref<8x21xf32, #tpu.memory_space<vmem>>, vector<8x1xf32>
    %233 = vector.broadcast %232 : vector<8x1xf32> to vector<8x576xf32>
    %234 = arith.mulf %233, %225 : vector<8x576xf32>
    %c0_122 = arith.constant 0 : index
    %c361_123 = arith.constant 361 : index
    %235 = vector.load %arg19[%c0_122, %c361_123] : memref<8x1296xf32, #tpu.memory_space<vmem>>, vector<8x576xf32>
    %c0_124 = arith.constant 0 : index
    %c4_125 = arith.constant 4 : index
    %236 = vector.load %arg4[%c0_124, %c4_125] : memref<8x7xf32, #tpu.memory_space<vmem>>, vector<8x1xf32>
    %237 = vector.broadcast %236 : vector<8x1xf32> to vector<8x576xf32>
    %238 = arith.mulf %237, %235 : vector<8x576xf32>
    %c0_126 = arith.constant 0 : index
    %c6_127 = arith.constant 6 : index
    %239 = vector.load %arg8[%c0_126, %c6_127] : memref<8x11xf32, #tpu.memory_space<vmem>>, vector<8x1xf32>
    %240 = vector.broadcast %239 : vector<8x1xf32> to vector<8x576xf32>
    %241 = arith.mulf %240, %235 : vector<8x576xf32>
    %c0_128 = arith.constant 0 : index
    %c11_129 = arith.constant 11 : index
    %242 = vector.load %arg12[%c0_128, %c11_129] : memref<8x21xf32, #tpu.memory_space<vmem>>, vector<8x1xf32>
    %243 = vector.broadcast %242 : vector<8x1xf32> to vector<8x576xf32>
    %244 = arith.mulf %243, %235 : vector<8x576xf32>
    %c0_130 = arith.constant 0 : index
    %c362_131 = arith.constant 362 : index
    %245 = vector.load %arg19[%c0_130, %c362_131] : memref<8x1296xf32, #tpu.memory_space<vmem>>, vector<8x576xf32>
    %c0_132 = arith.constant 0 : index
    %c5_133 = arith.constant 5 : index
    %246 = vector.load %arg4[%c0_132, %c5_133] : memref<8x7xf32, #tpu.memory_space<vmem>>, vector<8x1xf32>
    %247 = vector.broadcast %246 : vector<8x1xf32> to vector<8x576xf32>
    %248 = arith.mulf %247, %245 : vector<8x576xf32>
    %c0_134 = arith.constant 0 : index
    %c7_135 = arith.constant 7 : index
    %249 = vector.load %arg8[%c0_134, %c7_135] : memref<8x11xf32, #tpu.memory_space<vmem>>, vector<8x1xf32>
    %250 = vector.broadcast %249 : vector<8x1xf32> to vector<8x576xf32>
    %251 = arith.mulf %250, %245 : vector<8x576xf32>
    %c0_136 = arith.constant 0 : index
    %c12_137 = arith.constant 12 : index
    %252 = vector.load %arg12[%c0_136, %c12_137] : memref<8x21xf32, #tpu.memory_space<vmem>>, vector<8x1xf32>
    %253 = vector.broadcast %252 : vector<8x1xf32> to vector<8x576xf32>
    %254 = arith.mulf %253, %245 : vector<8x576xf32>
    %c0_138 = arith.constant 0 : index
    %c363 = arith.constant 363 : index
    %255 = vector.load %arg19[%c0_138, %c363] : memref<8x1296xf32, #tpu.memory_space<vmem>>, vector<8x576xf32>
    %c0_139 = arith.constant 0 : index
    %c6_140 = arith.constant 6 : index
    %256 = vector.load %arg4[%c0_139, %c6_140] : memref<8x7xf32, #tpu.memory_space<vmem>>, vector<8x1xf32>
    %257 = vector.broadcast %256 : vector<8x1xf32> to vector<8x576xf32>
    %258 = arith.mulf %257, %255 : vector<8x576xf32>
    %c0_141 = arith.constant 0 : index
    %c8_142 = arith.constant 8 : index
    %259 = vector.load %arg8[%c0_141, %c8_142] : memref<8x11xf32, #tpu.memory_space<vmem>>, vector<8x1xf32>
    %260 = vector.broadcast %259 : vector<8x1xf32> to vector<8x576xf32>
    %261 = arith.mulf %260, %255 : vector<8x576xf32>
    %c0_143 = arith.constant 0 : index
    %c13_144 = arith.constant 13 : index
    %262 = vector.load %arg12[%c0_143, %c13_144] : memref<8x21xf32, #tpu.memory_space<vmem>>, vector<8x1xf32>
    %263 = vector.broadcast %262 : vector<8x1xf32> to vector<8x576xf32>
    %264 = arith.mulf %263, %255 : vector<8x576xf32>
    %c0_145 = arith.constant 0 : index
    %c364 = arith.constant 364 : index
    %265 = vector.load %arg19[%c0_145, %c364] : memref<8x1296xf32, #tpu.memory_space<vmem>>, vector<8x576xf32>
    %c0_146 = arith.constant 0 : index
    %c9_147 = arith.constant 9 : index
    %266 = vector.load %arg8[%c0_146, %c9_147] : memref<8x11xf32, #tpu.memory_space<vmem>>, vector<8x1xf32>
    %267 = vector.broadcast %266 : vector<8x1xf32> to vector<8x576xf32>
    %268 = arith.mulf %267, %265 : vector<8x576xf32>
    %c0_148 = arith.constant 0 : index
    %c14_149 = arith.constant 14 : index
    %269 = vector.load %arg12[%c0_148, %c14_149] : memref<8x21xf32, #tpu.memory_space<vmem>>, vector<8x1xf32>
    %270 = vector.broadcast %269 : vector<8x1xf32> to vector<8x576xf32>
    %271 = arith.mulf %270, %265 : vector<8x576xf32>
    %c0_150 = arith.constant 0 : index
    %c365 = arith.constant 365 : index
    %272 = vector.load %arg19[%c0_150, %c365] : memref<8x1296xf32, #tpu.memory_space<vmem>>, vector<8x576xf32>
    %c0_151 = arith.constant 0 : index
    %c10_152 = arith.constant 10 : index
    %273 = vector.load %arg8[%c0_151, %c10_152] : memref<8x11xf32, #tpu.memory_space<vmem>>, vector<8x1xf32>
    %274 = vector.broadcast %273 : vector<8x1xf32> to vector<8x576xf32>
    %275 = arith.mulf %274, %272 : vector<8x576xf32>
    %c0_153 = arith.constant 0 : index
    %c15_154 = arith.constant 15 : index
    %276 = vector.load %arg12[%c0_153, %c15_154] : memref<8x21xf32, #tpu.memory_space<vmem>>, vector<8x1xf32>
    %277 = vector.broadcast %276 : vector<8x1xf32> to vector<8x576xf32>
    %278 = arith.mulf %277, %272 : vector<8x576xf32>
    %c0_155 = arith.constant 0 : index
    %c366 = arith.constant 366 : index
    %279 = vector.load %arg19[%c0_155, %c366] : memref<8x1296xf32, #tpu.memory_space<vmem>>, vector<8x576xf32>
    %c0_156 = arith.constant 0 : index
    %c16_157 = arith.constant 16 : index
    %280 = vector.load %arg12[%c0_156, %c16_157] : memref<8x21xf32, #tpu.memory_space<vmem>>, vector<8x1xf32>
    %281 = vector.broadcast %280 : vector<8x1xf32> to vector<8x576xf32>
    %282 = arith.mulf %281, %279 : vector<8x576xf32>
    %c0_158 = arith.constant 0 : index
    %c367 = arith.constant 367 : index
    %283 = vector.load %arg19[%c0_158, %c367] : memref<8x1296xf32, #tpu.memory_space<vmem>>, vector<8x576xf32>
    %c0_159 = arith.constant 0 : index
    %c17_160 = arith.constant 17 : index
    %284 = vector.load %arg12[%c0_159, %c17_160] : memref<8x21xf32, #tpu.memory_space<vmem>>, vector<8x1xf32>
    %285 = vector.broadcast %284 : vector<8x1xf32> to vector<8x576xf32>
    %286 = arith.mulf %285, %283 : vector<8x576xf32>
    %c0_161 = arith.constant 0 : index
    %c368 = arith.constant 368 : index
    %287 = vector.load %arg19[%c0_161, %c368] : memref<8x1296xf32, #tpu.memory_space<vmem>>, vector<8x576xf32>
    %c0_162 = arith.constant 0 : index
    %c18_163 = arith.constant 18 : index
    %288 = vector.load %arg12[%c0_162, %c18_163] : memref<8x21xf32, #tpu.memory_space<vmem>>, vector<8x1xf32>
    %289 = vector.broadcast %288 : vector<8x1xf32> to vector<8x576xf32>
    %290 = arith.mulf %289, %287 : vector<8x576xf32>
    %c0_164 = arith.constant 0 : index
    %c369 = arith.constant 369 : index
    %291 = vector.load %arg19[%c0_164, %c369] : memref<8x1296xf32, #tpu.memory_space<vmem>>, vector<8x576xf32>
    %c0_165 = arith.constant 0 : index
    %c19_166 = arith.constant 19 : index
    %292 = vector.load %arg12[%c0_165, %c19_166] : memref<8x21xf32, #tpu.memory_space<vmem>>, vector<8x1xf32>
    %293 = vector.broadcast %292 : vector<8x1xf32> to vector<8x576xf32>
    %294 = arith.mulf %293, %291 : vector<8x576xf32>
    %c0_167 = arith.constant 0 : index
    %c370 = arith.constant 370 : index
    %295 = vector.load %arg19[%c0_167, %c370] : memref<8x1296xf32, #tpu.memory_space<vmem>>, vector<8x576xf32>
    %c0_168 = arith.constant 0 : index
    %c20_169 = arith.constant 20 : index
    %296 = vector.load %arg12[%c0_168, %c20_169] : memref<8x21xf32, #tpu.memory_space<vmem>>, vector<8x1xf32>
    %297 = vector.broadcast %296 : vector<8x1xf32> to vector<8x576xf32>
    %298 = arith.mulf %297, %295 : vector<8x576xf32>
    %299 = arith.addf %198, %208 : vector<8x576xf32>
    %300 = arith.addf %218, %228 : vector<8x576xf32>
    %301 = arith.addf %238, %248 : vector<8x576xf32>
    %302 = arith.addf %299, %300 : vector<8x576xf32>
    %303 = arith.addf %301, %258 : vector<8x576xf32>
    %304 = arith.addf %302, %303 : vector<8x576xf32>
    %c0_170 = arith.constant 0 : index
    %c0_171 = arith.constant 0 : index
    %305 = vector.load %arg5[%c0_170, %c0_171] : memref<8x1xf32, #tpu.memory_space<vmem>>, vector<8x1xf32>
    %306 = vector.broadcast %305 : vector<8x1xf32> to vector<8x576xf32>
    %307 = arith.addf %304, %306 : vector<8x576xf32>
    %308 = arith.addf %184, %191 : vector<8x576xf32>
    %309 = arith.addf %201, %211 : vector<8x576xf32>
    %310 = arith.addf %221, %231 : vector<8x576xf32>
    %311 = arith.addf %241, %251 : vector<8x576xf32>
    %312 = arith.addf %261, %268 : vector<8x576xf32>
    %313 = arith.addf %308, %309 : vector<8x576xf32>
    %314 = arith.addf %310, %311 : vector<8x576xf32>
    %315 = arith.addf %312, %275 : vector<8x576xf32>
    %316 = arith.addf %313, %314 : vector<8x576xf32>
    %317 = arith.addf %316, %315 : vector<8x576xf32>
    %c0_172 = arith.constant 0 : index
    %c0_173 = arith.constant 0 : index
    %318 = vector.load %arg9[%c0_172, %c0_173] : memref<8x1xf32, #tpu.memory_space<vmem>>, vector<8x1xf32>
    %319 = vector.broadcast %318 : vector<8x1xf32> to vector<8x576xf32>
    %320 = arith.addf %317, %319 : vector<8x576xf32>
    %321 = arith.addf %164, %168 : vector<8x576xf32>
    %322 = arith.addf %172, %176 : vector<8x576xf32>
    %323 = arith.addf %180, %187 : vector<8x576xf32>
    %324 = arith.addf %194, %204 : vector<8x576xf32>
    %325 = arith.addf %214, %224 : vector<8x576xf32>
    %326 = arith.addf %234, %244 : vector<8x576xf32>
    %327 = arith.addf %254, %264 : vector<8x576xf32>
    %328 = arith.addf %271, %278 : vector<8x576xf32>
    %329 = arith.addf %282, %286 : vector<8x576xf32>
    %330 = arith.addf %290, %294 : vector<8x576xf32>
    %331 = arith.addf %321, %322 : vector<8x576xf32>
    %332 = arith.addf %323, %324 : vector<8x576xf32>
    %333 = arith.addf %325, %326 : vector<8x576xf32>
    %334 = arith.addf %327, %328 : vector<8x576xf32>
    %335 = arith.addf %329, %330 : vector<8x576xf32>
    %336 = arith.addf %331, %332 : vector<8x576xf32>
    %337 = arith.addf %333, %334 : vector<8x576xf32>
    %338 = arith.addf %335, %298 : vector<8x576xf32>
    %339 = arith.addf %336, %337 : vector<8x576xf32>
    %340 = arith.addf %339, %338 : vector<8x576xf32>
    %c0_174 = arith.constant 0 : index
    %c0_175 = arith.constant 0 : index
    %341 = vector.load %arg13[%c0_174, %c0_175] : memref<8x1xf32, #tpu.memory_space<vmem>>, vector<8x1xf32>
    %342 = vector.broadcast %341 : vector<8x1xf32> to vector<8x576xf32>
    %343 = arith.addf %340, %342 : vector<8x576xf32>
    %c0_176 = arith.constant 0 : index
    %c360_177 = arith.constant 360 : index
    %344 = vector.load %arg19[%c0_176, %c360_177] : memref<8x1296xf32, #tpu.memory_space<vmem>>, vector<8x576xf32>
    tpu.vector_store %arg19[%c0_176, %c360_177], %307 {strides = array<i32>} : memref<8x1296xf32, #tpu.memory_space<vmem>>, vector<8x576xf32>,
    %c0_178 = arith.constant 0 : index
    %c0_179 = arith.constant 0 : index
    %345 = vector.load %arg6[%c0_178, %c0_179] : memref<8x7xf32, #tpu.memory_space<vmem>>, vector<8x1xf32>
    %c0_180 = arith.constant 0 : index
    %c252 = arith.constant 252 : index
    %346 = vector.load %arg19[%c0_180, %c252] : memref<8x1296xf32, #tpu.memory_space<vmem>>, vector<8x576xf32>
    %347 = vector.broadcast %345 : vector<8x1xf32> to vector<8x576xf32>
    %348 = arith.mulf %347, %346 : vector<8x576xf32>
    %c0_181 = arith.constant 0 : index
    %c1_182 = arith.constant 1 : index
    %349 = vector.load %arg6[%c0_181, %c1_182] : memref<8x7xf32, #tpu.memory_space<vmem>>, vector<8x1xf32>
    %c0_183 = arith.constant 0 : index
    %c288_184 = arith.constant 288 : index
    %350 = vector.load %arg19[%c0_183, %c288_184] : memref<8x1296xf32, #tpu.memory_space<vmem>>, vector<8x576xf32>
    %351 = vector.broadcast %349 : vector<8x1xf32> to vector<8x576xf32>
    %352 = arith.mulf %351, %350 : vector<8x576xf32>
    %c0_185 = arith.constant 0 : index
    %c2_186 = arith.constant 2 : index
    %353 = vector.load %arg6[%c0_185, %c2_186] : memref<8x7xf32, #tpu.memory_space<vmem>>, vector<8x1xf32>
    %c0_187 = arith.constant 0 : index
    %c324_188 = arith.constant 324 : index
    %354 = vector.load %arg19[%c0_187, %c324_188] : memref<8x1296xf32, #tpu.memory_space<vmem>>, vector<8x576xf32>
    %355 = vector.broadcast %353 : vector<8x1xf32> to vector<8x576xf32>
    %356 = arith.mulf %355, %354 : vector<8x576xf32>
    %c0_189 = arith.constant 0 : index
    %c3_190 = arith.constant 3 : index
    %357 = vector.load %arg6[%c0_189, %c3_190] : memref<8x7xf32, #tpu.memory_space<vmem>>, vector<8x1xf32>
    %c0_191 = arith.constant 0 : index
    %c360_192 = arith.constant 360 : index
    %358 = vector.load %arg19[%c0_191, %c360_192] : memref<8x1296xf32, #tpu.memory_space<vmem>>, vector<8x576xf32>
    %359 = vector.broadcast %357 : vector<8x1xf32> to vector<8x576xf32>
    %360 = arith.mulf %359, %358 : vector<8x576xf32>
    %c0_193 = arith.constant 0 : index
    %c4_194 = arith.constant 4 : index
    %361 = vector.load %arg6[%c0_193, %c4_194] : memref<8x7xf32, #tpu.memory_space<vmem>>, vector<8x1xf32>
    %c0_195 = arith.constant 0 : index
    %c396_196 = arith.constant 396 : index
    %362 = vector.load %arg19[%c0_195, %c396_196] : memref<8x1296xf32, #tpu.memory_space<vmem>>, vector<8x576xf32>
    %363 = vector.broadcast %361 : vector<8x1xf32> to vector<8x576xf32>
    %364 = arith.mulf %363, %362 : vector<8x576xf32>
    %c0_197 = arith.constant 0 : index
    %c5_198 = arith.constant 5 : index
    %365 = vector.load %arg6[%c0_197, %c5_198] : memref<8x7xf32, #tpu.memory_space<vmem>>, vector<8x1xf32>
    %c0_199 = arith.constant 0 : index
    %c432_200 = arith.constant 432 : index
    %366 = vector.load %arg19[%c0_199, %c432_200] : memref<8x1296xf32, #tpu.memory_space<vmem>>, vector<8x576xf32>
    %367 = vector.broadcast %365 : vector<8x1xf32> to vector<8x576xf32>
    %368 = arith.mulf %367, %366 : vector<8x576xf32>
    %c0_201 = arith.constant 0 : index
    %c6_202 = arith.constant 6 : index
    %369 = vector.load %arg6[%c0_201, %c6_202] : memref<8x7xf32, #tpu.memory_space<vmem>>, vector<8x1xf32>
    %c0_203 = arith.constant 0 : index
    %c468 = arith.constant 468 : index
    %370 = vector.load %arg19[%c0_203, %c468] : memref<8x1296xf32, #tpu.memory_space<vmem>>, vector<8x576xf32>
    %371 = vector.broadcast %369 : vector<8x1xf32> to vector<8x576xf32>
    %372 = arith.mulf %371, %370 : vector<8x576xf32>
    %373 = arith.addf %348, %352 : vector<8x576xf32>
    %374 = arith.addf %356, %360 : vector<8x576xf32>
    %375 = arith.addf %364, %368 : vector<8x576xf32>
    %376 = arith.addf %373, %374 : vector<8x576xf32>
    %377 = arith.addf %375, %372 : vector<8x576xf32>
    %378 = arith.addf %376, %377 : vector<8x576xf32>
    %c0_204 = arith.constant 0 : index
    %c0_205 = arith.constant 0 : index
    %379 = vector.load %arg7[%c0_204, %c0_205] : memref<8x1xf32, #tpu.memory_space<vmem>>, vector<8x1xf32>
    %380 = vector.broadcast %379 : vector<8x1xf32> to vector<8x576xf32>
    %381 = arith.addf %378, %380 : vector<8x576xf32>
    %c0_206 = arith.constant 0 : index
    %c360_207 = arith.constant 360 : index
    %382 = vector.load %arg19[%c0_206, %c360_207] : memref<8x1296xf32, #tpu.memory_space<vmem>>, vector<8x576xf32>
    tpu.vector_store %arg19[%c0_206, %c360_207], %320 {strides = array<i32>} : memref<8x1296xf32, #tpu.memory_space<vmem>>, vector<8x576xf32>,
    %c0_208 = arith.constant 0 : index
    %c0_209 = arith.constant 0 : index
    %383 = vector.load %arg10[%c0_208, %c0_209] : memref<8x11xf32, #tpu.memory_space<vmem>>, vector<8x1xf32>
    %c0_210 = arith.constant 0 : index
    %c180 = arith.constant 180 : index
    %384 = vector.load %arg19[%c0_210, %c180] : memref<8x1296xf32, #tpu.memory_space<vmem>>, vector<8x576xf32>
    %385 = vector.broadcast %383 : vector<8x1xf32> to vector<8x576xf32>
    %386 = arith.mulf %385, %384 : vector<8x576xf32>
    %c0_211 = arith.constant 0 : index
    %c1_212 = arith.constant 1 : index
    %387 = vector.load %arg10[%c0_211, %c1_212] : memref<8x11xf32, #tpu.memory_space<vmem>>, vector<8x1xf32>
    %c0_213 = arith.constant 0 : index
    %c216 = arith.constant 216 : index
    %388 = vector.load %arg19[%c0_213, %c216] : memref<8x1296xf32, #tpu.memory_space<vmem>>, vector<8x576xf32>
    %389 = vector.broadcast %387 : vector<8x1xf32> to vector<8x576xf32>
    %390 = arith.mulf %389, %388 : vector<8x576xf32>
    %c0_214 = arith.constant 0 : index
    %c2_215 = arith.constant 2 : index
    %391 = vector.load %arg10[%c0_214, %c2_215] : memref<8x11xf32, #tpu.memory_space<vmem>>, vector<8x1xf32>
    %c0_216 = arith.constant 0 : index
    %c252_217 = arith.constant 252 : index
    %392 = vector.load %arg19[%c0_216, %c252_217] : memref<8x1296xf32, #tpu.memory_space<vmem>>, vector<8x576xf32>
    %393 = vector.broadcast %391 : vector<8x1xf32> to vector<8x576xf32>
    %394 = arith.mulf %393, %392 : vector<8x576xf32>
    %c0_218 = arith.constant 0 : index
    %c3_219 = arith.constant 3 : index
    %395 = vector.load %arg10[%c0_218, %c3_219] : memref<8x11xf32, #tpu.memory_space<vmem>>, vector<8x1xf32>
    %c0_220 = arith.constant 0 : index
    %c288_221 = arith.constant 288 : index
    %396 = vector.load %arg19[%c0_220, %c288_221] : memref<8x1296xf32, #tpu.memory_space<vmem>>, vector<8x576xf32>
    %397 = vector.broadcast %395 : vector<8x1xf32> to vector<8x576xf32>
    %398 = arith.mulf %397, %396 : vector<8x576xf32>
    %c0_222 = arith.constant 0 : index
    %c4_223 = arith.constant 4 : index
    %399 = vector.load %arg10[%c0_222, %c4_223] : memref<8x11xf32, #tpu.memory_space<vmem>>, vector<8x1xf32>
    %c0_224 = arith.constant 0 : index
    %c324_225 = arith.constant 324 : index
    %400 = vector.load %arg19[%c0_224, %c324_225] : memref<8x1296xf32, #tpu.memory_space<vmem>>, vector<8x576xf32>
    %401 = vector.broadcast %399 : vector<8x1xf32> to vector<8x576xf32>
    %402 = arith.mulf %401, %400 : vector<8x576xf32>
    %c0_226 = arith.constant 0 : index
    %c5_227 = arith.constant 5 : index
    %403 = vector.load %arg10[%c0_226, %c5_227] : memref<8x11xf32, #tpu.memory_space<vmem>>, vector<8x1xf32>
    %c0_228 = arith.constant 0 : index
    %c360_229 = arith.constant 360 : index
    %404 = vector.load %arg19[%c0_228, %c360_229] : memref<8x1296xf32, #tpu.memory_space<vmem>>, vector<8x576xf32>
    %405 = vector.broadcast %403 : vector<8x1xf32> to vector<8x576xf32>
    %406 = arith.mulf %405, %404 : vector<8x576xf32>
    %c0_230 = arith.constant 0 : index
    %c6_231 = arith.constant 6 : index
    %407 = vector.load %arg10[%c0_230, %c6_231] : memref<8x11xf32, #tpu.memory_space<vmem>>, vector<8x1xf32>
    %c0_232 = arith.constant 0 : index
    %c396_233 = arith.constant 396 : index
    %408 = vector.load %arg19[%c0_232, %c396_233] : memref<8x1296xf32, #tpu.memory_space<vmem>>, vector<8x576xf32>
    %409 = vector.broadcast %407 : vector<8x1xf32> to vector<8x576xf32>
    %410 = arith.mulf %409, %408 : vector<8x576xf32>
    %c0_234 = arith.constant 0 : index
    %c7_235 = arith.constant 7 : index
    %411 = vector.load %arg10[%c0_234, %c7_235] : memref<8x11xf32, #tpu.memory_space<vmem>>, vector<8x1xf32>
    %c0_236 = arith.constant 0 : index
    %c432_237 = arith.constant 432 : index
    %412 = vector.load %arg19[%c0_236, %c432_237] : memref<8x1296xf32, #tpu.memory_space<vmem>>, vector<8x576xf32>
    %413 = vector.broadcast %411 : vector<8x1xf32> to vector<8x576xf32>
    %414 = arith.mulf %413, %412 : vector<8x576xf32>
    %c0_238 = arith.constant 0 : index
    %c8_239 = arith.constant 8 : index
    %415 = vector.load %arg10[%c0_238, %c8_239] : memref<8x11xf32, #tpu.memory_space<vmem>>, vector<8x1xf32>
    %c0_240 = arith.constant 0 : index
    %c468_241 = arith.constant 468 : index
    %416 = vector.load %arg19[%c0_240, %c468_241] : memref<8x1296xf32, #tpu.memory_space<vmem>>, vector<8x576xf32>
    %417 = vector.broadcast %415 : vector<8x1xf32> to vector<8x576xf32>
    %418 = arith.mulf %417, %416 : vector<8x576xf32>
    %c0_242 = arith.constant 0 : index
    %c9_243 = arith.constant 9 : index
    %419 = vector.load %arg10[%c0_242, %c9_243] : memref<8x11xf32, #tpu.memory_space<vmem>>, vector<8x1xf32>
    %c0_244 = arith.constant 0 : index
    %c504 = arith.constant 504 : index
    %420 = vector.load %arg19[%c0_244, %c504] : memref<8x1296xf32, #tpu.memory_space<vmem>>, vector<8x576xf32>
    %421 = vector.broadcast %419 : vector<8x1xf32> to vector<8x576xf32>
    %422 = arith.mulf %421, %420 : vector<8x576xf32>
    %c0_245 = arith.constant 0 : index
    %c10_246 = arith.constant 10 : index
    %423 = vector.load %arg10[%c0_245, %c10_246] : memref<8x11xf32, #tpu.memory_space<vmem>>, vector<8x1xf32>
    %c0_247 = arith.constant 0 : index
    %c540 = arith.constant 540 : index
    %424 = vector.load %arg19[%c0_247, %c540] : memref<8x1296xf32, #tpu.memory_space<vmem>>, vector<8x576xf32>
    %425 = vector.broadcast %423 : vector<8x1xf32> to vector<8x576xf32>
    %426 = arith.mulf %425, %424 : vector<8x576xf32>
    %427 = arith.addf %386, %390 : vector<8x576xf32>
    %428 = arith.addf %394, %398 : vector<8x576xf32>
    %429 = arith.addf %402, %406 : vector<8x576xf32>
    %430 = arith.addf %410, %414 : vector<8x576xf32>
    %431 = arith.addf %418, %422 : vector<8x576xf32>
    %432 = arith.addf %427, %428 : vector<8x576xf32>
    %433 = arith.addf %429, %430 : vector<8x576xf32>
    %434 = arith.addf %431, %426 : vector<8x576xf32>
    %435 = arith.addf %432, %433 : vector<8x576xf32>
    %436 = arith.addf %435, %434 : vector<8x576xf32>
    %c0_248 = arith.constant 0 : index
    %c0_249 = arith.constant 0 : index
    %437 = vector.load %arg11[%c0_248, %c0_249] : memref<8x1xf32, #tpu.memory_space<vmem>>, vector<8x1xf32>
    %438 = vector.broadcast %437 : vector<8x1xf32> to vector<8x576xf32>
    %439 = arith.addf %436, %438 : vector<8x576xf32>
    %c0_250 = arith.constant 0 : index
    %c360_251 = arith.constant 360 : index
    %440 = vector.load %arg19[%c0_250, %c360_251] : memref<8x1296xf32, #tpu.memory_space<vmem>>, vector<8x576xf32>
    tpu.vector_store %arg19[%c0_250, %c360_251], %343 {strides = array<i32>} : memref<8x1296xf32, #tpu.memory_space<vmem>>, vector<8x576xf32>,
    %c0_252 = arith.constant 0 : index
    %c0_253 = arith.constant 0 : index
    %441 = vector.load %arg14[%c0_252, %c0_253] : memref<8x21xf32, #tpu.memory_space<vmem>>, vector<8x1xf32>
    %c0_254 = arith.constant 0 : index
    %c0_255 = arith.constant 0 : index
    %442 = vector.load %arg19[%c0_254, %c0_255] : memref<8x1296xf32, #tpu.memory_space<vmem>>, vector<8x576xf32>
    %443 = vector.broadcast %441 : vector<8x1xf32> to vector<8x576xf32>
    %444 = arith.mulf %443, %442 : vector<8x576xf32>
    %c0_256 = arith.constant 0 : index
    %c1_257 = arith.constant 1 : index
    %445 = vector.load %arg14[%c0_256, %c1_257] : memref<8x21xf32, #tpu.memory_space<vmem>>, vector<8x1xf32>
    %c0_258 = arith.constant 0 : index
    %c36 = arith.constant 36 : index
    %446 = vector.load %arg19[%c0_258, %c36] : memref<8x1296xf32, #tpu.memory_space<vmem>>, vector<8x576xf32>
    %447 = vector.broadcast %445 : vector<8x1xf32> to vector<8x576xf32>
    %448 = arith.mulf %447, %446 : vector<8x576xf32>
    %c0_259 = arith.constant 0 : index
    %c2_260 = arith.constant 2 : index
    %449 = vector.load %arg14[%c0_259, %c2_260] : memref<8x21xf32, #tpu.memory_space<vmem>>, vector<8x1xf32>
    %c0_261 = arith.constant 0 : index
    %c72 = arith.constant 72 : index
    %450 = vector.load %arg19[%c0_261, %c72] : memref<8x1296xf32, #tpu.memory_space<vmem>>, vector<8x576xf32>
    %451 = vector.broadcast %449 : vector<8x1xf32> to vector<8x576xf32>
    %452 = arith.mulf %451, %450 : vector<8x576xf32>
    %c0_262 = arith.constant 0 : index
    %c3_263 = arith.constant 3 : index
    %453 = vector.load %arg14[%c0_262, %c3_263] : memref<8x21xf32, #tpu.memory_space<vmem>>, vector<8x1xf32>
    %c0_264 = arith.constant 0 : index
    %c108 = arith.constant 108 : index
    %454 = vector.load %arg19[%c0_264, %c108] : memref<8x1296xf32, #tpu.memory_space<vmem>>, vector<8x576xf32>
    %455 = vector.broadcast %453 : vector<8x1xf32> to vector<8x576xf32>
    %456 = arith.mulf %455, %454 : vector<8x576xf32>
    %c0_265 = arith.constant 0 : index
    %c4_266 = arith.constant 4 : index
    %457 = vector.load %arg14[%c0_265, %c4_266] : memref<8x21xf32, #tpu.memory_space<vmem>>, vector<8x1xf32>
    %c0_267 = arith.constant 0 : index
    %c144 = arith.constant 144 : index
    %458 = vector.load %arg19[%c0_267, %c144] : memref<8x1296xf32, #tpu.memory_space<vmem>>, vector<8x576xf32>
    %459 = vector.broadcast %457 : vector<8x1xf32> to vector<8x576xf32>
    %460 = arith.mulf %459, %458 : vector<8x576xf32>
    %c0_268 = arith.constant 0 : index
    %c5_269 = arith.constant 5 : index
    %461 = vector.load %arg14[%c0_268, %c5_269] : memref<8x21xf32, #tpu.memory_space<vmem>>, vector<8x1xf32>
    %c0_270 = arith.constant 0 : index
    %c180_271 = arith.constant 180 : index
    %462 = vector.load %arg19[%c0_270, %c180_271] : memref<8x1296xf32, #tpu.memory_space<vmem>>, vector<8x576xf32>
    %463 = vector.broadcast %461 : vector<8x1xf32> to vector<8x576xf32>
    %464 = arith.mulf %463, %462 : vector<8x576xf32>
    %c0_272 = arith.constant 0 : index
    %c6_273 = arith.constant 6 : index
    %465 = vector.load %arg14[%c0_272, %c6_273] : memref<8x21xf32, #tpu.memory_space<vmem>>, vector<8x1xf32>
    %c0_274 = arith.constant 0 : index
    %c216_275 = arith.constant 216 : index
    %466 = vector.load %arg19[%c0_274, %c216_275] : memref<8x1296xf32, #tpu.memory_space<vmem>>, vector<8x576xf32>
    %467 = vector.broadcast %465 : vector<8x1xf32> to vector<8x576xf32>
    %468 = arith.mulf %467, %466 : vector<8x576xf32>
    %c0_276 = arith.constant 0 : index
    %c7_277 = arith.constant 7 : index
    %469 = vector.load %arg14[%c0_276, %c7_277] : memref<8x21xf32, #tpu.memory_space<vmem>>, vector<8x1xf32>
    %c0_278 = arith.constant 0 : index
    %c252_279 = arith.constant 252 : index
    %470 = vector.load %arg19[%c0_278, %c252_279] : memref<8x1296xf32, #tpu.memory_space<vmem>>, vector<8x576xf32>
    %471 = vector.broadcast %469 : vector<8x1xf32> to vector<8x576xf32>
    %472 = arith.mulf %471, %470 : vector<8x576xf32>
    %c0_280 = arith.constant 0 : index
    %c8_281 = arith.constant 8 : index
    %473 = vector.load %arg14[%c0_280, %c8_281] : memref<8x21xf32, #tpu.memory_space<vmem>>, vector<8x1xf32>
    %c0_282 = arith.constant 0 : index
    %c288_283 = arith.constant 288 : index
    %474 = vector.load %arg19[%c0_282, %c288_283] : memref<8x1296xf32, #tpu.memory_space<vmem>>, vector<8x576xf32>
    %475 = vector.broadcast %473 : vector<8x1xf32> to vector<8x576xf32>
    %476 = arith.mulf %475, %474 : vector<8x576xf32>
    %c0_284 = arith.constant 0 : index
    %c9_285 = arith.constant 9 : index
    %477 = vector.load %arg14[%c0_284, %c9_285] : memref<8x21xf32, #tpu.memory_space<vmem>>, vector<8x1xf32>
    %c0_286 = arith.constant 0 : index
    %c324_287 = arith.constant 324 : index
    %478 = vector.load %arg19[%c0_286, %c324_287] : memref<8x1296xf32, #tpu.memory_space<vmem>>, vector<8x576xf32>
    %479 = vector.broadcast %477 : vector<8x1xf32> to vector<8x576xf32>
    %480 = arith.mulf %479, %478 : vector<8x576xf32>
    %c0_288 = arith.constant 0 : index
    %c10_289 = arith.constant 10 : index
    %481 = vector.load %arg14[%c0_288, %c10_289] : memref<8x21xf32, #tpu.memory_space<vmem>>, vector<8x1xf32>
    %c0_290 = arith.constant 0 : index
    %c360_291 = arith.constant 360 : index
    %482 = vector.load %arg19[%c0_290, %c360_291] : memref<8x1296xf32, #tpu.memory_space<vmem>>, vector<8x576xf32>
    %483 = vector.broadcast %481 : vector<8x1xf32> to vector<8x576xf32>
    %484 = arith.mulf %483, %482 : vector<8x576xf32>
    %c0_292 = arith.constant 0 : index
    %c11_293 = arith.constant 11 : index
    %485 = vector.load %arg14[%c0_292, %c11_293] : memref<8x21xf32, #tpu.memory_space<vmem>>, vector<8x1xf32>
    %c0_294 = arith.constant 0 : index
    %c396_295 = arith.constant 396 : index
    %486 = vector.load %arg19[%c0_294, %c396_295] : memref<8x1296xf32, #tpu.memory_space<vmem>>, vector<8x576xf32>
    %487 = vector.broadcast %485 : vector<8x1xf32> to vector<8x576xf32>
    %488 = arith.mulf %487, %486 : vector<8x576xf32>
    %c0_296 = arith.constant 0 : index
    %c12_297 = arith.constant 12 : index
    %489 = vector.load %arg14[%c0_296, %c12_297] : memref<8x21xf32, #tpu.memory_space<vmem>>, vector<8x1xf32>
    %c0_298 = arith.constant 0 : index
    %c432_299 = arith.constant 432 : index
    %490 = vector.load %arg19[%c0_298, %c432_299] : memref<8x1296xf32, #tpu.memory_space<vmem>>, vector<8x576xf32>
    %491 = vector.broadcast %489 : vector<8x1xf32> to vector<8x576xf32>
    %492 = arith.mulf %491, %490 : vector<8x576xf32>
    %c0_300 = arith.constant 0 : index
    %c13_301 = arith.constant 13 : index
    %493 = vector.load %arg14[%c0_300, %c13_301] : memref<8x21xf32, #tpu.memory_space<vmem>>, vector<8x1xf32>
    %c0_302 = arith.constant 0 : index
    %c468_303 = arith.constant 468 : index
    %494 = vector.load %arg19[%c0_302, %c468_303] : memref<8x1296xf32, #tpu.memory_space<vmem>>, vector<8x576xf32>
    %495 = vector.broadcast %493 : vector<8x1xf32> to vector<8x576xf32>
    %496 = arith.mulf %495, %494 : vector<8x576xf32>
    %c0_304 = arith.constant 0 : index
    %c14_305 = arith.constant 14 : index
    %497 = vector.load %arg14[%c0_304, %c14_305] : memref<8x21xf32, #tpu.memory_space<vmem>>, vector<8x1xf32>
    %c0_306 = arith.constant 0 : index
    %c504_307 = arith.constant 504 : index
    %498 = vector.load %arg19[%c0_306, %c504_307] : memref<8x1296xf32, #tpu.memory_space<vmem>>, vector<8x576xf32>
    %499 = vector.broadcast %497 : vector<8x1xf32> to vector<8x576xf32>
    %500 = arith.mulf %499, %498 : vector<8x576xf32>
    %c0_308 = arith.constant 0 : index
    %c15_309 = arith.constant 15 : index
    %501 = vector.load %arg14[%c0_308, %c15_309] : memref<8x21xf32, #tpu.memory_space<vmem>>, vector<8x1xf32>
    %c0_310 = arith.constant 0 : index
    %c540_311 = arith.constant 540 : index
    %502 = vector.load %arg19[%c0_310, %c540_311] : memref<8x1296xf32, #tpu.memory_space<vmem>>, vector<8x576xf32>
    %503 = vector.broadcast %501 : vector<8x1xf32> to vector<8x576xf32>
    %504 = arith.mulf %503, %502 : vector<8x576xf32>
    %c0_312 = arith.constant 0 : index
    %c16_313 = arith.constant 16 : index
    %505 = vector.load %arg14[%c0_312, %c16_313] : memref<8x21xf32, #tpu.memory_space<vmem>>, vector<8x1xf32>
    %c0_314 = arith.constant 0 : index
    %c576 = arith.constant 576 : index
    %506 = vector.load %arg19[%c0_314, %c576] : memref<8x1296xf32, #tpu.memory_space<vmem>>, vector<8x576xf32>
    %507 = vector.broadcast %505 : vector<8x1xf32> to vector<8x576xf32>
    %508 = arith.mulf %507, %506 : vector<8x576xf32>
    %c0_315 = arith.constant 0 : index
    %c17_316 = arith.constant 17 : index
    %509 = vector.load %arg14[%c0_315, %c17_316] : memref<8x21xf32, #tpu.memory_space<vmem>>, vector<8x1xf32>
    %c0_317 = arith.constant 0 : index
    %c612 = arith.constant 612 : index
    %510 = vector.load %arg19[%c0_317, %c612] : memref<8x1296xf32, #tpu.memory_space<vmem>>, vector<8x576xf32>
    %511 = vector.broadcast %509 : vector<8x1xf32> to vector<8x576xf32>
    %512 = arith.mulf %511, %510 : vector<8x576xf32>
    %c0_318 = arith.constant 0 : index
    %c18_319 = arith.constant 18 : index
    %513 = vector.load %arg14[%c0_318, %c18_319] : memref<8x21xf32, #tpu.memory_space<vmem>>, vector<8x1xf32>
    %c0_320 = arith.constant 0 : index
    %c648 = arith.constant 648 : index
    %514 = vector.load %arg19[%c0_320, %c648] : memref<8x1296xf32, #tpu.memory_space<vmem>>, vector<8x576xf32>
    %515 = vector.broadcast %513 : vector<8x1xf32> to vector<8x576xf32>
    %516 = arith.mulf %515, %514 : vector<8x576xf32>
    %c0_321 = arith.constant 0 : index
    %c19_322 = arith.constant 19 : index
    %517 = vector.load %arg14[%c0_321, %c19_322] : memref<8x21xf32, #tpu.memory_space<vmem>>, vector<8x1xf32>
    %c0_323 = arith.constant 0 : index
    %c684 = arith.constant 684 : index
    %518 = vector.load %arg19[%c0_323, %c684] : memref<8x1296xf32, #tpu.memory_space<vmem>>, vector<8x576xf32>
    %519 = vector.broadcast %517 : vector<8x1xf32> to vector<8x576xf32>
    %520 = arith.mulf %519, %518 : vector<8x576xf32>
    %c0_324 = arith.constant 0 : index
    %c20_325 = arith.constant 20 : index
    %521 = vector.load %arg14[%c0_324, %c20_325] : memref<8x21xf32, #tpu.memory_space<vmem>>, vector<8x1xf32>
    %c0_326 = arith.constant 0 : index
    %c720 = arith.constant 720 : index
    %522 = vector.load %arg19[%c0_326, %c720] : memref<8x1296xf32, #tpu.memory_space<vmem>>, vector<8x576xf32>
    %523 = vector.broadcast %521 : vector<8x1xf32> to vector<8x576xf32>
    %524 = arith.mulf %523, %522 : vector<8x576xf32>
    %525 = arith.addf %444, %448 : vector<8x576xf32>
    %526 = arith.addf %452, %456 : vector<8x576xf32>
    %527 = arith.addf %460, %464 : vector<8x576xf32>
    %528 = arith.addf %468, %472 : vector<8x576xf32>
    %529 = arith.addf %476, %480 : vector<8x576xf32>
    %530 = arith.addf %484, %488 : vector<8x576xf32>
    %531 = arith.addf %492, %496 : vector<8x576xf32>
    %532 = arith.addf %500, %504 : vector<8x576xf32>
    %533 = arith.addf %508, %512 : vector<8x576xf32>
    %534 = arith.addf %516, %520 : vector<8x576xf32>
    %535 = arith.addf %525, %526 : vector<8x576xf32>
    %536 = arith.addf %527, %528 : vector<8x576xf32>
    %537 = arith.addf %529, %530 : vector<8x576xf32>
    %538 = arith.addf %531, %532 : vector<8x576xf32>
    %539 = arith.addf %533, %534 : vector<8x576xf32>
    %540 = arith.addf %535, %536 : vector<8x576xf32>
    %541 = arith.addf %537, %538 : vector<8x576xf32>
    %542 = arith.addf %539, %524 : vector<8x576xf32>
    %543 = arith.addf %540, %541 : vector<8x576xf32>
    %544 = arith.addf %543, %542 : vector<8x576xf32>
    %c0_327 = arith.constant 0 : index
    %c0_328 = arith.constant 0 : index
    %545 = vector.load %arg15[%c0_327, %c0_328] : memref<8x1xf32, #tpu.memory_space<vmem>>, vector<8x1xf32>
    %546 = vector.broadcast %545 : vector<8x1xf32> to vector<8x576xf32>
    %547 = arith.addf %544, %546 : vector<8x576xf32>
    %548 = arith.addf %159, %381 : vector<8x576xf32>
    %549 = arith.addf %548, %439 : vector<8x576xf32>
    %550 = arith.addf %549, %547 : vector<8x576xf32>
    %c0_329 = arith.constant 0 : index
    %c0_330 = arith.constant 0 : index
    %551 = vector.load %arg16[%c0_329, %c0_330] : memref<8x8xbf16, #tpu.memory_space<vmem>>, vector<8x8xbf16>
    %552 = arith.truncf %550 : vector<8x576xf32> to vector<8x576xbf16>
    %cst_331 = arith.constant dense<0.000000e+00> : vector<8x576xf32>
    %553 = tpu.matmul %551, %552, %cst_331 {dimension_numbers = #tpu.dot_dimension_numbers<[1], [0], [0], [1], [0, 0, 1, 1], [], []>} : vector<8x8xbf16>, vector<8x576xbf16>, vector<8x576xf32> -> vector<8x576xf32>
    %c0_332 = arith.constant 0 : index
    %c0_333 = arith.constant 0 : index
    %554 = vector.load %arg17[%c0_332, %c0_333] : memref<8x1xf32, #tpu.memory_space<vmem>>, vector<8x1xf32>
    %555 = vector.broadcast %554 : vector<8x1xf32> to vector<8x576xf32>
    %556 = arith.addf %553, %555 : vector<8x576xf32>
    %557 = arith.mulf %556, %29 : vector<8x576xf32>
    %c0_334 = arith.constant 0 : index
    %c0_335 = arith.constant 0 : index
    %c0_336 = arith.constant 0 : index
    %558 = vector.load %arg18[%c0_334, %c0_335, %c0_336] : memref<1x8x576xf32, #tpu.memory_space<vmem>>, vector<1x8x576xf32>
    %559 = vector.shape_cast %558 : vector<1x8x576xf32> to vector<8x576xf32>
    %560 = vector.shape_cast %557 : vector<8x576xf32> to vector<1x8x576xf32>
    tpu.vector_store %arg18[%c0_334, %c0_335, %c0_336], %560 {strides = array<i32>} : memref<1x8x576xf32, #tpu.memory_space<vmem>>, vector<1x8x576xf32>,
    return
  }
  func.func @transform_0(%arg0: i32) -> (i32, i32, i32) {
    %c0_i32 = arith.constant 0 : i32
    %c0_i32_0 = arith.constant 0 : i32
    %c0_i32_1 = arith.constant 0 : i32
    return %arg0, %c0_i32, %c0_i32_0 : i32, i32, i32
  }
  func.func @transform_1(%arg0: i32) -> (i32, i32) {
    %c0_i32 = arith.constant 0 : i32
    %c0_i32_0 = arith.constant 0 : i32
    %c0_i32_1 = arith.constant 0 : i32
    return %c0_i32, %c0_i32_0 : i32, i32
  }
  func.func @transform_2(%arg0: i32) -> (i32, i32) {
    %c0_i32 = arith.constant 0 : i32
    %c0_i32_0 = arith.constant 0 : i32
    %c0_i32_1 = arith.constant 0 : i32
    return %c0_i32, %c0_i32_0 : i32, i32
  }
  func.func @transform_3(%arg0: i32) -> (i32, i32) {
    %c0_i32 = arith.constant 0 : i32
    %c0_i32_0 = arith.constant 0 : i32
    %c0_i32_1 = arith.constant 0 : i32
    return %c0_i32, %c0_i32_0 : i32, i32
  }
  func.func @transform_4(%arg0: i32) -> (i32, i32) {
    %c0_i32 = arith.constant 0 : i32
    %c0_i32_0 = arith.constant 0 : i32
    %c0_i32_1 = arith.constant 0 : i32
    return %c0_i32, %c0_i32_0 : i32, i32
  }
  func.func @transform_5(%arg0: i32) -> (i32, i32) {
    %c0_i32 = arith.constant 0 : i32
    %c0_i32_0 = arith.constant 0 : i32
    %c0_i32_1 = arith.constant 0 : i32
    return %c0_i32, %c0_i32_0 : i32, i32
  }
  func.func @transform_6(%arg0: i32) -> (i32, i32) {
    %c0_i32 = arith.constant 0 : i32
    %c0_i32_0 = arith.constant 0 : i32
    %c0_i32_1 = arith.constant 0 : i32
    return %c0_i32, %c0_i32_0 : i32, i32
  }
  func.func @transform_7(%arg0: i32) -> (i32, i32) {
    %c0_i32 = arith.constant 0 : i32
    %c0_i32_0 = arith.constant 0 : i32
    %c0_i32_1 = arith.constant 0 : i32
    return %c0_i32, %c0_i32_0 : i32, i32
  }
  func.func @transform_8(%arg0: i32) -> (i32, i32) {
    %c0_i32 = arith.constant 0 : i32
    %c0_i32_0 = arith.constant 0 : i32
    %c0_i32_1 = arith.constant 0 : i32
    return %c0_i32, %c0_i32_0 : i32, i32
  }
  func.func @transform_9(%arg0: i32) -> (i32, i32) {
    %c0_i32 = arith.constant 0 : i32
    %c0_i32_0 = arith.constant 0 : i32
    %c0_i32_1 = arith.constant 0 : i32
    return %c0_i32, %c0_i32_0 : i32, i32
  }
  func.func @transform_10(%arg0: i32) -> (i32, i32) {
    %c0_i32 = arith.constant 0 : i32
    %c0_i32_0 = arith.constant 0 : i32
    %c0_i32_1 = arith.constant 0 : i32
    return %c0_i32, %c0_i32_0 : i32, i32
  }
  func.func @transform_11(%arg0: i32) -> (i32, i32) {
    %c0_i32 = arith.constant 0 : i32
    %c0_i32_0 = arith.constant 0 : i32
    %c0_i32_1 = arith.constant 0 : i32
    return %c0_i32, %c0_i32_0 : i32, i32
  }
  func.func @transform_12(%arg0: i32) -> (i32, i32) {
    %c0_i32 = arith.constant 0 : i32
    %c0_i32_0 = arith.constant 0 : i32
    %c0_i32_1 = arith.constant 0 : i32
    return %c0_i32, %c0_i32_0 : i32, i32
  }
  func.func @transform_13(%arg0: i32) -> (i32, i32) {
    %c0_i32 = arith.constant 0 : i32
    %c0_i32_0 = arith.constant 0 : i32
    %c0_i32_1 = arith.constant 0 : i32
    return %c0_i32, %c0_i32_0 : i32, i32
  }
  func.func @transform_14(%arg0: i32) -> (i32, i32) {
    %c0_i32 = arith.constant 0 : i32
    %c0_i32_0 = arith.constant 0 : i32
    %c0_i32_1 = arith.constant 0 : i32
    return %c0_i32, %c0_i32_0 : i32, i32
  }
  func.func @transform_15(%arg0: i32) -> (i32, i32) {
    %c0_i32 = arith.constant 0 : i32
    %c0_i32_0 = arith.constant 0 : i32
    %c0_i32_1 = arith.constant 0 : i32
    return %c0_i32, %c0_i32_0 : i32, i32
  }
  func.func @transform_16(%arg0: i32) -> (i32, i32) {
    %c0_i32 = arith.constant 0 : i32
    %c0_i32_0 = arith.constant 0 : i32
    %c0_i32_1 = arith.constant 0 : i32
    return %c0_i32, %c0_i32_0 : i32, i32
  }
  func.func @transform_17(%arg0: i32) -> (i32, i32, i32) {
    %c0_i32 = arith.constant 0 : i32
    %c0_i32_0 = arith.constant 0 : i32
    %c0_i32_1 = arith.constant 0 : i32
    return %arg0, %c0_i32, %c0_i32_0 : i32, i32, i32
  }
}

</mosaic_0001>

<bundles_post_ra>
// kernel: tpu_custom_call.1
= control target key start
LH: loop header
LB: loop body
LE: loop exit
PB: predicated region body
PF: predicated region fallthrough
CT: control target
= control target key end

     0   :  { %s10101_s0 = inlined_call_operand.hbm [shape: f32[2,8,576], index: 0, kind: input, shape index: {}]   ;;  %s10102_s1 = inlined_call_operand.vmem [shape: f32[8,25], index: 1, kind: input, shape index: {}]   ;;  %s10103_s2 = inlined_call_operand.vmem [shape: f32[8,1], index: 2, kind: input, shape index: {}]   ;;  %s10104_s3 = inlined_call_operand.vmem [shape: f32[8,7], index: 3, kind: input, shape index: {}]   ;;  %s10105_s4 = inlined_call_operand.vmem [shape: f32[8,1], index: 4, kind: input, shape index: {}]   ;;  %s10106_s5 = inlined_call_operand.vmem [shape: f32[8,7], index: 5, kind: input, shape index: {}]   ;;  %s10107_s6 = inlined_call_operand.vmem [shape: f32[8,1], index: 6, kind: input, shape index: {}]   ;;  %s10108_s7 = inlined_call_operand.vmem [shape: f32[8,11], index: 7, kind: input, shape index: {}]   ;;  %s10109_s8 = inlined_call_operand.vmem [shape: f32[8,1], index: 8, kind: input, shape index: {}]   ;;  %s10110_s9 = inlined_call_operand.vmem [shape: f32[8,11], index: 9, kind: input, shape index: {}]   ;;  %s10111_s10 = inlined_call_operand.vmem [shape: f32[8,1], index: 10, kind: input, shape index: {}]   ;;  %s10112_s11 = inlined_call_operand.vmem [shape: f32[8,21], index: 11, kind: input, shape index: {}]   ;;  %s10113_s12 = inlined_call_operand.vmem [shape: f32[8,1], index: 12, kind: input, shape index: {}]   ;;  %s10114_s13 = inlined_call_operand.vmem [shape: f32[8,21], index: 13, kind: input, shape index: {}]   ;;  %s10115_s14 = inlined_call_operand.vmem [shape: f32[8,1], index: 14, kind: input, shape index: {}]   ;;  %s10116_s15 = inlined_call_operand.vmem [shape: bf16[8,8], index: 15, kind: input, shape index: {}]   ;;  %s10117_s16 = inlined_call_operand.vmem [shape: f32[8,1], index: 16, kind: input, shape index: {}]   ;;  %s10118_s17 = inlined_call_operand.hbm [shape: f32[2,8,576], index: 17, kind: output, shape index: {}]  }
   0x1   :  { %10279 = sst [smem:[#allocation81_spill]] %s10101_s0 }
   0x2   :  { %10280 = sst [smem:[#allocation82_spill]] %s10102_s1 }
   0x3   :  { %10281 = sst [smem:[#allocation83_spill]] %s10115_s14 }
   0x4   :  { %10282 = sst [smem:[#allocation84_spill]] %s10116_s15 }
   0x5   :  { %10283 = sst [smem:[#allocation85_spill]] %s10117_s16 }
   0x6   :  { %10284 = sst [smem:[#allocation86_spill]] %s10118_s17 }
   0x7   :  { %22 = vsyncpa [#allocation4], 0 }
   0x8   :  { %24 = vsyncpa [#allocation4 + $0x1], 0 }
   0x9   :  { %25 = vsyncpa [#allocation5], 0 }
   0xa   :  { %27 = vsyncpa [#allocation5 + $0x1], 0  ;;  %s6137_s24 = smov 0   ;;  %s6139_s25 = smov 0  }
   0xb   :  { %s6141_s26 = smov 0   ;;  %s6143_s27 = smov 0  }
   0xc LB: > { %10285 = sst [smem:[#allocation9_spill]] %s5985_s24  ;;  %s6158_s28 = sadd.s32 4294967295, %s5997_s27   ;;  %s5997_s27 = sphi %s6143_s27, %s10591_s27   ;;  %s5993_s26 = sphi %s6141_s26, %s10593_s26   ;;  %s5989_s25 = sphi %s6139_s25, %s10595_s25   ;;  %s5985_s24 = sphi %s6137_s24, %s10594_s24  }
   0xd   : > { %10286 = sst [smem:[#allocation10_spill]] %s5993_s26  ;;  %s5655_s29 = sadd.s32 4294967294, %s5997_s27  }
   0xe   : > { %10287 = sst [smem:[#allocation11_spill]] %s6158_s28  ;;  %s6162_s0 = sadd.s32 1, %s5997_s27  }
   0xf   : > { %10288 = sst [smem:[#allocation12_spill]] %s6162_s0  ;;  %s40_s30 = sadd.s32 1, %s5993_s26 }
  0x10   : > { %s37_s18 = ssub.s32 %s5997_s27, %s6162_s0  ;;  %p47_p0 = scmp.ne.s32.totalorder %s5993_s26, %s5989_s25 }
  0x11   : > { %p38_p1 = scmp.eq.s32.totalorder %s37_s18, 0  ;;  %p48_p2 = scmp.eq.s32.totalorder %s5997_s27, 0 }
  0x12   : > { %p53_p3 = scmp.ne.s32.totalorder %s5989_s25, %s5985_s24  ;;  %p54_p4 = scmp.eq.s32.totalorder %s6158_s28, 0 }
  0x13   : > { %s6174_s19 = scalar_select %p38_p1, %s5993_s26, %s40_s30  }
  0x14   : > { %p49_p5 = por %p48_p2, %p47_p0  ;;  %p6176_p6 = por %p54_p4, %p53_p3 }
  0x15   : > { %10289 = sst [smem:[#allocation13_spill]] %s6174_s19  ;;  %p413_p7 = scmp.eq.s32.totalorder %s6158_s28, 1 }
  0x16   : > { %p419_p8 = scmp.eq.s32.totalorder %s5655_s29, 1  ;;  %p5657_p9 = scmp.ge.s32.totalorder %s5997_s27, 2 }
  0x17   : > { %p5689_p10 = scmp.lt.s32.totalorder %s5997_s27, 2  ;;  %p6183_p11 = por %p413_p7, %p47_p0 }
  0x18   : > { %p6187_p12 = por %p419_p8, %p53_p3  ;;  %s487_s22 = sand.u32 1, %s5993_s26  }
  0x19   : > { %s10291_s20 = scalar_select %p6183_p11, 1, 0 }
  0x1a   : > { %s10293_s21 = scalar_select %p6187_p12, 1, 0 }
  0x1b   : > { %10292 = sst [smem:[#allocation14_spill]] %s10291_s20  ;;  %s5674_s23 = smul.u32 40, %s5997_s27 }
  0x1c   : > { %10294 = sst [smem:[#allocation15_spill]] %s10293_s21  ;;  %s5673_s30 = smul.u32 40, %s487_s22 }
  0x1d   : > { %s10295_s0 = sld [smem:[#allocation81_spill]]  ;;  %p6196_p13 = pnand %p5689_p10, %p49_p5 }
  0x1e   : > { %s491_s28 = scalar_lea.vmem [#allocation3], %s5673_s30  ;;  %s488_s15 = scalar_lea.sflag [#allocation4], %s487_s22 }
  0x1f   : > { %s500_s20 = sshll.u32 %s491_s28, 4  ;;  %p5905_p1 = pneg %p6196_p13  ;;  %s501_s20 = int_to_ptr.vmem [resolvable:$true] %s500_s20 }
  0x23   : > { %s496_s24 = scalar_lea.hbm %s10295_s0, %s5674_s23  ;;  %s5908_s18 = scalar_lea.hbm %s10295_s0, 80 }
  0x24   : > { %s498_s29 = sshll.u32 %s496_s24, 4  ;;  %s499_s29 = int_to_ptr.hbm [resolvable:$true] %s498_s29 }
  0x25   : > { %s5901_s16 = sshra.s32 %s499_s29, 4  ;;  %s5902_s16 = int_to_ptr.hbm [resolvable:$true] %s5901_s16 }
  0x26   : > { %s5903_s26 = scalar_lea.hbm %s5902_s16, 40  ;;  %p5909_p4 = scmp.lt.s32.totalorder %s5902_s16, %s10295_s0 }
  0x27   : > { %p5904_p0 = scmp.ne.s32.totalorder %s5902_s16, %s5903_s26  ;;  %p5910_p5 = scmp.lt.s32.totalorder %s5908_s18, %s5903_s26 }
  0x29   : > { %p5906_p2 = pnand %p5905_p1, %p5904_p0  ;;  %p5911_p7 = por %p5910_p5, %p5909_p4 }
  0x2b   : > { %p5907_p3 = pneg %p5906_p2 }
  0x2d   : > { %p5912_p8 = pnand %p5911_p7, %p5907_p3 }
  0x2f   : > { %5915 = shalt.err (!%p5912_p8)
}
  0x30   : > { %5684 = dma.hbm_to_vmem [thread:$0]  (!%p6196_p13), %s499_s29, 640, %s501_s20, %s488_s15  }
  0x31   : > { %p5659_p10 = scmp.ge.s32.totalorder %s5997_s27, 1  ;;  %p505_p0 = scmp.lt.s32.totalorder %s5997_s27, 3 }
  0x33   : > { %p506_p1 = pnand %p5659_p10, %p505_p0 }
  0x35   : > { %509 = sbr.rel (%p506_p1) target bundleno = 3796 (0xed4), region = 88 }
  0x3a   : > { %s6213_s24 = sand.u32 1, %s5989_s25  }
  0x3b   : > { %s5675_s14 = smul.u32 40, %s6213_s24  ;;  %s512_s16 = scalar_lea.sflag [#allocation4], %s6213_s24 }
  0x3d   : > { %s6219_s26 = scalar_lea.vmem [#allocation3], %s5675_s14 }
  0x3e   : > { %5976 = dma.done.wait (%p6176_p6), %s512_s16, 640  }
  0x3f   : > { %5978 = vsyncadd (%p6176_p6), %s512_s16, 4294966656  ;;  %v10169_v0 = vmov 0   ;;  %v10163_v1 = vmov 6   ;;  %v10167_v2 = vmov 2   ;;  %v783_v3 = vld [vmem:[%s6219_s26 + $0x20] sm:$0xff]  ;;  %v781_v4 = vld [vmem:[%s6219_s26 + $0x10] sm:$0xff] }
  0x40   : > { %5771 = vset.pattern.permute.xlu2 %v10169_v0  ;;  %5776 = vset.pattern.permute.xlu0 %v10163_v1  ;;  %v779_v5 = vld [vmem:[%s6219_s26] sm:$0xff]  ;;  %s6002_s15 = smov 104   ;;  %s10297_s1 = sld [smem:[#allocation82_spill]]  ;;  %v782_v7 = vld [vmem:[%s6219_s26 + $0x18] sm:$0xff]  ;;  %v780_v8 = vld [vmem:[%s6219_s26 + $0x8] sm:$0xff]  ;;  %v10165_v9 = vmov 3  }
  0x41   : > { %5772 = vset.pattern.permute.xlu1 %v10167_v2  ;;  %797 = vrot.lane.b32.xlu2 %v783_v3, %s6002_s15  ;;  %v10161_v10 = vmov 4   ;;  %v10147_v11 = vmov 11   ;;  %v10159_v12 = vmov 5   ;;  %v10157_v13 = vmov 7   ;;  %s6026_s20 = smov 96   ;;  %s6027_s21 = smov 127  }
  0x42   : > { %793 = vrot.lane.b32.xlu1 %v781_v4, %s6002_s15  ;;  %789 = vrot.lane.b32.xlu0 %v779_v5, %s6002_s15  ;;  %v10133_v14 = vmov 16   ;;  %v10155_v15 = vmov 8   ;;  %v10151_v16 = vmov 9   ;;  %v6011_v17 = vmov 21   ;;  %s6028_s22 = smov 126   ;;  %s6029_s30 = smov 95  }
  0x43   : > { %v10153_v18 = vmov 10   ;;  %v10145_v19 = vmov 12   ;;  %v10131_v20 = vmov 1   ;;  %v10139_v21 = vmov 13   ;;  %s6030_s29 = smov 124   ;;  %s6031_s19 = smov 93  }
  0x44   : > { %vm572_vm0 = vcmask 1047872   ;;  %v6016_v22 = vmov 0.0   ;;  %v10143_v23 = vmov 14   ;;  %v10141_v24 = vmov 15   ;;  %s6032_s23 = smov 89   ;;  %s6033_s18 = smov 30  }
  0x45   : > { %573 = vst.msk [vmem:[#allocation2 + $0x38] sm:$0xff] %vm572_vm0, %v6016_v22  ;;  %v10149_v25 = vmov 17   ;;  %v10137_v26 = vmov 18   ;;  %v10129_v27 = vmov 19   ;;  %v10135_v28 = vmov 20   ;;  %s6035_s28 = smov 74  }
  0x46   : > { %v6234_v6 = vld [vmem:[%s10297_s1] sm:$0xff]  ;;  %568 = vst [vmem:[#allocation2] sm:$0xff] %v6016_v22  ;;  %vm570_vm1 = vcmask 850944   ;;  %vm815_vm2 = vcmask 326656   ;;  %v6023_v29 = vmov 22   ;;  %v6024_v30 = vmov 23  }
  0x47   : > { %571 = vst.msk [vmem:[#allocation2 + $0x10] sm:$0xff] %vm570_vm1, %v6016_v22  ;;  %v6025_v32 = vmov 24   ;;  %vm809_vm3 = vcmask 1048384   ;;  %vm1080_vm4 = vcmask 1039360   ;;  %vm10180_vm5 = vcmask 785408   ;;  %s6039_s17 = smov 92  }
  0x48   : > { %vm1493_vm6 = vcmask 777216   ;;  %vm1460_vm7 = vcmask 1031168   ;;  %s10526_s16 = sld [smem:[#allocation83_spill]] }
  0x49   : > { %825 = vperm.xlu2 %5771, %v6234_v6   ;;  %s10584_s1 = sld [smem:[#allocation85_spill]] }
  0x4a   : > { %795 = vrot.lane.b32.xlu1 %v782_v7, %s6002_s15  ;;  %791 = vrot.lane.b32.xlu0 %v780_v8, %s6002_s15  ;;  %s6042_s15 = smov 10  }
  0x51   : > { %5773 = vset.pattern.permute.xlu2 %v10165_v9 }
  0x52   : > { %843 = vperm.xlu1 %5772, %v6234_v6   ;;  %886 = vperm.xlu0 %5776, %v6234_v6  }
  0x53   : > { %852 = vperm.xlu2 %5773, %v6234_v6  }
  0x5a   : > { %5774 = vset.pattern.permute.xlu1 %v10161_v10  ;;  %5781 = vset.pattern.permute.xlu0 %v10147_v11 }
  0x5b   : > { %5775 = vset.pattern.permute.xlu2 %v10159_v12  ;;  %861 = vperm.xlu1 %5774, %v6234_v6  }
  0x5c   : > { %936 = vperm.xlu0 %5781, %v6234_v6   ;;  %876 = vperm.xlu2 %5775, %v6234_v6  }
  0x63   : > { %5777 = vset.pattern.permute.xlu1 %v10157_v13 }
  0x64   : > { %5786 = vset.pattern.permute.xlu0 %v10133_v14  ;;  %5778 = vset.pattern.permute.xlu2 %v10155_v15 }
  0x65   : > { %896 = vperm.xlu1 %5777, %v6234_v6   ;;  %985 = vperm.xlu0 %5786, %v6234_v6  }
  0x66   : > { %906 = vperm.xlu2 %5778, %v6234_v6  }
  0x6d   : > { %5779 = vset.pattern.permute.xlu1 %v10151_v16  ;;  %5791 = vset.pattern.permute.xlu0 %v6011_v17 }
  0x6e   : > { %5780 = vset.pattern.permute.xlu2 %v10153_v18  ;;  %916 = vperm.xlu1 %5779, %v6234_v6  }
  0x6f   : > { %1030 = vperm.xlu0 %5791, %v6234_v6   ;;  %926 = vperm.xlu2 %5780, %v6234_v6  }
  0x76   : > { %5782 = vset.pattern.permute.xlu1 %v10145_v19 }
  0x77   : > { %5792 = vset.pattern.permute.xlu0 %v10131_v20  ;;  %5783 = vset.pattern.permute.xlu2 %v10139_v21 }
  0x78   : > { %946 = vperm.xlu1 %5782, %v6234_v6   ;;  %834 = vperm.xlu0 %5792, %v6234_v6  }
  0x79   : > { %956 = vperm.xlu2 %5783, %v6234_v6  }
  0x80   : > { %5784 = vset.pattern.permute.xlu1 %v10143_v23 }
  0x81   : > { %5785 = vset.pattern.permute.xlu2 %v10141_v24  ;;  %966 = vperm.xlu1 %5784, %v6234_v6  }
  0x82   : > { %976 = vperm.xlu2 %5785, %v6234_v6  }
  0x89   : > { %5787 = vset.pattern.permute.xlu1 %v10149_v25 }
  0x8a   : > { %5788 = vset.pattern.permute.xlu2 %v10137_v26  ;;  %994 = vperm.xlu1 %5787, %v6234_v6  }
  0x8b   : > { %1003 = vperm.xlu2 %5788, %v6234_v6  }
  0x92   : > { %5789 = vset.pattern.permute.xlu1 %v10129_v27 }
  0x93   : > { %5790 = vset.pattern.permute.xlu2 %v10135_v28  ;;  %1012 = vperm.xlu1 %5789, %v6234_v6  }
  0x94   : > { %1021 = vperm.xlu2 %5790, %v6234_v6  }
  0x9b   : > { %5793 = vset.pattern.permute.xlu1 %v6023_v29  ;;  %v798_v31 = vpop.permute.xlu2 %797 }
  0x9c   : > { %5794 = vset.pattern.permute.xlu2 %v6024_v30  ;;  %1039 = vperm.xlu1 %5793, %v6234_v6   ;;  %816 = vst.msk [vmem:[#allocation2 + $0x38] sm:$0xff] %vm815_vm2, %v798_v31 }
  0x9d   : > { %1048 = vperm.xlu2 %5794, %v6234_v6  }
  0xa3   : > { %v6284_v33 = vpop.permute.xlu2 %825  ;;  %v6320_v55 = vld [vmem:[#allocation2 + $0x38] sm:$0xff] }
  0xa4   : > { %5795 = vset.pattern.permute.xlu1 %v6025_v32  ;;  %10298 = vst [vmem:[#allocation16_spill] sm:$0xff] %v6284_v33 }
  0xa5   : > { %1057 = vperm.xlu1 %5795, %v6234_v6   ;;  %5807 = vset.pattern.permute.xlu2 %v10131_v20 }
  0xad   : > { %5806 = vset.pattern.permute.xlu1 %v10169_v0  ;;  %v853_v34 = vpop.permute.xlu2 %852 }
  0xb4   : > { %v790_v35 = vpop.permute.xlu0 %789  ;;  %v794_v44 = vpop.permute.xlu1 %793 }
  0xb5   : > { %810 = vst.msk [vmem:[#allocation2 + $0x10] sm:$0xff] %vm809_vm3, %v790_v35 }
  0xb6   : > { %v877_v36 = vpop.permute.xlu2 %876 }
  0xb7   : > { %v884_v59 = vmul.f32 %v877_v36, %v6320_v55 }
  0xbc   : > { %v792_v37 = vpop.permute.xlu0 %791  ;;  %v6288_v38 = vld [vmem:[#allocation2 + $0x10] sm:$0xff]  ;;  %v796_v46 = vpop.permute.xlu1 %795 }
  0xbd   : > { %v879_v39 = vmul.f32 %v877_v36, %v6288_v38  ;;  %v855_v40 = vmul.f32 %v6288_v38, %v853_v34  ;;  %v6303_v47 = vsel %vm570_vm1, %v790_v35, %v792_v37  ;;  %v6306_v48 = vsel %vm570_vm1, %v792_v37, %v794_v44 }
  0xbe   : > { %v6315_v53 = vsel %vm570_vm1, %v794_v44, %v796_v46  ;;  %v6318_v54 = vsel %vm570_vm1, %v796_v46, %v798_v31  ;;  %v857_v60 = vmul.f32 %v853_v34, %v6306_v48  ;;  %v880_v61 = vmul.f32 %v877_v36, %v6303_v47 }
  0xbf   : > { %1130 = vrot.lane.b32.xlu0 %v879_v39, %s6026_s20  ;;  %1100 = vrot.lane.b32.xlu1 %v855_v40, %s6027_s21  ;;  %v858_v57 = vmul.f32 %v853_v34, %v6315_v53  ;;  %v882_v3 = vmul.f32 %v877_v36, %v6315_v53  ;;  %v883_v4 = vmul.f32 %v877_v36, %v6318_v54 }
  0xc0   : > { %v6340_v5 = vpop.permute.xlu2 %906  ;;  %v856_v6 = vmul.f32 %v853_v34, %v6303_v47  ;;  %v859_v22 = vmul.f32 %v853_v34, %v6318_v54  ;;  %v881_v35 = vmul.f32 %v877_v36, %v6306_v48 }
  0xc4   : > { %v6294_v41 = vpop.permute.xlu0 %886  ;;  %v6324_v58 = vpop.permute.xlu1 %843 }
  0xc5   : > { %v846_v21 = vmul.f32 %v6288_v38, %v6324_v58 }
  0xc9   : > { %v6351_v29 = vpop.permute.xlu2 %926 }
  0xcd   : > { %v6335_v63 = vpop.permute.xlu1 %861 }
  0xce   : > { %v6296_v42 = vpop.permute.xlu0 %936 }
  0xd3   : > { %v957_v34 = vpop.permute.xlu2 %956 }
  0xd7   : > { %v6298_v43 = vpop.permute.xlu0 %985  ;;  %v897_v7 = vpop.permute.xlu1 %896 }
  0xd8   : > { %v899_v8 = vmul.f32 %v897_v7, %v6288_v38  ;;  %v900_v17 = vmul.f32 %v897_v7, %v6303_v47  ;;  %v902_v31 = vmul.f32 %v897_v7, %v6315_v53  ;;  %v903_v32 = vmul.f32 %v897_v7, %v6318_v54 }
  0xd9   : > { %v901_v40 = vmul.f32 %v897_v7, %v6306_v48 }
  0xdc   : > { %v977_v36 = vpop.permute.xlu2 %976 }
  0xe0   : > { %v917_v30 = vpop.permute.xlu1 %916 }
  0xe1   : > { %v6300_v45 = vpop.permute.xlu0 %1030  ;;  %v919_v37 = vmul.f32 %v917_v30, %v6288_v38  ;;  %v920_v39 = vmul.f32 %v917_v30, %v6303_v47  ;;  %v922_v46 = vmul.f32 %v917_v30, %v6315_v53 }
  0xe2   : > { %v1037_v27 = vmul.f32 %v6300_v45, %v6320_v55  ;;  %v1035_v26 = vmul.f32 %v6300_v45, %v6315_v53 }
  0xea   : > { %v835_v49 = vpop.permute.xlu0 %834  ;;  %v6363_v44 = vpop.permute.xlu1 %946 }
  0xeb   : > { %v838_v50 = vmul.f32 %v835_v49, %v6303_v47  ;;  %v839_v51 = vmul.f32 %v835_v49, %v6306_v48  ;;  %v837_v52 = vmul.f32 %v6288_v38, %v835_v49  ;;  %v841_v56 = vmul.f32 %v835_v49, %v6318_v54 }
  0xec   : > { %v840_v62 = vmul.f32 %v835_v49, %v6315_v53  ;;  %v923_v49 = vmul.f32 %v917_v30, %v6318_v54 }
  0xed   : > { %1072 = vrot.lane.b32.xlu0 %v838_v50, %s6027_s21  ;;  %1074 = vrot.lane.b32.xlu1 %v839_v51, %s6027_s21  ;;  %v904_v50 = vmul.f32 %v897_v7, %v6320_v55  ;;  %v959_v7 = vmul.f32 %v957_v34, %v6288_v38 }
  0xee   : > { %1070 = vrot.lane.b32.xlu2 %v837_v52, %s6027_s21  ;;  %v939_v52 = vmul.f32 %v6296_v42, %v6288_v38 }
  0xf3   : > { %v6374_v51 = vpop.permute.xlu1 %966 }
  0xf5   : > { %1078 = vrot.lane.b32.xlu0 %v841_v56, %s6027_s21  ;;  %1106 = vrot.lane.b32.xlu1 %v858_v57, %s6027_s21  ;;  %v940_v56 = vmul.f32 %v6296_v42, %v6303_v47  ;;  %v6380_v57 = vpop.permute.xlu2 %1003 }
  0xf6   : > { %1140 = vrot.lane.b32.xlu2 %v884_v59, %s6026_s20  ;;  %v921_v59 = vmul.f32 %v917_v30, %v6306_v48  ;;  %v1010_v13 = vmul.f32 %v6380_v57, %v6320_v55 }
  0xfd   : > { %1104 = vrot.lane.b32.xlu0 %v857_v60, %s6027_s21  ;;  %1132 = vrot.lane.b32.xlu1 %v880_v61, %s6026_s20  ;;  %v995_v60 = vpop.permute.xlu1 %994  ;;  %v942_v61 = vmul.f32 %v6296_v42, %v6315_v53 }
  0xfe   : > { %1076 = vrot.lane.b32.xlu2 %v840_v62, %s6027_s21  ;;  %v943_v62 = vmul.f32 %v6296_v42, %v6318_v54 }
 0x105   : > { %1136 = vrot.lane.b32.xlu0 %v882_v3, %s6026_s20  ;;  %1138 = vrot.lane.b32.xlu1 %v883_v4, %s6026_s20  ;;  %v924_v3 = vmul.f32 %v917_v30, %v6320_v55  ;;  %v6393_v4 = vpop.permute.xlu2 %1021  ;;  %v962_v30 = vmul.f32 %v957_v34, %v6315_v53 }
 0x106   : > { %1102 = vrot.lane.b32.xlu2 %v856_v6, %s6027_s21  ;;  %v6396_v6 = vpop.permute.xlu1 %1012 }
 0x107   : > { %v1019_v20 = vmul.f32 %v6396_v6, %v6320_v55 }
 0x10d   : > { %1164 = vrot.lane.b32.xlu0 %v899_v8, %s6027_s21  ;;  %1166 = vrot.lane.b32.xlu1 %v900_v17, %s6027_s21  ;;  %v960_v8 = vmul.f32 %v957_v34, %v6303_v47  ;;  %v941_v17 = vmul.f32 %v6296_v42, %v6306_v48 }
 0x10e   : > { %1108 = vrot.lane.b32.xlu2 %v859_v22, %s6027_s21  ;;  %v6405_v22 = vpop.permute.xlu2 %1048 }
 0x10f   : > { %v1052_v14 = vmul.f32 %v6405_v22, %v6306_v48  ;;  %v1053_v28 = vmul.f32 %v6405_v22, %v6315_v53 }
 0x115   : > { %1170 = vrot.lane.b32.xlu0 %v902_v31, %s6027_s21  ;;  %1172 = vrot.lane.b32.xlu1 %v903_v32, %s6027_s21  ;;  %v963_v31 = vmul.f32 %v957_v34, %v6318_v54  ;;  %v944_v32 = vmul.f32 %v6296_v42, %v6320_v55 }
 0x116   : > { %1134 = vrot.lane.b32.xlu2 %v881_v35, %s6026_s20  ;;  %v6411_v35 = vpop.permute.xlu1 %1039 }
 0x117   : > { %v1046_v9 = vmul.f32 %v6411_v35, %v6320_v55 }
 0x11d   : > { %1199 = vrot.lane.b32.xlu0 %v919_v37, %s6027_s21  ;;  %1201 = vrot.lane.b32.xlu1 %v920_v39, %s6027_s21  ;;  %v979_v39 = vmul.f32 %v977_v36, %v6303_v47 }
 0x11e   : > { %1168 = vrot.lane.b32.xlu2 %v901_v40, %s6027_s21  ;;  %v980_v40 = vmul.f32 %v977_v36, %v6306_v48  ;;  %v6424_v42 = vpop.permute.xlu1 %1057 }
 0x125   : > { %1205 = vrot.lane.b32.xlu0 %v922_v46, %s6027_s21  ;;  %1207 = vrot.lane.b32.xlu1 %v923_v49, %s6027_s21  ;;  %v961_v46 = vmul.f32 %v957_v34, %v6306_v48 }
 0x126   : > { %1174 = vrot.lane.b32.xlu2 %v904_v50, %s6027_s21  ;;  %v982_v50 = vmul.f32 %v977_v36, %v6318_v54 }
 0x12d   : > { %1234 = vrot.lane.b32.xlu0 %v939_v52, %s6027_s21  ;;  %1236 = vrot.lane.b32.xlu1 %v940_v56, %s6027_s21  ;;  %v983_v52 = vmul.f32 %v977_v36, %v6320_v55  ;;  %v964_v56 = vmul.f32 %v957_v34, %v6320_v55 }
 0x12e   : > { %1203 = vrot.lane.b32.xlu2 %v921_v59, %s6027_s21 }
 0x131   : > { %v6434_v59 = vpop.permute.xlu0 %1130 }
 0x135   : > { %1240 = vrot.lane.b32.xlu0 %v942_v61, %s6027_s21  ;;  %1242 = vrot.lane.b32.xlu1 %v943_v62, %s6027_s21  ;;  %v1101_v61 = vpop.permute.xlu1 %1100 }
 0x136   : > { %1209 = vrot.lane.b32.xlu2 %v924_v3, %s6027_s21  ;;  %v998_v3 = vmul.f32 %v995_v60, %v6306_v48 }
 0x13d   : > { %1269 = vrot.lane.b32.xlu0 %v959_v7, %s6027_s21  ;;  %1271 = vrot.lane.b32.xlu1 %v960_v8, %s6027_s21  ;;  %v999_v7 = vmul.f32 %v995_v60, %v6315_v53  ;;  %v981_v8 = vmul.f32 %v977_v36, %v6315_v53 }
 0x13e   : > { %1238 = vrot.lane.b32.xlu2 %v941_v17, %s6027_s21 }
 0x145   : > { %1275 = vrot.lane.b32.xlu0 %v962_v30, %s6027_s21  ;;  %1277 = vrot.lane.b32.xlu1 %v963_v31, %s6027_s21  ;;  %v1001_v31 = vmul.f32 %v995_v60, %v6320_v55 }
 0x146   : > { %1244 = vrot.lane.b32.xlu2 %v944_v32, %s6027_s21  ;;  %v1015_v32 = vmul.f32 %v6396_v6, %v6303_v47 }
 0x148   : > { %v6416_v37 = vpop.permute.xlu2 %1070 }
 0x149   : > { %10299 = vst [vmem:[#allocation17_spill] sm:$0xff] %v6416_v37 }
 0x14d   : > { %1303 = vrot.lane.b32.xlu0 %v979_v39, %s6026_s20  ;;  %1305 = vrot.lane.b32.xlu1 %v980_v40, %s6026_s20  ;;  %v997_v39 = vmul.f32 %v995_v60, %v6303_v47 }
 0x14e   : > { %1273 = vrot.lane.b32.xlu2 %v961_v46, %s6027_s21 }
 0x150   : > { %v6426_v49 = vpop.permute.xlu2 %1140 }
 0x155   : > { %1309 = vrot.lane.b32.xlu0 %v982_v50, %s6026_s20  ;;  %1311 = vrot.lane.b32.xlu1 %v983_v52, %s6026_s20  ;;  %v1017_v50 = vmul.f32 %v6396_v6, %v6315_v53  ;;  %v1018_v52 = vmul.f32 %v6396_v6, %v6318_v54 }
 0x156   : > { %1279 = vrot.lane.b32.xlu2 %v964_v56, %s6027_s21  ;;  %v1000_v56 = vmul.f32 %v995_v60, %v6318_v54  ;;  %v1016_v60 = vmul.f32 %v6396_v6, %v6306_v48 }
 0x158   : > { %v6436_v62 = vpop.permute.xlu2 %1076 }
 0x159   : > { %10300 = vst [vmem:[#allocation18_spill] sm:$0xff] %v6436_v62 }
 0x15d   : > { %1336 = vrot.lane.b32.xlu0 %v998_v3, %s6027_s21  ;;  %1338 = vrot.lane.b32.xlu1 %v999_v7, %s6027_s21 }
 0x15e   : > { %1307 = vrot.lane.b32.xlu2 %v981_v8, %s6026_s20 }
 0x15f   : > { %v6444_v34 = vpop.permute.xlu0 %1072  ;;  %v6446_v17 = vpop.permute.xlu1 %1074 }
 0x160   : > { %10301 = vst [vmem:[#allocation19_spill] sm:$0xff] %v6444_v34  ;;  %v6448_v30 = vpop.permute.xlu2 %1102 }
 0x161   : > { %10302 = vst [vmem:[#allocation20_spill] sm:$0xff] %v6446_v17  ;;  %v1110_v6 = vsel %vm1080_vm4, %v1101_v61, %v6448_v30 }
 0x162   : > { %v1119_v24 = vadd.f32 %v1110_v6, %v846_v21  ;;  %v848_v6 = vmul.f32 %v6324_v58, %v6306_v48 }
 0x165   : > { %1342 = vrot.lane.b32.xlu0 %v1001_v31, %s6027_s21  ;;  %1363 = vrot.lane.b32.xlu1 %v1015_v32, %s6027_s21  ;;  %v1033_v31 = vmul.f32 %v6300_v45, %v6303_v47  ;;  %v1034_v32 = vmul.f32 %v6300_v45, %v6306_v48 }
 0x166   : > { %1334 = vrot.lane.b32.xlu2 %v997_v39, %s6027_s21 }
 0x167   : > { %v6457_v36 = vpop.permute.xlu0 %1078  ;;  %v1107_v40 = vpop.permute.xlu1 %1106 }
 0x168   : > { %10303 = vst [vmem:[#allocation21_spill] sm:$0xff] %v6457_v36  ;;  %v6459_v46 = vpop.permute.xlu2 %1108 }
 0x169   : > { %v1113_v61 = vsel %vm1080_vm4, %v1107_v40, %v6459_v46 }
 0x16d   : > { %1367 = vrot.lane.b32.xlu0 %v1017_v50, %s6027_s21  ;;  %1369 = vrot.lane.b32.xlu1 %v1018_v52, %s6027_s21 }
 0x16e   : > { %1340 = vrot.lane.b32.xlu2 %v1000_v56, %s6027_s21  ;;  %v1036_v56 = vmul.f32 %v6300_v45, %v6318_v54  ;;  %v1055_v45 = vmul.f32 %v6405_v22, %v6320_v55 }
 0x16f   : > { %v1105_v3 = vpop.permute.xlu0 %1104  ;;  %v6469_v7 = vpop.permute.xlu1 %1132 }
 0x170   : > { %v6471_v8 = vpop.permute.xlu2 %1134  ;;  %v1112_v23 = vsel %vm1080_vm4, %v1105_v3, %v1107_v40 }
 0x175   : > { %1392 = vrot.lane.b32.xlu0 %v1033_v31, %s6027_s21  ;;  %1394 = vrot.lane.b32.xlu1 %v1034_v32, %s6027_s21 }
 0x176   : > { %1365 = vrot.lane.b32.xlu2 %v1016_v60, %s6027_s21 }
 0x177   : > { %v6482_v39 = vpop.permute.xlu0 %1136  ;;  %v6484_v50 = vpop.permute.xlu1 %1138 }
 0x178   : > { %v6486_v52 = vpop.permute.xlu2 %1168 }
 0x17d   : > { %1398 = vrot.lane.b32.xlu0 %v1036_v56, %s6027_s21  ;;  %1400 = vrot.lane.b32.xlu1 %v1037_v27, %s6027_s21 }
 0x17e   : > { %1371 = vrot.lane.b32.xlu2 %v1019_v20, %s6027_s21 }
 0x17f   : > { %v1165_v31 = vpop.permute.xlu0 %1164  ;;  %v1167_v32 = vpop.permute.xlu1 %1166 }
 0x180   : > { %v6497_v60 = vpop.permute.xlu2 %1174  ;;  %v1176_v25 = vsel %vm1080_vm4, %v1165_v31, %v1167_v32  ;;  %v1177_v16 = vsel %vm1080_vm4, %v1167_v32, %v6486_v52 }
 0x185   : > { %1423 = vrot.lane.b32.xlu0 %v1052_v14, %s6027_s21  ;;  %1425 = vrot.lane.b32.xlu1 %v1053_v28, %s6027_s21  ;;  %v1051_v14 = vmul.f32 %v6405_v22, %v6303_v47 }
 0x186   : > { %1396 = vrot.lane.b32.xlu2 %v1035_v26, %s6027_s21 }
 0x187   : > { %v1171_v20 = vpop.permute.xlu0 %1170  ;;  %v1173_v27 = vpop.permute.xlu1 %1172 }
 0x188   : > { %v6510_v56 = vpop.permute.xlu2 %1203  ;;  %v1179_v31 = vsel %vm1080_vm4, %v1171_v20, %v1173_v27  ;;  %v1180_v32 = vsel %vm1080_vm4, %v1173_v27, %v6497_v60 }
 0x18d   : > { %1429 = vrot.lane.b32.xlu0 %v1055_v45, %s6027_s21  ;;  %1450 = vrot.lane.b32.xlu1 %v1119_v24, %s6028_s22  ;;  %v849_v45 = vmul.f32 %v6324_v58, %v6315_v53  ;;  %v1121_v24 = vadd.f32 %v1112_v23, %v848_v6  ;;  %v847_v6 = vmul.f32 %v6324_v58, %v6303_v47 }
 0x18e   : > { %1421 = vrot.lane.b32.xlu2 %v1051_v14, %s6027_s21  ;;  %v1054_v14 = vmul.f32 %v6405_v22, %v6318_v54  ;;  %v889_v22 = vmul.f32 %v6294_v41, %v6288_v38 }
 0x18f   : > { %v6521_v26 = vpop.permute.xlu0 %1199  ;;  %v6523_v28 = vpop.permute.xlu1 %1201  ;;  %v1122_v19 = vadd.f32 %v1113_v61, %v849_v45  ;;  %v1111_v61 = vsel %vm1080_vm4, %v6448_v30, %v1105_v3 }
 0x190   : > { %v6528_v21 = vpop.permute.xlu2 %1209  ;;  %v1187_v45 = vadd.f32 %v1176_v25, %v889_v22  ;;  %v892_v25 = vmul.f32 %v6294_v41, %v6315_v53 }
 0x192   : > { %v1190_v22 = vadd.f32 %v1179_v31, %v892_v25  ;;  %v930_v31 = vmul.f32 %v6351_v29, %v6303_v47 }
 0x195   : > { %1454 = vrot.lane.b32.xlu0 %v1121_v24, %s6028_s22  ;;  %1456 = vrot.lane.b32.xlu1 %v1122_v19, %s6028_s22  ;;  %v890_v19 = vmul.f32 %v6294_v41, %v6303_v47 }
 0x196   : > { %1427 = vrot.lane.b32.xlu2 %v1054_v14, %s6027_s21  ;;  %v1120_v14 = vadd.f32 %v1111_v61, %v847_v6  ;;  %v850_v61 = vmul.f32 %v6324_v58, %v6318_v54  ;;  %v1178_v58 = vsel %vm1080_vm4, %v6486_v52, %v1171_v20 }
 0x197   : > { %v6539_v40 = vpop.permute.xlu0 %1205  ;;  %v6541_v11 = vpop.permute.xlu1 %1207  ;;  %v1188_v24 = vadd.f32 %v1177_v16, %v890_v19  ;;  %v893_v16 = vmul.f32 %v6294_v41, %v6318_v54 }
 0x198   : > { %v1239_v23 = vpop.permute.xlu2 %1238  ;;  %v1123_v6 = vadd.f32 %v6459_v46, %v850_v61  ;;  %v929_v46 = vmul.f32 %v6351_v29, %v6288_v38 }
 0x199   : > { %v1191_v19 = vadd.f32 %v1180_v32, %v893_v16  ;;  %v891_v32 = vmul.f32 %v6294_v41, %v6306_v48 }
 0x19b   : > { %v1189_v61 = vadd.f32 %v1178_v58, %v891_v32 }
 0x19d   : > { %1481 = vrot.lane.b32.xlu0 %v1187_v45, %s6029_s30  ;;  %1483 = vrot.lane.b32.xlu1 %v1188_v24, %s6029_s30 }
 0x19e   : > { %1452 = vrot.lane.b32.xlu2 %v1120_v14, %s6028_s22 }
 0x19f   : > { %v1235_v30 = vpop.permute.xlu0 %1234  ;;  %v1237_v3 = vpop.permute.xlu1 %1236 }
 0x1a0   : > { %v1245_v18 = vpop.permute.xlu2 %1244  ;;  %v1246_v24 = vsel %vm1080_vm4, %v1235_v30, %v1237_v3  ;;  %v1247_v14 = vsel %vm1080_vm4, %v1237_v3, %v1239_v23 }
 0x1a1   : > { %v1257_v25 = vadd.f32 %v1246_v24, %v929_v46  ;;  %v1258_v16 = vadd.f32 %v1247_v14, %v930_v31  ;;  %v894_v24 = vmul.f32 %v6294_v41, %v6320_v55  ;;  %v931_v41 = vmul.f32 %v6351_v29, %v6306_v48 }
 0x1a3   : > { %v1192_v46 = vadd.f32 %v6497_v60, %v894_v24  ;;  %v969_v60 = vmul.f32 %v6374_v51, %v6288_v38 }
 0x1a5   : > { %1487 = vrot.lane.b32.xlu0 %v1190_v22, %s6029_s30  ;;  %1489 = vrot.lane.b32.xlu1 %v1191_v19, %s6029_s30  ;;  %v932_v19 = vmul.f32 %v6351_v29, %v6315_v53 }
 0x1a6   : > { %1458 = vrot.lane.b32.xlu2 %v1123_v6, %s6028_s22  ;;  %v933_v6 = vmul.f32 %v6351_v29, %v6318_v54 }
 0x1a7   : > { %v1241_v27 = vpop.permute.xlu0 %1240  ;;  %v1243_v45 = vpop.permute.xlu1 %1242 }
 0x1a8   : > { %v6572_v15 = vpop.permute.xlu2 %1273  ;;  %v1249_v20 = vsel %vm1080_vm4, %v1241_v27, %v1243_v45  ;;  %v1250_v3 = vsel %vm1080_vm4, %v1243_v45, %v1245_v18 }
 0x1a9   : > { %v1260_v14 = vadd.f32 %v1249_v20, %v932_v19  ;;  %v1261_v58 = vadd.f32 %v1250_v3, %v933_v6  ;;  %v970_v3 = vmul.f32 %v6374_v51, %v6303_v47 }
 0x1ad   : > { %1515 = vrot.lane.b32.xlu0 %v1257_v25, %s6029_s30  ;;  %1517 = vrot.lane.b32.xlu1 %v1258_v16, %s6029_s30  ;;  %v1248_v25 = vsel %vm1080_vm4, %v1239_v23, %v1241_v27  ;;  %v934_v27 = vmul.f32 %v6351_v29, %v6320_v55 }
 0x1ae   : > { %1485 = vrot.lane.b32.xlu2 %v1189_v61, %s6029_s30  ;;  %v1259_v16 = vadd.f32 %v1248_v25, %v931_v41  ;;  %v973_v25 = vmul.f32 %v6374_v51, %v6318_v54  ;;  %v972_v41 = vmul.f32 %v6374_v51, %v6315_v53 }
 0x1af   : > { %v6585_v30 = vpop.permute.xlu0 %1269  ;;  %v6587_v52 = vpop.permute.xlu1 %1271 }
 0x1b0   : > { %v6591_v22 = vpop.permute.xlu2 %1279 }
 0x1b5   : > { %1521 = vrot.lane.b32.xlu0 %v1260_v14, %s6029_s30  ;;  %1523 = vrot.lane.b32.xlu1 %v1261_v58, %s6029_s30  ;;  %v1262_v14 = vadd.f32 %v1245_v18, %v934_v27 }
 0x1b6   : > { %1491 = vrot.lane.b32.xlu2 %v1192_v46, %s6029_s30 }
 0x1b7   : > { %v6603_v45 = vpop.permute.xlu0 %1275  ;;  %v6605_v31 = vpop.permute.xlu1 %1277 }
 0x1b8   : > { %v1308_v32 = vpop.permute.xlu2 %1307 }
 0x1be   : > { %1519 = vrot.lane.b32.xlu2 %v1259_v16, %s6029_s30 }
 0x1bf   : > { %v1304_v61 = vpop.permute.xlu0 %1303  ;;  %v1306_v20 = vpop.permute.xlu1 %1305 }
 0x1c0   : > { %v1323_v19 = vadd.f32 %v1304_v61, %v969_v60  ;;  %v1313_v6 = vsel %vm10180_vm5, %v1304_v61, %v1306_v20  ;;  %v6616_v24 = vpop.permute.xlu2 %1334  ;;  %v1314_v61 = vsel %vm10180_vm5, %v1306_v20, %v1308_v32 }
 0x1c1   : > { %v1324_v23 = vadd.f32 %v1313_v6, %v970_v3 }
 0x1c2   : > { %1550 = vrot.lane.b32.xlu0 %v1323_v19, %s6028_s22  ;;  %v971_v19 = vmul.f32 %v6374_v51, %v6306_v48 }
 0x1c3   : > { %1552 = vrot.lane.b32.xlu1 %v1324_v23, %s6028_s22 }
 0x1c4   : > { %v1325_v6 = vadd.f32 %v1314_v61, %v971_v19  ;;  %v1009_v19 = vmul.f32 %v6380_v57, %v6318_v54 }
 0x1c6   : > { %1525 = vrot.lane.b32.xlu2 %v1262_v14, %s6029_s30 }
 0x1c7   : > { %v1310_v58 = vpop.permute.xlu0 %1309  ;;  %v1312_v46 = vpop.permute.xlu1 %1311 }
 0x1c8   : > { %v1315_v16 = vsel %vm10180_vm5, %v1308_v32, %v1310_v58  ;;  %v1316_v60 = vsel %vm10180_vm5, %v1310_v58, %v1312_v46  ;;  %v6629_v29 = vpop.permute.xlu2 %1340  ;;  %v974_v32 = vmul.f32 %v6374_v51, %v6320_v55  ;;  %v1008_v51 = vmul.f32 %v6380_v57, %v6315_v53 }
 0x1c9   : > { %v1327_v3 = vadd.f32 %v1316_v60, %v973_v25  ;;  %v1326_v18 = vadd.f32 %v1315_v16, %v972_v41  ;;  %v1006_v25 = vmul.f32 %v6380_v57, %v6303_v47 }
 0x1ca   : > { %v1328_v20 = vadd.f32 %v1312_v46, %v974_v32  ;;  %v1007_v46 = vmul.f32 %v6380_v57, %v6306_v48  ;;  %v1042_v57 = vmul.f32 %v6411_v35, %v6303_v47 }
 0x1cb   : > { %1558 = vrot.lane.b32.xlu1 %v1327_v3, %s6028_s22  ;;  %1556 = vrot.lane.b32.xlu0 %v1326_v18, %s6028_s22 }
 0x1ce   : > { %1554 = vrot.lane.b32.xlu2 %v1325_v6, %s6028_s22 }
 0x1cf   : > { %v6637_v23 = vpop.permute.xlu0 %1336  ;;  %v6639_v27 = vpop.permute.xlu1 %1338 }
 0x1d0   : > { %v1366_v14 = vpop.permute.xlu2 %1365 }
 0x1d6   : > { %1560 = vrot.lane.b32.xlu2 %v1328_v20, %s6028_s22 }
 0x1d7   : > { %v6644_v58 = vpop.permute.xlu0 %1342  ;;  %v1364_v41 = vpop.permute.xlu1 %1363 }
 0x1d8   : > { %v1373_v16 = vsel %vm1080_vm4, %v1364_v41, %v1366_v14  ;;  %v1372_v60 = vpop.permute.xlu2 %1371 }
 0x1d9   : > { %v1382_v61 = vadd.f32 %v1373_v16, %v1006_v25 }
 0x1db   : > { %1584 = vrot.lane.b32.xlu0 %v1382_v61, %s6028_s22 }
 0x1df   : > { %v1368_v3 = vpop.permute.xlu0 %1367  ;;  %v1370_v18 = vpop.permute.xlu1 %1369 }
 0x1e0   : > { %v1374_v6 = vsel %vm1080_vm4, %v1366_v14, %v1368_v3  ;;  %v1375_v32 = vsel %vm1080_vm4, %v1368_v3, %v1370_v18  ;;  %v1376_v20 = vsel %vm1080_vm4, %v1370_v18, %v1372_v60  ;;  %v6659_v25 = vpop.permute.xlu2 %1396  ;;  %v1386_v18 = vadd.f32 %v1372_v60, %v1010_v13 }
 0x1e1   : > { %v1384_v41 = vadd.f32 %v1375_v32, %v1008_v51  ;;  %v1383_v16 = vadd.f32 %v1374_v6, %v1007_v46  ;;  %v1385_v61 = vadd.f32 %v1376_v20, %v1009_v19  ;;  %v1043_v20 = vmul.f32 %v6411_v35, %v6306_v48 }
 0x1e3   : > { %1588 = vrot.lane.b32.xlu2 %v1384_v41, %s6028_s22  ;;  %1586 = vrot.lane.b32.xlu1 %v1383_v16, %s6028_s22  ;;  %v1044_v41 = vmul.f32 %v6411_v35, %v6315_v53 }
 0x1e4   : > { %1590 = vrot.lane.b32.xlu0 %v1385_v61, %s6028_s22 }
 0x1e7   : > { %v6666_v12 = vpop.permute.xlu0 %1392  ;;  %v6668_v14 = vpop.permute.xlu1 %1394 }
 0x1e8   : > { %v1422_v3 = vpop.permute.xlu2 %1421 }
 0x1eb   : > { %1592 = vrot.lane.b32.xlu1 %v1386_v18, %s6028_s22 }
 0x1ef   : > { %v6671_v51 = vpop.permute.xlu0 %1398  ;;  %v6673_v46 = vpop.permute.xlu1 %1400 }
 0x1f0   : > { %v1428_v19 = vpop.permute.xlu2 %1427 }
 0x1f7   : > { %v1424_v6 = vpop.permute.xlu0 %1423  ;;  %v1426_v32 = vpop.permute.xlu1 %1425 }
 0x1f8   : > { %v1431_v13 = vsel %vm1080_vm4, %v1422_v3, %v1424_v6  ;;  %v1432_v60 = vsel %vm1080_vm4, %v1424_v6, %v1426_v32  ;;  %v1433_v16 = vsel %vm1080_vm4, %v1426_v32, %v1428_v19  ;;  %v6684_v61 = vpop.permute.xlu2 %1452  ;;  %v1045_v6 = vmul.f32 %v6411_v35, %v6318_v54 }
 0x1f9   : > { %10304 = vst [vmem:[#allocation22_spill] sm:$0xff] %v6684_v61  ;;  %v1441_v18 = vadd.f32 %v1432_v60, %v1043_v20  ;;  %v1440_v10 = vadd.f32 %v1431_v13, %v1042_v57  ;;  %v1442_v1 = vadd.f32 %v1433_v16, %v1044_v41  ;;  %v1143_v60 = vsel %vm10180_vm5, %v6434_v59, %v6469_v7 }
 0x1fa   : > { %v865_v35 = vmul.f32 %v6335_v63, %v6303_v47 }
 0x1fb   : > { %1615 = vrot.lane.b32.xlu0 %v1441_v18, %s6028_s22  ;;  %1613 = vrot.lane.b32.xlu2 %v1440_v10, %s6028_s22 }
 0x1fc   : > { %1617 = vrot.lane.b32.xlu1 %v1442_v1, %s6028_s22 }
 0x1ff   : > { %v1430_v2 = vpop.permute.xlu0 %1429  ;;  %v6691_v3 = vpop.permute.xlu1 %1450 }
 0x200   : > { %10305 = vst [vmem:[#allocation23_spill] sm:$0xff] %v6691_v3  ;;  %v1434_v32 = vsel %vm1080_vm4, %v1428_v19, %v1430_v2  ;;  %v1444_v20 = vadd.f32 %v1430_v2, %v1046_v9  ;;  %v6696_v57 = vpop.permute.xlu2 %1458  ;;  %v1144_v2 = vsel %vm10180_vm5, %v6469_v7, %v6471_v8  ;;  %v864_v9 = vmul.f32 %v6288_v38, %v6335_v63 }
 0x201   : > { %10306 = vst [vmem:[#allocation24_spill] sm:$0xff] %v6696_v57  ;;  %v1443_v41 = vadd.f32 %v1434_v32, %v1045_v6  ;;  %v1154_v16 = vadd.f32 %v1144_v2, %v865_v35  ;;  %v1145_v7 = vsel %vm10180_vm5, %v6471_v8, %v6482_v39  ;;  %v1147_v2 = vsel %vm10180_vm5, %v6484_v50, %v6426_v49 }
 0x202   : > { %v1153_v19 = vadd.f32 %v1143_v60, %v864_v9  ;;  %v1146_v60 = vsel %vm10180_vm5, %v6482_v39, %v6484_v50  ;;  %v866_v35 = vmul.f32 %v6335_v63, %v6306_v48 }
 0x203   : > { %1621 = vrot.lane.b32.xlu0 %v1444_v20, %s6028_s22  ;;  %1619 = vrot.lane.b32.xlu2 %v1443_v41, %s6028_s22 }
 0x207   : > { %v6700_v1 = vpop.permute.xlu0 %1454  ;;  %v6702_v10 = vpop.permute.xlu1 %1456 }
 0x208   : > { %10307 = vst [vmem:[#allocation25_spill] sm:$0xff] %v6700_v1  ;;  %v1486_v13 = vpop.permute.xlu2 %1485 }
 0x209   : > { %10308 = vst [vmem:[#allocation26_spill] sm:$0xff] %v6702_v10 }
 0x20f   : > { %v1482_v18 = vpop.permute.xlu0 %1481  ;;  %v1484_v6 = vpop.permute.xlu1 %1483 }
 0x210   : > { %v1494_v32 = vsel %vm1493_vm6, %v1482_v18, %v1484_v6  ;;  %v1495_v20 = vsel %vm1493_vm6, %v1484_v6, %v1486_v13  ;;  %v1492_v9 = vpop.permute.xlu2 %1491  ;;  %v1155_v18 = vadd.f32 %v1145_v7, %v866_v35  ;;  %v1281_v35 = vsel %vm1080_vm4, %v6585_v30, %v6587_v52 }
 0x211   : > { %v1504_v59 = vadd.f32 %v1494_v32, %v1153_v19  ;;  %v1505_v41 = vadd.f32 %v1495_v20, %v1154_v16  ;;  %v867_v19 = vmul.f32 %v6335_v63, %v6315_v53  ;;  %v868_v16 = vmul.f32 %v6335_v63, %v6318_v54 }
 0x213   : > { %1642 = vrot.lane.b32.xlu1 %v1504_v59, %s6030_s29  ;;  %1644 = vrot.lane.b32.xlu2 %v1505_v41, %s6030_s29  ;;  %v1156_v8 = vadd.f32 %v1146_v60, %v867_v19  ;;  %v1157_v6 = vadd.f32 %v1147_v2, %v868_v16  ;;  %v949_v16 = vmul.f32 %v6363_v44, %v6288_v38 }
 0x214   : > { %v1283_v38 = vsel %vm1080_vm4, %v6572_v15, %v6603_v45 }
 0x217   : > { %v1488_v32 = vpop.permute.xlu0 %1487  ;;  %v1490_v20 = vpop.permute.xlu1 %1489 }
 0x218   : > { %v1496_v39 = vsel %vm1493_vm6, %v1486_v13, %v1488_v32  ;;  %v1497_v59 = vsel %vm1493_vm6, %v1488_v32, %v1490_v20  ;;  %v1498_v49 = vsel %vm1493_vm6, %v1490_v20, %v1492_v9  ;;  %v6739_v63 = vpop.permute.xlu2 %1519 }
 0x219   : > { %v1507_v50 = vadd.f32 %v1497_v59, %v1156_v8  ;;  %v1506_v41 = vadd.f32 %v1496_v39, %v1155_v18  ;;  %v1508_v0 = vadd.f32 %v1498_v49, %v1157_v6  ;;  %v950_v18 = vmul.f32 %v6363_v44, %v6303_v47 }
 0x21a   : > { %v1292_v6 = vadd.f32 %v1281_v35, %v949_v16  ;;  %v952_v35 = vmul.f32 %v6363_v44, %v6315_v53 }
 0x21b   : > { %1648 = vrot.lane.b32.xlu1 %v1507_v50, %s6030_s29  ;;  %1646 = vrot.lane.b32.xlu0 %v1506_v41, %s6030_s29  ;;  %v1285_v50 = vsel %vm1080_vm4, %v6605_v31, %v6591_v22  ;;  %v951_v41 = vmul.f32 %v6363_v44, %v6306_v48 }
 0x21c   : > { %1650 = vrot.lane.b32.xlu2 %v1508_v0, %s6030_s29  ;;  %v1282_v0 = vsel %vm1080_vm4, %v6587_v52, %v6572_v15  ;;  %v1284_v52 = vsel %vm1080_vm4, %v6603_v45, %v6605_v31 }
 0x21d   : > { %v1293_v32 = vadd.f32 %v1282_v0, %v950_v18  ;;  %v953_v0 = vmul.f32 %v6363_v44, %v6318_v54  ;;  %v1294_v18 = vadd.f32 %v1283_v38, %v951_v41  ;;  %v1295_v15 = vadd.f32 %v1284_v52, %v952_v35 }
 0x21e   : > { %v578_v52 = vlaneseq }
 0x21f   : > { %v6741_v7 = vpop.permute.xlu0 %1515  ;;  %v6743_v60 = vpop.permute.xlu1 %1517 }
 0x220   : > { %v6745_v13 = vpop.permute.xlu2 %1525  ;;  %v6789_v41 = vand.u32 127, %v578_v52 }
 0x222   : > { %v587_v35 = vand.u32 65535, %v6789_v41 }
 0x227   : > { %v6747_v2 = vpop.permute.xlu0 %1521  ;;  %v6749_v9 = vpop.permute.xlu1 %1523 }
 0x228   : > { %v1555_v19 = vpop.permute.xlu2 %1554 }
 0x230   : > { %v1561_v16 = vpop.permute.xlu2 %1560 }
 0x234   : > { %v1551_v8 = vpop.permute.xlu0 %1550 }
 0x235   : > { %v1553_v20 = vpop.permute.xlu1 %1552 }
 0x236   : > { %v1562_v39 = vsel %vm1460_vm7, %v1551_v8, %v1553_v20  ;;  %v1563_v30 = vsel %vm1460_vm7, %v1553_v20, %v1555_v19  ;;  %v1296_v8 = vadd.f32 %v1285_v50, %v953_v0 }
 0x237   : > { %v1573_v59 = vadd.f32 %v1562_v39, %v1292_v6  ;;  %v1574_v49 = vadd.f32 %v1563_v30, %v1293_v32 }
 0x239   : > { %1673 = vrot.lane.b32.xlu0 %v1573_v59, %s6031_s19  ;;  %1675 = vrot.lane.b32.xlu1 %v1574_v49, %s6031_s19  ;;  %v954_v49 = vmul.f32 %v6363_v44, %v6320_v55 }
 0x23b   : > { %v1297_v38 = vadd.f32 %v6591_v22, %v954_v49  ;;  %v590_v22 = vmul.u32 14564, %v587_v35 }
 0x23d   : > { %v1559_v6 = vpop.permute.xlu1 %1558  ;;  %v1557_v32 = vpop.permute.xlu0 %1556  ;;  %v1578_v50 = vadd.f32 %v1561_v16, %v1297_v38 }
 0x23e   : > { %v1566_v45 = vsel %vm1460_vm7, %v1559_v6, %v1561_v16  ;;  %v1564_v20 = vsel %vm1460_vm7, %v1555_v19, %v1557_v32  ;;  %v1565_v31 = vsel %vm1460_vm7, %v1557_v32, %v1559_v6  ;;  %v6793_v19 = vadd.s32 128, %v6789_v41  ;;  %v6810_v1 = vpop.permute.xlu2 %1588 }
 0x23f   : > { %v1576_v39 = vadd.f32 %v1565_v31, %v1295_v15  ;;  %v1575_v30 = vadd.f32 %v1564_v20, %v1294_v18  ;;  %v1577_v59 = vadd.f32 %v1566_v45, %v1296_v8  ;;  %v588_v18 = vshrl.u32 %v6789_v41, 16 }
 0x240   : > { %v616_v0 = vand.u32 65535, %v6793_v19  ;;  %v591_v15 = vmul.u32 58254, %v587_v35  ;;  %v617_v55 = vshrl.u32 %v6793_v19, 16  ;;  %v6802_v35 = vadd.s32 512, %v6789_v41 }
 0x241   : > { %1679 = vrot.lane.b32.xlu0 %v1576_v39, %s6031_s19  ;;  %1677 = vrot.lane.b32.xlu2 %v1575_v30, %s6031_s19  ;;  %v592_v8 = vmul.u32 14564, %v588_v18  ;;  %v593_v39 = vmul.u32 58254, %v588_v18  ;;  %v10309_v30 = vmov 0  }
 0x242   : > { %1681 = vrot.lane.b32.xlu1 %v1577_v59, %s6031_s19  ;;  %v620_v44 = vmul.u32 58254, %v616_v0  ;;  %v594_v16 = vshll.u32 %v591_v15, 16  ;;  %v619_v6 = vmul.u32 14564, %v616_v0  ;;  %v621_v32 = vmul.u32 14564, %v617_v55 }
 0x243   : > { %v596_v20 = vshll.u32 %v592_v8, 16  ;;  %v622_v49 = vmul.u32 58254, %v617_v55  ;;  %v704_v18 = vshrl.u32 %v6802_v35, 16 }
 0x244   : > { %v623_v45 = vshll.u32 %v620_v44, 16  ;;  %vm598_vm8 = vc.u32 %v590_v22, %v594_v16  ;;  %v600_v31 = vadd.s32 %v594_v16, %v590_v22  ;;  %v625_v38 = vshll.u32 %v621_v32, 16 }
 0x245   : > { %v599_v59 = vsel %vm598_vm8, 1, %v10309_v30  ;;  %v703_v22 = vand.u32 65535, %v6802_v35  ;;  %v595_v16 = vshrl.u32 %v591_v15, 16  ;;  %v626_v61 = vshrl.u32 %v621_v32, 16 }
 0x246   : > { %vm627_vm9 = vc.u32 %v619_v6, %v623_v45  ;;  %vm602_vm10 = vc.u32 %v600_v31, %v596_v20  ;;  %v601_v57 = vadd.s32 %v599_v59, %v593_v39  ;;  %v624_v59 = vshrl.u32 %v620_v44, 16 }
 0x247   : > { %v628_v52 = vsel %vm627_vm9, 1, %v10309_v30  ;;  %v603_v0 = vsel %vm602_vm10, 1, %v10309_v30  ;;  %v706_v31 = vmul.u32 14564, %v703_v22  ;;  %v709_v17 = vmul.u32 58254, %v704_v18 }
 0x248   : > { %v630_v36 = vadd.s32 %v628_v52, %v622_v49  ;;  %v605_v20 = vadd.s32 %v603_v0, %v601_v57  ;;  %v1024_v32 = vmul.f32 %v6393_v4, %v6303_v47 }
 0x249   : > { %1683 = vrot.lane.b32.xlu2 %v1578_v50, %s6031_s19  ;;  %v629_v50 = vadd.s32 %v623_v45, %v619_v6  ;;  %v707_v6 = vmul.u32 58254, %v703_v22  ;;  %v708_v45 = vmul.u32 14564, %v704_v18 }
 0x24a   : > { %v606_v3 = vadd.s32 %v605_v20, %v595_v16 }
 0x24b   : > { %vm631_vm11 = vc.u32 %v629_v50, %v625_v38  ;;  %v710_v38 = vshll.u32 %v707_v6, 16  ;;  %v712_v52 = vshll.u32 %v708_v45, 16  ;;  %v597_v50 = vshrl.u32 %v592_v8, 16 }
 0x24c   : > { %v632_v55 = vsel %vm631_vm11, 1, %v10309_v30 }
 0x24d   : > { %v6808_v10 = vpop.permute.xlu0 %1584  ;;  %v634_v49 = vadd.s32 %v632_v55, %v630_v36  ;;  %vm714_vm12 = vc.u32 %v706_v31, %v710_v38  ;;  %v716_v15 = vadd.s32 %v710_v38, %v706_v31  ;;  %v607_v0 = vadd.s32 %v606_v3, %v597_v50 }
 0x24e   : > { %v715_v57 = vsel %vm714_vm12, 1, %v10309_v30  ;;  %v711_v55 = vshrl.u32 %v707_v6, 16  ;;  %v1402_v3 = vsel %vm1080_vm4, %v6666_v12, %v6668_v14  ;;  %v713_v31 = vshrl.u32 %v708_v45, 16 }
 0x24f   : > { %v635_v62 = vadd.s32 %v634_v49, %v624_v59  ;;  %vm718_vm13 = vc.u32 %v716_v15, %v712_v52  ;;  %v717_v37 = vadd.s32 %v715_v57, %v709_v17  ;;  %v608_v8 = vshrl.u32 %v607_v0, 5 }
 0x250   : > { %v719_v36 = vsel %vm718_vm13, 1, %v10309_v30  ;;  %v1403_v17 = vsel %vm1080_vm4, %v6668_v14, %v6659_v25  ;;  %v1411_v59 = vadd.f32 %v1402_v3, %v1024_v32  ;;  %v1027_v32 = vmul.f32 %v6393_v4, %v6318_v54 }
 0x251   : > { %v636_v33 = vadd.s32 %v635_v62, %v626_v61  ;;  %v721_v20 = vadd.s32 %v719_v36, %v717_v37  ;;  %v1025_v62 = vmul.f32 %v6393_v4, %v6306_v48  ;;  %v609_v61 = vmul.u32 36, %v608_v8 }
 0x252   : > { %v1026_v37 = vmul.f32 %v6393_v4, %v6315_v53 }
 0x253   : > { %v637_v16 = vshrl.u32 %v636_v33, 5  ;;  %v1404_v33 = vsel %vm1080_vm4, %v6659_v25, %v6671_v51  ;;  %v722_v6 = vadd.s32 %v721_v20, %v711_v55  ;;  %v1412_v49 = vadd.f32 %v1403_v17, %v1025_v62  ;;  %v6841_v55 = vld [vmem:[#allocation2 + $0x38] sm:$0xff] }
 0x254   : > { %v1413_v38 = vadd.f32 %v1404_v33, %v1026_v37  ;;  %v610_v0 = vsub.s32 %v6789_v41, %v609_v61  ;;  %v1405_v20 = vsel %vm1080_vm4, %v6671_v51, %v6673_v46 }
 0x255   : > { %v6812_v39 = vpop.permute.xlu1 %1586  ;;  %v1614_v22 = vpop.permute.xlu2 %1613  ;;  %v638_v18 = vmul.u32 36, %v637_v16  ;;  %v723_v16 = vadd.s32 %v722_v6, %v713_v31  ;;  %v1414_v62 = vadd.f32 %v1405_v20, %v1027_v32 }
 0x256   : > { %v6815_v34 = vpop.permute.xlu0 %1590  ;;  %vm729_vm14 = vcmp.ne.s32.totalorder %v610_v0, 0  ;;  %vm734_vm15 = vcmp.lt.s32.totalorder %v610_v0, 0  ;;  %v744_v33 = vadd.s32 36, %v610_v0 }
 0x257   : > { %v639_v45 = vsub.s32 %v6793_v19, %v638_v18  ;;  %v724_v3 = vshrl.u32 %v723_v16, 5  ;;  %vm739_vm8 = vmand %vm734_vm15, %vm729_vm14  ;;  %v6882_v16 = vld [vmem:[%s10108_s7] sm:$0xff] }
 0x259   : > { %vm730_vm0 = vcmp.ne.s32.totalorder %v639_v45, 0  ;;  %vm735_vm1 = vcmp.lt.s32.totalorder %v639_v45, 0  ;;  %v745_v37 = vadd.s32 36, %v639_v45  ;;  %v725_v31 = vmul.u32 36, %v724_v3 }
 0x25a   : > { %vm740_vm9 = vmand %vm735_vm1, %vm730_vm0 }
 0x25b   : > { %v750_v6 = vsel %vm740_vm9, %v745_v37, %v639_v45 }
 0x25c   : > { %vm755_vm12 = vcmp.ge.s32.totalorder %v750_v6, 10  ;;  %vm760_vm13 = vcmp.lt.s32.totalorder %v750_v6, 26 }
 0x25d   : > { %v6818_v44 = vpop.permute.xlu1 %1592  ;;  %v1620_v52 = vpop.permute.xlu2 %1619  ;;  %vm765_vm15 = vmand %vm755_vm12, %vm760_vm13 }
 0x26d   : > { %v1616_v12 = vpop.permute.xlu0 %1615 }
 0x26e   : > { %v1623_v50 = vsel %vm1460_vm7, %v1614_v22, %v1616_v12  ;;  %v1618_v15 = vpop.permute.xlu1 %1617  ;;  %v1028_v22 = vmul.f32 %v6841_v55, %v6393_v4  ;;  %v1060_v4 = vmul.f32 %v6424_v42, %v6303_v47 }
 0x26f   : > { %v1624_v14 = vsel %vm1460_vm7, %v1616_v12, %v1618_v15  ;;  %v1625_v57 = vsel %vm1460_vm7, %v1618_v15, %v1620_v52  ;;  %v1632_v25 = vadd.f32 %v1623_v50, %v1411_v59  ;;  %v726_v59 = vsub.s32 %v6802_v35, %v725_v31 }
 0x270   : > { %v1633_v36 = vadd.f32 %v1624_v14, %v1412_v49  ;;  %v1634_v8 = vadd.f32 %v1625_v57, %v1413_v38  ;;  %v1415_v19 = vadd.f32 %v6673_v46, %v1028_v22  ;;  %v749_v46 = vsel %vm739_vm8, %v744_v33, %v610_v0 }
 0x271   : > { %1708 = vrot.lane.b32.xlu0 %v1632_v25, %s6031_s19  ;;  %vm754_vm10 = vcmp.ge.s32.totalorder %v749_v46, 10  ;;  %vm759_vm11 = vcmp.lt.s32.totalorder %v749_v46, 26  ;;  %v1061_v12 = vmul.f32 %v6424_v42, %v6306_v48  ;;  %v1062_v49 = vmul.f32 %v6424_v42, %v6315_v53 }
 0x272   : > { %1710 = vrot.lane.b32.xlu1 %v1633_v36, %s6031_s19  ;;  %1712 = vrot.lane.b32.xlu2 %v1634_v8, %s6031_s19  ;;  %vm764_vm14 = vmand %vm754_vm10, %vm759_vm11  ;;  %v1063_v38 = vmul.f32 %v6424_v42, %v6318_v54  ;;  %vm733_vm0 = vcmp.ne.s32.totalorder %v726_v59, 0  ;;  %vm738_vm1 = vcmp.lt.s32.totalorder %v726_v59, 0  ;;  %v748_v35 = vadd.s32 36, %v726_v59 }
 0x273   : > { %vm743_vm8 = vmand %vm738_vm1, %vm733_vm0  ;;  %v1064_v25 = vmul.f32 %v6841_v55, %v6424_v42  ;;  %v581_v0 = vadd.s32 256, %v6789_v41  ;;  %v582_v36 = vadd.s32 384, %v6789_v41 }
 0x274   : > { %v753_v57 = vsel %vm743_vm8, %v748_v35, %v726_v59  ;;  %v6897_v35 = vld [vmem:[%s10112_s11] sm:$0xff] }
 0x275   : > { %v1622_v17 = vpop.permute.xlu0 %1621  ;;  %vm758_vm9 = vcmp.ge.s32.totalorder %v753_v57, 10  ;;  %vm763_vm10 = vcmp.lt.s32.totalorder %v753_v57, 26  ;;  %v645_v8 = vand.u32 65535, %v581_v0  ;;  %v674_v45 = vand.u32 65535, %v582_v36  ;;  %v6900_v57 = vpop.permute.xlu2 %1644 }
 0x276   : > { %v1626_v61 = vsel %vm1460_vm7, %v1620_v52, %v1622_v17  ;;  %v1636_v51 = vadd.f32 %v1622_v17, %v1415_v19  ;;  %v6869_v52 = vld [vmem:[#allocation2] sm:$0xff]  ;;  %vm768_vm11 = vmand %vm758_vm9, %vm763_vm10  ;;  %v646_v22 = vshrl.u32 %v581_v0, 16  ;;  %v675_v32 = vshrl.u32 %v582_v36, 16 }
 0x277   : > { %v1635_v18 = vadd.f32 %v1626_v61, %v1414_v62  ;;  %v5660_v50 = vsel %vm764_vm14, 1.0, %v6869_v52  ;;  %v5661_v15 = vsel %vm765_vm15, 1.0, %v6869_v52  ;;  %v5664_v42 = vsel %vm768_vm11, 1.0, %v6869_v52 }
 0x278   : > { %v5796_v14 = vpack.i.bf16 %v5661_v15, %v5660_v50  ;;  %v649_v20 = vmul.u32 58254, %v645_v8  ;;  %v678_v19 = vmul.u32 58254, %v674_v45  ;;  %v648_v3 = vmul.u32 14564, %v645_v8 }
 0x279   : > { %1714 = vrot.lane.b32.xlu0 %v1635_v18, %s6031_s19  ;;  %v650_v62 = vmul.u32 14564, %v646_v22  ;;  %v677_v17 = vmul.u32 14564, %v674_v45  ;;  %v679_v33 = vmul.u32 14564, %v675_v32  ;;  %v680_v18 = vmul.u32 58254, %v675_v32 }
 0x27a   : > { %1716 = vrot.lane.b32.xlu1 %v1636_v51, %s6031_s19  ;;  %1771 = vrot.lane.b32.xlu2 %v1060_v4, %s6032_s23  ;;  %v652_v41 = vshll.u32 %v649_v20, 16  ;;  %v681_v61 = vshll.u32 %v678_v19, 16  ;;  %v651_v51 = vmul.u32 58254, %v646_v22  ;;  %v653_v50 = vshrl.u32 %v649_v20, 16  ;;  %s6034_s19 = smov 19  }
 0x27b   : > { %v654_v37 = vshll.u32 %v650_v62, 16  ;;  %v683_v31 = vshll.u32 %v679_v33, 16  ;;  %v684_v22 = vshrl.u32 %v679_v33, 16 }
 0x27c   : > { %vm656_vm12 = vc.u32 %v648_v3, %v652_v41  ;;  %v658_v4 = vadd.s32 %v652_v41, %v648_v3  ;;  %vm685_vm13 = vc.u32 %v677_v17, %v681_v61  ;;  %v687_v59 = vadd.s32 %v681_v61, %v677_v17 }
 0x27d   : > { %v657_v46 = vsel %vm656_vm12, 1, %v10309_v30  ;;  %v686_v6 = vsel %vm685_vm13, 1, %v10309_v30 }
 0x27e   : > { %vm660_vm14 = vc.u32 %v658_v4, %v654_v37  ;;  %vm689_vm15 = vc.u32 %v687_v59, %v683_v31  ;;  %v10310_v37 = vmov 2   ;;  %v6908_v4 = vpop.permute.xlu2 %1650  ;;  %v10311_v31 = vmov 3  }
 0x27f   : > { %v661_v15 = vsel %vm660_vm14, 1, %v10309_v30  ;;  %v690_v8 = vsel %vm689_vm15, 1, %v10309_v30 }
 0x281   : > { %1773 = vrot.lane.b32.xlu0 %v1061_v12, %s6032_s23  ;;  %v6892_v12 = vld [vmem:[%s10104_s3] sm:$0xff] }
 0x282   : > { %1775 = vrot.lane.b32.xlu1 %v1062_v49, %s6032_s23  ;;  %1777 = vrot.lane.b32.xlu2 %v1063_v38, %s6032_s23  ;;  %v659_v49 = vadd.s32 %v657_v46, %v651_v51  ;;  %v688_v38 = vadd.s32 %v686_v6, %v680_v18 }
 0x284   : > { %v692_v32 = vadd.s32 %v690_v8, %v688_v38 }
 0x285   : > { %v6903_v45 = vpop.permute.xlu1 %1642 }
 0x289   : > { %1779 = vrot.lane.b32.xlu0 %v1064_v25, %s6032_s23  ;;  %v663_v25 = vadd.s32 %v661_v15, %v659_v49  ;;  %v1212_v49 = vsel %vm1080_vm4, %v6523_v28, %v6510_v56 }
 0x28a   : > { %5797 = vrot.lane.b32.xlu1 %v5796_v14, %s6033_s18  ;;  %v682_v14 = vshrl.u32 %v678_v19, 16 }
 0x28b   : > { %v664_v3 = vadd.s32 %v663_v25, %v653_v50 }
 0x28c   : > { %v693_v20 = vadd.s32 %v692_v32, %v682_v14 }
 0x28d   : > { %v6912_v33 = vpop.permute.xlu1 %1648 }
 0x28e   : > { %v694_v41 = vadd.s32 %v693_v20, %v684_v22 }
 0x290   : > { %v695_v61 = vshrl.u32 %v694_v41, 5  ;;  %v1531_v41 = vsel %vm1493_vm6, %v6749_v9, %v6745_v13 }
 0x291   : > { %1979 = vperm.xlu0 %5792, %v6882_v16  }
 0x292   : > { %1849 = vrot.lane.b32.xlu1 %v5664_v42, %s6033_s18  ;;  %v655_v42 = vshrl.u32 %v650_v62, 16  ;;  %v696_v18 = vmul.u32 36, %v695_v61  ;;  %v6941_v61 = vpop.permute.xlu0 %1646 }
 0x294   : > { %v665_v17 = vadd.s32 %v664_v3, %v655_v42  ;;  %v697_v46 = vsub.s32 %v582_v36, %v696_v18  ;;  %v1528_v36 = vsel %vm1493_vm6, %v6743_v60, %v6739_v63 }
 0x296   : > { %v666_v19 = vshrl.u32 %v665_v17, 5  ;;  %vm732_vm8 = vcmp.ne.s32.totalorder %v697_v46, 0  ;;  %vm737_vm9 = vcmp.lt.s32.totalorder %v697_v46, 0  ;;  %v747_v59 = vadd.s32 36, %v697_v46 }
 0x297   : > { %vm742_vm11 = vmand %vm737_vm9, %vm732_vm8  ;;  %v1215_v17 = vsel %vm1080_vm4, %v6541_v11, %v6528_v21  ;;  %vm1810_vm8 = vcmask 154624   ;;  %vm1851_vm9 = vcmask 244736  }
 0x298   : > { %v667_v51 = vmul.u32 36, %v666_v19  ;;  %v752_v50 = vsel %vm742_vm11, %v747_v59, %v697_v46  ;;  %vm3616_vm11 = vcmask 23552  }
 0x299   : > { %2031 = vperm.xlu0 %5792, %v6892_v12   ;;  %vm757_vm14 = vcmp.ge.s32.totalorder %v752_v50, 10  ;;  %vm762_vm15 = vcmp.lt.s32.totalorder %v752_v50, 26 }
 0x29a   : > { %1907 = vperm.xlu1 %5806, %v6897_v35   ;;  %v668_v62 = vsub.s32 %v581_v0, %v667_v51  ;;  %v910_v0 = vmul.f32 %v6340_v5, %v6303_v47  ;;  %vm767_vm5 = vmand %vm757_vm14, %vm762_vm15  ;;  %vm2855_vm14 = vcmask 982016   ;;  %vm3947_vm15 = vcmask 39936  }
 0x29b   : > { %v1678_v25 = vpop.permute.xlu2 %1677  ;;  %v5663_v8 = vsel %vm767_vm5, 1.0, %v6869_v52  ;;  %vm1750_vm5 = vcmask 728064  }
 0x29c   : > { %vm731_vm0 = vcmp.ne.s32.totalorder %v668_v62, 0  ;;  %vm736_vm1 = vcmp.lt.s32.totalorder %v668_v62, 0  ;;  %v746_v6 = vadd.s32 36, %v668_v62  ;;  %v1223_v15 = vadd.f32 %v1212_v49, %v910_v0 }
 0x29d   : > { %vm741_vm10 = vmand %vm736_vm1, %vm731_vm0  ;;  %vm1685_vm1 = vcmask 760832   ;;  %v914_v0 = vmul.f32 %v6841_v55, %v6340_v5 }
 0x29e   : > { %v751_v38 = vsel %vm741_vm10, %v746_v6, %v668_v62  ;;  %v1539_v42 = vadd.f32 %v1528_v36, %v1223_v15  ;;  %v10312_v62 = vmov 6   ;;  %vm1881_vm10 = vcmask 605184  }
 0x29f   : > { %vm756_vm12 = vcmp.ge.s32.totalorder %v751_v38, 10  ;;  %vm761_vm13 = vcmp.lt.s32.totalorder %v751_v38, 26  ;;  %v10313_v38 = vmov 4   ;;  %v1227_v50 = vadd.f32 %v6528_v21, %v914_v0 }
 0x2a0   : > { %vm766_vm0 = vmand %vm756_vm12, %vm761_vm13  ;;  %v1529_v21 = vsel %vm1493_vm6, %v6739_v63, %v6747_v2  ;;  %v1346_v0 = vsel %vm1080_vm4, %v6639_v27, %v6629_v29  ;;  %vm3736_vm12 = vcmask 752640   ;;  %vm3835_vm13 = vcmask 457728  }
 0x2a1   : > { %5816 = vset.pattern.permute.xlu0 %v10310_v37  ;;  %v5662_v14 = vsel %vm766_vm0, 1.0, %v6869_v52  ;;  %v913_v52 = vmul.f32 %v6340_v5, %v6318_v54  ;;  %v1543_v36 = vadd.f32 %v6745_v13, %v1227_v50  ;;  %v990_v50 = vmul.f32 %v6298_v43, %v6315_v53 }
 0x2a2   : > { %5808 = vset.pattern.permute.xlu1 %v10311_v31  ;;  %1927 = vperm.xlu0 %5816, %v6897_v35   ;;  %v5801_v32 = vpack.i.bf16 %v5663_v8, %v5662_v14  ;;  %v1213_v14 = vsel %vm1080_vm4, %v6510_v56, %v6539_v40  ;;  %v911_v8 = vmul.f32 %v6340_v5, %v6306_v48  ;;  %vm3568_vm0 = vcmask 916480  }
 0x2a3   : > { %1937 = vperm.xlu1 %5808, %v6897_v35   ;;  %v1226_v19 = vadd.f32 %v1215_v17, %v913_v52  ;;  %v1684_v18 = vpop.permute.xlu2 %1683  ;;  %v10315_v17 = vmov 7   ;;  %v10316_v52 = vmov 8  }
 0x2a4   : > { %5802 = vrot.lane.b32.xlu2 %v5801_v32, %s6033_s18  ;;  %v1702_v15 = vadd.f32 %v1684_v18, %v1543_v36  ;;  %v10314_v32 = vmov 5   ;;  %v1224_v13 = vadd.f32 %v1213_v14, %v911_v8  ;;  %v1594_v36 = vsel %vm1460_vm7, %v6808_v10, %v6812_v39 }
 0x2a5   : > { %v1542_v51 = vadd.f32 %v1531_v41, %v1226_v19  ;;  %v1355_v14 = vadd.f32 %v1346_v0, %v990_v50  ;;  %v992_v10 = vmul.f32 %v6841_v55, %v6298_v43  ;;  %v1597_v55 = vsel %vm1460_vm7, %v6815_v34, %v6818_v44 }
 0x2ab   : > { %5810 = vset.pattern.permute.xlu1 %v10309_v30  ;;  %v6926_v22 = vpop.permute.xlu1 %1675  ;;  %v6951_v49 = vpop.permute.xlu0 %1673 }
 0x2ac   : > { %v1687_v3 = vsel %vm1685_vm1, %v6926_v22, %v1678_v25  ;;  %1959 = vperm.xlu1 %5810, %v6882_v16   ;;  %1917 = vperm.xlu2 %5807, %v6897_v35  }
 0x2ad   : > { %v1698_v20 = vadd.f32 %v1687_v3, %v1539_v42  ;;  %v1540_v3 = vadd.f32 %v1529_v21, %v1224_v13 }
 0x2af   : > { %1740 = vrot.lane.b32.xlu0 %v1698_v20, %s6032_s23 }
 0x2b3   : > { %v6966_v42 = vpop.permute.xlu0 %1679 }
 0x2b4   : > { %5812 = vset.pattern.permute.xlu1 %v10312_v62  ;;  %v6944_v46 = vpop.permute.xlu1 %1681  ;;  %5809 = vset.pattern.permute.xlu2 %v10313_v38  ;;  %v1688_v56 = vsel %vm1685_vm1, %v1678_v25, %v6966_v42 }
 0x2b5   : > { %v1690_v6 = vsel %vm1685_vm1, %v6944_v46, %v1684_v18  ;;  %1989 = vperm.xlu1 %5812, %v6897_v35   ;;  %1947 = vperm.xlu2 %5809, %v6897_v35   ;;  %v1699_v20 = vadd.f32 %v1688_v56, %v1540_v3  ;;  %v1344_v18 = vsel %vm1080_vm4, %v6616_v24, %v6637_v23 }
 0x2b6   : > { %v1701_v59 = vadd.f32 %v1690_v6, %v1542_v51  ;;  %v1596_v24 = vsel %vm1460_vm7, %v6810_v1, %v6815_v34  ;;  %v1211_v34 = vsel %vm1080_vm4, %v6521_v26, %v6523_v28  ;;  %v1686_v26 = vsel %vm1685_vm1, %v6951_v49, %v6926_v22 }
 0x2b7   : > { %v1605_v56 = vadd.f32 %v1596_v24, %v1355_v14  ;;  %v1357_v14 = vadd.f32 %v6644_v58, %v992_v10  ;;  %v1689_v22 = vsel %vm1685_vm1, %v6966_v42, %v6944_v46 }
 0x2b8   : > { %1746 = vrot.lane.b32.xlu0 %v1701_v59, %s6032_s23  ;;  %v988_v59 = vmul.f32 %v6298_v43, %v6303_v47 }
 0x2bd   : > { %5814 = vset.pattern.permute.xlu1 %v10310_v37  ;;  %5811 = vset.pattern.permute.xlu2 %v10314_v32 }
 0x2be   : > { %2011 = vperm.xlu1 %5814, %v6882_v16   ;;  %1969 = vperm.xlu2 %5811, %v6897_v35  }
 0x2c6   : > { %1748 = vrot.lane.b32.xlu1 %v1702_v15, %s6032_s23  ;;  %5813 = vset.pattern.permute.xlu2 %v10309_v30  ;;  %v1353_v15 = vadd.f32 %v1344_v18, %v988_v59  ;;  %v1347_v18 = vsel %vm1080_vm4, %v6629_v29, %v6644_v58  ;;  %v1607_v29 = vadd.f32 %v6818_v44, %v1357_v14 }
 0x2c7   : > { %5817 = vset.pattern.permute.xlu1 %v10311_v31  ;;  %2001 = vperm.xlu2 %5813, %v6892_v12  }
 0x2c8   : > { %v1603_v21 = vadd.f32 %v1594_v36, %v1353_v15  ;;  %v991_v36 = vmul.f32 %v6298_v43, %v6318_v54 }
 0x2cc   : > { %v6982_v63 = vpop.permute.xlu2 %1712 }
 0x2ce   : > { %1742 = vrot.lane.b32.xlu1 %v1699_v20, %s6032_s23 }
 0x2cf   : > { %5815 = vset.pattern.permute.xlu2 %v10315_v17 }
 0x2d0   : > { %2021 = vperm.xlu2 %5815, %v6897_v35  }
 0x2d4   : > { %v1772_v25 = vpop.permute.xlu2 %1771 }
 0x2d8   : > { %5818 = vset.pattern.permute.xlu2 %v10316_v52 }
 0x2dc   : > { %v1778_v59 = vpop.permute.xlu2 %1777 }
 0x2e3   : > { %v1709_v41 = vpop.permute.xlu0 %1708 }
 0x2e4   : > { %v6985_v19 = vpop.permute.xlu1 %1710 }
 0x2e5   : > { %v1718_v8 = vsel %vm1685_vm1, %v1709_v41, %v6985_v19  ;;  %v1719_v46 = vsel %vm1685_vm1, %v6985_v19, %v6982_v63  ;;  %v10320_v19 = vmov 11  }
 0x2e6   : > { %v1727_v3 = vadd.f32 %v1718_v8, %v1603_v21  ;;  %v1356_v21 = vadd.f32 %v1347_v18, %v991_v36  ;;  %v1214_v36 = vsel %vm1080_vm4, %v6539_v40, %v6541_v11  ;;  %v989_v40 = vmul.f32 %v6298_v43, %v6306_v48 }
 0x2eb   : > { %v1715_v51 = vpop.permute.xlu0 %1714 }
 0x2ec   : > { %v1717_v6 = vpop.permute.xlu1 %1716  ;;  %v1720_v13 = vsel %vm1685_vm1, %v6982_v63, %v1715_v51  ;;  %v1825_v63 = vld [vmem:[%s10103_s2] sm:$0xff] }
 0x2ed   : > { %v1729_v0 = vadd.f32 %v1720_v13, %v1605_v56  ;;  %v1606_v13 = vadd.f32 %v1597_v55, %v1356_v21  ;;  %v1731_v56 = vadd.f32 %v1717_v6, %v1607_v29  ;;  %v10323_v29 = vmov 14  }
 0x2f3   : > { %v1774_v20 = vpop.permute.xlu0 %1773 }
 0x2f4   : > { %v1776_v50 = vpop.permute.xlu1 %1775  ;;  %v1781_v41 = vsel %vm1750_vm5, %v1772_v25, %v1774_v20  ;;  %v1721_v25 = vsel %vm1685_vm1, %v1715_v51, %v1717_v6  ;;  %v1527_v51 = vsel %vm1493_vm6, %v6741_v7, %v6743_v60  ;;  %v1530_v7 = vsel %vm1493_vm6, %v6747_v2, %v6749_v9 }
 0x2f5   : > { %v1783_v15 = vsel %vm1750_vm5, %v1776_v50, %v1778_v59  ;;  %v1790_v24 = vadd.f32 %v1781_v41, %v1727_v3  ;;  %v1730_v3 = vadd.f32 %v1721_v25, %v1606_v13  ;;  %v1595_v9 = vsel %vm1460_vm7, %v6812_v39, %v6810_v1 }
 0x2f6   : > { %v1792_v8 = vadd.f32 %v1783_v15, %v1729_v0  ;;  %v7028_v0 = vld [vmem:[#allocation2 + $0x10] sm:$0xff]  ;;  %v912_v15 = vmul.f32 %v6340_v5, %v6315_v53  ;;  %v10318_v1 = vmov 9   ;;  %v10319_v39 = vmov 17  }
 0x2f7   : > { %1800 = vrot.lane.b32.xlu1 %v1790_v24, %s6034_s19  ;;  %v909_v44 = vmul.f32 %v7028_v0, %v6340_v5  ;;  %v10317_v24 = vmov 10   ;;  %v1345_v5 = vsel %vm1080_vm4, %v6637_v23, %v6639_v27  ;;  %v1782_v23 = vsel %vm1750_vm5, %v1774_v20, %v1776_v50 }
 0x2f8   : > { %1804 = vrot.lane.b32.xlu0 %v1792_v8, %s6034_s19  ;;  %v1225_v60 = vadd.f32 %v1214_v36, %v912_v15  ;;  %v1354_v49 = vadd.f32 %v1345_v5, %v989_v40  ;;  %v10321_v50 = vmov 12   ;;  %v10332_v36 = vmov 1   ;;  %v2510_v5 = vld [vmem:[%s10105_s4] sm:$0xff] }
 0x2f9   : > { %v1222_v6 = vadd.f32 %v1211_v34, %v909_v44  ;;  %vm1652_vm6 = vcmask 1014784  }
 0x2fa   : > { %v1541_v11 = vadd.f32 %v1530_v7, %v1225_v60  ;;  %v1604_v42 = vadd.f32 %v1595_v9, %v1354_v49  ;;  %v10333_v60 = vmov 19  }
 0x2fb   : > { %v1780_v41 = vpop.permute.xlu0 %1779  ;;  %v1538_v28 = vadd.f32 %v1527_v51, %v1222_v6  ;;  %v10329_v51 = vmov 20  }
 0x2fc   : > { %v1784_v58 = vsel %vm1750_vm5, %v1778_v59, %v1780_v41  ;;  %v1794_v10 = vadd.f32 %v1780_v41, %v1731_v56  ;;  %v1700_v2 = vadd.f32 %v1689_v22, %v1541_v11  ;;  %v1728_v43 = vadd.f32 %v1719_v46, %v1604_v42  ;;  %v7101_v55 = vpop.permute.xlu1 %5797 }
 0x2fd   : > { %v1793_v18 = vadd.f32 %v1784_v58, %v1730_v3  ;;  %v1697_v59 = vadd.f32 %v1686_v26, %v1538_v28  ;;  %v10324_v41 = vmov 15  }
 0x2fe   : > { %1808 = vrot.lane.b32.xlu2 %v1794_v10, %s6034_s19  ;;  %v1791_v27 = vadd.f32 %v1782_v23, %v1728_v43  ;;  %v7091_v20 = vpop.permute.xlu2 %5802  ;;  %v10326_v10 = vmov 13  }
 0x2ff   : > { %1806 = vrot.lane.b32.xlu1 %v1793_v18, %s6034_s19  ;;  %v10328_v18 = vmov 18  }
 0x300   : > { %2061 = vperm.xlu0 %5816, %v6892_v12  }
 0x303   : > { %v7103_v8 = vpop.permute.xlu0 %1979 }
 0x304   : > { %v7112_v25 = vpop.permute.xlu1 %1849 }
 0x306   : > { %1738 = vrot.lane.b32.xlu2 %v1697_v59, %s6032_s23  ;;  %v7098_v14 = vpop.permute.xlu2 %1917  ;;  %v10331_v59 = vmov 16  }
 0x307   : > { %2041 = vperm.xlu1 %5817, %v6882_v16  }
 0x308   : > { %5823 = vset.pattern.permute.xlu0 %v10317_v24 }
 0x309   : > { %2111 = vperm.xlu0 %5823, %v6897_v35  }
 0x30b   : > { %v7114_v13 = vpop.permute.xlu0 %2031 }
 0x30c   : > { %v7125_v58 = vpop.permute.xlu1 %1907 }
 0x30d   : > { %10325 = vst [vmem:[#allocation28_spill] sm:$0xff] %v7125_v58 }
 0x30e   : > { %1744 = vrot.lane.b32.xlu2 %v1700_v2, %s6032_s23  ;;  %s6038_s23 = smov 3  }
 0x30f   : > { %5819 = vset.pattern.permute.xlu1 %v10313_v38  ;;  %v7109_v21 = vpop.permute.xlu2 %1947 }
 0x310   : > { %2071 = vperm.xlu1 %5819, %v6882_v16   ;;  %10322 = vst [vmem:[#allocation27_spill] sm:$0xff] %v7109_v21 }
 0x311   : > { %5828 = vset.pattern.permute.xlu0 %v10315_v17 }
 0x312   : > { %2161 = vperm.xlu0 %5828, %v6882_v16  }
 0x314   : > { %v7121_v3 = vpop.permute.xlu0 %1927 }
 0x316   : > { %1802 = vrot.lane.b32.xlu2 %v1791_v27, %s6034_s19  ;;  %v10335_v27 = vld [vmem:[#allocation19_spill] sm:$0xff]  ;;  %s6036_s19 = smov 120  }
 0x318   : > { %5821 = vset.pattern.permute.xlu1 %v10311_v31  ;;  %v7119_v56 = vpop.permute.xlu2 %1969 }
 0x319   : > { %2091 = vperm.xlu1 %5821, %v6892_v12  }
 0x31a   : > { %5833 = vset.pattern.permute.xlu0 %v10318_v1 }
 0x31b   : > { %2211 = vperm.xlu0 %5833, %v6882_v16  }
 0x31e   : > { %2051 = vperm.xlu2 %5818, %v6897_v35  }
 0x321   : > { %5824 = vset.pattern.permute.xlu1 %v10313_v38  ;;  %v7129_v34 = vpop.permute.xlu2 %2001  ;;  %v1741_v44 = vpop.permute.xlu0 %1740 }
 0x322   : > { %2121 = vperm.xlu1 %5824, %v6892_v12   ;;  %10327 = vst [vmem:[#allocation29_spill] sm:$0xff] %v7129_v34 }
 0x323   : > { %5838 = vset.pattern.permute.xlu0 %v10319_v39  ;;  %v10338_v39 = vld [vmem:[#allocation20_spill] sm:$0xff] }
 0x324   : > { %2261 = vperm.xlu0 %5838, %v6897_v35  }
 0x326   : > { %5820 = vset.pattern.permute.xlu2 %v10318_v1  ;;  %v10343_v1 = vld [vmem:[#allocation26_spill] sm:$0xff] }
 0x327   : > { %2081 = vperm.xlu2 %5820, %v6897_v35  }
 0x32a   : > { %5826 = vset.pattern.permute.xlu1 %v10320_v19  ;;  %v7138_v6 = vpop.permute.xlu2 %2021  ;;  %v7141_v26 = vpop.permute.xlu0 %1746  ;;  %v10341_v19 = vld [vmem:[#allocation23_spill] sm:$0xff] }
 0x32b   : > { %2141 = vperm.xlu1 %5826, %v6897_v35  }
 0x32c   : > { %5839 = vset.pattern.permute.xlu0 %v10309_v30 }
 0x32d   : > { %1828 = vperm.xlu0 %5839, %v1825_v63   ;;  %v10336_v63 = vld [vmem:[#allocation17_spill] sm:$0xff] }
 0x32f   : > { %5822 = vset.pattern.permute.xlu2 %v10314_v32 }
 0x330   : > { %2101 = vperm.xlu2 %5822, %v6882_v16  }
 0x333   : > { %5829 = vset.pattern.permute.xlu1 %v10321_v50 }
 0x334   : > { %2171 = vperm.xlu1 %5829, %v6897_v35  }
 0x338   : > { %5825 = vset.pattern.permute.xlu2 %v10312_v62 }
 0x339   : > { %2131 = vperm.xlu2 %5825, %v6882_v16  }
 0x33c   : > { %5831 = vset.pattern.permute.xlu1 %v10316_v52  ;;  %v10342_v52 = vld [vmem:[#allocation25_spill] sm:$0xff] }
 0x33d   : > { %2191 = vperm.xlu1 %5831, %v6882_v16  }
 0x341   : > { %5827 = vset.pattern.permute.xlu2 %v10314_v32 }
 0x342   : > { %2151 = vperm.xlu2 %5827, %v6892_v12  }
 0x345   : > { %5834 = vset.pattern.permute.xlu1 %v10323_v29  ;;  %v1082_v29 = vsel %vm1080_vm4, %v10335_v27, %v10338_v39 }
 0x346   : > { %2221 = vperm.xlu1 %5834, %v6897_v35  }
 0x34a   : > { %5830 = vset.pattern.permute.xlu2 %v10312_v62 }
 0x34b   : > { %2181 = vperm.xlu2 %5830, %v6892_v12   ;;  %v7133_v12 = vpop.permute.xlu1 %1937 }
 0x34e   : > { %5836 = vset.pattern.permute.xlu1 %v10324_v41  ;;  %v10339_v41 = vld [vmem:[#allocation18_spill] sm:$0xff] }
 0x34f   : > { %2241 = vperm.xlu1 %5836, %v6897_v35  }
 0x353   : > { %5832 = vset.pattern.permute.xlu2 %v10326_v10  ;;  %v7143_v28 = vpop.permute.xlu1 %1959  ;;  %v1083_v10 = vsel %vm1080_vm4, %v10338_v39, %v10339_v41 }
 0x354   : > { %2201 = vperm.xlu2 %5832, %v6897_v35   ;;  %10330 = vst [vmem:[#allocation30_spill] sm:$0xff] %v7143_v28 }
 0x357   : > { %5840 = vset.pattern.permute.xlu1 %v10328_v18 }
 0x358   : > { %2271 = vperm.xlu1 %5840, %v6897_v35   ;;  %v7150_v7 = vpop.permute.xlu2 %1808 }
 0x35c   : > { %5835 = vset.pattern.permute.xlu2 %v10317_v24  ;;  %v10344_v24 = vld [vmem:[#allocation21_spill] sm:$0xff] }
 0x35d   : > { %2231 = vperm.xlu2 %5835, %v6882_v16   ;;  %v7152_v16 = vpop.permute.xlu1 %1989 }
 0x360   : > { %5842 = vset.pattern.permute.xlu1 %v10329_v51  ;;  %v1739_v11 = vpop.permute.xlu2 %1738  ;;  %v1081_v51 = vsel %vm1080_vm4, %v10336_v63, %v10335_v27 }
 0x361   : > { %2291 = vperm.xlu1 %5842, %v6897_v35  }
 0x365   : > { %5837 = vset.pattern.permute.xlu2 %v10331_v59  ;;  %v7162_v40 = vpop.permute.xlu1 %2011  ;;  %v10340_v59 = vld [vmem:[#allocation22_spill] sm:$0xff] }
 0x366   : > { %2251 = vperm.xlu2 %5837, %v6897_v35   ;;  %v1462_v39 = vsel %vm1460_vm7, %v10340_v59, %v10342_v52 }
 0x368   : > { %v7166_v9 = vpop.permute.xlu2 %1744 }
 0x369   : > { %5844 = vset.pattern.permute.xlu1 %v10332_v36 }
 0x36a   : > { %v7148_v15 = vpop.permute.xlu0 %1804 }
 0x36d   : > { %v1749_v49 = vpop.permute.xlu1 %1748 }
 0x36e   : > { %5841 = vset.pattern.permute.xlu2 %v10333_v60  ;;  %v10337_v60 = vld [vmem:[#allocation16_spill] sm:$0xff] }
 0x36f   : > { %2281 = vperm.xlu2 %5841, %v6897_v35   ;;  %v829_v18 = vmul.f32 %v10337_v60, %v6303_v47  ;;  %v830_v50 = vmul.f32 %v10337_v60, %v6306_v48  ;;  %v832_v63 = vmul.f32 %v10337_v60, %v6318_v54  ;;  %v831_v27 = vmul.f32 %v10337_v60, %v6315_v53 }
 0x370   : > { %v1803_v35 = vpop.permute.xlu2 %1802  ;;  %v1463_v48 = vsel %vm1460_vm7, %v10342_v52, %v10343_v1  ;;  %v1653_v53 = vsel %vm1652_vm6, %v6903_v45, %v6900_v57  ;;  %v1655_v52 = vsel %vm1652_vm6, %v6941_v61, %v6912_v33  ;;  %v1751_v45 = vsel %vm1750_vm5, %v1739_v11, %v1741_v44 }
 0x371   : > { %v1091_v17 = vadd.f32 %v1082_v29, %v829_v18  ;;  %v1092_v54 = vadd.f32 %v1083_v10, %v830_v50  ;;  %v1094_v28 = vadd.f32 %v10344_v24, %v832_v63  ;;  %v10345_v29 = vld [vmem:[#allocation24_spill] sm:$0xff] }
 0x372   : > { %v7156_v22 = vpop.permute.xlu0 %2061 }
 0x373   : > { %v1471_v50 = vadd.f32 %v1462_v39, %v1091_v17 }
 0x375   : > { %v1743_v42 = vpop.permute.xlu1 %1742 }
 0x376   : > { %v1752_v10 = vsel %vm1750_vm5, %v1741_v44, %v1743_v42  ;;  %v1753_v18 = vsel %vm1750_vm5, %v1743_v42, %v7166_v9  ;;  %v1656_v44 = vsel %vm1652_vm6, %v6912_v33, %v6908_v4 }
 0x377   : > { %5843 = vset.pattern.permute.xlu2 %v10309_v30 }
 0x378   : > { %2513 = vperm.xlu2 %5843, %v2510_v5   ;;  %v7172_v43 = vpop.permute.xlu2 %2051  ;;  %v828_v5 = vmul.f32 %v7028_v0, %v10337_v60  ;;  %v1461_v0 = vsel %vm1460_vm7, %v10341_v19, %v10340_v59  ;;  %v1084_v19 = vsel %vm1080_vm4, %v10339_v41, %v10344_v24  ;;  %v1654_v59 = vsel %vm1652_vm6, %v6900_v57, %v6941_v61 }
 0x379   : > { %10334 = vst [vmem:[#allocation31_spill] sm:$0xff] %v7172_v43  ;;  %v1464_v24 = vsel %vm1460_vm7, %v10343_v1, %v10345_v29  ;;  %v1472_v41 = vadd.f32 %v1463_v48, %v1092_v54  ;;  %v1663_v60 = vadd.f32 %v1654_v59, %v1471_v50  ;;  %v1474_v61 = vadd.f32 %v10345_v29, %v1094_v28 }
 0x37a   : > { %v1090_v58 = vadd.f32 %v1081_v51, %v828_v5  ;;  %v1812_v1 = vsel %vm1810_vm8, %v1803_v35, %v7148_v15  ;;  %v5800_v48 = vunpack.i.h.bf16 %v7101_v55  ;;  %v5799_v28 = vunpack.i.l.bf16 %v7101_v55 }
 0x37b   : > { %v7164_v2 = vpop.permute.xlu0 %2111  ;;  %v1664_v63 = vadd.f32 %v1655_v52, %v1472_v41  ;;  %v1762_v11 = vadd.f32 %v1752_v10, %v1663_v60  ;;  %v5804_v54 = vunpack.i.l.bf16 %v7091_v20  ;;  %v1666_v52 = vadd.f32 %v6908_v4, %v1474_v61 }
 0x37c   : > { %v1470_v5 = vadd.f32 %v1461_v0, %v1090_v58  ;;  %v1093_v58 = vadd.f32 %v1084_v19, %v831_v27  ;;  %v1755_v19 = vsel %vm1750_vm5, %v7141_v26, %v1749_v49  ;;  %v1754_v29 = vsel %vm1750_vm5, %v7166_v9, %v7141_v26 }
 0x37d   : > { %v1801_v47 = vpop.permute.xlu1 %1800  ;;  %v1763_v42 = vadd.f32 %v1753_v18, %v1664_v63  ;;  %v1853_v10 = vsel %vm1851_vm9, %v5800_v48, %v5804_v54  ;;  %v1765_v49 = vadd.f32 %v1755_v19, %v1666_v52  ;;  %v5805_v60 = vunpack.i.h.bf16 %v7091_v20 }
 0x37e   : > { %v1662_v57 = vadd.f32 %v1653_v53, %v1470_v5  ;;  %v1473_v17 = vadd.f32 %v1464_v24, %v1093_v58  ;;  %v1811_v0 = vsel %vm1810_vm8, %v1801_v47, %v1803_v35  ;;  %v1852_v58 = vsel %vm1851_vm9, %v5799_v28, %v5800_v48 }
 0x37f   : > { %v1821_v5 = vadd.f32 %v1811_v0, %v1762_v11  ;;  %v1822_v53 = vadd.f32 %v1812_v1, %v1763_v42  ;;  %v1854_v0 = vsel %vm1851_vm9, %v5804_v54, %v5805_v60 }
 0x380   : > { %v1761_v27 = vadd.f32 %v1751_v45, %v1662_v57  ;;  %v1665_v33 = vadd.f32 %v1656_v44, %v1473_v17  ;;  %v1855_v17 = vsel %vm1851_vm9, %v5805_v60, %v7112_v25 }
 0x381   : > { %v7228_v39 = vpop.permute.xlu2 %2081 }
 0x382   : > { %v1820_v35 = vadd.f32 %v1801_v47, %v1761_v27  ;;  %v1764_v26 = vadd.f32 %v1754_v29, %v1665_v33 }
 0x384   : > { %v7168_v46 = vpop.permute.xlu0 %2161 }
 0x385   : > { %v1807_v59 = vpop.permute.xlu1 %1806 }
 0x386   : > { %v1814_v47 = vsel %vm1810_vm8, %v1807_v59, %v7150_v7  ;;  %v1813_v4 = vsel %vm1810_vm8, %v7148_v15, %v1807_v59 }
 0x387   : > { %v1824_v9 = vadd.f32 %v1814_v47, %v1765_v49  ;;  %v1823_v63 = vadd.f32 %v1813_v4, %v1764_v26 }
 0x38a   : > { %v7258_v7 = vpop.permute.xlu2 %2101 }
 0x38d   : > { %v7170_v23 = vpop.permute.xlu0 %2211  ;;  %v7277_v48 = vpop.permute.xlu1 %2041 }
 0x393   : > { %v7269_v20 = vpop.permute.xlu2 %2131 }
 0x396   : > { %v7206_v51 = vpop.permute.xlu0 %2261 }
 0x39c   : > { %v7271_v11 = vpop.permute.xlu2 %2151 }
 0x39f   : > { %v1829_v50 = vpop.permute.xlu0 %1828 }
 0x3a0   : > { %v1832_v24 = vadd.f32 %v1829_v50, %v1821_v5  ;;  %v1833_v41 = vadd.f32 %v1829_v50, %v1822_v53  ;;  %v1831_v55 = vadd.f32 %v1829_v50, %v1820_v35  ;;  %v1835_v15 = vadd.f32 %v1829_v50, %v1824_v9 }
 0x3a1   : > { %v1834_v61 = vadd.f32 %v1829_v50, %v1823_v63 }
 0x3a2   : > { %v7248_v45 = vmul.f32 %v1852_v58, %v1832_v24  ;;  %v7250_v18 = vmul.f32 %v1853_v10, %v1833_v41  ;;  %v7252_v57 = vmul.f32 %v5799_v28, %v1831_v55  ;;  %v7263_v1 = vmul.f32 %v1855_v17, %v1835_v15  ;;  %v7281_v28 = vpop.permute.xlu1 %2071 }
 0x3a3   : > { %v7265_v44 = vmul.f32 %v1854_v0, %v1834_v61 }
 0x3a4   : > { %10346 = vst [vmem:[#allocation19_spill] sm:$0xff] %v7248_v45  ;;  %1873 = vrot.lane.b32.xlu0 %v7248_v45, %s6035_s28  ;;  %1875 = vrot.lane.b32.xlu1 %v7250_v18, %s6035_s28 }
 0x3a5   : > { %10347 = vst [vmem:[#allocation17_spill] sm:$0xff] %v7250_v18  ;;  %1871 = vrot.lane.b32.xlu2 %v7252_v57, %s6035_s28  ;;  %v7273_v27 = vpop.permute.xlu2 %2181 }
 0x3a6   : > { %10348 = vst [vmem:[#allocation16_spill] sm:$0xff] %v7252_v57 }
 0x3a7   : > { %10349 = vst [vmem:[#allocation20_spill] sm:$0xff] %v7263_v1 }
 0x3a8   : > { %10350 = vst [vmem:[#allocation18_spill] sm:$0xff] %v7265_v44 }
 0x3aa   : > { %v7285_v19 = vpop.permute.xlu1 %2091 }
 0x3ac   : > { %1879 = vrot.lane.b32.xlu0 %v7263_v1, %s6035_s28 }
 0x3ad   : > { %1877 = vrot.lane.b32.xlu2 %v7265_v44, %s6035_s28  ;;  %s6040_s28 = smov 56  }
 0x3ae   : > { %v7275_v42 = vpop.permute.xlu2 %2201 }
 0x3b2   : > { %v7289_v5 = vpop.permute.xlu1 %2121 }
 0x3b7   : > { %v7279_v25 = vpop.permute.xlu2 %2231 }
 0x3ba   : > { %v7293_v59 = vpop.permute.xlu1 %2141 }
 0x3c0   : > { %v7283_v54 = vpop.permute.xlu2 %2251 }
 0x3c1   : > { %10351 = vst [vmem:[#allocation22_spill] sm:$0xff] %v7283_v54 }
 0x3c2   : > { %v7296_v33 = vpop.permute.xlu1 %2171 }
 0x3c3   : > { %10353 = vst [vmem:[#allocation25_spill] sm:$0xff] %v7296_v33 }
 0x3c9   : > { %v7287_v35 = vpop.permute.xlu2 %2281 }
 0x3ca   : > { %v7310_v58 = vpop.permute.xlu1 %2191 }
 0x3d2   : > { %v7291_v53 = vpop.permute.xlu2 %2513  ;;  %v7320_v4 = vpop.permute.xlu1 %2221 }
 0x3d3   : > { %10352 = vst [vmem:[#allocation23_spill] sm:$0xff] %v7291_v53 }
 0x3da   : > { %v7329_v63 = vpop.permute.xlu1 %2241 }
 0x3ff   : > { %v1872_v52 = vpop.permute.xlu2 %1871 }
 0x400   : > { %1892 = vst.msk [vmem:[#allocation2 + $0x10] sm:$0xff] %vm809_vm3, %v1872_v52 }
 0x407   : > { %v7298_v50 = vld [vmem:[#allocation2 + $0x10] sm:$0xff] }
 0x408   : > { %v2034_v29 = vmul.f32 %v7114_v13, %v7298_v50  ;;  %v1982_v24 = vmul.f32 %v7103_v8, %v7298_v50  ;;  %v2094_v41 = vmul.f32 %v7285_v19, %v7298_v50  ;;  %v2044_v55 = vmul.f32 %v7277_v48, %v7298_v50 }
 0x409   : > { %v2154_v49 = vmul.f32 %v7271_v11, %v7298_v50  ;;  %v2104_v47 = vmul.f32 %v7258_v7, %v7298_v50  ;;  %v2184_v9 = vmul.f32 %v7273_v27, %v7298_v50  ;;  %v2164_v60 = vmul.f32 %v7168_v46, %v7298_v50 }
 0x40a   : > { %2306 = vrot.lane.b32.xlu2 %v2034_v29, %s6027_s21  ;;  %2528 = vrot.lane.b32.xlu0 %v1982_v24, %s6027_s21  ;;  %v2214_v0 = vmul.f32 %v7170_v23, %v7298_v50  ;;  %v7342_v29 = vpop.permute.xlu1 %2271  ;;  %v2014_v43 = vmul.f32 %v7162_v40, %v7298_v50 }
 0x412   : > { %2341 = vrot.lane.b32.xlu2 %v2094_v41, %s6027_s21  ;;  %2563 = vrot.lane.b32.xlu0 %v2044_v55, %s6027_s21  ;;  %v2234_v55 = vmul.f32 %v7279_v25, %v7298_v50 }
 0x416   : > { %v1874_v10 = vpop.permute.xlu0 %1873 }
 0x41a   : > { %2376 = vrot.lane.b32.xlu2 %v2154_v49, %s6027_s21  ;;  %2598 = vrot.lane.b32.xlu0 %v2104_v47, %s6027_s21  ;;  %v7354_v49 = vsel %vm1881_vm10, %v1872_v52, %v1874_v10 }
 0x41b   : > { %v1941_v32 = vmul.f32 %v7133_v12, %v7354_v49 }
 0x41e   : > { %v1880_v26 = vpop.permute.xlu0 %1879 }
 0x41f   : > { %1897 = vst.msk [vmem:[#allocation2 + $0x38] sm:$0xff] %vm815_vm2, %v1880_v26 }
 0x422   : > { %2446 = vrot.lane.b32.xlu2 %v2184_v9, %s6028_s22  ;;  %2633 = vrot.lane.b32.xlu0 %v2164_v60, %s6027_s21  ;;  %v2035_v60 = vmul.f32 %v7114_v13, %v7354_v49 }
 0x426   : > { %v7331_v15 = vld [vmem:[#allocation2 + $0x38] sm:$0xff] }
 0x427   : > { %v2039_v61 = vmul.f32 %v7114_v13, %v7331_v15  ;;  %v1987_v17 = vmul.f32 %v7103_v8, %v7331_v15  ;;  %v2099_v24 = vmul.f32 %v7285_v19, %v7331_v15  ;;  %v2049_v41 = vmul.f32 %v7277_v48, %v7331_v15 }
 0x428   : > { %v2159_v47 = vmul.f32 %v7271_v11, %v7331_v15  ;;  %v2109_v9 = vmul.f32 %v7258_v7, %v7331_v15  ;;  %v2239_v45 = vmul.f32 %v7279_v25, %v7331_v15 }
 0x429   : > { %2316 = vrot.lane.b32.xlu1 %v2039_v61, %s6027_s21  ;;  %v7362_v61 = vpop.permute.xlu1 %2291 }
 0x42a   : > { %2538 = vrot.lane.b32.xlu2 %v1987_v17, %s6027_s21  ;;  %2668 = vrot.lane.b32.xlu0 %v2214_v0, %s6027_s21  ;;  %10354 = vst [vmem:[#allocation26_spill] sm:$0xff] %v7362_v61  ;;  %v1878_v17 = vpop.permute.xlu2 %1877  ;;  %v2189_v0 = vmul.f32 %v7273_v27, %v7331_v15 }
 0x42b   : > { %v7368_v52 = vsel %vm1881_vm10, %v1878_v17, %v1880_v26 }
 0x42c   : > { %v2168_v1 = vmul.f32 %v7168_v46, %v7368_v52  ;;  %v2218_v30 = vmul.f32 %v7170_v23, %v7368_v52  ;;  %v1924_v36 = vmul.f32 %v7098_v14, %v7368_v52  ;;  %v2238_v38 = vmul.f32 %v7279_v25, %v7368_v52 }
 0x431   : > { %2351 = vrot.lane.b32.xlu1 %v2099_v24, %s6027_s21  ;;  %v2169_v24 = vmul.f32 %v7168_v46, %v7331_v15 }
 0x432   : > { %2573 = vrot.lane.b32.xlu2 %v2049_v41, %s6027_s21  ;;  %2773 = vrot.lane.b32.xlu0 %v2234_v55, %s6028_s22  ;;  %v2038_v41 = vmul.f32 %v7114_v13, %v7368_v52  ;;  %v1876_v55 = vpop.permute.xlu1 %1875 }
 0x439   : > { %2386 = vrot.lane.b32.xlu1 %v2159_v47, %s6027_s21  ;;  %v7380_v47 = vsel %vm1881_vm10, %v1874_v10, %v1876_v55 }
 0x43a   : > { %2608 = vrot.lane.b32.xlu2 %v2109_v9, %s6027_s21  ;;  %2308 = vrot.lane.b32.xlu0 %v2035_v60, %s6027_s21  ;;  %v2036_v26 = vmul.f32 %v7114_v13, %v7380_v47  ;;  %v2219_v9 = vmul.f32 %v7170_v23, %v7331_v15  ;;  %v2095_v60 = vmul.f32 %v7285_v19, %v7354_v49 }
 0x43b   : > { %v2096_v10 = vmul.f32 %v7285_v19, %v7380_v47 }
 0x441   : > { %2456 = vrot.lane.b32.xlu1 %v2189_v0, %s6028_s22  ;;  %v7392_v0 = vsel %vm1881_vm10, %v1876_v55, %v1878_v17  ;;  %v2155_v17 = vmul.f32 %v7271_v11, %v7354_v49  ;;  %vm5322_vm10 = vcmask 523264  }
 0x442   : > { %2643 = vrot.lane.b32.xlu2 %v2169_v24, %s6027_s21  ;;  %2314 = vrot.lane.b32.xlu0 %v2038_v41, %s6027_s21  ;;  %v2098_v24 = vmul.f32 %v7285_v19, %v7368_v52  ;;  %v2037_v41 = vmul.f32 %v7114_v13, %v7392_v0  ;;  %v2097_v55 = vmul.f32 %v7285_v19, %v7392_v0 }
 0x443   : > { %v2186_v13 = vmul.f32 %v7273_v27, %v7380_v47  ;;  %v2167_v44 = vmul.f32 %v7168_v46, %v7392_v0  ;;  %v2217_v18 = vmul.f32 %v7170_v23, %v7392_v0  ;;  %v2237_v57 = vmul.f32 %v7279_v25, %v7392_v0 }
 0x444   : > { %v1923_v62 = vmul.f32 %v7098_v14, %v7392_v0  ;;  %v1943_v37 = vmul.f32 %v7133_v12, %v7392_v0 }
 0x449   : > { %2310 = vrot.lane.b32.xlu1 %v2036_v26, %s6027_s21  ;;  %v2156_v26 = vmul.f32 %v7271_v11, %v7380_v47 }
 0x44a   : > { %2678 = vrot.lane.b32.xlu2 %v2219_v9, %s6027_s21  ;;  %2343 = vrot.lane.b32.xlu0 %v2095_v60, %s6027_s21  ;;  %v2158_v9 = vmul.f32 %v7271_v11, %v7368_v52  ;;  %v2157_v60 = vmul.f32 %v7271_v11, %v7392_v0 }
 0x451   : > { %2345 = vrot.lane.b32.xlu1 %v2096_v10, %s6027_s21  ;;  %v1983_v10 = vmul.f32 %v7103_v8, %v7354_v49 }
 0x452   : > { %2349 = vrot.lane.b32.xlu0 %v2098_v24, %s6027_s21  ;;  %2312 = vrot.lane.b32.xlu2 %v2037_v41, %s6027_s21  ;;  %v2185_v24 = vmul.f32 %v7273_v27, %v7354_v49  ;;  %v2187_v41 = vmul.f32 %v7273_v27, %v7392_v0 }
 0x459   : > { %2380 = vrot.lane.b32.xlu1 %v2156_v26, %s6027_s21  ;;  %v1986_v26 = vmul.f32 %v7103_v8, %v7368_v52 }
 0x45a   : > { %2378 = vrot.lane.b32.xlu0 %v2155_v17, %s6027_s21  ;;  %2347 = vrot.lane.b32.xlu2 %v2097_v55, %s6027_s21  ;;  %v2188_v17 = vmul.f32 %v7273_v27, %v7368_v52  ;;  %v1984_v55 = vmul.f32 %v7103_v8, %v7380_v47  ;;  %v1985_v27 = vmul.f32 %v7103_v8, %v7392_v0 }
 0x461   : > { %2450 = vrot.lane.b32.xlu1 %v2186_v13, %s6028_s22 }
 0x462   : > { %2384 = vrot.lane.b32.xlu0 %v2158_v9, %s6027_s21  ;;  %2382 = vrot.lane.b32.xlu2 %v2157_v60, %s6027_s21  ;;  %v2045_v9 = vmul.f32 %v7277_v48, %v7354_v49  ;;  %v2046_v60 = vmul.f32 %v7277_v48, %v7380_v47 }
 0x464   : > { %v7421_v19 = vpop.permute.xlu2 %2306 }
 0x465   : > { %10355 = vst [vmem:[#allocation21_spill] sm:$0xff] %v7421_v19 }
 0x469   : > { %2530 = vrot.lane.b32.xlu1 %v1983_v10, %s6027_s21 }
 0x46a   : > { %2448 = vrot.lane.b32.xlu0 %v2185_v24, %s6028_s22  ;;  %2452 = vrot.lane.b32.xlu2 %v2187_v41, %s6028_s22  ;;  %v2048_v41 = vmul.f32 %v7277_v48, %v7368_v52 }
 0x46c   : > { %v7432_v11 = vpop.permute.xlu2 %2341 }
 0x471   : > { %2536 = vrot.lane.b32.xlu1 %v1986_v26, %s6027_s21  ;;  %v2106_v26 = vmul.f32 %v7258_v7, %v7380_v47 }
 0x472   : > { %2454 = vrot.lane.b32.xlu0 %v2188_v17, %s6028_s22  ;;  %2532 = vrot.lane.b32.xlu2 %v1984_v55, %s6027_s21  ;;  %v2047_v17 = vmul.f32 %v7277_v48, %v7392_v0 }
 0x474   : > { %v7443_v13 = vpop.permute.xlu2 %2376 }
 0x479   : > { %2565 = vrot.lane.b32.xlu1 %v2045_v9, %s6027_s21  ;;  %v2105_v9 = vmul.f32 %v7258_v7, %v7354_v49 }
 0x47a   : > { %2567 = vrot.lane.b32.xlu2 %v2046_v60, %s6027_s21  ;;  %2534 = vrot.lane.b32.xlu0 %v1985_v27, %s6027_s21  ;;  %v2166_v60 = vmul.f32 %v7168_v46, %v7380_v47  ;;  %v2107_v27 = vmul.f32 %v7258_v7, %v7392_v0 }
 0x47c   : > { %v7454_v10 = vpop.permute.xlu0 %2528  ;;  %v7456_v24 = vpop.permute.xlu2 %2446 }
 0x47d   : > { %10356 = vst [vmem:[#allocation24_spill] sm:$0xff] %v7454_v10 }
 0x481   : > { %2571 = vrot.lane.b32.xlu1 %v2048_v41, %s6027_s21 }
 0x482   : > { %2602 = vrot.lane.b32.xlu2 %v2106_v26, %s6027_s21  ;;  %2569 = vrot.lane.b32.xlu0 %v2047_v17, %s6027_s21  ;;  %v2108_v26 = vmul.f32 %v7258_v7, %v7368_v52  ;;  %v2216_v17 = vmul.f32 %v7170_v23, %v7380_v47  ;;  %v2236_v7 = vmul.f32 %v7279_v25, %v7380_v47 }
 0x484   : > { %v7467_v8 = vpop.permute.xlu0 %2563  ;;  %v7469_v55 = vpop.permute.xlu2 %2538 }
 0x485   : > { %10357 = vst [vmem:[#allocation32_spill] sm:$0xff] %v7469_v55  ;;  %v2873_v55 = vld [vmem:[%s10109_s8] sm:$0xff] }
 0x489   : > { %2600 = vrot.lane.b32.xlu1 %v2105_v9, %s6027_s21 }
 0x48a   : > { %2637 = vrot.lane.b32.xlu2 %v2166_v60, %s6027_s21  ;;  %2604 = vrot.lane.b32.xlu0 %v2107_v27, %s6027_s21  ;;  %v2165_v27 = vmul.f32 %v7168_v46, %v7354_v49  ;;  %v2215_v46 = vmul.f32 %v7170_v23, %v7354_v49  ;;  %v2235_v23 = vmul.f32 %v7279_v25, %v7354_v49 }
 0x48b   : > { %v2019_v25 = vmul.f32 %v7162_v40, %v7331_v15 }
 0x48c   : > { %v7480_v48 = vpop.permute.xlu0 %2598  ;;  %v7482_v41 = vpop.permute.xlu2 %2573 }
 0x491   : > { %2606 = vrot.lane.b32.xlu1 %v2108_v26, %s6027_s21 }
 0x492   : > { %2672 = vrot.lane.b32.xlu2 %v2216_v17, %s6027_s21  ;;  %2639 = vrot.lane.b32.xlu0 %v2167_v44, %s6027_s21 }
 0x494   : > { %v7493_v9 = vpop.permute.xlu0 %2633  ;;  %v7495_v60 = vpop.permute.xlu2 %2608 }
 0x499   : > { %2635 = vrot.lane.b32.xlu1 %v2165_v27, %s6027_s21 }
 0x49a   : > { %2777 = vrot.lane.b32.xlu2 %v2236_v7, %s6028_s22  ;;  %2674 = vrot.lane.b32.xlu0 %v2217_v18, %s6027_s21 }
 0x49b   : > { %v7506_v44 = vpop.permute.xlu1 %2316 }
 0x49c   : > { %10358 = vst [vmem:[#allocation33_spill] sm:$0xff] %v7506_v44  ;;  %v7508_v26 = vpop.permute.xlu0 %2668  ;;  %v7510_v17 = vpop.permute.xlu2 %2643 }
 0x4a1   : > { %2641 = vrot.lane.b32.xlu1 %v2168_v1, %s6027_s21  ;;  %v1921_v1 = vmul.f32 %v7098_v14, %v7354_v49 }
 0x4a2   : > { %2783 = vrot.lane.b32.xlu2 %v2239_v45, %s6028_s22  ;;  %2779 = vrot.lane.b32.xlu0 %v2237_v57, %s6028_s22 }
 0x4a3   : > { %v7521_v18 = vpop.permute.xlu1 %2351 }
 0x4a4   : > { %v7523_v27 = vpop.permute.xlu0 %2773  ;;  %v7525_v7 = vpop.permute.xlu2 %2678 }
 0x4a9   : > { %2670 = vrot.lane.b32.xlu1 %v2215_v46, %s6027_s21 }
 0x4aa   : > { %2893 = vrot.lane.b32.xlu2 %v1921_v1, %s6027_s21  ;;  %2876 = vperm.xlu0 %5839, %v2873_v55  }
 0x4ab   : > { %v7536_v45 = vpop.permute.xlu1 %2386 }
 0x4ac   : > { %v7538_v57 = vpop.permute.xlu0 %2308  ;;  %v7540_v10 = vpop.permute.xlu2 %2312 }
 0x4ad   : > { %10359 = vst [vmem:[#allocation34_spill] sm:$0xff] %v7538_v57 }
 0x4ae   : > { %10360 = vst [vmem:[#allocation35_spill] sm:$0xff] %v7540_v10 }
 0x4b1   : > { %2676 = vrot.lane.b32.xlu1 %v2218_v30, %s6027_s21  ;;  %v1940_v30 = vmul.f32 %v7133_v12, %v7298_v50 }
 0x4b2   : > { %2899 = vrot.lane.b32.xlu0 %v1924_v36, %s6027_s21  ;;  %2897 = vrot.lane.b32.xlu2 %v1923_v62, %s6027_s21 }
 0x4b3   : > { %v7551_v55 = vpop.permute.xlu1 %2456  ;;  %5846 = vset.pattern.permute.xlu0 %v10311_v31 }
 0x4b4   : > { %v7554_v46 = vpop.permute.xlu0 %2314  ;;  %v7556_v1 = vpop.permute.xlu2 %2347 }
 0x4b5   : > { %10361 = vst [vmem:[#allocation36_spill] sm:$0xff] %v7554_v46 }
 0x4b9   : > { %2775 = vrot.lane.b32.xlu1 %v2235_v23, %s6028_s22 }
 0x4ba   : > { %2928 = vrot.lane.b32.xlu0 %v1941_v32, %s6027_s21  ;;  %2926 = vrot.lane.b32.xlu2 %v1940_v30, %s6027_s21  ;;  %v2065_v32 = vmul.f32 %v7156_v22, %v7354_v49 }
 0x4bb   : > { %v7567_v62 = vpop.permute.xlu1 %2310 }
 0x4bc   : > { %10362 = vst [vmem:[#allocation37_spill] sm:$0xff] %v7567_v62  ;;  %v2344_v36 = vpop.permute.xlu0 %2343  ;;  %v7569_v31 = vpop.permute.xlu2 %2382 }
 0x4c1   : > { %2781 = vrot.lane.b32.xlu1 %v2238_v38, %s6028_s22  ;;  %v1920_v38 = vmul.f32 %v7098_v14, %v7298_v50 }
 0x4c2   : > { %2932 = vrot.lane.b32.xlu2 %v1943_v37, %s6027_s21  ;;  %v2591_v37 = vadd.f32 %v7482_v41, %v2019_v25  ;;  %v2139_v25 = vmul.f32 %v7269_v20, %v7331_v15 }
 0x4c3   : > { %v2346_v23 = vpop.permute.xlu1 %2345 }
 0x4c4   : > { %v2354_v30 = vsel %vm1080_vm4, %v2344_v36, %v2346_v23  ;;  %v2350_v53 = vpop.permute.xlu0 %2349  ;;  %v7580_v10 = vpop.permute.xlu2 %2452 }
 0x4c5   : > { %v2365_v46 = vadd.f32 %v2354_v30, %v2065_v32  ;;  %v2357_v44 = vsel %vm1080_vm4, %v2350_v53, %v7521_v18  ;;  %v2068_v32 = vmul.f32 %v7156_v22, %v7368_v52 }
 0x4c7   : > { %2413 = vrot.lane.b32.xlu0 %v2365_v46, %s6028_s22  ;;  %v2368_v34 = vadd.f32 %v2357_v44, %v2068_v32  ;;  %v2353_v44 = vsel %vm1080_vm4, %v7432_v11, %v2344_v36  ;;  %v1925_v32 = vmul.f32 %v7098_v14, %v7331_v15  ;;  %v2356_v11 = vsel %vm1080_vm4, %v7556_v1, %v2350_v53 }
 0x4c8   : > { %v2067_v36 = vmul.f32 %v7156_v22, %v7392_v0 }
 0x4c9   : > { %2891 = vrot.lane.b32.xlu1 %v1920_v38, %s6027_s21  ;;  %v1922_v38 = vmul.f32 %v7098_v14, %v7380_v47  ;;  %v1942_v14 = vmul.f32 %v7133_v12, %v7380_v47 }
 0x4ca   : > { %2713 = vrot.lane.b32.xlu2 %v2591_v37, %s6028_s22  ;;  %v2661_v37 = vadd.f32 %v7510_v17, %v2139_v25 }
 0x4cb   : > { %v7594_v30 = vpop.permute.xlu1 %2380 }
 0x4cc   : > { %v7596_v19 = vpop.permute.xlu0 %2378  ;;  %v7598_v46 = vpop.permute.xlu2 %2532 }
 0x4cd   : > { %10363 = vst [vmem:[#allocation38_spill] sm:$0xff] %v7598_v46 }
 0x4cf   : > { %2419 = vrot.lane.b32.xlu0 %v2368_v34, %s6028_s22  ;;  %v2064_v34 = vmul.f32 %v7156_v22, %v7298_v50 }
 0x4d1   : > { %2895 = vrot.lane.b32.xlu1 %v1922_v38, %s6027_s21  ;;  %v2364_v54 = vadd.f32 %v2353_v44, %v2064_v34  ;;  %v2367_v44 = vadd.f32 %v2356_v11, %v2067_v36  ;;  %v2355_v36 = vsel %vm1080_vm4, %v2346_v23, %v7556_v1  ;;  %v2017_v23 = vmul.f32 %v7162_v40, %v7392_v0 }
 0x4d2   : > { %2748 = vrot.lane.b32.xlu2 %v2661_v37, %s6028_s22 }
 0x4d3   : > { %v7608_v57 = vpop.permute.xlu1 %2450 }
 0x4d4   : > { %v7610_v62 = vpop.permute.xlu0 %2384  ;;  %v2568_v46 = vpop.permute.xlu2 %2567 }
 0x4d9   : > { %2901 = vrot.lane.b32.xlu1 %v1925_v32, %s6027_s21 }
 0x4da   : > { %2411 = vrot.lane.b32.xlu2 %v2364_v54, %s6028_s22 }
 0x4db   : > { %v7620_v25 = vpop.permute.xlu1 %2530 }
 0x4dc   : > { %10364 = vst [vmem:[#allocation39_spill] sm:$0xff] %v7620_v25  ;;  %v7622_v38 = vpop.permute.xlu0 %2448  ;;  %v7624_v37 = vpop.permute.xlu2 %2602  ;;  %v2069_v25 = vmul.f32 %v7156_v22, %v7331_v15 }
 0x4de   : > { %v2369_v53 = vadd.f32 %v7521_v18, %v2069_v25  ;;  %v2129_v25 = vmul.f32 %v7289_v5, %v7331_v15 }
 0x4e1   : > { %2930 = vrot.lane.b32.xlu1 %v1942_v14, %s6027_s21 }
 0x4e2   : > { %2417 = vrot.lane.b32.xlu2 %v2367_v44, %s6028_s22 }
 0x4e3   : > { %v7634_v54 = vpop.permute.xlu1 %2536 }
 0x4e4   : > { %10365 = vst [vmem:[#allocation40_spill] sm:$0xff] %v7634_v54  ;;  %v7636_v34 = vpop.permute.xlu0 %2454  ;;  %v2638_v32 = vpop.permute.xlu2 %2637  ;;  %v2066_v54 = vmul.f32 %v7156_v22, %v7380_v47  ;;  %v2404_v22 = vadd.f32 %v7536_v45, %v2129_v25 }
 0x4e6   : > { %v2366_v18 = vadd.f32 %v2355_v36, %v2066_v54 }
 0x4e9   : > { %2421 = vrot.lane.b32.xlu1 %v2369_v53, %s6028_s22 }
 0x4eb   : > { %v2566_v11 = vpop.permute.xlu1 %2565 }
 0x4ec   : > { %v2575_v14 = vsel %vm1080_vm4, %v7467_v8, %v2566_v11  ;;  %v7648_v44 = vpop.permute.xlu0 %2534  ;;  %v7652_v33 = vpop.permute.xlu2 %2672  ;;  %v2016_v8 = vmul.f32 %v7162_v40, %v7380_v47  ;;  %v2576_v25 = vsel %vm1080_vm4, %v2566_v11, %v2568_v46 }
 0x4ed   : > { %10366 = vst [vmem:[#allocation41_spill] sm:$0xff] %v7648_v44  ;;  %v2586_v61 = vadd.f32 %v2575_v14, %v2014_v43  ;;  %v2474_v14 = vadd.f32 %v7551_v55, %v2404_v22 }
 0x4ef   : > { %2703 = vrot.lane.b32.xlu0 %v2586_v61, %s6028_s22 }
 0x4f1   : > { %2415 = vrot.lane.b32.xlu1 %v2366_v18, %s6028_s22 }
 0x4f3   : > { %v2572_v1 = vpop.permute.xlu1 %2571 }
 0x4f4   : > { %v2570_v53 = vpop.permute.xlu0 %2569  ;;  %v7666_v18 = vpop.permute.xlu2 %2777 }
 0x4f5   : > { %v2577_v43 = vsel %vm1080_vm4, %v2568_v46, %v2570_v53  ;;  %v2578_v54 = vsel %vm1080_vm4, %v2570_v53, %v2572_v1  ;;  %v2018_v46 = vmul.f32 %v7162_v40, %v7368_v52 }
 0x4f6   : > { %v2588_v61 = vadd.f32 %v2577_v43, %v2016_v8  ;;  %v2589_v36 = vadd.f32 %v2578_v54, %v2017_v23  ;;  %v2015_v8 = vmul.f32 %v7162_v40, %v7354_v49  ;;  %v2579_v43 = vsel %vm1080_vm4, %v2572_v1, %v7482_v41 }
 0x4f7   : > { %v2136_v54 = vmul.f32 %v7269_v20, %v7380_v47  ;;  %v2134_v41 = vmul.f32 %v7269_v20, %v7298_v50 }
 0x4f8   : > { %2709 = vrot.lane.b32.xlu0 %v2589_v36, %s6028_s22  ;;  %2707 = vrot.lane.b32.xlu2 %v2588_v61, %s6028_s22  ;;  %v2587_v23 = vadd.f32 %v2576_v25, %v2015_v8  ;;  %v2199_v25 = vmul.f32 %v7310_v58, %v7331_v15 }
 0x4f9   : > { %2491 = vrot.lane.b32.xlu1 %v2474_v14, %s6030_s29  ;;  %v2590_v14 = vadd.f32 %v2579_v43, %v2018_v46 }
 0x4fa   : > { %v2696_v8 = vadd.f32 %v7525_v7, %v2199_v25 }
 0x4fb   : > { %v7671_v44 = vpop.permute.xlu1 %2600 }
 0x4fc   : > { %v7674_v21 = vpop.permute.xlu0 %2604  ;;  %v7679_v53 = vpop.permute.xlu2 %2783 }
 0x501   : > { %2705 = vrot.lane.b32.xlu1 %v2587_v23, %s6028_s22 }
 0x503   : > { %v7681_v22 = vpop.permute.xlu1 %2606 }
 0x504   : > { %v2640_v61 = vpop.permute.xlu0 %2639  ;;  %v7697_v23 = vpop.permute.xlu2 %2893 }
 0x505   : > { %v2647_v11 = vsel %vm1080_vm4, %v2638_v32, %v2640_v61  ;;  %10367 = vst [vmem:[#allocation42_spill] sm:$0xff] %v7697_v23 }
 0x506   : > { %v2658_v36 = vadd.f32 %v2647_v11, %v2136_v54  ;;  %v2135_v54 = vmul.f32 %v7269_v20, %v7354_v49  ;;  %v2801_v11 = vadd.f32 %v7679_v53, %v2696_v8 }
 0x508   : > { %2742 = vrot.lane.b32.xlu2 %v2658_v36, %s6028_s22 }
 0x509   : > { %2711 = vrot.lane.b32.xlu1 %v2590_v14, %s6028_s22  ;;  %v2388_v14 = vsel %vm1080_vm4, %v7443_v13, %v7596_v19  ;;  %v2138_v13 = vmul.f32 %v7269_v20, %v7368_v52 }
 0x50b   : > { %v2636_v1 = vpop.permute.xlu1 %2635 }
 0x50c   : > { %v2645_v40 = vsel %vm1080_vm4, %v7493_v9, %v2636_v1  ;;  %v2646_v43 = vsel %vm1080_vm4, %v2636_v1, %v2638_v32  ;;  %v2124_v9 = vmul.f32 %v7289_v5, %v7298_v50  ;;  %v2458_v32 = vsel %vm1460_vm7, %v7456_v24, %v7622_v38 }
 0x50d   : > { %v2656_v46 = vadd.f32 %v2645_v40, %v2134_v41  ;;  %v2657_v36 = vadd.f32 %v2646_v43, %v2135_v54  ;;  %v2137_v41 = vmul.f32 %v7269_v20, %v7392_v0  ;;  %v2389_v24 = vsel %vm1080_vm4, %v7596_v19, %v7594_v30 }
 0x50e   : > { %v2399_v1 = vadd.f32 %v2388_v14, %v2124_v9  ;;  %v2391_v20 = vsel %vm1080_vm4, %v7569_v31, %v7610_v62  ;;  %v2127_v14 = vmul.f32 %v7289_v5, %v7392_v0  ;;  %v2459_v19 = vsel %vm1460_vm7, %v7622_v38, %v7608_v57 }
 0x50f   : > { %2738 = vrot.lane.b32.xlu0 %v2656_v46, %s6028_s22  ;;  %v2675_v46 = vpop.permute.xlu0 %2674  ;;  %v2126_v9 = vmul.f32 %v7289_v5, %v7380_v47  ;;  %v2392_v38 = vsel %vm1080_vm4, %v7610_v62, %v7536_v45  ;;  %v2196_v45 = vmul.f32 %v7310_v58, %v7380_v47 }
 0x510   : > { %2853 = vrot.lane.b32.xlu2 %v2801_v11, %s6036_s19  ;;  %v2469_v54 = vadd.f32 %v2458_v32, %v2399_v1  ;;  %v7723_v11 = vpop.permute.xlu2 %2897 }
 0x511   : > { %2740 = vrot.lane.b32.xlu1 %v2657_v36, %s6028_s22  ;;  %10368 = vst [vmem:[#allocation43_spill] sm:$0xff] %v7723_v11  ;;  %v2610_v11 = vsel %vm1080_vm4, %v7480_v48, %v7671_v44 }
 0x513   : > { %v2642_v25 = vpop.permute.xlu1 %2641 }
 0x514   : > { %v2648_v8 = vsel %vm1080_vm4, %v2640_v61, %v2642_v25  ;;  %v2649_v40 = vsel %vm1080_vm4, %v2642_v25, %v7510_v17  ;;  %v2125_v17 = vmul.f32 %v7289_v5, %v7354_v49  ;;  %v2390_v61 = vsel %vm1080_vm4, %v7594_v30, %v7569_v31 }
 0x515   : > { %v2659_v43 = vadd.f32 %v2648_v8, %v2137_v41  ;;  %v2660_v36 = vadd.f32 %v2649_v40, %v2138_v13  ;;  %v2461_v25 = vsel %vm1460_vm7, %v7580_v10, %v7636_v34  ;;  %v2460_v31 = vsel %vm1460_vm7, %v7608_v57, %v7580_v10 }
 0x516   : > { %v2400_v32 = vadd.f32 %v2389_v24, %v2125_v17  ;;  %v2402_v30 = vadd.f32 %v2391_v20, %v2127_v14  ;;  %v2401_v1 = vadd.f32 %v2390_v61, %v2126_v9  ;;  %v2682_v10 = vsel %vm1080_vm4, %v7652_v33, %v2675_v46 }
 0x517   : > { %2744 = vrot.lane.b32.xlu0 %v2659_v43, %s6028_s22  ;;  %v2780_v43 = vpop.permute.xlu0 %2779  ;;  %v2462_v57 = vsel %vm1460_vm7, %v7636_v34, %v7551_v55  ;;  %v2693_v20 = vadd.f32 %v2682_v10, %v2196_v45  ;;  %v2194_v55 = vmul.f32 %v7310_v58, %v7298_v50  ;;  %v2195_v34 = vmul.f32 %v7310_v58, %v7354_v49 }
 0x518   : > { %2481 = vrot.lane.b32.xlu2 %v2469_v54, %s6030_s29  ;;  %v2470_v8 = vadd.f32 %v2459_v19, %v2400_v32  ;;  %v2472_v40 = vadd.f32 %v2461_v25, %v2402_v30  ;;  %v2471_v13 = vadd.f32 %v2460_v31, %v2401_v1  ;;  %v7756_v54 = vpop.permute.xlu2 %2926  ;;  %v2787_v24 = vsel %vm1460_vm7, %v7666_v18, %v2780_v43 }
 0x519   : > { %2746 = vrot.lane.b32.xlu1 %v2660_v36, %s6028_s22  ;;  %v2128_v36 = vmul.f32 %v7289_v5, %v7368_v52  ;;  %v2798_v5 = vadd.f32 %v2787_v24, %v2693_v20  ;;  %v1972_v1 = vmul.f32 %v7119_v56, %v7298_v50  ;;  %v1944_v24 = vmul.f32 %v7133_v12, %v7368_v52 }
 0x51b   : > { %v2671_v41 = vpop.permute.xlu1 %2670  ;;  %v2403_v62 = vadd.f32 %v2392_v38, %v2128_v36 }
 0x51c   : > { %v2680_v14 = vsel %vm1080_vm4, %v7508_v26, %v2671_v41  ;;  %v2681_v19 = vsel %vm1080_vm4, %v2671_v41, %v7652_v33 }
 0x51d   : > { %v2473_v61 = vadd.f32 %v2462_v57, %v2403_v62  ;;  %v2691_v32 = vadd.f32 %v2680_v14, %v2194_v55  ;;  %v2692_v25 = vadd.f32 %v2681_v19, %v2195_v34  ;;  %v1975_v62 = vmul.f32 %v7119_v56, %v7392_v0 }
 0x51e   : > { %v2027_v14 = vmul.f32 %v7138_v6, %v7392_v0 }
 0x51f   : > { %2483 = vrot.lane.b32.xlu0 %v2470_v8, %s6030_s29  ;;  %v7822_v20 = vpop.permute.xlu0 %2876 }
 0x520   : > { %2487 = vrot.lane.b32.xlu2 %v2472_v40, %s6030_s29  ;;  %v7781_v9 = vpop.permute.xlu2 %2932  ;;  %10371 = vst [vmem:[#allocation46_spill] sm:$0xff] %v7822_v20  ;;  %v1934_v20 = vmul.f32 %v7121_v3, %v7368_v52 }
 0x521   : > { %2485 = vrot.lane.b32.xlu1 %v2471_v13, %s6030_s29 }
 0x523   : > { %v2677_v17 = vpop.permute.xlu1 %2676 }
 0x524   : > { %v2683_v8 = vsel %vm1080_vm4, %v2675_v46, %v2677_v17  ;;  %v2684_v40 = vsel %vm1080_vm4, %v2677_v17, %v7525_v7  ;;  %v2024_v17 = vmul.f32 %v7138_v6, %v7298_v50 }
 0x527   : > { %2489 = vrot.lane.b32.xlu0 %v2473_v61, %s6030_s29  ;;  %v7837_v55 = vpop.permute.xlu0 %2899 }
 0x528   : > { %2847 = vrot.lane.b32.xlu2 %v2798_v5, %s6036_s19  ;;  %v7799_v10 = vpop.permute.xlu2 %2713  ;;  %v1973_v5 = vmul.f32 %v7119_v56, %v7354_v49  ;;  %10373 = vst [vmem:[#allocation48_spill] sm:$0xff] %v7837_v55  ;;  %v2611_v55 = vsel %vm1080_vm4, %v7671_v44, %v7624_v37 }
 0x529   : > { %10369 = vst [vmem:[#allocation44_spill] sm:$0xff] %v7799_v10 }
 0x52b   : > { %v2776_v31 = vpop.permute.xlu1 %2775 }
 0x52c   : > { %v2785_v30 = vsel %vm1460_vm7, %v7523_v27, %v2776_v31  ;;  %v2786_v26 = vsel %vm1460_vm7, %v2776_v31, %v7666_v18  ;;  %v2198_v27 = vmul.f32 %v7310_v58, %v7368_v52  ;;  %v2197_v18 = vmul.f32 %v7310_v58, %v7392_v0 }
 0x52d   : > { %v2796_v33 = vadd.f32 %v2785_v30, %v2691_v32  ;;  %v2797_v41 = vadd.f32 %v2786_v26, %v2692_v25  ;;  %v1976_v32 = vmul.f32 %v7119_v56, %v7368_v52  ;;  %v1977_v25 = vmul.f32 %v7119_v56, %v7331_v15 }
 0x52e   : > { %v2694_v13 = vadd.f32 %v2683_v8, %v2197_v18  ;;  %v2695_v38 = vadd.f32 %v2684_v40, %v2198_v27  ;;  %v2084_v31 = vmul.f32 %v7228_v39, %v7298_v50  ;;  %v2028_v18 = vmul.f32 %v7138_v6, %v7368_v52 }
 0x52f   : > { %2843 = vrot.lane.b32.xlu0 %v2796_v33, %s6036_s19  ;;  %2845 = vrot.lane.b32.xlu1 %v2797_v41, %s6036_s19  ;;  %v7854_v33 = vpop.permute.xlu0 %2928  ;;  %v2025_v41 = vmul.f32 %v7138_v6, %v7354_v49 }
 0x530   : > { %2961 = vrot.lane.b32.xlu2 %v1972_v1, %s6027_s21  ;;  %v2087_v1 = vmul.f32 %v7228_v39, %v7392_v0 }
 0x533   : > { %v2782_v36 = vpop.permute.xlu1 %2781 }
 0x534   : > { %v2788_v57 = vsel %vm1460_vm7, %v2780_v43, %v2782_v36  ;;  %v2789_v46 = vsel %vm1460_vm7, %v2782_v36, %v7679_v53  ;;  %v1945_v43 = vmul.f32 %v7133_v12, %v7331_v15  ;;  %v7815_v53 = vpop.permute.xlu2 %2748  ;;  %v1974_v12 = vmul.f32 %v7119_v56, %v7380_v47 }
 0x535   : > { %v2799_v45 = vadd.f32 %v2788_v57, %v2694_v13  ;;  %v2800_v7 = vadd.f32 %v2789_v46, %v2695_v38  ;;  %v2026_v56 = vmul.f32 %v7138_v6, %v7380_v47  ;;  %v2029_v13 = vmul.f32 %v7138_v6, %v7331_v15 }
 0x536   : > { %v2144_v38 = vmul.f32 %v7293_v59, %v7298_v50  ;;  %v2085_v46 = vmul.f32 %v7228_v39, %v7354_v49  ;;  %v2147_v6 = vmul.f32 %v7293_v59, %v7392_v0 }
 0x537   : > { %2849 = vrot.lane.b32.xlu0 %v2799_v45, %s6036_s19  ;;  %2851 = vrot.lane.b32.xlu1 %v2800_v7, %s6036_s19  ;;  %v2086_v45 = vmul.f32 %v7228_v39, %v7380_v47 }
 0x538   : > { %2967 = vrot.lane.b32.xlu2 %v1975_v62, %s6027_s21 }
 0x539   : > { %v7869_v27 = vpop.permute.xlu0 %2413 }
 0x53b   : > { %v7809_v58 = vpop.permute.xlu1 %2891 }
 0x53c   : > { %10370 = vst [vmem:[#allocation45_spill] sm:$0xff] %v7809_v58  ;;  %v7834_v19 = vpop.permute.xlu2 %2411  ;;  %v2264_v58 = vmul.f32 %v7206_v51, %v7298_v50 }
 0x53f   : > { %2934 = vrot.lane.b32.xlu0 %v1944_v24, %s6027_s21  ;;  %2936 = vrot.lane.b32.xlu1 %v1945_v43, %s6027_s21  ;;  %v2088_v43 = vmul.f32 %v7228_v39, %v7368_v52 }
 0x540   : > { %2996 = vrot.lane.b32.xlu2 %v2024_v17, %s6027_s21  ;;  %v2089_v17 = vmul.f32 %v7228_v39, %v7331_v15  ;;  %v2146_v39 = vmul.f32 %v7293_v59, %v7380_v47 }
 0x541   : > { %v7890_v7 = vpop.permute.xlu0 %2419 }
 0x543   : > { %v7824_v61 = vpop.permute.xlu1 %2895 }
 0x544   : > { %10372 = vst [vmem:[#allocation47_spill] sm:$0xff] %v7824_v61  ;;  %v7850_v30 = vpop.permute.xlu2 %2417 }
 0x547   : > { %2963 = vrot.lane.b32.xlu0 %v1973_v5, %s6027_s21  ;;  %2965 = vrot.lane.b32.xlu1 %v1974_v12, %s6027_s21  ;;  %v2204_v5 = vmul.f32 %v7275_v42, %v7298_v50 }
 0x548   : > { %3002 = vrot.lane.b32.xlu2 %v2027_v14, %s6027_s21 }
 0x54b   : > { %v7839_v34 = vpop.permute.xlu1 %2901 }
 0x54c   : > { %10374 = vst [vmem:[#allocation49_spill] sm:$0xff] %v7839_v34 }
 0x54f   : > { %2969 = vrot.lane.b32.xlu0 %v1976_v32, %s6027_s21  ;;  %2971 = vrot.lane.b32.xlu1 %v1977_v25, %s6027_s21  ;;  %v2145_v25 = vmul.f32 %v7293_v59, %v7354_v49 }
 0x550   : > { %3031 = vrot.lane.b32.xlu2 %v2084_v31, %s6027_s21  ;;  %v2207_v31 = vmul.f32 %v7275_v42, %v7392_v0 }
 0x552   : > { %v7865_v8 = vpop.permute.xlu2 %2707 }
 0x553   : > { %v7852_v26 = vpop.permute.xlu1 %2930  ;;  %10375 = vst [vmem:[#allocation50_spill] sm:$0xff] %v7865_v8 }
 0x554   : > { %v2940_v23 = vsel %vm1080_vm4, %v7852_v26, %v7781_v9 }
 0x557   : > { %2998 = vrot.lane.b32.xlu0 %v2025_v41, %s6027_s21  ;;  %3000 = vrot.lane.b32.xlu1 %v2026_v56, %s6027_s21 }
 0x558   : > { %3037 = vrot.lane.b32.xlu2 %v2087_v1, %s6027_s21 }
 0x55b   : > { %v7867_v40 = vpop.permute.xlu1 %2421 }
 0x55f   : > { %3004 = vrot.lane.b32.xlu0 %v2028_v18, %s6027_s21  ;;  %3006 = vrot.lane.b32.xlu1 %v2029_v13, %s6027_s21  ;;  %v2148_v18 = vmul.f32 %v7293_v59, %v7368_v52  ;;  %v2149_v13 = vmul.f32 %v7293_v59, %v7331_v15  ;;  %v2247_v59 = vmul.f32 %v7329_v63, %v7392_v0 }
 0x560   : > { %3066 = vrot.lane.b32.xlu2 %v2144_v38, %s6027_s21  ;;  %v2244_v38 = vmul.f32 %v7329_v63, %v7298_v50 }
 0x561   : > { %v7905_v12 = vpop.permute.xlu0 %2703 }
 0x562   : > { %v7880_v36 = vpop.permute.xlu2 %2742  ;;  %10377 = vst [vmem:[#allocation52_spill] sm:$0xff] %v7905_v12 }
 0x563   : > { %v7882_v57 = vpop.permute.xlu1 %2415 }
 0x567   : > { %3033 = vrot.lane.b32.xlu0 %v2085_v46, %s6027_s21  ;;  %3035 = vrot.lane.b32.xlu1 %v2086_v45, %s6027_s21 }
 0x568   : > { %3072 = vrot.lane.b32.xlu2 %v2147_v6, %s6027_s21 }
 0x56a   : > { %v7895_v62 = vpop.permute.xlu2 %2853  ;;  %v7923_v41 = vpop.permute.xlu0 %2709 }
 0x56b   : > { %10376 = vst [vmem:[#allocation51_spill] sm:$0xff] %v7895_v62  ;;  %v7897_v24 = vpop.permute.xlu1 %2491 }
 0x56c   : > { %10378 = vst [vmem:[#allocation53_spill] sm:$0xff] %v7923_v41 }
 0x56f   : > { %3039 = vrot.lane.b32.xlu0 %v2088_v43, %s6027_s21  ;;  %3041 = vrot.lane.b32.xlu1 %v2089_v17, %s6027_s21  ;;  %v2205_v43 = vmul.f32 %v7275_v42, %v7354_v49  ;;  %v2206_v17 = vmul.f32 %v7275_v42, %v7380_v47 }
 0x570   : > { %3101 = vrot.lane.b32.xlu2 %v2204_v5, %s6027_s21 }
 0x572   : > { %v7910_v14 = vpop.permute.xlu2 %2481 }
 0x573   : > { %v7912_v32 = vpop.permute.xlu1 %2705 }
 0x577   : > { %3068 = vrot.lane.b32.xlu0 %v2145_v25, %s6027_s21  ;;  %3070 = vrot.lane.b32.xlu1 %v2146_v39, %s6027_s21  ;;  %v2079_v25 = vmul.f32 %v7281_v28, %v7331_v15 }
 0x578   : > { %3107 = vrot.lane.b32.xlu2 %v2207_v31, %s6027_s21 }
 0x579   : > { %v2626_v31 = vadd.f32 %v7495_v60, %v2079_v25  ;;  %v2076_v25 = vmul.f32 %v7281_v28, %v7380_v47 }
 0x57a   : > { %v7925_v56 = vpop.permute.xlu2 %2487 }
 0x57b   : > { %v7927_v1 = vpop.permute.xlu1 %2711 }
 0x57c   : > { %10379 = vst [vmem:[#allocation54_spill] sm:$0xff] %v7927_v1 }
 0x57f   : > { %3074 = vrot.lane.b32.xlu0 %v2148_v18, %s6027_s21  ;;  %3076 = vrot.lane.b32.xlu1 %v2149_v13, %s6027_s21  ;;  %v2208_v18 = vmul.f32 %v7275_v42, %v7368_v52  ;;  %v2209_v13 = vmul.f32 %v7275_v42, %v7331_v15 }
 0x580   : > { %3136 = vrot.lane.b32.xlu2 %v2244_v38, %s6027_s21  ;;  %v2766_v38 = vadd.f32 %v7815_v53, %v2626_v31 }
 0x581   : > { %v2739_v46 = vpop.permute.xlu0 %2738 }
 0x582   : > { %v7938_v45 = vpop.permute.xlu2 %2847 }
 0x583   : > { %10380 = vst [vmem:[#allocation55_spill] sm:$0xff] %v7938_v45  ;;  %v2741_v6 = vpop.permute.xlu1 %2740 }
 0x584   : > { %v2751_v48 = vsel %vm1460_vm7, %v2741_v6, %v7880_v36 }
 0x587   : > { %3103 = vrot.lane.b32.xlu0 %v2205_v43, %s6027_s21  ;;  %3105 = vrot.lane.b32.xlu1 %v2206_v17, %s6027_s21  ;;  %v2612_v17 = vsel %vm1080_vm4, %v7624_v37, %v7674_v21 }
 0x588   : > { %3142 = vrot.lane.b32.xlu2 %v2247_v59, %s6027_s21  ;;  %v2623_v31 = vadd.f32 %v2612_v17, %v2076_v25  ;;  %v2074_v17 = vmul.f32 %v7281_v28, %v7298_v50  ;;  %v2075_v25 = vmul.f32 %v7281_v28, %v7354_v49  ;;  %v2077_v50 = vmul.f32 %v7281_v28, %v7392_v0 }
 0x589   : > { %v2745_v5 = vpop.permute.xlu0 %2744 }
 0x58a   : > { %v7951_v39 = vpop.permute.xlu2 %2961  ;;  %v2752_v42 = vsel %vm1460_vm7, %v7880_v36, %v2745_v5  ;;  %v2621_v37 = vadd.f32 %v2610_v11, %v2074_v17  ;;  %v2622_v44 = vadd.f32 %v2611_v55, %v2075_v25  ;;  %v2614_v36 = vsel %vm1080_vm4, %v7681_v22, %v7495_v60 }
 0x58b   : > { %v2747_v43 = vpop.permute.xlu1 %2746  ;;  %v2078_v11 = vmul.f32 %v7281_v28, %v7368_v52 }
 0x58c   : > { %v2762_v61 = vadd.f32 %v2751_v48, %v2622_v44 }
 0x58d   : > { %v2625_v25 = vadd.f32 %v2614_v36, %v2078_v11  ;;  %v2265_v36 = vmul.f32 %v7206_v51, %v7354_v49  ;;  %v2287_v11 = vmul.f32 %v7287_v35, %v7392_v0 }
 0x58f   : > { %3109 = vrot.lane.b32.xlu0 %v2208_v18, %s6027_s21  ;;  %3111 = vrot.lane.b32.xlu1 %v2209_v13, %s6027_s21  ;;  %v2245_v18 = vmul.f32 %v7329_v63, %v7354_v49  ;;  %v2246_v13 = vmul.f32 %v7329_v63, %v7380_v47 }
 0x590   : > { %2818 = vrot.lane.b32.xlu2 %v2766_v38, %s6030_s29  ;;  %v2763_v38 = vadd.f32 %v2752_v42, %v2623_v31 }
 0x591   : > { %v7965_v59 = vpop.permute.xlu0 %2483 }
 0x592   : > { %v7969_v34 = vpop.permute.xlu2 %2967 }
 0x593   : > { %v7990_v42 = vpop.permute.xlu1 %2485 }
 0x597   : > { %3138 = vrot.lane.b32.xlu0 %v2245_v18, %s6027_s21  ;;  %3140 = vrot.lane.b32.xlu1 %v2246_v13, %s6027_s21  ;;  %v2750_v18 = vsel %vm1460_vm7, %v2739_v46, %v2741_v6  ;;  %v2613_v46 = vsel %vm1080_vm4, %v7674_v21, %v7681_v22  ;;  %v2754_v21 = vsel %vm1460_vm7, %v2747_v43, %v7815_v53 }
 0x598   : > { %2812 = vrot.lane.b32.xlu2 %v2763_v38, %s6030_s29  ;;  %v2761_v38 = vadd.f32 %v2750_v18, %v2621_v37  ;;  %v2624_v17 = vadd.f32 %v2613_v46, %v2077_v50  ;;  %v2267_v18 = vmul.f32 %v7206_v51, %v7392_v0  ;;  %v2248_v53 = vmul.f32 %v7329_v63, %v7368_v52  ;;  %v8038_v37 = vld [vmem:[#allocation2 + $0x10] sm:$0xff] }
 0x599   : > { %v7992_v31 = vpop.permute.xlu0 %2489  ;;  %v2284_v44 = vmul.f32 %v8038_v37, %v7287_v35 }
 0x59a   : > { %v7997_v13 = vpop.permute.xlu2 %2996 }
 0x59f   : > { %2808 = vrot.lane.b32.xlu0 %v2761_v38, %s6030_s29  ;;  %2810 = vrot.lane.b32.xlu1 %v2762_v61, %s6030_s29  ;;  %v2753_v61 = vsel %vm1460_vm7, %v2745_v5, %v2747_v43  ;;  %v2249_v43 = vmul.f32 %v7329_v63, %v7331_v15  ;;  %v2266_v63 = vmul.f32 %v7206_v51, %v7380_v47 }
 0x5a0   : > { %3171 = vrot.lane.b32.xlu2 %v2264_v58, %s6027_s21  ;;  %v2764_v22 = vadd.f32 %v2753_v61, %v2624_v17  ;;  %v2765_v58 = vadd.f32 %v2754_v21, %v2625_v25  ;;  %v2938_v17 = vsel %vm1080_vm4, %v7756_v54, %v7854_v33  ;;  %v1930_v25 = vmul.f32 %v8038_v37, %v7121_v3 }
 0x5a1   : > { %v8014_v55 = vpop.permute.xlu0 %2843  ;;  %v8016_v6 = vpop.permute.xlu1 %2845 }
 0x5a2   : > { %10381 = vst [vmem:[#allocation56_spill] sm:$0xff] %v8014_v55  ;;  %v8021_v60 = vpop.permute.xlu2 %3002 }
 0x5a3   : > { %10382 = vst [vmem:[#allocation57_spill] sm:$0xff] %v8016_v6 }
 0x5a7   : > { %2814 = vrot.lane.b32.xlu0 %v2764_v22, %s6030_s29  ;;  %2816 = vrot.lane.b32.xlu1 %v2765_v58, %s6030_s29  ;;  %v2268_v22 = vmul.f32 %v7206_v51, %v7368_v52  ;;  %v2269_v58 = vmul.f32 %v7206_v51, %v7331_v15  ;;  %v2285_v51 = vmul.f32 %v7287_v35, %v7354_v49 }
 0x5a8   : > { %3177 = vrot.lane.b32.xlu2 %v2267_v18, %s6027_s21  ;;  %v2949_v18 = vadd.f32 %v2938_v17, %v1930_v25  ;;  %v2286_v15 = vmul.f32 %v7287_v35, %v7380_v47 }
 0x5a9   : > { %v8028_v28 = vpop.permute.xlu0 %2849  ;;  %v8030_v5 = vpop.permute.xlu1 %2851 }
 0x5aa   : > { %10383 = vst [vmem:[#allocation58_spill] sm:$0xff] %v8028_v28  ;;  %v8036_v48 = vpop.permute.xlu2 %3031 }
 0x5ab   : > { %10384 = vst [vmem:[#allocation59_spill] sm:$0xff] %v8030_v5 }
 0x5af   : > { %3144 = vrot.lane.b32.xlu0 %v2248_v53, %s6027_s21  ;;  %3146 = vrot.lane.b32.xlu1 %v2249_v43, %s6027_s21 }
 0x5b0   : > { %3206 = vrot.lane.b32.xlu2 %v2284_v44, %s6027_s21 }
 0x5b1   : > { %v2935_v38 = vpop.permute.xlu0 %2934  ;;  %v2937_v46 = vpop.permute.xlu1 %2936 }
 0x5b2   : > { %v8053_v50 = vpop.permute.xlu2 %3037  ;;  %v2941_v44 = vsel %vm1080_vm4, %v7781_v9, %v2935_v38  ;;  %v2942_v5 = vsel %vm1080_vm4, %v2935_v38, %v2937_v46 }
 0x5b7   : > { %3173 = vrot.lane.b32.xlu0 %v2265_v36, %s6027_s21  ;;  %3175 = vrot.lane.b32.xlu1 %v2266_v63, %s6027_s21  ;;  %v1933_v36 = vmul.f32 %v7121_v3, %v7392_v0 }
 0x5b8   : > { %3212 = vrot.lane.b32.xlu2 %v2287_v11, %s6027_s21 }
 0x5b9   : > { %v8056_v61 = vpop.permute.xlu0 %2963  ;;  %v8058_v21 = vpop.permute.xlu1 %2965  ;;  %v2952_v63 = vadd.f32 %v2941_v44, %v1933_v36  ;;  %v8095_v44 = vld [vmem:[#allocation2 + $0x38] sm:$0xff] }
 0x5ba   : > { %v3067_v54 = vpop.permute.xlu2 %3066  ;;  %v2289_v36 = vmul.f32 %v8095_v44, %v7287_v35 }
 0x5bf   : > { %3179 = vrot.lane.b32.xlu0 %v2268_v22, %s6027_s21  ;;  %3181 = vrot.lane.b32.xlu1 %v2269_v58, %s6027_s21  ;;  %v1992_v58 = vmul.f32 %v8038_v37, %v7152_v16 }
 0x5c0   : > { %3241 = vrot.lane.b32.xlu2 %v2949_v18, %s6028_s22  ;;  %v2288_v18 = vmul.f32 %v7287_v35, %v7368_v52  ;;  %v1931_v35 = vmul.f32 %v7121_v3, %v7354_v49 }
 0x5c1   : > { %v8072_v53 = vpop.permute.xlu0 %2969  ;;  %v8074_v43 = vpop.permute.xlu1 %2971 }
 0x5c2   : > { %v8089_v22 = vpop.permute.xlu2 %3072 }
 0x5c7   : > { %3208 = vrot.lane.b32.xlu0 %v2285_v51, %s6027_s21  ;;  %3210 = vrot.lane.b32.xlu1 %v2286_v15, %s6027_s21 }
 0x5c8   : > { %3247 = vrot.lane.b32.xlu2 %v2952_v63, %s6028_s22  ;;  %v2939_v63 = vsel %vm1080_vm4, %v7854_v33, %v7852_v26 }
 0x5c9   : > { %v2999_v11 = vpop.permute.xlu0 %2998  ;;  %v3001_v17 = vpop.permute.xlu1 %3000 }
 0x5ca   : > { %v3008_v25 = vsel %vm1080_vm4, %v7997_v13, %v2999_v11  ;;  %v8116_v62 = vpop.permute.xlu2 %3101  ;;  %v3009_v38 = vsel %vm1080_vm4, %v2999_v11, %v3001_v17 }
 0x5cb   : > { %v3019_v51 = vadd.f32 %v3008_v25, %v1992_v58  ;;  %v1932_v25 = vmul.f32 %v7121_v3, %v7380_v47 }
 0x5cf   : > { %3214 = vrot.lane.b32.xlu0 %v2288_v18, %s6027_s21  ;;  %3216 = vrot.lane.b32.xlu1 %v2289_v36, %s6027_s21  ;;  %v1995_v18 = vmul.f32 %v7152_v16, %v7392_v0  ;;  %v2950_v36 = vadd.f32 %v2939_v63, %v1931_v35  ;;  %v2953_v63 = vadd.f32 %v2942_v5, %v1934_v20  ;;  %s6037_s21 = smov 112  }
 0x5d0   : > { %3276 = vrot.lane.b32.xlu2 %v3019_v51, %s6028_s22  ;;  %v2951_v51 = vadd.f32 %v2940_v23, %v1932_v25  ;;  %v1935_v23 = vmul.f32 %v8095_v44, %v7121_v3  ;;  %v1993_v3 = vmul.f32 %v7152_v16, %v7354_v49  ;;  %v1994_v20 = vmul.f32 %v7152_v16, %v7380_v47 }
 0x5d1   : > { %v3005_v13 = vpop.permute.xlu0 %3004  ;;  %v3007_v15 = vpop.permute.xlu1 %3006 }
 0x5d2   : > { %v3011_v58 = vsel %vm1080_vm4, %v8021_v60, %v3005_v13  ;;  %v2954_v35 = vadd.f32 %v2937_v46, %v1935_v23  ;;  %v8132_v25 = vpop.permute.xlu2 %3107  ;;  %v3020_v5 = vadd.f32 %v3009_v38, %v1993_v3  ;;  %v3012_v23 = vsel %vm1080_vm4, %v3005_v13, %v3007_v15 }
 0x5d3   : > { %v3022_v33 = vadd.f32 %v3011_v58, %v1995_v18  ;;  %v2117_v13 = vmul.f32 %v7164_v2, %v7392_v0 }
 0x5d7   : > { %3243 = vrot.lane.b32.xlu0 %v2950_v36, %s6028_s22  ;;  %3245 = vrot.lane.b32.xlu1 %v2951_v51, %s6028_s22  ;;  %v3010_v36 = vsel %vm1080_vm4, %v3001_v17, %v8021_v60  ;;  %v2114_v51 = vmul.f32 %v8038_v37, %v7164_v2 }
 0x5d8   : > { %3282 = vrot.lane.b32.xlu2 %v3022_v33, %s6028_s22  ;;  %v3021_v46 = vadd.f32 %v3010_v36, %v1994_v20 }
 0x5d9   : > { %v8121_v9 = vpop.permute.xlu0 %3033  ;;  %v8123_v26 = vpop.permute.xlu1 %3035 }
 0x5da   : > { %v3137_v60 = vpop.permute.xlu2 %3136 }
 0x5df   : > { %3249 = vrot.lane.b32.xlu0 %v2953_v63, %s6028_s22  ;;  %3251 = vrot.lane.b32.xlu1 %v2954_v35, %s6028_s22  ;;  %v1996_v63 = vmul.f32 %v7152_v16, %v7368_v52  ;;  %v1997_v35 = vmul.f32 %v8095_v44, %v7152_v16 }
 0x5e1   : > { %v8134_v58 = vpop.permute.xlu0 %3039  ;;  %v8136_v18 = vpop.permute.xlu1 %3041  ;;  %v3023_v36 = vadd.f32 %v3012_v23, %v1996_v63  ;;  %v3024_v3 = vadd.f32 %v3007_v15, %v1997_v35  ;;  %v2115_v15 = vmul.f32 %v7164_v2, %v7354_v49 }
 0x5e7   : > { %3278 = vrot.lane.b32.xlu0 %v3020_v5, %s6028_s22  ;;  %3280 = vrot.lane.b32.xlu1 %v3021_v46, %s6028_s22 }
 0x5e9   : > { %v3069_v33 = vpop.permute.xlu0 %3068  ;;  %v3071_v11 = vpop.permute.xlu1 %3070 }
 0x5ea   : > { %v3078_v17 = vsel %vm1080_vm4, %v3067_v54, %v3069_v33  ;;  %v3079_v5 = vsel %vm1080_vm4, %v3069_v33, %v3071_v11  ;;  %v3080_v46 = vsel %vm1080_vm4, %v3071_v11, %v8089_v22 }
 0x5eb   : > { %v3089_v38 = vadd.f32 %v3078_v17, %v2114_v51  ;;  %v2116_v51 = vmul.f32 %v7164_v2, %v7380_v47  ;;  %v3143_v17 = vpop.permute.xlu2 %3142  ;;  %v3090_v63 = vadd.f32 %v3079_v5, %v2115_v15 }
 0x5ed   : > { %3311 = vrot.lane.b32.xlu2 %v3089_v38, %s6028_s22  ;;  %v3091_v35 = vadd.f32 %v3080_v46, %v2116_v51  ;;  %v2118_v38 = vmul.f32 %v7164_v2, %v7368_v52 }
 0x5ef   : > { %3284 = vrot.lane.b32.xlu0 %v3023_v36, %s6028_s22  ;;  %3286 = vrot.lane.b32.xlu1 %v3024_v3, %s6028_s22  ;;  %v2119_v36 = vmul.f32 %v8095_v44, %v7164_v2  ;;  %v2225_v2 = vmul.f32 %v7320_v4, %v7354_v49 }
 0x5f1   : > { %v3075_v20 = vpop.permute.xlu0 %3074  ;;  %v3077_v54 = vpop.permute.xlu1 %3076 }
 0x5f2   : > { %v3081_v16 = vsel %vm1080_vm4, %v8089_v22, %v3075_v20  ;;  %v3082_v22 = vsel %vm1080_vm4, %v3075_v20, %v3077_v54  ;;  %v2224_v20 = vmul.f32 %v8038_v37, %v7320_v4 }
 0x5f3   : > { %v3092_v23 = vadd.f32 %v3081_v16, %v2117_v13  ;;  %v3093_v3 = vadd.f32 %v3082_v22, %v2118_v38  ;;  %v3094_v13 = vadd.f32 %v3077_v54, %v2119_v36  ;;  %v8181_v5 = vpop.permute.xlu2 %2818  ;;  %v2226_v54 = vmul.f32 %v7320_v4, %v7380_v47 }
 0x5f4   : > { %10385 = vst [vmem:[#allocation60_spill] sm:$0xff] %v8181_v5 }
 0x5f5   : > { %3317 = vrot.lane.b32.xlu2 %v3092_v23, %s6028_s22 }
 0x5f7   : > { %3313 = vrot.lane.b32.xlu0 %v3090_v63, %s6028_s22  ;;  %3315 = vrot.lane.b32.xlu1 %v3091_v35, %s6028_s22 }
 0x5f9   : > { %v8172_v33 = vpop.permute.xlu0 %3103  ;;  %v8174_v11 = vpop.permute.xlu1 %3105 }
 0x5fb   : > { %v8189_v15 = vpop.permute.xlu2 %2812 }
 0x5fc   : > { %10386 = vst [vmem:[#allocation61_spill] sm:$0xff] %v8189_v15  ;;  %v2279_v15 = vmul.f32 %v8095_v44, %v7342_v29 }
 0x5ff   : > { %3319 = vrot.lane.b32.xlu0 %v3093_v3, %s6028_s22  ;;  %3321 = vrot.lane.b32.xlu1 %v3094_v13, %s6028_s22 }
 0x601   : > { %v8185_v46 = vpop.permute.xlu0 %3109  ;;  %v8187_v16 = vpop.permute.xlu1 %3111 }
 0x603   : > { %v8207_v28 = vpop.permute.xlu2 %3171 }
 0x609   : > { %v3139_v51 = vpop.permute.xlu0 %3138  ;;  %v3141_v23 = vpop.permute.xlu1 %3140 }
 0x60a   : > { %v3148_v63 = vsel %vm1080_vm4, %v3137_v60, %v3139_v51  ;;  %v3149_v35 = vsel %vm1080_vm4, %v3139_v51, %v3141_v23  ;;  %v3150_v22 = vsel %vm1080_vm4, %v3141_v23, %v3143_v17 }
 0x60b   : > { %v3159_v38 = vadd.f32 %v3148_v63, %v2224_v20  ;;  %v3160_v36 = vadd.f32 %v3149_v35, %v2225_v2  ;;  %v3161_v3 = vadd.f32 %v3150_v22, %v2226_v54  ;;  %v8213_v23 = vpop.permute.xlu2 %3177  ;;  %v2229_v20 = vmul.f32 %v8095_v44, %v7320_v4 }
 0x60c   : > { %v2227_v2 = vmul.f32 %v7320_v4, %v7392_v0  ;;  %v2228_v63 = vmul.f32 %v7320_v4, %v7368_v52 }
 0x60d   : > { %3348 = vrot.lane.b32.xlu0 %v3160_v36, %s6028_s22  ;;  %3346 = vrot.lane.b32.xlu2 %v3159_v38, %s6028_s22 }
 0x60e   : > { %3350 = vrot.lane.b32.xlu1 %v3161_v3, %s6028_s22 }
 0x611   : > { %v8203_v13 = vpop.permute.xlu0 %2808  ;;  %v8205_v5 = vpop.permute.xlu1 %2810 }
 0x612   : > { %10387 = vst [vmem:[#allocation62_spill] sm:$0xff] %v8203_v13 }
 0x613   : > { %10388 = vst [vmem:[#allocation63_spill] sm:$0xff] %v8205_v5  ;;  %v3207_v45 = vpop.permute.xlu2 %3206 }
 0x619   : > { %v8209_v60 = vpop.permute.xlu0 %2814  ;;  %v8211_v51 = vpop.permute.xlu1 %2816 }
 0x61a   : > { %10389 = vst [vmem:[#allocation64_spill] sm:$0xff] %v8209_v60 }
 0x61b   : > { %10390 = vst [vmem:[#allocation65_spill] sm:$0xff] %v8211_v51  ;;  %v3213_v4 = vpop.permute.xlu2 %3212 }
 0x621   : > { %v3145_v54 = vpop.permute.xlu0 %3144  ;;  %v3147_v35 = vpop.permute.xlu1 %3146 }
 0x622   : > { %v3151_v22 = vsel %vm1080_vm4, %v3143_v17, %v3145_v54  ;;  %v3152_v38 = vsel %vm1080_vm4, %v3145_v54, %v3147_v35  ;;  %v3164_v36 = vadd.f32 %v3147_v35, %v2229_v20  ;;  %v2274_v20 = vmul.f32 %v8038_v37, %v7342_v29 }
 0x623   : > { %v3162_v3 = vadd.f32 %v3151_v22, %v2227_v2  ;;  %v3163_v51 = vadd.f32 %v3152_v38, %v2228_v63  ;;  %v2275_v54 = vmul.f32 %v7342_v29, %v7354_v49  ;;  %v8240_v35 = vpop.permute.xlu2 %3241 }
 0x624   : > { %3356 = vrot.lane.b32.xlu1 %v3164_v36, %s6028_s22  ;;  %10391 = vst [vmem:[#allocation66_spill] sm:$0xff] %v8240_v35  ;;  %v2277_v35 = vmul.f32 %v7342_v29, %v7392_v0 }
 0x625   : > { %3354 = vrot.lane.b32.xlu0 %v3163_v51, %s6028_s22  ;;  %3352 = vrot.lane.b32.xlu2 %v3162_v3, %s6028_s22  ;;  %v2276_v51 = vmul.f32 %v7342_v29, %v7380_v47 }
 0x629   : > { %v8226_v55 = vpop.permute.xlu0 %3173  ;;  %v8228_v6 = vpop.permute.xlu1 %3175 }
 0x631   : > { %v8230_v10 = vpop.permute.xlu0 %3179  ;;  %v8232_v17 = vpop.permute.xlu1 %3181 }
 0x639   : > { %v3209_v2 = vpop.permute.xlu0 %3208  ;;  %v3211_v63 = vpop.permute.xlu1 %3210 }
 0x63a   : > { %v3218_v22 = vsel %vm1080_vm4, %v3207_v45, %v3209_v2  ;;  %v3219_v38 = vsel %vm1080_vm4, %v3209_v2, %v3211_v63  ;;  %v3220_v36 = vsel %vm1080_vm4, %v3211_v63, %v3213_v4  ;;  %v2278_v2 = vmul.f32 %v7342_v29, %v7368_v52 }
 0x63b   : > { %v3229_v3 = vadd.f32 %v3218_v22, %v2274_v20  ;;  %v3230_v1 = vadd.f32 %v3219_v38, %v2275_v54  ;;  %v3231_v60 = vadd.f32 %v3220_v36, %v2276_v51  ;;  %v8256_v38 = vpop.permute.xlu2 %3247 }
 0x63c   : > { %10392 = vst [vmem:[#allocation67_spill] sm:$0xff] %v8256_v38 }
 0x63d   : > { %3383 = vrot.lane.b32.xlu0 %v3230_v1, %s6028_s22  ;;  %3381 = vrot.lane.b32.xlu2 %v3229_v3, %s6028_s22 }
 0x63e   : > { %3385 = vrot.lane.b32.xlu1 %v3231_v60, %s6028_s22 }
 0x641   : > { %v3215_v45 = vpop.permute.xlu0 %3214  ;;  %v3217_v63 = vpop.permute.xlu1 %3216 }
 0x642   : > { %v3221_v20 = vsel %vm1080_vm4, %v3213_v4, %v3215_v45  ;;  %v3222_v54 = vsel %vm1080_vm4, %v3215_v45, %v3217_v63  ;;  %v3234_v1 = vadd.f32 %v3217_v63, %v2279_v15  ;;  %v2973_v15 = vsel %vm1080_vm4, %v7951_v39, %v8056_v61 }
 0x643   : > { %v3232_v51 = vadd.f32 %v3221_v20, %v2277_v35  ;;  %v3233_v22 = vadd.f32 %v3222_v54, %v2278_v2  ;;  %v3277_v29 = vpop.permute.xlu2 %3276  ;;  %v2974_v35 = vsel %vm1080_vm4, %v8056_v61, %v8058_v21  ;;  %v2975_v45 = vsel %vm1080_vm4, %v8058_v21, %v7969_v34  ;;  %v10397_v2 = vld [vmem:[#allocation27_spill] sm:$0xff] }
 0x644   : > { %v1950_v63 = vmul.f32 %v8038_v37, %v10397_v2  ;;  %v1951_v20 = vmul.f32 %v10397_v2, %v7354_v49  ;;  %v1952_v54 = vmul.f32 %v10397_v2, %v7380_v47 }
 0x645   : > { %3389 = vrot.lane.b32.xlu0 %v3233_v22, %s6028_s22  ;;  %3387 = vrot.lane.b32.xlu2 %v3232_v51, %s6028_s22 }
 0x646   : > { %3391 = vrot.lane.b32.xlu1 %v3234_v1, %s6028_s22  ;;  %v2984_v51 = vadd.f32 %v2973_v15, %v1950_v63  ;;  %v2985_v39 = vadd.f32 %v2974_v35, %v1951_v20  ;;  %v2986_v22 = vadd.f32 %v2975_v45, %v1952_v54  ;;  %v2976_v15 = vsel %vm1080_vm4, %v7969_v34, %v8072_v53  ;;  %s10585_s22 = sld [smem:[#allocation84_spill]] }
 0x647   : > { %v1955_v35 = vmul.f32 %v8095_v44, %v10397_v2 }
 0x649   : > { %v8261_v60 = vpop.permute.xlu0 %3243  ;;  %v8263_v36 = vpop.permute.xlu1 %3245 }
 0x64a   : > { %10393 = vst [vmem:[#allocation68_spill] sm:$0xff] %v8261_v60 }
 0x64b   : > { %10394 = vst [vmem:[#allocation69_spill] sm:$0xff] %v8263_v36  ;;  %v3283_v1 = vpop.permute.xlu2 %3282 }
 0x651   : > { %v8265_v3 = vpop.permute.xlu0 %3249  ;;  %v8267_v4 = vpop.permute.xlu1 %3251 }
 0x652   : > { %10395 = vst [vmem:[#allocation70_spill] sm:$0xff] %v8265_v3 }
 0x653   : > { %10396 = vst [vmem:[#allocation71_spill] sm:$0xff] %v8267_v4 }
 0x659   : > { %v3279_v4 = vpop.permute.xlu0 %3278  ;;  %v3281_v3 = vpop.permute.xlu1 %3280 }
 0x65a   : > { %v3288_v61 = vsel %vm1460_vm7, %v3277_v29, %v3279_v4  ;;  %v3289_v38 = vsel %vm1460_vm7, %v3279_v4, %v3281_v3  ;;  %v3290_v21 = vsel %vm1460_vm7, %v3281_v3, %v3283_v1  ;;  %v2977_v29 = vsel %vm1080_vm4, %v8072_v53, %v8074_v43 }
 0x65b   : > { %v3299_v36 = vadd.f32 %v3288_v61, %v2984_v51  ;;  %v3300_v60 = vadd.f32 %v3289_v38, %v2985_v39  ;;  %v3301_v13 = vadd.f32 %v3290_v21, %v2986_v22  ;;  %v1953_v38 = vmul.f32 %v10397_v2, %v7392_v0 }
 0x65c   : > { %v3113_v21 = vsel %vm1080_vm4, %v8116_v62, %v8172_v33 }
 0x65d   : > { %3418 = vrot.lane.b32.xlu0 %v3300_v60, %s6030_s29  ;;  %3416 = vrot.lane.b32.xlu2 %v3299_v36, %s6030_s29  ;;  %v1954_v60 = vmul.f32 %v10397_v2, %v7368_v52  ;;  %v2989_v36 = vadd.f32 %v8074_v43, %v1955_v35  ;;  %v2987_v3 = vadd.f32 %v2976_v15, %v1953_v38  ;;  %v10398_v15 = vld [vmem:[#allocation25_spill] sm:$0xff] }
 0x65e   : > { %3420 = vrot.lane.b32.xlu1 %v3301_v13, %s6030_s29  ;;  %v8305_v13 = vpop.permute.xlu2 %3311  ;;  %v2174_v35 = vmul.f32 %v8038_v37, %v10398_v15  ;;  %v3115_v38 = vsel %vm1080_vm4, %v8174_v11, %v8132_v25 }
 0x65f   : > { %v2988_v4 = vadd.f32 %v2977_v29, %v1954_v60  ;;  %v3114_v29 = vsel %vm1080_vm4, %v8172_v33, %v8174_v11  ;;  %v2175_v60 = vmul.f32 %v10398_v15, %v7354_v49 }
 0x661   : > { %v3285_v34 = vpop.permute.xlu0 %3284  ;;  %v3287_v45 = vpop.permute.xlu1 %3286 }
 0x662   : > { %v3291_v63 = vsel %vm1460_vm7, %v3283_v1, %v3285_v34  ;;  %v3292_v20 = vsel %vm1460_vm7, %v3285_v34, %v3287_v45  ;;  %v3304_v54 = vadd.f32 %v3287_v45, %v2989_v36  ;;  %v2176_v36 = vmul.f32 %v10398_v15, %v7380_v47 }
 0x663   : > { %v3302_v53 = vadd.f32 %v3291_v63, %v2987_v3  ;;  %v3303_v51 = vadd.f32 %v3292_v20, %v2988_v4  ;;  %v3124_v3 = vadd.f32 %v3113_v21, %v2174_v35  ;;  %v3125_v34 = vadd.f32 %v3114_v29, %v2175_v60 }
 0x664   : > { %v3126_v45 = vadd.f32 %v3115_v38, %v2176_v36  ;;  %v2179_v21 = vmul.f32 %v8095_v44, %v10398_v15  ;;  %v3117_v35 = vsel %vm1080_vm4, %v8185_v46, %v8187_v16  ;;  %v2177_v29 = vmul.f32 %v10398_v15, %v7392_v0 }
 0x665   : > { %3424 = vrot.lane.b32.xlu0 %v3303_v51, %s6030_s29  ;;  %3422 = vrot.lane.b32.xlu2 %v3302_v53, %s6030_s29  ;;  %v2178_v38 = vmul.f32 %v10398_v15, %v7368_v52 }
 0x666   : > { %3426 = vrot.lane.b32.xlu1 %v3304_v54, %s6030_s29  ;;  %v8314_v39 = vpop.permute.xlu2 %3317  ;;  %v3129_v60 = vadd.f32 %v8187_v16, %v2179_v21 }
 0x669   : > { %v8310_v43 = vpop.permute.xlu0 %3313  ;;  %v8312_v2 = vpop.permute.xlu1 %3315 }
 0x66e   : > { %v3347_v1 = vpop.permute.xlu2 %3346 }
 0x671   : > { %v8316_v22 = vpop.permute.xlu0 %3319  ;;  %v8318_v61 = vpop.permute.xlu1 %3321 }
 0x67f   : > { %v3349_v4 = vpop.permute.xlu0 %3348  ;;  %v3353_v62 = vpop.permute.xlu2 %3352 }
 0x680   : > { %v3358_v63 = vsel %vm1460_vm7, %v3347_v1, %v3349_v4  ;;  %v3351_v20 = vpop.permute.xlu1 %3350  ;;  %v3116_v1 = vsel %vm1080_vm4, %v8132_v25, %v8185_v46  ;;  %v10399_v46 = vld [vmem:[#allocation26_spill] sm:$0xff] }
 0x681   : > { %v3369_v54 = vadd.f32 %v3358_v63, %v3124_v3  ;;  %v3359_v33 = vsel %vm1460_vm7, %v3349_v4, %v3351_v20  ;;  %v3360_v53 = vsel %vm1460_vm7, %v3351_v20, %v3353_v62  ;;  %v3127_v3 = vadd.f32 %v3116_v1, %v2177_v29 }
 0x682   : > { %v3370_v11 = vadd.f32 %v3359_v33, %v3125_v34  ;;  %v3371_v51 = vadd.f32 %v3360_v53, %v3126_v45  ;;  %v3128_v4 = vadd.f32 %v3117_v35, %v2178_v38  ;;  %v2296_v16 = vmul.f32 %v10399_v46, %v7380_v47 }
 0x683   : > { %3451 = vrot.lane.b32.xlu2 %v3369_v54, %s6030_s29  ;;  %v2295_v15 = vmul.f32 %v10399_v46, %v7354_v49  ;;  %v2299_v33 = vmul.f32 %v8095_v44, %v10399_v46  ;;  %v2298_v53 = vmul.f32 %v10399_v46, %v7368_v52 }
 0x684   : > { %3453 = vrot.lane.b32.xlu0 %v3370_v11, %s6030_s29  ;;  %3455 = vrot.lane.b32.xlu1 %v3371_v51, %s6030_s29  ;;  %v2297_v11 = vmul.f32 %v10399_v46, %v7392_v0 }
 0x696   : > { %v3357_v36 = vpop.permute.xlu1 %3356 }
 0x697   : > { %v3374_v34 = vadd.f32 %v3357_v36, %v3129_v60  ;;  %v3355_v45 = vpop.permute.xlu0 %3354  ;;  %v8377_v51 = vpop.permute.xlu2 %3381 }
 0x698   : > { %v3361_v63 = vsel %vm1460_vm7, %v3353_v62, %v3355_v45  ;;  %v3362_v25 = vsel %vm1460_vm7, %v3355_v45, %v3357_v36  ;;  %v2294_v62 = vmul.f32 %v8038_v37, %v10399_v46  ;;  %v10406_v46 = vld [vmem:[#allocation31_spill] sm:$0xff] }
 0x699   : > { %v3372_v20 = vadd.f32 %v3361_v63, %v3127_v3  ;;  %v3373_v54 = vadd.f32 %v3362_v25, %v3128_v4  ;;  %3461 = vrot.lane.b32.xlu1 %v3374_v34, %s6030_s29  ;;  %v3043_v25 = vsel %vm1080_vm4, %v8036_v48, %v8121_v9  ;;  %v3323_v48 = vsel %vm1460_vm7, %v8305_v13, %v8310_v43 }
 0x69b   : > { %3459 = vrot.lane.b32.xlu0 %v3373_v54, %s6030_s29  ;;  %3457 = vrot.lane.b32.xlu2 %v3372_v20, %s6030_s29  ;;  %v3044_v20 = vsel %vm1080_vm4, %v8121_v9, %v8123_v26  ;;  %v3045_v54 = vsel %vm1080_vm4, %v8123_v26, %v8053_v50  ;;  %v3324_v9 = vsel %vm1460_vm7, %v8310_v43, %v8312_v2 }
 0x69c   : > { %v3325_v26 = vsel %vm1460_vm7, %v8312_v2, %v8314_v39  ;;  %v2059_v2 = vmul.f32 %v8095_v44, %v10406_v46 }
 0x69f   : > { %v8383_v35 = vpop.permute.xlu2 %3387 }
 0x6a1   : > { %3490 = vrot.lane.b32.xlu1 %v2296_v16, %s6030_s29  ;;  %v2054_v16 = vmul.f32 %v8038_v37, %v10406_v46 }
 0x6a3   : > { %3488 = vrot.lane.b32.xlu0 %v2295_v15, %s6030_s29  ;;  %3486 = vrot.lane.b32.xlu2 %v2294_v62, %s6030_s29  ;;  %v2055_v15 = vmul.f32 %v10406_v46, %v7354_v49  ;;  %v2056_v62 = vmul.f32 %v10406_v46, %v7380_v47 }
 0x6a9   : > { %3496 = vrot.lane.b32.xlu1 %v2299_v33, %s6030_s29  ;;  %v3054_v33 = vadd.f32 %v3043_v25, %v2054_v16 }
 0x6ab   : > { %3494 = vrot.lane.b32.xlu0 %v2298_v53, %s6030_s29  ;;  %3492 = vrot.lane.b32.xlu2 %v2297_v11, %s6030_s29  ;;  %v3055_v53 = vadd.f32 %v3044_v20, %v2055_v15  ;;  %v3056_v11 = vadd.f32 %v3045_v54, %v2056_v62  ;;  %s566_s29 = scalar_lea.vmem [#allocation6], %s5675_s14 }
 0x6af   : > { %v8379_v21 = vpop.permute.xlu0 %3383 }
 0x6b0   : > { %v8381_v1 = vpop.permute.xlu1 %3385 }
 0x6b7   : > { %v8385_v29 = vpop.permute.xlu2 %3416  ;;  %v8387_v38 = vpop.permute.xlu0 %3389 }
 0x6b8   : > { %10400 = vst [vmem:[#allocation27_spill] sm:$0xff] %v8385_v29  ;;  %v8389_v60 = vpop.permute.xlu1 %3391 }
 0x6bf   : > { %v8395_v4 = vpop.permute.xlu2 %3422 }
 0x6c0   : > { %10403 = vst [vmem:[#allocation72_spill] sm:$0xff] %v8395_v4  ;;  %v3335_v4 = vadd.f32 %v3324_v9, %v3055_v53  ;;  %v3184_v9 = vsel %vm1080_vm4, %v8226_v55, %v8228_v6 }
 0x6cf   : > { %v8391_v36 = vpop.permute.xlu0 %3418 }
 0x6d0   : > { %10401 = vst [vmem:[#allocation25_spill] sm:$0xff] %v8391_v36  ;;  %v8393_v3 = vpop.permute.xlu1 %3420 }
 0x6d1   : > { %10402 = vst [vmem:[#allocation26_spill] sm:$0xff] %v8393_v3  ;;  %v3336_v3 = vadd.f32 %v3325_v26, %v3056_v11 }
 0x6d7   : > { %v8397_v45 = vpop.permute.xlu0 %3424 }
 0x6d8   : > { %10404 = vst [vmem:[#allocation73_spill] sm:$0xff] %v8397_v45  ;;  %v8399_v63 = vpop.permute.xlu1 %3426  ;;  %v3334_v45 = vadd.f32 %v3323_v48, %v3054_v33  ;;  %v3183_v48 = vsel %vm1080_vm4, %v8207_v28, %v8226_v55  ;;  %v3393_v28 = vsel %vm1460_vm7, %v8377_v51, %v8379_v21  ;;  %v3394_v55 = vsel %vm1460_vm7, %v8379_v21, %v8381_v1 }
 0x6d9   : > { %10405 = vst [vmem:[#allocation74_spill] sm:$0xff] %v8399_v63 }
 0x6dd   : > { %v3452_v34 = vpop.permute.xlu2 %3451 }
 0x6f5   : > { %v3458_v63 = vpop.permute.xlu2 %3457 }
 0x6f6   : > { %v3454_v29 = vpop.permute.xlu0 %3453  ;;  %v3456_v36 = vpop.permute.xlu1 %3455 }
 0x6f7   : > { %v3463_v5 = vsel %vm1652_vm6, %v3452_v34, %v3454_v29  ;;  %v3464_v13 = vsel %vm1652_vm6, %v3454_v29, %v3456_v36  ;;  %v3465_v41 = vsel %vm1652_vm6, %v3456_v36, %v3458_v63  ;;  %v3046_v34 = vsel %vm1080_vm4, %v8053_v50, %v8134_v58 }
 0x6f8   : > { %v3474_v43 = vadd.f32 %v3463_v5, %v3334_v45  ;;  %v3475_v8 = vadd.f32 %v3464_v13, %v3335_v4  ;;  %v3476_v12 = vadd.f32 %v3465_v41, %v3336_v3  ;;  %v3047_v29 = vsel %vm1080_vm4, %v8134_v58, %v8136_v18 }
 0x6f9   : > { %v3059_v5 = vadd.f32 %v8136_v18, %v2059_v2  ;;  %v2058_v41 = vmul.f32 %v10406_v46, %v7368_v52  ;;  %v3326_v36 = vsel %vm1460_vm7, %v8314_v39, %v8316_v22  ;;  %v3327_v50 = vsel %vm1460_vm7, %v8316_v22, %v8318_v61  ;;  %v10407_v22 = vld [vmem:[#allocation22_spill] sm:$0xff] }
 0x6fa   : > { %3523 = vrot.lane.b32.xlu0 %v3475_v8, %s6036_s19  ;;  %3521 = vrot.lane.b32.xlu2 %v3474_v43, %s6036_s19  ;;  %v2057_v8 = vmul.f32 %v10406_v46, %v7392_v0  ;;  %v3185_v46 = vsel %vm1080_vm4, %v8228_v6, %v8213_v23  ;;  %v2254_v26 = vmul.f32 %v8038_v37, %v10407_v22 }
 0x6fb   : > { %3525 = vrot.lane.b32.xlu1 %v3476_v12, %s6036_s19  ;;  %v3339_v3 = vadd.f32 %v8318_v61, %v3059_v5  ;;  %v3058_v4 = vadd.f32 %v3047_v29, %v2058_v41  ;;  %v2256_v61 = vmul.f32 %v10407_v22, %v7380_v47  ;;  %v2255_v33 = vmul.f32 %v10407_v22, %v7354_v49 }
 0x6fc   : > { %v3057_v58 = vadd.f32 %v3046_v34, %v2057_v8  ;;  %v3194_v6 = vadd.f32 %v3183_v48, %v2254_v26  ;;  %v2423_v26 = vsel %vm1460_vm7, %v7834_v19, %v7869_v27 }
 0x6fd   : > { %v3487_v12 = vpop.permute.xlu2 %3486  ;;  %v3338_v20 = vadd.f32 %v3327_v50, %v3058_v4  ;;  %v3196_v53 = vadd.f32 %v3185_v46, %v2256_v61  ;;  %v3195_v11 = vadd.f32 %v3184_v9, %v2255_v33  ;;  %v10411_v61 = vld [vmem:[#allocation21_spill] sm:$0xff]  ;;  %v2494_v33 = vsel %vm1652_vm6, %v7965_v59, %v7990_v42 }
 0x6fe   : > { %v3337_v25 = vadd.f32 %v3326_v36, %v3057_v58  ;;  %v3404_v29 = vadd.f32 %v3393_v28, %v3194_v6  ;;  %v2259_v36 = vmul.f32 %v8095_v44, %v10407_v22  ;;  %v3187_v58 = vsel %vm1080_vm4, %v8230_v10, %v8232_v17 }
 0x6ff   : > { %v3405_v5 = vadd.f32 %v3394_v55, %v3195_v11 }
 0x700   : > { %v3199_v4 = vadd.f32 %v8232_v17, %v2259_v36  ;;  %v3397_v17 = vsel %vm1460_vm7, %v8387_v38, %v8389_v60 }
 0x705   : > { %v3493_v43 = vpop.permute.xlu2 %3492 }
 0x70b   : > { %v3462_v18 = vpop.permute.xlu1 %3461 }
 0x70c   : > { %v3479_v45 = vadd.f32 %v3462_v18, %v3339_v3 }
 0x70d   : > { %v3460_v54 = vpop.permute.xlu0 %3459 }
 0x70e   : > { %v3466_v16 = vsel %vm1652_vm6, %v3458_v63, %v3460_v54  ;;  %v3467_v39 = vsel %vm1652_vm6, %v3460_v54, %v3462_v18  ;;  %3531 = vrot.lane.b32.xlu1 %v3479_v45, %s6036_s19  ;;  %v3395_v63 = vsel %vm1460_vm7, %v8381_v1, %v8383_v35  ;;  %v3186_v1 = vsel %vm1080_vm4, %v8213_v23, %v8230_v10  ;;  %v10408_v45 = vld [vmem:[#allocation37_spill] sm:$0xff] }
 0x70f   : > { %v3477_v15 = vadd.f32 %v3466_v16, %v3337_v25  ;;  %v3478_v62 = vadd.f32 %v3467_v39, %v3338_v20  ;;  %v3406_v13 = vadd.f32 %v3395_v63, %v3196_v53  ;;  %v2258_v18 = vmul.f32 %v10407_v22, %v7368_v52  ;;  %v10409_v25 = vld [vmem:[#allocation34_spill] sm:$0xff]  ;;  %v10410_v54 = vld [vmem:[#allocation29_spill] sm:$0xff] }
 0x710   : > { %v2319_v23 = vsel %vm1080_vm4, %v10409_v25, %v10408_v45  ;;  %v3396_v10 = vsel %vm1460_vm7, %v8383_v35, %v8387_v38  ;;  %v3409_v20 = vadd.f32 %v8389_v60, %v3199_v4  ;;  %v2005_v46 = vmul.f32 %v10410_v54, %v7354_v49 }
 0x711   : > { %3529 = vrot.lane.b32.xlu0 %v3478_v62, %s6036_s19  ;;  %3527 = vrot.lane.b32.xlu2 %v3477_v15, %s6036_s19  ;;  %v3198_v39 = vadd.f32 %v3187_v58, %v2258_v18  ;;  %v2318_v15 = vsel %vm1080_vm4, %v10411_v61, %v10409_v25  ;;  %v2424_v35 = vsel %vm1460_vm7, %v7869_v27, %v7882_v57  ;;  %v10412_v27 = vld [vmem:[#allocation33_spill] sm:$0xff]  ;;  %s6041_s19 = smov 5  }
 0x712   : > { %v2004_v38 = vmul.f32 %v8038_v37, %v10410_v54  ;;  %v2330_v48 = vadd.f32 %v2319_v23, %v2005_v46  ;;  %v2426_v58 = vsel %vm1460_vm7, %v7850_v30, %v7890_v7  ;;  %v2425_v4 = vsel %vm1460_vm7, %v7882_v57, %v7850_v30  ;;  %v3586_v18 = vld [vmem:[%s10113_s12] sm:$0xff] }
 0x713   : > { %v3491_v2 = vpop.permute.xlu1 %3490  ;;  %v3408_v9 = vadd.f32 %v3397_v17, %v3198_v39  ;;  %v2496_v30 = vsel %vm1652_vm6, %v7925_v56, %v7992_v31  ;;  %v2009_v39 = vmul.f32 %v8095_v44, %v10410_v54 }
 0x714   : > { %v3500_v34 = vsel %vm1652_vm6, %v3491_v2, %v3493_v43  ;;  %v2329_v55 = vadd.f32 %v2318_v15, %v2004_v38  ;;  %v2435_v6 = vadd.f32 %v2424_v35, %v2330_v48  ;;  %v10417_v38 = vmov 4  }
 0x715   : > { %v3511_v8 = vadd.f32 %v3500_v34, %v3406_v13  ;;  %v3489_v41 = vpop.permute.xlu0 %3488  ;;  %v2334_v61 = vadd.f32 %v10412_v27, %v2009_v39  ;;  %v10419_v48 = vmov 6  }
 0x716   : > { %v3498_v51 = vsel %vm1652_vm6, %v3487_v12, %v3489_v41  ;;  %v3499_v50 = vsel %vm1652_vm6, %v3489_v41, %v3491_v2  ;;  %v2257_v12 = vmul.f32 %v10407_v22, %v7392_v0  ;;  %v2493_v2 = vsel %vm1652_vm6, %v7910_v14, %v7965_v59  ;;  %v10414_v41 = vld [vmem:[#allocation35_spill] sm:$0xff] }
 0x717   : > { %v3509_v3 = vadd.f32 %v3498_v51, %v3404_v29  ;;  %v3510_v21 = vadd.f32 %v3499_v50, %v3405_v5  ;;  %3560 = vrot.lane.b32.xlu1 %v3511_v8, %s6037_s21  ;;  %v2434_v34 = vadd.f32 %v2423_v26, %v2329_v55  ;;  %v2505_v19 = vadd.f32 %v2494_v33, %v2435_v6 }
 0x718   : > { %v3197_v16 = vadd.f32 %v3186_v1, %v2257_v12  ;;  %v2008_v5 = vmul.f32 %v10410_v54, %v7368_v52  ;;  %v2320_v14 = vsel %vm1080_vm4, %v10408_v45, %v10414_v41  ;;  %v2427_v59 = vsel %vm1460_vm7, %v7890_v7, %v7867_v40 }
 0x719   : > { %3558 = vrot.lane.b32.xlu0 %v3510_v21, %s6037_s21  ;;  %3556 = vrot.lane.b32.xlu2 %v3509_v3, %s6037_s21  ;;  %v2504_v8 = vadd.f32 %v2493_v2, %v2434_v34  ;;  %v2007_v51 = vmul.f32 %v10410_v54, %v7392_v0  ;;  %v2006_v3 = vmul.f32 %v10410_v54, %v7380_v47  ;;  %v10415_v21 = vld [vmem:[#allocation23_spill] sm:$0xff]  ;;  %v3634_v54 = vld [vmem:[%s10106_s5] sm:$0xff] }
 0x71a   : > { %v3407_v60 = vadd.f32 %v3396_v10, %v3197_v16  ;;  %v2517_v1 = vadd.f32 %v10415_v21, %v2505_v19  ;;  %v2497_v12 = vsel %vm1652_vm6, %v7992_v31, %v7897_v24  ;;  %v2495_v7 = vsel %vm1652_vm6, %v7990_v42, %v7925_v56 }
 0x71b   : > { %v3497_v22 = vpop.permute.xlu1 %3496  ;;  %v2331_v25 = vadd.f32 %v2320_v14, %v2006_v3  ;;  %v2516_v10 = vadd.f32 %v10415_v21, %v2504_v8  ;;  %v2439_v56 = vadd.f32 %v7867_v40, %v2334_v61  ;;  %v10416_v31 = vmov 2  }
 0x71c   : > { %v3514_v62 = vadd.f32 %v3497_v22, %v3409_v20  ;;  %v10418_v40 = vmov 5  }
 0x71d   : > { %v3495_v63 = vpop.permute.xlu0 %3494  ;;  %v2436_v17 = vadd.f32 %v2425_v4, %v2331_v25  ;;  %v2509_v35 = vadd.f32 %v7897_v24, %v2439_v56  ;;  %v10420_v24 = vmov 1  }
 0x71e   : > { %v3501_v53 = vsel %vm1652_vm6, %v3493_v43, %v3495_v63  ;;  %v3502_v28 = vsel %vm1652_vm6, %v3495_v63, %v3497_v22  ;;  %v10413_v43 = vld [vmem:[#allocation36_spill] sm:$0xff] }
 0x71f   : > { %v3512_v11 = vadd.f32 %v3501_v53, %v3407_v60  ;;  %v3513_v13 = vadd.f32 %v3502_v28, %v3408_v9  ;;  %3566 = vrot.lane.b32.xlu1 %v3514_v62, %s6037_s21  ;;  %v2322_v29 = vsel %vm1080_vm4, %v10413_v43, %v10412_v27  ;;  %v2321_v36 = vsel %vm1080_vm4, %v10414_v41, %v10413_v43 }
 0x720   : > { %v2333_v50 = vadd.f32 %v2322_v29, %v2008_v5  ;;  %v2332_v45 = vadd.f32 %v2321_v36, %v2007_v51  ;;  %v2506_v46 = vadd.f32 %v2495_v7, %v2436_v17  ;;  %v2521_v62 = vadd.f32 %v10415_v21, %v2509_v35 }
 0x721   : > { %3564 = vrot.lane.b32.xlu0 %v3513_v13, %s6037_s21  ;;  %3562 = vrot.lane.b32.xlu2 %v3512_v11, %s6037_s21  ;;  %v10421_v60 = vmov 0  }
 0x722   : > { %v2438_v23 = vadd.f32 %v2427_v59, %v2333_v50  ;;  %v2437_v57 = vadd.f32 %v2426_v58, %v2332_v45  ;;  %v2518_v42 = vadd.f32 %v10415_v21, %v2506_v46 }
 0x724   : > { %v2508_v20 = vadd.f32 %v2497_v12, %v2438_v23  ;;  %v2507_v16 = vadd.f32 %v2496_v30, %v2437_v57 }
 0x726   : > { %v2520_v22 = vadd.f32 %v10415_v21, %v2508_v20  ;;  %v2519_v15 = vadd.f32 %v10415_v21, %v2507_v16 }
 0x727   : > { %3606 = vrot.lane.b32.xlu1 %v2517_v1, %s6038_s23 }
 0x729   : > { %3604 = vrot.lane.b32.xlu0 %v2516_v10, %s6038_s23  ;;  %3589 = vperm.xlu2 %5843, %v3586_v18  }
 0x72f   : > { %3612 = vrot.lane.b32.xlu1 %v2520_v22, %s6038_s23 }
 0x731   : > { %3610 = vrot.lane.b32.xlu0 %v2519_v15, %s6038_s23  ;;  %3608 = vrot.lane.b32.xlu2 %v2518_v42, %s6038_s23 }
 0x732   : > { %5845 = vset.pattern.permute.xlu2 %v10416_v31 }
 0x737   : > { %3653 = vperm.xlu1 %5844, %v3634_v54  }
 0x739   : > { %3678 = vperm.xlu0 %5846, %v3634_v54   ;;  %3614 = vrot.lane.b32.xlu2 %v2521_v62, %s6038_s23 }
 0x73f   : > { %5847 = vset.pattern.permute.xlu1 %v10417_v38 }
 0x740   : > { %3688 = vperm.xlu1 %5847, %v3634_v54  }
 0x741   : > { %3668 = vperm.xlu2 %5845, %v3634_v54   ;;  %5855 = vset.pattern.permute.xlu0 %v10418_v40 }
 0x748   : > { %5849 = vset.pattern.permute.xlu1 %v10419_v48 }
 0x749   : > { %5848 = vset.pattern.permute.xlu2 %v10418_v40  ;;  %3712 = vperm.xlu1 %5849, %v3634_v54  }
 0x74a   : > { %3697 = vperm.xlu2 %5848, %v3634_v54  }
 0x751   : > { %5851 = vset.pattern.permute.xlu1 %v10420_v24 }
 0x752   : > { %5850 = vset.pattern.permute.xlu2 %v10421_v60 }
 0x754   : > { %v8590_v9 = vpop.permute.xlu2 %3521 }
 0x76b   : > { %v8592_v63 = vpop.permute.xlu2 %3527 }
 0x76c   : > { %v8598_v53 = vpop.permute.xlu0 %3523 }
 0x76d   : > { %v8594_v26 = vpop.permute.xlu1 %3525 }
 0x773   : > { %v8596_v33 = vpop.permute.xlu2 %3556 }
 0x77b   : > { %v8602_v55 = vpop.permute.xlu2 %3562 }
 0x780   : > { %v8600_v28 = vpop.permute.xlu1 %3531 }
 0x783   : > { %v8604_v6 = vpop.permute.xlu0 %3529  ;;  %v8610_v2 = vpop.permute.xlu2 %3589 }
 0x789   : > { %v8606_v11 = vpop.permute.xlu1 %3560 }
 0x78b   : > { %v8608_v13 = vpop.permute.xlu0 %3558  ;;  %v3609_v27 = vpop.permute.xlu2 %3608 }
 0x791   : > { %v8612_v34 = vpop.permute.xlu1 %3566 }
 0x793   : > { %v8614_v19 = vpop.permute.xlu0 %3564  ;;  %v3615_v5 = vpop.permute.xlu2 %3614 }
 0x799   : > { %v3607_v43 = vpop.permute.xlu1 %3606 }
 0x79a   : > { %v8620_v14 = vsel %vm3616_vm11, %v3607_v43, %v3609_v27 }
 0x79b   : > { %v3605_v29 = vpop.permute.xlu0 %3604  ;;  %10422 = vst [vmem:[#allocation31_spill] sm:$0xff] %v8620_v14  ;;  %v3669_v23 = vpop.permute.xlu2 %3668 }
 0x79c   : > { %3628 = vst.msk [vmem:[#allocation2 + $0x10] sm:$0xff] %vm809_vm3, %v3605_v29  ;;  %v8623_v59 = vsel %vm3616_vm11, %v3605_v29, %v3607_v43 }
 0x79d   : > { %10423 = vst [vmem:[#allocation22_spill] sm:$0xff] %v8623_v59 }
 0x7a1   : > { %v3613_v8 = vpop.permute.xlu1 %3612 }
 0x7a2   : > { %v3621_v41 = vsel %vm3616_vm11, %v3613_v8, %v3615_v5 }
 0x7a3   : > { %3633 = vst.msk [vmem:[#allocation2 + $0x38] sm:$0xff] %vm815_vm2, %v3621_v41  ;;  %v3611_v36 = vpop.permute.xlu0 %3610  ;;  %v8625_v50 = vld [vmem:[#allocation2 + $0x10] sm:$0xff] }
 0x7a4   : > { %10424 = vst [vmem:[#allocation37_spill] sm:$0xff] %v8625_v50  ;;  %v8634_v4 = vsel %vm3616_vm11, %v3609_v27, %v3611_v36  ;;  %v8637_v12 = vsel %vm3616_vm11, %v3611_v36, %v3613_v8  ;;  %v3698_v17 = vpop.permute.xlu2 %3697  ;;  %v3671_v8 = vmul.f32 %v3669_v23, %v8625_v50 }
 0x7a5   : > { %10425 = vst [vmem:[#allocation34_spill] sm:$0xff] %v8634_v4  ;;  %v3700_v16 = vmul.f32 %v3698_v17, %v8623_v59  ;;  %v3702_v39 = vmul.f32 %v3698_v17, %v8634_v4  ;;  %v3701_v22 = vmul.f32 %v3698_v17, %v8620_v14  ;;  %v3703_v61 = vmul.f32 %v3698_v17, %v8637_v12 }
 0x7a6   : > { %10426 = vst [vmem:[#allocation29_spill] sm:$0xff] %v8637_v12 }
 0x7a9   : > { %v3654_v51 = vpop.permute.xlu1 %3653 }
 0x7aa   : > { %v3657_v3 = vmul.f32 %v3654_v51, %v8623_v59  ;;  %v3656_v21 = vmul.f32 %v3654_v51, %v8625_v50  ;;  %v3658_v1 = vmul.f32 %v3654_v51, %v8620_v14  ;;  %v3660_v18 = vmul.f32 %v3654_v51, %v8637_v12  ;;  %v8651_v57 = vld [vmem:[#allocation2 + $0x38] sm:$0xff] }
 0x7ab   : > { %v3679_v58 = vpop.permute.xlu0 %3678  ;;  %v3659_v45 = vmul.f32 %v3654_v51, %v8634_v4  ;;  %v3704_v42 = vmul.f32 %v3698_v17, %v8651_v57 }
 0x7ac   : > { %3728 = vrot.lane.b32.xlu0 %v3657_v3, %s6039_s17  ;;  %3726 = vrot.lane.b32.xlu2 %v3656_v21, %s6039_s17  ;;  %v3681_v25 = vmul.f32 %v3679_v58, %v8625_v50  ;;  %v3682_v10 = vmul.f32 %v3679_v58, %v8623_v59  ;;  %v3683_v7 = vmul.f32 %v3679_v58, %v8620_v14 }
 0x7ad   : > { %3730 = vrot.lane.b32.xlu1 %v3658_v1, %s6039_s17  ;;  %v3684_v30 = vmul.f32 %v3679_v58, %v8634_v4  ;;  %v3685_v20 = vmul.f32 %v3679_v58, %v8637_v12  ;;  %v3686_v46 = vmul.f32 %v3679_v58, %v8651_v57  ;;  %v3672_v3 = vmul.f32 %v3669_v23, %v8623_v59 }
 0x7b2   : > { %v8667_v15 = vpop.permute.xlu1 %3688 }
 0x7b4   : > { %3734 = vrot.lane.b32.xlu0 %v3660_v18, %s6039_s17  ;;  %3732 = vrot.lane.b32.xlu2 %v3659_v45, %s6039_s17  ;;  %v3673_v18 = vmul.f32 %v3669_v23, %v8620_v14  ;;  %v3674_v45 = vmul.f32 %v3669_v23, %v8634_v4 }
 0x7b5   : > { %3759 = vrot.lane.b32.xlu1 %v3681_v25, %s6039_s17 }
 0x7bb   : > { %v3713_v35 = vpop.permute.xlu1 %3712 }
 0x7bc   : > { %3761 = vrot.lane.b32.xlu2 %v3682_v10, %s6039_s17  ;;  %3763 = vrot.lane.b32.xlu0 %v3683_v7, %s6039_s17 }
 0x7bd   : > { %3765 = vrot.lane.b32.xlu1 %v3684_v30, %s6039_s17 }
 0x7c4   : > { %3767 = vrot.lane.b32.xlu2 %v3685_v20, %s6039_s17  ;;  %3769 = vrot.lane.b32.xlu0 %v3686_v46, %s6039_s17  ;;  %v3676_v20 = vmul.f32 %v3669_v23, %v8651_v57 }
 0x7c5   : > { %3793 = vrot.lane.b32.xlu1 %v3700_v16, %s6039_s17  ;;  %v3675_v16 = vmul.f32 %v3669_v23, %v8637_v12  ;;  %v3719_v23 = vmul.f32 %v3713_v35, %v8651_v57 }
 0x7cc   : > { %3797 = vrot.lane.b32.xlu0 %v3702_v39, %s6039_s17  ;;  %3795 = vrot.lane.b32.xlu2 %v3701_v22, %s6039_s17 }
 0x7cd   : > { %3799 = vrot.lane.b32.xlu1 %v3703_v61, %s6039_s17 }
 0x7d4   : > { %3801 = vrot.lane.b32.xlu2 %v3704_v42, %s6039_s17  ;;  %v3715_v42 = vmul.f32 %v3713_v35, %v8623_v59 }
 0x806   : > { %v8669_v56 = vpop.permute.xlu2 %3726 }
 0x807   : > { %10427 = vst [vmem:[#allocation21_spill] sm:$0xff] %v8669_v56 }
 0x80e   : > { %v8671_v54 = vpop.permute.xlu2 %3732 }
 0x80f   : > { %10428 = vst [vmem:[#allocation33_spill] sm:$0xff] %v8671_v54 }
 0x816   : > { %v3762_v43 = vpop.permute.xlu2 %3761 }
 0x81e   : > { %v8673_v62 = vpop.permute.xlu0 %3728  ;;  %v3768_v21 = vpop.permute.xlu2 %3767 }
 0x81f   : > { %10429 = vst [vmem:[#allocation36_spill] sm:$0xff] %v8673_v62  ;;  %v8675_v27 = vpop.permute.xlu1 %3730 }
 0x820   : > { %10430 = vst [vmem:[#allocation35_spill] sm:$0xff] %v8675_v27  ;;  %v10451_v27 = vld [vmem:[#allocation64_spill] sm:$0xff] }
 0x826   : > { %v8677_v29 = vpop.permute.xlu0 %3734 }
 0x827   : > { %10431 = vst [vmem:[#allocation23_spill] sm:$0xff] %v8677_v29  ;;  %v3760_v5 = vpop.permute.xlu1 %3759  ;;  %v10440_v29 = vld [vmem:[#allocation38_spill] sm:$0xff] }
 0x828   : > { %v3771_v41 = vsel %vm3736_vm12, %v3760_v5, %v3762_v43  ;;  %v3717_v5 = vmul.f32 %v3713_v35, %v8634_v4 }
 0x829   : > { %v3782_v36 = vadd.f32 %v3771_v41, %v3671_v8  ;;  %v3718_v8 = vmul.f32 %v3713_v35, %v8637_v12  ;;  %v8705_v41 = vld [vmem:[#allocation2] sm:$0xff] }
 0x82b   : > { %3823 = vrot.lane.b32.xlu0 %v3782_v36, %s6040_s28  ;;  %v3720_v36 = vmul.f32 %v8705_v41, %v3713_v35 }
 0x82e   : > { %v3764_v51 = vpop.permute.xlu0 %3763 }
 0x82f   : > { %v3772_v1 = vsel %vm3736_vm12, %v3762_v43, %v3764_v51  ;;  %v3766_v58 = vpop.permute.xlu1 %3765  ;;  %v3716_v43 = vmul.f32 %v3713_v35, %v8620_v14 }
 0x830   : > { %v3783_v25 = vadd.f32 %v3772_v1, %v3672_v3  ;;  %v3773_v10 = vsel %vm3736_vm12, %v3764_v51, %v3766_v58  ;;  %v3774_v7 = vsel %vm3736_vm12, %v3766_v58, %v3768_v21  ;;  %v3796_v51 = vpop.permute.xlu2 %3795 }
 0x831   : > { %v3784_v30 = vadd.f32 %v3773_v10, %v3673_v18  ;;  %v3785_v17 = vadd.f32 %v3774_v7, %v3674_v45 }
 0x832   : > { %3825 = vrot.lane.b32.xlu1 %v3783_v25, %s6040_s28 }
 0x833   : > { %3827 = vrot.lane.b32.xlu2 %v3784_v30, %s6040_s28  ;;  %3829 = vrot.lane.b32.xlu0 %v3785_v17, %s6040_s28 }
 0x836   : > { %v3770_v46 = vpop.permute.xlu0 %3769 }
 0x837   : > { %v3775_v39 = vsel %vm3736_vm12, %v3768_v21, %v3770_v46  ;;  %v3787_v22 = vadd.f32 %v3770_v46, %v3676_v20  ;;  %v3794_v3 = vpop.permute.xlu1 %3793  ;;  %v3691_v46 = vmul.f32 %v8667_v15, %v8623_v59 }
 0x838   : > { %v3786_v61 = vadd.f32 %v3775_v39, %v3675_v16  ;;  %v3802_v1 = vpop.permute.xlu2 %3801  ;;  %v3803_v17 = vsel %vm3736_vm12, %v3794_v3, %v3796_v51  ;;  %v3692_v16 = vmul.f32 %v8667_v15, %v8620_v14  ;;  %v10447_v14 = vld [vmem:[#allocation53_spill] sm:$0xff] }
 0x83a   : > { %3831 = vrot.lane.b32.xlu1 %v3786_v61, %s6040_s28  ;;  %v3693_v61 = vmul.f32 %v8667_v15, %v8634_v4 }
 0x83b   : > { %3833 = vrot.lane.b32.xlu2 %v3787_v22, %s6040_s28  ;;  %3859 = vrot.lane.b32.xlu0 %v3715_v42, %s6040_s28  ;;  %v3812_v42 = vadd.f32 %v3803_v17, %v3691_v46 }
 0x83e   : > { %v3798_v21 = vpop.permute.xlu0 %3797 }
 0x83f   : > { %v3800_v58 = vpop.permute.xlu1 %3799  ;;  %v3804_v20 = vsel %vm3736_vm12, %v3796_v51, %v3798_v21 }
 0x840   : > { %v3805_v39 = vsel %vm3736_vm12, %v3798_v21, %v3800_v58 }
 0x841   : > { %v3814_v51 = vadd.f32 %v3805_v39, %v3693_v61 }
 0x842   : > { %3861 = vrot.lane.b32.xlu1 %v3716_v43, %s6040_s28  ;;  %v3813_v43 = vadd.f32 %v3804_v20, %v3692_v16  ;;  %v10441_v20 = vld [vmem:[#allocation30_spill] sm:$0xff] }
 0x843   : > { %3863 = vrot.lane.b32.xlu2 %v3717_v5, %s6040_s28  ;;  %3865 = vrot.lane.b32.xlu0 %v3718_v8, %s6040_s28  ;;  %v10438_v8 = vld [vmem:[#allocation39_spill] sm:$0xff]  ;;  %v1962_v46 = vmul.f32 %v8038_v37, %v10441_v20  ;;  %v1963_v16 = vmul.f32 %v10441_v20, %v7354_v49  ;;  %v1964_v61 = vmul.f32 %v10441_v20, %v7380_v47 }
 0x844   : > { %v2541_v21 = vsel %vm1080_vm4, %v10438_v8, %v10440_v29 }
 0x84a   : > { %3867 = vrot.lane.b32.xlu1 %v3719_v23, %s6040_s28  ;;  %v10439_v23 = vld [vmem:[#allocation24_spill] sm:$0xff] }
 0x84b   : > { %3869 = vrot.lane.b32.xlu2 %v3720_v36, %s6040_s28  ;;  %v2540_v36 = vsel %vm1080_vm4, %v10439_v23, %v10438_v8  ;;  %v2552_v8 = vadd.f32 %v2541_v21, %v1963_v16  ;;  %v10444_v23 = vld [vmem:[#allocation50_spill] sm:$0xff] }
 0x88d   : > { %v8712_v45 = vpop.permute.xlu2 %3827 }
 0x88e   : > { %10433 = vst [vmem:[#allocation76_spill] sm:$0xff] %v8712_v45 }
 0x895   : > { %v8718_v7 = vpop.permute.xlu2 %3833 }
 0x896   : > { %10436 = vst [vmem:[#allocation79_spill] sm:$0xff] %v8718_v7 }
 0x89d   : > { %v8710_v18 = vpop.permute.xlu0 %3823  ;;  %v3864_v22 = vpop.permute.xlu2 %3863 }
 0x89e   : > { %10432 = vst [vmem:[#allocation75_spill] sm:$0xff] %v8710_v18 }
 0x8a4   : > { %v8714_v25 = vpop.permute.xlu1 %3825 }
 0x8a5   : > { %10434 = vst [vmem:[#allocation77_spill] sm:$0xff] %v8714_v25  ;;  %v8716_v10 = vpop.permute.xlu0 %3829  ;;  %v3870_v25 = vpop.permute.xlu2 %3869 }
 0x8a6   : > { %10435 = vst [vmem:[#allocation78_spill] sm:$0xff] %v8716_v10 }
 0x8ac   : > { %v8720_v35 = vpop.permute.xlu1 %3831 }
 0x8ad   : > { %10437 = vst [vmem:[#allocation80_spill] sm:$0xff] %v8720_v35  ;;  %v3860_v30 = vpop.permute.xlu0 %3859 }
 0x8b4   : > { %v3862_v5 = vpop.permute.xlu1 %3861 }
 0x8b5   : > { %v3871_v3 = vsel %vm3835_vm13, %v3860_v30, %v3862_v5  ;;  %v3872_v7 = vsel %vm3835_vm13, %v3862_v5, %v3864_v22  ;;  %v3866_v35 = vpop.permute.xlu0 %3865  ;;  %v1966_v30 = vmul.f32 %v10441_v20, %v7368_v52  ;;  %v10442_v5 = vld [vmem:[#allocation41_spill] sm:$0xff] }
 0x8b6   : > { %v3881_v10 = vadd.f32 %v3871_v3, %v3812_v42  ;;  %v3882_v4 = vadd.f32 %v3872_v7, %v3813_v43  ;;  %v3873_v17 = vsel %vm3835_vm13, %v3864_v22, %v3866_v35  ;;  %v2542_v42 = vsel %vm1080_vm4, %v10440_v29, %v10442_v5  ;;  %v10443_v7 = vld [vmem:[#allocation52_spill] sm:$0xff] }
 0x8b7   : > { %v3883_v39 = vadd.f32 %v3873_v17, %v3814_v51  ;;  %v2715_v22 = vsel %vm1460_vm7, %v10443_v7, %v7912_v32  ;;  %v2551_v43 = vadd.f32 %v2540_v36, %v1962_v46  ;;  %v2716_v51 = vsel %vm1460_vm7, %v7912_v32, %v10444_v23  ;;  %v10445_v17 = vld [vmem:[#allocation32_spill] sm:$0xff]  ;;  %v10448_v46 = vld [vmem:[#allocation63_spill] sm:$0xff] }
 0x8b8   : > { %3891 = vrot.lane.b32.xlu0 %v3881_v10, %s6037_s21  ;;  %3893 = vrot.lane.b32.xlu1 %v3882_v4, %s6037_s21  ;;  %v3806_v3 = vsel %vm3736_vm12, %v3800_v58, %v3802_v1  ;;  %v10446_v29 = vld [vmem:[#allocation40_spill] sm:$0xff]  ;;  %v2717_v10 = vsel %vm1460_vm7, %v10444_v23, %v10447_v14  ;;  %v3695_v4 = vmul.f32 %v8667_v15, %v8651_v57  ;;  %v10449_v58 = vld [vmem:[#allocation62_spill] sm:$0xff] }
 0x8b9   : > { %3895 = vrot.lane.b32.xlu2 %v3883_v39, %s6037_s21  ;;  %v2544_v54 = vsel %vm1080_vm4, %v10446_v29, %v10445_v17  ;;  %v3694_v36 = vmul.f32 %v8667_v15, %v8637_v12  ;;  %v2553_v21 = vadd.f32 %v2542_v42, %v1964_v61  ;;  %v2726_v32 = vadd.f32 %v2715_v22, %v2551_v43  ;;  %v10450_v39 = vld [vmem:[#allocation61_spill] sm:$0xff] }
 0x8ba   : > { %v2820_v16 = vsel %vm1652_vm6, %v10449_v58, %v10448_v46  ;;  %v2821_v7 = vsel %vm1652_vm6, %v10448_v46, %v10450_v39  ;;  %v2727_v45 = vadd.f32 %v2716_v51, %v2552_v8  ;;  %v2822_v23 = vsel %vm1652_vm6, %v10450_v39, %v10451_v27  ;;  %v3917_v8 = vld [vmem:[%s10107_s6] sm:$0xff] }
 0x8bb   : > { %v3816_v59 = vadd.f32 %v3802_v1, %v3695_v4  ;;  %v3815_v57 = vadd.f32 %v3806_v3, %v3694_v36  ;;  %v2728_v15 = vadd.f32 %v2717_v10, %v2553_v21  ;;  %v2831_v22 = vadd.f32 %v2820_v16, %v2726_v32  ;;  %v10457_v36 = vld [vmem:[#allocation58_spill] sm:$0xff]  ;;  %v10458_v16 = vld [vmem:[#allocation65_spill] sm:$0xff] }
 0x8bc   : > { %v3868_v62 = vpop.permute.xlu1 %3867  ;;  %v2832_v43 = vadd.f32 %v2821_v7, %v2727_v45  ;;  %v2543_v1 = vsel %vm1080_vm4, %v10442_v5, %v10446_v29  ;;  %v1967_v3 = vmul.f32 %v8095_v44, %v10441_v20  ;;  %v2555_v10 = vadd.f32 %v2544_v54, %v1966_v30  ;;  %v10454_v5 = vld [vmem:[#allocation57_spill] sm:$0xff]  ;;  %v10455_v29 = vld [vmem:[#allocation56_spill] sm:$0xff]  ;;  %v10456_v54 = vld [vmem:[#allocation55_spill] sm:$0xff] }
 0x8bd   : > { %v3874_v61 = vsel %vm3835_vm13, %v3866_v35, %v3868_v62  ;;  %v3875_v42 = vsel %vm3835_vm13, %v3868_v62, %v3870_v25  ;;  %v2833_v51 = vadd.f32 %v2822_v23, %v2728_v15  ;;  %v1965_v62 = vmul.f32 %v10441_v20, %v7392_v0  ;;  %v10453_v25 = vld [vmem:[#allocation44_spill] sm:$0xff] }
 0x8be   : > { %v3884_v58 = vadd.f32 %v3874_v61, %v3815_v57  ;;  %v3885_v12 = vadd.f32 %v3875_v42, %v3816_v59  ;;  %v10452_v59 = vld [vmem:[#allocation54_spill] sm:$0xff]  ;;  %v2856_v4 = vsel %vm2855_vm14, %v10455_v29, %v10454_v5  ;;  %v2857_v20 = vsel %vm2855_vm14, %v10454_v5, %v10456_v54  ;;  %v10459_v7 = vld [vmem:[#allocation60_spill] sm:$0xff]  ;;  %v8835_v29 = vld [vmem:[%s10110_s9] sm:$0xff] }
 0x8bf   : > { %v2718_v45 = vsel %vm1460_vm7, %v10447_v14, %v10452_v59  ;;  %v2719_v35 = vsel %vm1460_vm7, %v10452_v59, %v10453_v25  ;;  %v2554_v30 = vadd.f32 %v2543_v1, %v1965_v62  ;;  %v2867_v21 = vadd.f32 %v2856_v4, %v2831_v22  ;;  %10463 = vst [vmem:[#allocation39_spill] sm:$0xff] %v8835_v29 }
 0x8c0   : > { %3897 = vrot.lane.b32.xlu0 %v3884_v58, %s6037_s21  ;;  %3899 = vrot.lane.b32.xlu1 %v3885_v12, %s6037_s21  ;;  %v2858_v12 = vsel %vm2855_vm14, %v10456_v54, %v10457_v36  ;;  %v2868_v14 = vadd.f32 %v2857_v20, %v2832_v43  ;;  %v2556_v32 = vadd.f32 %v10445_v17, %v1967_v3  ;;  %v10462_v3 = vld [vmem:[#allocation51_spill] sm:$0xff]  ;;  %v10464_v4 = vmov 10  }
 0x8c1   : > { %3920 = vperm.xlu2 %5850, %v3917_v8   ;;  %v2869_v46 = vadd.f32 %v2858_v12, %v2833_v51  ;;  %v2823_v39 = vsel %vm1652_vm6, %v10451_v27, %v10458_v16  ;;  %v2824_v23 = vsel %vm1652_vm6, %v10458_v16, %v10459_v7  ;;  %v2729_v57 = vadd.f32 %v2718_v45, %v2554_v30  ;;  %v10460_v8 = vld [vmem:[#allocation46_spill] sm:$0xff]  ;;  %v10461_v27 = vld [vmem:[#allocation59_spill] sm:$0xff] }
 0x8c2   : > { %v2730_v15 = vadd.f32 %v2719_v35, %v2555_v10  ;;  %v2731_v61 = vadd.f32 %v10453_v25, %v2556_v32  ;;  %v2879_v22 = vadd.f32 %v10460_v8, %v2867_v21  ;;  %v2880_v43 = vadd.f32 %v10460_v8, %v2868_v14 }
 0x8c3   : > { %v2834_v42 = vadd.f32 %v2823_v39, %v2729_v57  ;;  %v2881_v1 = vadd.f32 %v10460_v8, %v2869_v46  ;;  %v2859_v51 = vsel %vm2855_vm14, %v10457_v36, %v10461_v27  ;;  %v2860_v10 = vsel %vm2855_vm14, %v10461_v27, %v10462_v3 }
 0x8c4   : > { %v2835_v58 = vadd.f32 %v2824_v23, %v2730_v15  ;;  %v2836_v17 = vadd.f32 %v10459_v7, %v2731_v61  ;;  %v10465_v54 = vmov 3   ;;  %v10466_v20 = vmov 7  }
 0x8c5   : > { %v2870_v62 = vadd.f32 %v2859_v51, %v2834_v42  ;;  %v10467_v30 = vmov 9   ;;  %v10468_v36 = vmov 8  }
 0x8c6   : > { %v2871_v59 = vadd.f32 %v2860_v10, %v2835_v58  ;;  %v2872_v45 = vadd.f32 %v10462_v3, %v2836_v17 }
 0x8c7   : > { %v2882_v25 = vadd.f32 %v10460_v8, %v2870_v62 }
 0x8c8   : > { %3935 = vrot.lane.b32.xlu0 %v2879_v22, %s6041_s19  ;;  %3937 = vrot.lane.b32.xlu1 %v2880_v43, %s6041_s19  ;;  %v2883_v35 = vadd.f32 %v10460_v8, %v2871_v59  ;;  %v2884_v5 = vadd.f32 %v10460_v8, %v2872_v45 }
 0x8c9   : > { %3939 = vrot.lane.b32.xlu2 %v2881_v1, %s6041_s19 }
 0x8ca   : > { %5852 = vset.pattern.permute.xlu2 %v10416_v31 }
 0x8d0   : > { %3941 = vrot.lane.b32.xlu0 %v2882_v25, %s6041_s19  ;;  %3943 = vrot.lane.b32.xlu1 %v2883_v35, %s6041_s19 }
 0x8d1   : > { %3945 = vrot.lane.b32.xlu2 %v2884_v5, %s6041_s19 }
 0x8d8   : > { %4033 = vperm.xlu0 %5855, %v8835_v29   ;;  %3988 = vperm.xlu1 %5851, %v8835_v29  }
 0x8d9   : > { %3998 = vperm.xlu2 %5852, %v8835_v29  }
 0x8e0   : > { %5860 = vset.pattern.permute.xlu0 %v10464_v4  ;;  %5853 = vset.pattern.permute.xlu1 %v10465_v54 }
 0x8e1   : > { %5854 = vset.pattern.permute.xlu2 %v10417_v38  ;;  %4087 = vperm.xlu0 %5860, %v8835_v29  }
 0x8e2   : > { %4023 = vperm.xlu2 %5854, %v8835_v29   ;;  %4008 = vperm.xlu1 %5853, %v8835_v29  }
 0x8e9   : > { %5863 = vset.pattern.permute.xlu0 %v10420_v24 }
 0x8ea   : > { %5857 = vset.pattern.permute.xlu2 %v10466_v20  ;;  %5856 = vset.pattern.permute.xlu1 %v10419_v48 }
 0x8eb   : > { %4052 = vperm.xlu2 %5857, %v8835_v29   ;;  %4043 = vperm.xlu1 %5856, %v8835_v29  }
 0x8f3   : > { %5859 = vset.pattern.permute.xlu2 %v10467_v30  ;;  %5858 = vset.pattern.permute.xlu1 %v10468_v36 }
 0x8f4   : > { %4077 = vperm.xlu2 %5859, %v8835_v29   ;;  %4067 = vperm.xlu1 %5858, %v8835_v29  }
 0x8fc   : > { %5861 = vset.pattern.permute.xlu1 %v10421_v60  ;;  %5862 = vset.pattern.permute.xlu2 %v10421_v60 }
 0x913   : > { %v8857_v24 = vpop.permute.xlu2 %3895 }
 0x914   : > { %10469 = vst [vmem:[#allocation24_spill] sm:$0xff] %v8857_v24 }
 0x91b   : > { %v8863_v14 = vpop.permute.xlu2 %3920 }
 0x91c   : > { %10472 = vst [vmem:[#allocation41_spill] sm:$0xff] %v8863_v14 }
 0x923   : > { %v3940_v16 = vpop.permute.xlu2 %3939 }
 0x92a   : > { %v8859_v12 = vpop.permute.xlu0 %3891  ;;  %v8861_v21 = vpop.permute.xlu1 %3893 }
 0x92b   : > { %10470 = vst [vmem:[#allocation38_spill] sm:$0xff] %v8859_v12  ;;  %v3946_v23 = vpop.permute.xlu2 %3945 }
 0x92c   : > { %10471 = vst [vmem:[#allocation30_spill] sm:$0xff] %v8861_v21 }
 0x932   : > { %v8865_v32 = vpop.permute.xlu0 %3897  ;;  %v8867_v46 = vpop.permute.xlu1 %3899 }
 0x933   : > { %10473 = vst [vmem:[#allocation52_spill] sm:$0xff] %v8865_v32  ;;  %v8900_v35 = vpop.permute.xlu2 %3998 }
 0x934   : > { %10474 = vst [vmem:[#allocation50_spill] sm:$0xff] %v8867_v46 }
 0x93a   : > { %v3936_v39 = vpop.permute.xlu0 %3935  ;;  %v3938_v7 = vpop.permute.xlu1 %3937 }
 0x93b   : > { %3959 = vst.msk [vmem:[#allocation2 + $0x10] sm:$0xff] %vm809_vm3, %v3936_v39  ;;  %v8884_v1 = vsel %vm3947_vm15, %v3936_v39, %v3938_v7  ;;  %v8887_v27 = vsel %vm3947_vm15, %v3938_v7, %v3940_v16 }
 0x942   : > { %v3944_v57 = vpop.permute.xlu1 %3943  ;;  %v3942_v61 = vpop.permute.xlu0 %3941  ;;  %v8875_v8 = vld [vmem:[#allocation2 + $0x10] sm:$0xff] }
 0x943   : > { %v3952_v15 = vsel %vm3947_vm15, %v3944_v57, %v3946_v23  ;;  %v8873_v42 = vsel %vm3947_vm15, %v3940_v16, %v3942_v61  ;;  %v8896_v59 = vsel %vm3947_vm15, %v3942_v61, %v3944_v57  ;;  %v8911_v57 = vpop.permute.xlu2 %4023  ;;  %vm5397_vm15 = vcmask 867328  }
 0x944   : > { %3964 = vst.msk [vmem:[#allocation2 + $0x38] sm:$0xff] %vm815_vm2, %v3952_v15 }
 0x945   : > { %10475 = vst [vmem:[#allocation32_spill] sm:$0xff] %v8873_v42 }
 0x94a   : > { %v3989_v58 = vpop.permute.xlu1 %3988  ;;  %v4034_v16 = vpop.permute.xlu0 %4033 }
 0x94b   : > { %v3992_v22 = vmul.f32 %v3989_v58, %v8875_v8  ;;  %v3991_v43 = vmul.f32 %v8705_v41, %v3989_v58  ;;  %v3995_v17 = vmul.f32 %v3989_v58, %v8873_v42  ;;  %v3994_v51 = vmul.f32 %v3989_v58, %v8887_v27  ;;  %v8914_v15 = vld [vmem:[#allocation2 + $0x38] sm:$0xff] }
 0x94c   : > { %v3993_v3 = vmul.f32 %v3989_v58, %v8884_v1  ;;  %v3996_v25 = vmul.f32 %v3989_v58, %v8896_v59  ;;  %v4038_v23 = vmul.f32 %v4034_v16, %v8887_v27  ;;  %v4037_v61 = vmul.f32 %v4034_v16, %v8884_v1 }
 0x94d   : > { %4103 = vrot.lane.b32.xlu2 %v3992_v22, %s6039_s17  ;;  %4101 = vrot.lane.b32.xlu1 %v3991_v43, %s6039_s17  ;;  %v4036_v58 = vmul.f32 %v4034_v16, %v8875_v8  ;;  %v4041_v22 = vmul.f32 %v4034_v16, %v8914_v15  ;;  %v4053_v43 = vpop.permute.xlu2 %4052 }
 0x94e   : > { %4109 = vrot.lane.b32.xlu0 %v3995_v17, %s6039_s17  ;;  %v4040_v17 = vmul.f32 %v4034_v16, %v8896_v59 }
 0x954   : > { %v4009_v10 = vpop.permute.xlu1 %4008 }
 0x955   : > { %4107 = vrot.lane.b32.xlu2 %v3994_v51, %s6039_s17  ;;  %4105 = vrot.lane.b32.xlu1 %v3993_v3, %s6039_s17  ;;  %v4012_v62 = vmul.f32 %v4009_v10, %v8884_v1  ;;  %v4011_v45 = vmul.f32 %v4009_v10, %v8875_v8  ;;  %v4015_v5 = vmul.f32 %v4009_v10, %v8896_v59 }
 0x956   : > { %v4014_v39 = vmul.f32 %v4009_v10, %v8873_v42  ;;  %v4013_v7 = vmul.f32 %v4009_v10, %v8887_v27  ;;  %v4039_v51 = vmul.f32 %v4034_v16, %v8873_v42  ;;  %v4057_v3 = vmul.f32 %v4053_v43, %v8873_v42  ;;  %v4078_v10 = vpop.permute.xlu2 %4077 }
 0x957   : > { %4135 = vrot.lane.b32.xlu0 %v4012_v62, %s6039_s17  ;;  %v4056_v62 = vmul.f32 %v4053_v43, %v8887_v27  ;;  %v4058_v16 = vmul.f32 %v4053_v43, %v8896_v59 }
 0x95d   : > { %4133 = vrot.lane.b32.xlu2 %v4011_v45, %s6039_s17  ;;  %4111 = vrot.lane.b32.xlu1 %v3996_v25, %s6039_s17  ;;  %v4055_v45 = vmul.f32 %v4053_v43, %v8884_v1  ;;  %v4080_v25 = vmul.f32 %v4078_v10, %v8884_v1 }
 0x95f   : > { %4141 = vrot.lane.b32.xlu0 %v4015_v5, %s6039_s17  ;;  %v4059_v5 = vmul.f32 %v4053_v43, %v8914_v15  ;;  %v4044_v43 = vpop.permute.xlu1 %4043 }
 0x960   : > { %v4048_v18 = vmul.f32 %v4044_v43, %v8873_v42 }
 0x965   : > { %4139 = vrot.lane.b32.xlu2 %v4014_v39, %s6039_s17  ;;  %4137 = vrot.lane.b32.xlu1 %v4013_v7, %s6039_s17  ;;  %v4083_v39 = vmul.f32 %v4078_v10, %v8896_v59  ;;  %v4082_v7 = vmul.f32 %v4078_v10, %v8873_v42 }
 0x967   : > { %4169 = vrot.lane.b32.xlu0 %v4038_v23, %s6039_s17  ;;  %v4081_v23 = vmul.f32 %v4078_v10, %v8887_v27 }
 0x96d   : > { %4167 = vrot.lane.b32.xlu2 %v4037_v61, %s6039_s17  ;;  %4165 = vrot.lane.b32.xlu1 %v4036_v58, %s6039_s17  ;;  %v4085_v61 = vmul.f32 %v8705_v41, %v4078_v10  ;;  %v4084_v58 = vmul.f32 %v4078_v10, %v8914_v15 }
 0x96f   : > { %4175 = vrot.lane.b32.xlu0 %v4041_v22, %s6039_s17 }
 0x975   : > { %4173 = vrot.lane.b32.xlu2 %v4040_v17, %s6039_s17  ;;  %4171 = vrot.lane.b32.xlu1 %v4039_v51, %s6039_s17  ;;  %v4001_v51 = vmul.f32 %v8705_v41, %v8900_v35 }
 0x977   : > { %4203 = vrot.lane.b32.xlu0 %v4057_v3, %s6039_s17  ;;  %v8954_v3 = vpop.permute.xlu1 %4067 }
 0x97d   : > { %4201 = vrot.lane.b32.xlu2 %v4056_v62, %s6039_s17  ;;  %4199 = vrot.lane.b32.xlu1 %v4055_v45, %s6039_s17  ;;  %v8956_v45 = vpop.permute.xlu0 %4087 }
 0x97f   : > { %4229 = vrot.lane.b32.xlu0 %v4080_v25, %s6039_s17 }
 0x985   : > { %4207 = vrot.lane.b32.xlu2 %v4059_v5, %s6039_s17  ;;  %4205 = vrot.lane.b32.xlu1 %v4058_v16, %s6039_s17 }
 0x987   : > { %4235 = vrot.lane.b32.xlu0 %v4083_v39, %s6039_s17 }
 0x98d   : > { %4233 = vrot.lane.b32.xlu2 %v4082_v7, %s6039_s17  ;;  %4231 = vrot.lane.b32.xlu1 %v4081_v23, %s6039_s17  ;;  %v4002_v23 = vmul.f32 %v8900_v35, %v8875_v8 }
 0x995   : > { %4239 = vrot.lane.b32.xlu2 %v4085_v61, %s6039_s17  ;;  %4237 = vrot.lane.b32.xlu1 %v4084_v58, %s6039_s17 }
 0x9a7   : > { %v8948_v22 = vpop.permute.xlu2 %4103 }
 0x9a8   : > { %10476 = vst [vmem:[#allocation40_spill] sm:$0xff] %v8948_v22 }
 0x9af   : > { %v8950_v17 = vpop.permute.xlu2 %4107 }
 0x9b0   : > { %10477 = vst [vmem:[#allocation53_spill] sm:$0xff] %v8950_v17  ;;  %v4003_v17 = vmul.f32 %v8900_v35, %v8884_v1 }
 0x9b7   : > { %v4134_v62 = vpop.permute.xlu2 %4133 }
 0x9b8   : > { %v4153_v25 = vadd.f32 %v4134_v62, %v4001_v51 }
 0x9ba   : > { %4264 = vrot.lane.b32.xlu0 %v4153_v25, %s6040_s28  ;;  %v4005_v25 = vmul.f32 %v8900_v35, %v8873_v42 }
 0x9bf   : > { %v8959_v10 = vpop.permute.xlu1 %4101  ;;  %v4140_v39 = vpop.permute.xlu2 %4139 }
 0x9c0   : > { %10478 = vst [vmem:[#allocation63_spill] sm:$0xff] %v8959_v10  ;;  %v8961_v5 = vpop.permute.xlu0 %4109 }
 0x9c1   : > { %10479 = vst [vmem:[#allocation62_spill] sm:$0xff] %v8961_v5 }
 0x9c7   : > { %v8963_v16 = vpop.permute.xlu1 %4105  ;;  %v8973_v32 = vpop.permute.xlu2 %4167 }
 0x9c8   : > { %10480 = vst [vmem:[#allocation61_spill] sm:$0xff] %v8963_v16 }
 0x9c9   : > { %v4136_v7 = vpop.permute.xlu0 %4135 }
 0x9ca   : > { %v4143_v61 = vsel %vm3736_vm12, %v4134_v62, %v4136_v7  ;;  %v4004_v62 = vmul.f32 %v8900_v35, %v8887_v27 }
 0x9cb   : > { %v4154_v58 = vadd.f32 %v4143_v61, %v4002_v23 }
 0x9cd   : > { %4266 = vrot.lane.b32.xlu1 %v4154_v58, %s6040_s28 }
 0x9cf   : > { %v8969_v46 = vpop.permute.xlu1 %4111 }
 0x9d0   : > { %10481 = vst [vmem:[#allocation64_spill] sm:$0xff] %v8969_v46 }
 0x9d1   : > { %v4142_v51 = vpop.permute.xlu0 %4141 }
 0x9d2   : > { %v4146_v5 = vsel %vm3736_vm12, %v4140_v39, %v4142_v51 }
 0x9d3   : > { %v4157_v24 = vadd.f32 %v4146_v5, %v4005_v25  ;;  %v4006_v5 = vmul.f32 %v8900_v35, %v8896_v59 }
 0x9d5   : > { %4272 = vrot.lane.b32.xlu1 %v4157_v24, %s6040_s28  ;;  %v8987_v24 = vpop.permute.xlu2 %4173  ;;  %v4158_v16 = vadd.f32 %v4142_v51, %v4006_v5 }
 0x9d7   : > { %v4138_v23 = vpop.permute.xlu1 %4137 }
 0x9d8   : > { %v4144_v61 = vsel %vm3736_vm12, %v4136_v7, %v4138_v23  ;;  %v4145_v58 = vsel %vm3736_vm12, %v4138_v23, %v4140_v39  ;;  %v4047_v7 = vmul.f32 %v4044_v43, %v8887_v27  ;;  %v4046_v23 = vmul.f32 %v4044_v43, %v8884_v1 }
 0x9d9   : > { %v4155_v46 = vadd.f32 %v4144_v61, %v4003_v17  ;;  %v4156_v21 = vadd.f32 %v4145_v58, %v4004_v62  ;;  %v8983_v14 = vpop.permute.xlu0 %4169  ;;  %v4050_v58 = vmul.f32 %v4044_v43, %v8914_v15 }
 0x9db   : > { %4270 = vrot.lane.b32.xlu0 %v4156_v21, %s6040_s28  ;;  %4268 = vrot.lane.b32.xlu2 %v4155_v46, %s6040_s28 }
 0x9dd   : > { %v4202_v39 = vpop.permute.xlu2 %4201 }
 0x9df   : > { %v4166_v25 = vpop.permute.xlu1 %4165 }
 0x9e1   : > { %v8991_v12 = vpop.permute.xlu0 %4175 }
 0x9e3   : > { %4274 = vrot.lane.b32.xlu2 %v4158_v16, %s6040_s28 }
 0x9e5   : > { %v4208_v61 = vpop.permute.xlu2 %4207 }
 0x9e6   : > { %v4222_v5 = vadd.f32 %v4208_v61, %v4050_v58 }
 0x9e7   : > { %v8994_v17 = vpop.permute.xlu1 %4171 }
 0x9e9   : > { %v4204_v62 = vpop.permute.xlu0 %4203 }
 0x9ea   : > { %v4210_v21 = vsel %vm3736_vm12, %v4202_v39, %v4204_v62 }
 0x9eb   : > { %v4219_v46 = vadd.f32 %v4210_v21, %v4047_v7  ;;  %v4049_v7 = vmul.f32 %v4044_v43, %v8896_v59  ;;  %v4090_v43 = vmul.f32 %v8956_v45, %v8887_v27 }
 0x9ed   : > { %4298 = vrot.lane.b32.xlu1 %v4219_v46, %s6040_s28 }
 0x9ef   : > { %v4200_v35 = vpop.permute.xlu1 %4199 }
 0x9f0   : > { %v4209_v51 = vsel %vm3736_vm12, %v4200_v35, %v4202_v39  ;;  %v4092_v39 = vmul.f32 %v8956_v45, %v8896_v59 }
 0x9f1   : > { %v4218_v16 = vadd.f32 %v4209_v51, %v4046_v23  ;;  %v4091_v23 = vmul.f32 %v8956_v45, %v8873_v42 }
 0x9f3   : > { %4296 = vrot.lane.b32.xlu0 %v4218_v16, %s6040_s28 }
 0x9f5   : > { %4304 = vrot.lane.b32.xlu1 %v4222_v5, %s6040_s28 }
 0x9f7   : > { %v4206_v21 = vpop.permute.xlu1 %4205 }
 0x9f8   : > { %v4211_v46 = vsel %vm3736_vm12, %v4204_v62, %v4206_v21  ;;  %v4212_v50 = vsel %vm3736_vm12, %v4206_v21, %v4208_v61  ;;  %v4230_v62 = vpop.permute.xlu0 %4229  ;;  %v4179_v21 = vsel %vm3736_vm12, %v8983_v14, %v8994_v17 }
 0x9f9   : > { %v4220_v10 = vadd.f32 %v4211_v46, %v4048_v18  ;;  %v4221_v22 = vadd.f32 %v4212_v50, %v4049_v7  ;;  %v4094_v50 = vmul.f32 %v8705_v41, %v8956_v45  ;;  %v4093_v18 = vmul.f32 %v8956_v45, %v8914_v15 }
 0x9fa   : > { %v4028_v46 = vmul.f32 %v8911_v57, %v8887_v27 }
 0x9fb   : > { %4302 = vrot.lane.b32.xlu0 %v4221_v22, %s6040_s28  ;;  %4300 = vrot.lane.b32.xlu2 %v4220_v10, %s6040_s28  ;;  %v4234_v22 = vpop.permute.xlu2 %4233 }
 0x9fd   : > { %4331 = vrot.lane.b32.xlu1 %v4092_v39, %s6040_s28 }
 0x9ff   : > { %v4232_v10 = vpop.permute.xlu1 %4231 }
 0xa00   : > { %v9029_v51 = vpop.permute.xlu0 %4235 }
 0xa03   : > { %4329 = vrot.lane.b32.xlu0 %v4091_v23, %s6040_s28  ;;  %4327 = vrot.lane.b32.xlu2 %v4090_v43, %s6040_s28  ;;  %v9025_v35 = vpop.permute.xlu2 %4239  ;;  %v4190_v23 = vadd.f32 %v4179_v21, %v4028_v46  ;;  %v4031_v46 = vmul.f32 %v8911_v57, %v8914_v15 }
 0xa07   : > { %v9027_v61 = vpop.permute.xlu1 %4237 }
 0xa0b   : > { %4335 = vrot.lane.b32.xlu0 %v4094_v50, %s6040_s28  ;;  %4333 = vrot.lane.b32.xlu2 %v4093_v18, %s6040_s28 }
 0xa2c   : > { %v9035_v5 = vpop.permute.xlu0 %4264 }
 0xa2d   : > { %10484 = vst [vmem:[#allocation57_spill] sm:$0xff] %v9035_v5  ;;  %v4026_v5 = vmul.f32 %v8911_v57, %v8875_v8 }
 0xa35   : > { %v9031_v58 = vpop.permute.xlu2 %4268 }
 0xa36   : > { %10482 = vst [vmem:[#allocation54_spill] sm:$0xff] %v9031_v58  ;;  %v4177_v58 = vsel %vm3736_vm12, %v4166_v25, %v8973_v32  ;;  %v4193_v25 = vadd.f32 %v8991_v12, %v4031_v46 }
 0xa37   : > { %v4188_v21 = vadd.f32 %v4177_v58, %v4026_v5  ;;  %v4181_v58 = vsel %vm3736_vm12, %v8987_v24, %v8991_v12  ;;  %v4030_v5 = vmul.f32 %v8911_v57, %v8896_v59 }
 0xa3d   : > { %v9037_v45 = vpop.permute.xlu2 %4274 }
 0xa3e   : > { %10485 = vst [vmem:[#allocation56_spill] sm:$0xff] %v9037_v45 }
 0xa3f   : > { %v9033_v16 = vpop.permute.xlu1 %4266 }
 0xa40   : > { %10483 = vst [vmem:[#allocation44_spill] sm:$0xff] %v9033_v16  ;;  %v4027_v16 = vmul.f32 %v8911_v57, %v8884_v1 }
 0xa47   : > { %v9039_v7 = vpop.permute.xlu1 %4272 }
 0xa48   : > { %10486 = vst [vmem:[#allocation55_spill] sm:$0xff] %v9039_v7  ;;  %v4178_v7 = vsel %vm3736_vm12, %v8973_v32, %v8983_v14 }
 0xa4d   : > { %v9046_v39 = vpop.permute.xlu0 %4270 }
 0xa4e   : > { %10487 = vst [vmem:[#allocation58_spill] sm:$0xff] %v9046_v39  ;;  %v4189_v39 = vadd.f32 %v4178_v7, %v4027_v16  ;;  %v4180_v16 = vsel %vm3736_vm12, %v8994_v17, %v8987_v24  ;;  %v4243_v24 = vsel %vm3736_vm12, %v4234_v22, %v9029_v51  ;;  %v4072_v17 = vmul.f32 %v8954_v3, %v8873_v42 }
 0xa55   : > { %v4301_v43 = vpop.permute.xlu2 %4300 }
 0xa5f   : > { %v4299_v50 = vpop.permute.xlu1 %4298 }
 0xa60   : > { %v4307_v18 = vsel %vm3835_vm13, %v4299_v50, %v4301_v43 }
 0xa61   : > { %v4318_v45 = vadd.f32 %v4307_v18, %v4190_v23 }
 0xa63   : > { %4363 = vrot.lane.b32.xlu0 %v4318_v45, %s6037_s21  ;;  %v4192_v45 = vadd.f32 %v4181_v58, %v4030_v5  ;;  %v10488_v5 = vld [vmem:[#allocation42_spill] sm:$0xff] }
 0xa65   : > { %v4297_v56 = vpop.permute.xlu0 %4296 }
 0xa66   : > { %v4306_v23 = vsel %vm3835_vm13, %v4297_v56, %v4299_v50  ;;  %v4316_v18 = vadd.f32 %v4297_v56, %v4188_v21  ;;  %v4029_v56 = vmul.f32 %v8911_v57, %v8873_v42  ;;  %v4241_v57 = vsel %vm3736_vm12, %v4230_v62, %v4232_v10 }
 0xa67   : > { %v4317_v14 = vadd.f32 %v4306_v23, %v4189_v39  ;;  %v4305_v32 = vpop.permute.xlu1 %4304  ;;  %v4071_v23 = vmul.f32 %v8954_v3, %v8887_v27 }
 0xa68   : > { %v4321_v29 = vadd.f32 %v4305_v32, %v4193_v25  ;;  %4359 = vrot.lane.b32.xlu1 %v4316_v18, %s6037_s21  ;;  %v4191_v7 = vadd.f32 %v4180_v16, %v4029_v56  ;;  %v4328_v25 = vpop.permute.xlu2 %4327  ;;  %v4254_v18 = vadd.f32 %v4243_v24, %v4072_v17  ;;  %v10489_v56 = vld [vmem:[#allocation45_spill] sm:$0xff]  ;;  %v10492_v17 = vld [vmem:[#allocation68_spill] sm:$0xff] }
 0xa69   : > { %4361 = vrot.lane.b32.xlu2 %v4317_v14, %s6037_s21  ;;  %v2903_v62 = vsel %vm1080_vm4, %v10489_v56, %v10488_v5  ;;  %v4073_v56 = vmul.f32 %v8954_v3, %v8896_v59 }
 0xa6b   : > { %4369 = vrot.lane.b32.xlu0 %v4321_v29, %s6037_s21  ;;  %v4242_v29 = vsel %vm3736_vm12, %v4232_v10, %v4234_v22 }
 0xa6d   : > { %v4303_v39 = vpop.permute.xlu0 %4302 }
 0xa6e   : > { %v4308_v50 = vsel %vm3835_vm13, %v4301_v43, %v4303_v39  ;;  %v4309_v21 = vsel %vm3835_vm13, %v4303_v39, %v4305_v32  ;;  %v4070_v43 = vmul.f32 %v8954_v3, %v8884_v1  ;;  %v4253_v32 = vadd.f32 %v4242_v29, %v4071_v23 }
 0xa6f   : > { %v4319_v12 = vadd.f32 %v4308_v50, %v4191_v7  ;;  %v4320_v46 = vadd.f32 %v4309_v21, %v4192_v45  ;;  %v4332_v58 = vpop.permute.xlu1 %4331  ;;  %v10490_v45 = vld [vmem:[#allocation28_spill] sm:$0xff] }
 0xa70   : > { %v4252_v14 = vadd.f32 %v4241_v57, %v4070_v43  ;;  %v1910_v7 = vmul.f32 %v8038_v37, %v10490_v45  ;;  %v1911_v29 = vmul.f32 %v10490_v45, %v7354_v49  ;;  %v10493_v43 = vld [vmem:[#allocation66_spill] sm:$0xff]  ;;  %v10494_v37 = vld [vmem:[#allocation69_spill] sm:$0xff]  ;;  %v4245_v49 = vsel %vm3736_vm12, %v9027_v61, %v9025_v35 }
 0xa71   : > { %4365 = vrot.lane.b32.xlu1 %v4319_v12, %s6037_s21  ;;  %4367 = vrot.lane.b32.xlu2 %v4320_v46, %s6037_s21  ;;  %v1913_v12 = vmul.f32 %v10490_v45, %v7392_v0  ;;  %v10491_v46 = vld [vmem:[#allocation47_spill] sm:$0xff]  ;;  %v3253_v23 = vsel %vm1460_vm7, %v10493_v43, %v10492_v17  ;;  %v3254_v0 = vsel %vm1460_vm7, %v10492_v17, %v10494_v37  ;;  %v10498_v17 = vld [vmem:[#allocation48_spill] sm:$0xff] }
 0xa72   : > { %v4347_v39 = vadd.f32 %v4328_v25, %v4252_v14  ;;  %v2904_v24 = vsel %vm1080_vm4, %v10488_v5, %v10491_v46  ;;  %v2914_v57 = vadd.f32 %v2903_v62, %v1910_v7  ;;  %v4334_v62 = vpop.permute.xlu2 %4333  ;;  %v10499_v43 = vld [vmem:[#allocation43_spill] sm:$0xff] }
 0xa73   : > { %v2915_v14 = vadd.f32 %v2904_v24, %v1911_v29 }
 0xa75   : > { %v4330_v16 = vpop.permute.xlu0 %4329  ;;  %v3265_v7 = vadd.f32 %v3254_v0, %v2915_v14  ;;  %v2905_v0 = vsel %vm1080_vm4, %v10491_v46, %v10499_v43  ;;  %v3570_v14 = vsel %vm3568_vm0, %v8608_v13, %v8606_v11  ;;  %v1914_v46 = vmul.f32 %v10490_v45, %v7368_v52  ;;  %v10504_v52 = vld [vmem:[#allocation72_spill] sm:$0xff] }
 0xa76   : > { %v4337_v22 = vsel %vm3835_vm13, %v4328_v25, %v4330_v16  ;;  %v4338_v10 = vsel %vm3835_vm13, %v4330_v16, %v4332_v58  ;;  %v4075_v25 = vmul.f32 %v8705_v41, %v8954_v3  ;;  %v10496_v16 = vld [vmem:[#allocation27_spill] sm:$0xff]  ;;  %v4074_v41 = vmul.f32 %v8954_v3, %v8914_v15 }
 0xa77   : > { %v4348_v50 = vadd.f32 %v4337_v22, %v4253_v32  ;;  %v4349_v21 = vadd.f32 %v4338_v10, %v4254_v18  ;;  %v4244_v18 = vsel %vm3736_vm12, %v9029_v51, %v9027_v61  ;;  %v10495_v32 = vld [vmem:[#allocation25_spill] sm:$0xff]  ;;  %v1912_v51 = vmul.f32 %v10490_v45, %v7380_v47 }
 0xa78   : > { %v3428_v5 = vsel %vm1652_vm6, %v10496_v16, %v10495_v32  ;;  %v3264_v22 = vadd.f32 %v3253_v23, %v2914_v57  ;;  %v4257_v61 = vadd.f32 %v9025_v35, %v4075_v25  ;;  %v4339_v10 = vsel %vm3835_vm13, %v4332_v58, %v4334_v62  ;;  %v10502_v16 = vld [vmem:[#allocation70_spill] sm:$0xff] }
 0xa79   : > { %4392 = vrot.lane.b32.xlu1 %v4347_v39, %s6026_s20  ;;  %4394 = vrot.lane.b32.xlu2 %v4348_v50, %s6026_s20  ;;  %v10497_v39 = vld [vmem:[#allocation26_spill] sm:$0xff]  ;;  %v4256_v24 = vadd.f32 %v4245_v49, %v4074_v41  ;;  %v3533_v15 = vsel %vm2855_vm14, %v8590_v9, %v8598_v53  ;;  %v3534_v35 = vsel %vm2855_vm14, %v8598_v53, %v8594_v26 }
 0xa7a   : > { %4396 = vrot.lane.b32.xlu0 %v4349_v21, %s6026_s20  ;;  %v3429_v50 = vsel %vm1652_vm6, %v10495_v32, %v10497_v39  ;;  %v4255_v21 = vadd.f32 %v4244_v18, %v4073_v56  ;;  %v3439_v29 = vadd.f32 %v3428_v5, %v3264_v22  ;;  %v2906_v23 = vsel %vm1080_vm4, %v10499_v43, %v10498_v17  ;;  %v10500_v18 = vld [vmem:[#allocation49_spill] sm:$0xff]  ;;  %v10501_v32 = vld [vmem:[#allocation67_spill] sm:$0xff] }
 0xa7b   : > { %v3440_v25 = vadd.f32 %v3429_v50, %v3265_v7  ;;  %v3569_v9 = vsel %vm3568_vm0, %v8596_v33, %v8608_v13  ;;  %v2907_v53 = vsel %vm1080_vm4, %v10498_v17, %v10500_v18  ;;  %v3255_v33 = vsel %vm1460_vm7, %v10494_v37, %v10501_v32  ;;  %v10505_v37 = vld [vmem:[#allocation73_spill] sm:$0xff] }
 0xa7c   : > { %v4350_v58 = vadd.f32 %v4339_v10, %v4255_v21  ;;  %v3544_v49 = vadd.f32 %v3533_v15, %v3439_v29  ;;  %v3256_v5 = vsel %vm1460_vm7, %v10501_v32, %v10502_v16  ;;  %v2917_v41 = vadd.f32 %v2906_v23, %v1913_v12  ;;  %v10506_v29 = vld [vmem:[#allocation74_spill] sm:$0xff] }
 0xa7d   : > { %v4336_v59 = vpop.permute.xlu0 %4335  ;;  %v3545_v56 = vadd.f32 %v3534_v35, %v3440_v25  ;;  %v2916_v13 = vadd.f32 %v2905_v0, %v1912_v51  ;;  %v2918_v10 = vadd.f32 %v2907_v53, %v1914_v46  ;;  %v3430_v7 = vsel %vm1652_vm6, %v10497_v39, %v10504_v52 }
 0xa7e   : > { %v4340_v47 = vsel %vm3835_vm13, %v4334_v62, %v4336_v59  ;;  %v4352_v3 = vadd.f32 %v4336_v59, %v4257_v61  ;;  %v10503_v62 = vld [vmem:[#allocation71_spill] sm:$0xff]  ;;  %v3580_v61 = vadd.f32 %v3569_v9, %v3544_v49  ;;  %v3431_v50 = vsel %vm1652_vm6, %v10504_v52, %v10505_v37 }
 0xa7f   : > { %v4351_v57 = vadd.f32 %v4340_v47, %v4256_v24  ;;  %v3257_v22 = vsel %vm1460_vm7, %v10502_v16, %v10503_v62  ;;  %v3581_v21 = vadd.f32 %v3570_v14, %v3545_v56  ;;  %v3266_v24 = vadd.f32 %v3255_v33, %v2916_v13  ;;  %v4466_v33 = vld [vmem:[%s10114_s13] sm:$0xff] }
 0xa80   : > { %v3267_v59 = vadd.f32 %v3256_v5, %v2917_v41  ;;  %v3432_v12 = vsel %vm1652_vm6, %v10505_v37, %v10506_v29  ;;  %v1915_v51 = vmul.f32 %v8095_v44, %v10490_v45  ;;  %v3268_v15 = vadd.f32 %v3257_v22, %v2918_v10 }
 0xa81   : > { %4400 = vrot.lane.b32.xlu2 %v4351_v57, %s6026_s20  ;;  %4398 = vrot.lane.b32.xlu1 %v4350_v58, %s6026_s20  ;;  %v3535_v47 = vsel %vm2855_vm14, %v8594_v26, %v8592_v63  ;;  %v3536_v39 = vsel %vm2855_vm14, %v8592_v63, %v8604_v6  ;;  %v3441_v35 = vadd.f32 %v3430_v7, %v3266_v24  ;;  %v10515_v5 = vmov 18  }
 0xa82   : > { %4402 = vrot.lane.b32.xlu0 %v4352_v3, %s6026_s20  ;;  %v4419_v3 = vld [vmem:[%s10111_s10] sm:$0xff]  ;;  %v3442_v58 = vadd.f32 %v3431_v50, %v3267_v59  ;;  %v3537_v57 = vsel %vm2855_vm14, %v8604_v6, %v8600_v28  ;;  %v3592_v44 = vadd.f32 %v8610_v2, %v3580_v61  ;;  %v3443_v45 = vadd.f32 %v3432_v12, %v3268_v15 }
 0xa83   : > { %v3571_v26 = vsel %vm3568_vm0, %v8606_v11, %v8602_v55  ;;  %v3593_v17 = vadd.f32 %v8610_v2, %v3581_v21  ;;  %v3572_v63 = vsel %vm3568_vm0, %v8602_v55, %v8614_v19  ;;  %v3546_v43 = vadd.f32 %v3535_v47, %v3441_v35 }
 0xa84   : > { %v3547_v23 = vadd.f32 %v3536_v39, %v3442_v58  ;;  %v3573_v0 = vsel %vm3568_vm0, %v8614_v19, %v8612_v34  ;;  %v3548_v6 = vadd.f32 %v3537_v57, %v3443_v45  ;;  %v2919_v25 = vadd.f32 %v10500_v18, %v1915_v51 }
 0xa85   : > { %v3582_v11 = vadd.f32 %v3571_v26, %v3546_v43  ;;  %v10517_v22 = vmov 20   ;;  %vm4448_vm4 = vcmask 80896   ;;  %vm5366_vm14 = vcmask 277504  }
 0xa86   : > { %v3583_v9 = vadd.f32 %v3572_v63, %v3547_v23  ;;  %v3584_v53 = vadd.f32 %v3573_v0, %v3548_v6  ;;  %v3269_v49 = vadd.f32 %v10503_v62, %v2919_v25  ;;  %v10516_v62 = vmov 19  }
 0xa87   : > { %v3594_v14 = vadd.f32 %v8610_v2, %v3582_v11 }
 0xa88   : > { %v3444_v55 = vadd.f32 %v10506_v29, %v3269_v49  ;;  %v3595_v46 = vadd.f32 %v8610_v2, %v3583_v9  ;;  %v3596_v19 = vadd.f32 %v8610_v2, %v3584_v53 }
 0xa89   : > { %4436 = vrot.lane.b32.xlu2 %v3592_v44, %s6042_s15  ;;  %4422 = vperm.xlu1 %5861, %v4419_v3  }
 0xa8a   : > { %4438 = vrot.lane.b32.xlu0 %v3593_v17, %s6042_s15  ;;  %v3549_v32 = vadd.f32 %v8600_v28, %v3444_v55  ;;  %v10508_v28 = vmov 16  }
 0xa8c   : > { %v3585_v18 = vadd.f32 %v8612_v34, %v3549_v32  ;;  %v10511_v34 = vld [vmem:[#allocation39_spill] sm:$0xff] }
 0xa8e   : > { %v3597_v16 = vadd.f32 %v8610_v2, %v3585_v18  ;;  %v10510_v2 = vmov 13  }
 0xa91   : > { %4442 = vrot.lane.b32.xlu2 %v3595_v46, %s6042_s15  ;;  %4440 = vrot.lane.b32.xlu1 %v3594_v14, %s6042_s15 }
 0xa92   : > { %4444 = vrot.lane.b32.xlu0 %v3596_v19, %s6042_s15  ;;  %5864 = vset.pattern.permute.xlu1 %v10416_v31  ;;  %v10507_v31 = vmov 11  }
 0xa99   : > { %4474 = vperm.xlu2 %5862, %v4466_v33   ;;  %4446 = vrot.lane.b32.xlu1 %v3597_v16, %s6042_s15 }
 0xa9a   : > { %4483 = vperm.xlu0 %5863, %v4466_v33  }
 0xaa1   : > { %5865 = vset.pattern.permute.xlu2 %v10465_v54  ;;  %4498 = vperm.xlu1 %5864, %v4466_v33   ;;  %v10512_v54 = vmov 15  }
 0xaa2   : > { %5868 = vset.pattern.permute.xlu0 %v10419_v48  ;;  %4508 = vperm.xlu2 %5865, %v4466_v33   ;;  %v10509_v48 = vmov 12  }
 0xaa3   : > { %4542 = vperm.xlu0 %5868, %v4466_v33  }
 0xaa9   : > { %5866 = vset.pattern.permute.xlu1 %v10417_v38  ;;  %v5891_v38 = vld [vmem:[%s10106_s5] sm:$0xff] }
 0xaaa   : > { %5867 = vset.pattern.permute.xlu2 %v10418_v40  ;;  %4518 = vperm.xlu1 %5866, %v4466_v33  }
 0xaab   : > { %5873 = vset.pattern.permute.xlu0 %v10507_v31  ;;  %4527 = vperm.xlu2 %5867, %v4466_v33  }
 0xaac   : > { %4597 = vperm.xlu0 %5873, %v4466_v33  }
 0xab2   : > { %5869 = vset.pattern.permute.xlu1 %v10466_v20  ;;  %v10513_v20 = vmov 14  }
 0xab3   : > { %5870 = vset.pattern.permute.xlu2 %v10468_v36  ;;  %4552 = vperm.xlu1 %5869, %v4466_v33   ;;  %v10514_v36 = vmov 17  }
 0xab4   : > { %5878 = vset.pattern.permute.xlu0 %v10508_v28  ;;  %4562 = vperm.xlu2 %5870, %v4466_v33  }
 0xab5   : > { %4650 = vperm.xlu0 %5878, %v4466_v33  }
 0xabb   : > { %5871 = vset.pattern.permute.xlu1 %v10467_v30 }
 0xabc   : > { %5872 = vset.pattern.permute.xlu2 %v10464_v4  ;;  %4577 = vperm.xlu1 %5871, %v4466_v33  }
 0xabd   : > { %5879 = vset.pattern.permute.xlu0 %v10421_v60  ;;  %4587 = vperm.xlu2 %5872, %v4466_v33  }
 0xabe   : > { %3643 = vperm.xlu0 %5879, %v5891_v38  }
 0xac3   : > { %v9232_v40 = vpop.permute.xlu2 %4361 }
 0xac4   : > { %5874 = vset.pattern.permute.xlu1 %v10509_v48 }
 0xac5   : > { %5875 = vset.pattern.permute.xlu2 %v10510_v2  ;;  %4606 = vperm.xlu1 %5874, %v4466_v33  }
 0xac6   : > { %3973 = vperm.xlu0 %5879, %v10511_v34   ;;  %4621 = vperm.xlu2 %5875, %v4466_v33  }
 0xacb   : > { %v9237_v4 = vpop.permute.xlu2 %4367 }
 0xacd   : > { %5876 = vset.pattern.permute.xlu1 %v10512_v54 }
 0xace   : > { %5877 = vset.pattern.permute.xlu2 %v10513_v20  ;;  %4641 = vperm.xlu1 %5876, %v4466_v33  }
 0xacf   : > { %4631 = vperm.xlu2 %5877, %v4466_v33  }
 0xad3   : > { %v9241_v30 = vpop.permute.xlu2 %4394 }
 0xad5   : > { %v9245_v56 = vpop.permute.xlu0 %4363 }
 0xad6   : > { %5880 = vset.pattern.permute.xlu1 %v10514_v36 }
 0xad7   : > { %5881 = vset.pattern.permute.xlu2 %v10515_v5  ;;  %4665 = vperm.xlu1 %5880, %v4466_v33  }
 0xad8   : > { %4675 = vperm.xlu2 %5881, %v4466_v33  }
 0xada   : > { %v9247_v41 = vpop.permute.xlu1 %4359 }
 0xadb   : > { %v9249_v13 = vpop.permute.xlu2 %4400 }
 0xadd   : > { %v9255_v52 = vpop.permute.xlu0 %4369 }
 0xade   : > { %10518 = vst [vmem:[#allocation65_spill] sm:$0xff] %v9255_v52 }
 0xadf   : > { %5882 = vset.pattern.permute.xlu1 %v10516_v62 }
 0xae0   : > { %5883 = vset.pattern.permute.xlu2 %v10517_v22  ;;  %4684 = vperm.xlu1 %5882, %v4466_v33  }
 0xae1   : > { %4699 = vperm.xlu2 %5883, %v4466_v33   ;;  %v9323_v33 = vld [vmem:[#allocation2] sm:$0xff] }
 0xae3   : > { %v4437_v61 = vpop.permute.xlu2 %4436  ;;  %v9253_v10 = vpop.permute.xlu1 %4365 }
 0xae4   : > { %4460 = vst.msk [vmem:[#allocation2 + $0x10] sm:$0xff] %vm809_vm3, %v4437_v61  ;;  %vm10543_vm3 = vcmask 785408  }
 0xae5   : > { %vm10548_vm7 = vmmov %vm10543_vm3 }
 0xae6   : > { %vm10551_vm1 = vmmov %vm10543_vm3 }
 0xae7   : > { %vm10556_vm5 = vmmov %vm10551_vm1 }
 0xae8   : > { %vm10562_vm6 = vmmov %vm10551_vm1 }
 0xae9   : > { %5884 = vset.pattern.permute.xlu2 %v10421_v60  ;;  %vm10563_vm8 = vmmov %vm10551_vm1 }
 0xaea   : > { %vm10573_vm11 = vmmov %vm10551_vm1 }
 0xaeb   : > { %v9259_v7 = vpop.permute.xlu1 %4392  ;;  %v4443_v12 = vpop.permute.xlu2 %4442  ;;  %v9302_v11 = vld [vmem:[#allocation2 + $0x10] sm:$0xff] }
 0xaec   : > { %v9261_v37 = vpop.permute.xlu0 %4396 }
 0xaf3   : > { %v9263_v50 = vpop.permute.xlu1 %4398  ;;  %v9280_v58 = vpop.permute.xlu2 %4474 }
 0xaf4   : > { %v9265_v21 = vpop.permute.xlu0 %4402  ;;  %10520 = vst [vmem:[#allocation46_spill] sm:$0xff] %v9280_v58 }
 0xaf5   : > { %10519 = vst [vmem:[#allocation60_spill] sm:$0xff] %v9265_v21 }
 0xafb   : > { %v9267_v24 = vpop.permute.xlu1 %4422 }
 0xafc   : > { %v4439_v59 = vpop.permute.xlu0 %4438  ;;  %v9284_v44 = vpop.permute.xlu2 %4508 }
 0xafd   : > { %v9269_v29 = vsel %vm4448_vm4, %v4437_v61, %v4439_v59  ;;  %v4511_v54 = vmul.f32 %v9323_v33, %v9284_v44 }
 0xafe   : > { %4461 = vst [vmem:[#allocation2 + $0x18] sm:$0xff] %v9269_v29 }
 0xb03   : > { %v4441_v51 = vpop.permute.xlu1 %4440 }
 0xb04   : > { %v4445_v15 = vpop.permute.xlu0 %4444  ;;  %v9272_v60 = vsel %vm4448_vm4, %v4439_v59, %v4441_v51  ;;  %v9274_v47 = vsel %vm4448_vm4, %v4441_v51, %v4443_v12 }
 0xb05   : > { %v9276_v39 = vsel %vm4448_vm4, %v4443_v12, %v4445_v15  ;;  %4462 = vst [vmem:[#allocation2 + $0x20] sm:$0xff] %v9272_v60  ;;  %v9288_v26 = vpop.permute.xlu2 %4527 }
 0xb0b   : > { %v4447_v3 = vpop.permute.xlu1 %4446 }
 0xb0c   : > { %v4453_v35 = vsel %vm4448_vm4, %v4445_v15, %v4447_v3  ;;  %v4484_v63 = vpop.permute.xlu0 %4483  ;;  %vm5477_vm4 = vcmask 1043456  }
 0xb0d   : > { %4465 = vst.msk [vmem:[#allocation2 + $0x38] sm:$0xff] %vm815_vm2, %v4453_v35  ;;  %v4486_v16 = vmul.f32 %v9323_v33, %v4484_v63  ;;  %v4488_v38 = vmul.f32 %v4484_v63, %v9302_v11  ;;  %v4489_v48 = vmul.f32 %v4484_v63, %v9269_v29  ;;  %v4490_v20 = vmul.f32 %v4484_v63, %v9272_v60 }
 0xb0e   : > { %v9292_v43 = vpop.permute.xlu2 %4562  ;;  %vm576_vm2 = vcmask 130048  }
 0xb0f   : > { %577 = vst.msk [vmem:[#allocation2 + $0x50] sm:$0xff] %vm576_vm2, %v9323_v33 }
 0xb13   : > { %v9282_v57 = vpop.permute.xlu1 %4498 }
 0xb14   : > { %v9308_v53 = vld [vmem:[#allocation2 + $0x38] sm:$0xff] }
 0xb15   : > { %v9296_v0 = vpop.permute.xlu0 %4542 }
 0xb17   : > { %v9298_v6 = vpop.permute.xlu2 %4587 }
 0xb18   : > { %v9306_v9 = vmul.f32 %v9298_v6, %v9302_v11  ;;  %v9312_v49 = vmul.f32 %v9308_v53, %v9298_v6 }
 0xb1c   : > { %v9286_v45 = vpop.permute.xlu1 %4518 }
 0xb1e   : > { %v4598_v55 = vpop.permute.xlu0 %4597 }
 0xb1f   : > { %v9318_v18 = vmul.f32 %v9308_v53, %v4598_v55  ;;  %v4600_v59 = vmul.f32 %v4598_v55, %v9269_v29  ;;  %v4602_v51 = vmul.f32 %v4598_v55, %v9274_v47  ;;  %v4603_v15 = vmul.f32 %v4598_v55, %v9276_v39 }
 0xb20   : > { %v4601_v3 = vmul.f32 %v4598_v55, %v9272_v60  ;;  %v4622_v63 = vpop.permute.xlu2 %4621 }
 0xb25   : > { %v9290_v17 = vpop.permute.xlu1 %4552 }
 0xb26   : > { %v4556_v5 = vmul.f32 %v9290_v17, %v9302_v11  ;;  %v4557_v62 = vmul.f32 %v9290_v17, %v9269_v29  ;;  %v4555_v22 = vmul.f32 %v9323_v33, %v9290_v17  ;;  %v4559_v61 = vmul.f32 %v9290_v17, %v9274_v47 }
 0xb27   : > { %v4558_v12 = vmul.f32 %v9290_v17, %v9272_v60 }
 0xb2e   : > { %v9294_v23 = vpop.permute.xlu1 %4577 }
 0xb2f   : > { %v9335_v2 = vmul.f32 %v9294_v23, %v9302_v11  ;;  %v9339_v34 = vmul.f32 %v9308_v53, %v9294_v23 }
 0xb37   : > { %v9300_v25 = vpop.permute.xlu1 %4606 }
 0xb38   : > { %v9351_v36 = vmul.f32 %v9308_v53, %v9300_v25 }
 0xb40   : > { %v4642_v14 = vpop.permute.xlu1 %4641 }
 0xb41   : > { %v4646_v46 = vmul.f32 %v4642_v14, %v9276_v39  ;;  %v4645_v19 = vmul.f32 %v4642_v14, %v9274_v47  ;;  %v4644_v32 = vmul.f32 %v4642_v14, %v9272_v60  ;;  %v4648_v31 = vmul.f32 %v9323_v33, %v4642_v14 }
 0xb42   : > { %v4647_v28 = vmul.f32 %v4642_v14, %v9308_v53  ;;  %v4625_v14 = vmul.f32 %v4622_v63, %v9272_v60 }
 0xb43   : > { %4942 = vrot.lane.b32.xlu2 %v4646_v46, %s6039_s17  ;;  %4940 = vrot.lane.b32.xlu1 %v4645_v19, %s6039_s17  ;;  %v4626_v46 = vmul.f32 %v4622_v63, %v9274_v47  ;;  %v4624_v19 = vmul.f32 %v4622_v63, %v9269_v29 }
 0xb44   : > { %4938 = vrot.lane.b32.xlu0 %v4644_v32, %s6039_s17  ;;  %v4628_v32 = vmul.f32 %v4622_v63, %v9308_v53 }
 0xb49   : > { %v9376_v35 = vpop.permute.xlu1 %4665 }
 0xb4b   : > { %4946 = vrot.lane.b32.xlu1 %v4648_v31, %s6039_s17  ;;  %4713 = vrot.lane.b32.xlu2 %v4486_v16, %s6039_s17  ;;  %v4627_v31 = vmul.f32 %v4622_v63, %v9276_v39 }
 0xb4c   : > { %4944 = vrot.lane.b32.xlu0 %v4647_v28, %s6039_s17 }
 0xb52   : > { %v4685_v55 = vpop.permute.xlu1 %4684 }
 0xb53   : > { %4717 = vrot.lane.b32.xlu1 %v4488_v38, %s6039_s17  ;;  %4719 = vrot.lane.b32.xlu2 %v4489_v48, %s6039_s17  ;;  %v4690_v28 = vmul.f32 %v9323_v33, %v4685_v55  ;;  %v4689_v38 = vmul.f32 %v4685_v55, %v9308_v53  ;;  %v4688_v48 = vmul.f32 %v4685_v55, %v9276_v39 }
 0xb54   : > { %4715 = vrot.lane.b32.xlu0 %v4486_v16, %s6039_s17  ;;  %v4687_v16 = vmul.f32 %v4685_v55, %v9274_v47 }
 0xb5b   : > { %4743 = vrot.lane.b32.xlu1 %v4511_v54, %s6039_s17  ;;  %4745 = vrot.lane.b32.xlu2 %v4511_v54, %s6039_s17  ;;  %v4632_v54 = vpop.permute.xlu2 %4631 }
 0xb5c   : > { %4721 = vrot.lane.b32.xlu0 %v4490_v20, %s6039_s17  ;;  %v9397_v20 = vpop.permute.xlu0 %4650  ;;  %v4638_v52 = vmul.f32 %v4632_v54, %v9308_v53 }
 0xb63   : > { %4809 = vrot.lane.b32.xlu1 %v4556_v5, %s6039_s17  ;;  %4811 = vrot.lane.b32.xlu2 %v4557_v62, %s6039_s17  ;;  %v9399_v5 = vpop.permute.xlu2 %4675 }
 0xb64   : > { %4807 = vrot.lane.b32.xlu0 %v4555_v22, %s6039_s17  ;;  %v9401_v62 = vpop.permute.xlu0 %3643 }
 0xb6b   : > { %4815 = vrot.lane.b32.xlu1 %v4559_v61, %s6039_s17  ;;  %4874 = vrot.lane.b32.xlu2 %v4600_v59, %s6039_s17  ;;  %v9403_v22 = vpop.permute.xlu2 %4699 }
 0xb6c   : > { %4813 = vrot.lane.b32.xlu0 %v4558_v12, %s6039_s17  ;;  %v9405_v61 = vpop.permute.xlu0 %3973  ;;  %v4634_v12 = vmul.f32 %v4632_v54, %v9269_v29 }
 0xb73   : > { %4878 = vrot.lane.b32.xlu1 %v4602_v51, %s6039_s17  ;;  %4880 = vrot.lane.b32.xlu2 %v4603_v15, %s6039_s17  ;;  %v4636_v51 = vmul.f32 %v4632_v54, %v9274_v47 }
 0xb74   : > { %4876 = vrot.lane.b32.xlu0 %v4601_v3, %s6039_s17 }
 0xb7b   : > { %4908 = vrot.lane.b32.xlu1 %v4625_v14, %s6039_s17  ;;  %4910 = vrot.lane.b32.xlu2 %v4626_v46, %s6039_s17  ;;  %v4635_v14 = vmul.f32 %v4632_v54, %v9272_v60 }
 0xb7c   : > { %4906 = vrot.lane.b32.xlu0 %v4624_v19, %s6039_s17 }
 0xb83   : > { %4914 = vrot.lane.b32.xlu1 %v4628_v32, %s6039_s17  ;;  %5002 = vrot.lane.b32.xlu2 %v4687_v16, %s6039_s17 }
 0xb84   : > { %4912 = vrot.lane.b32.xlu0 %v4627_v31, %s6039_s17 }
 0xb8b   : > { %5006 = vrot.lane.b32.xlu1 %v4689_v38, %s6039_s17  ;;  %5008 = vrot.lane.b32.xlu2 %v4690_v28, %s6039_s17 }
 0xb8c   : > { %5004 = vrot.lane.b32.xlu0 %v4688_v48, %s6039_s17  ;;  %v4637_v48 = vmul.f32 %v4632_v54, %v9276_v39 }
 0xb9d   : > { %v4943_v59 = vpop.permute.xlu2 %4942 }
 0xba5   : > { %v4714_v31 = vpop.permute.xlu2 %4713 }
 0xbb5   : > { %v4941_v15 = vpop.permute.xlu1 %4940 }
 0xbb6   : > { %v4939_v3 = vpop.permute.xlu0 %4938  ;;  %v4949_v46 = vsel %vm3736_vm12, %v4941_v15, %v4943_v59 }
 0xbb7   : > { %v4958_v19 = vadd.f32 %v4939_v3, %v4634_v12  ;;  %v4948_v55 = vsel %vm3736_vm12, %v4939_v3, %v4941_v15  ;;  %v4960_v32 = vadd.f32 %v4949_v46, %v4636_v51  ;;  %v4560_v51 = vmul.f32 %v9290_v17, %v9276_v39 }
 0xbb8   : > { %v4959_v16 = vadd.f32 %v4948_v55, %v4635_v14  ;;  %v4720_v14 = vpop.permute.xlu2 %4719  ;;  %v4479_v46 = vmul.f32 %v9280_v58, %v9302_v11  ;;  %v4629_v17 = vmul.f32 %v9323_v33, %v4622_v63  ;;  %v4514_v63 = vmul.f32 %v9284_v44, %v9269_v29 }
 0xbb9   : > { %5131 = vrot.lane.b32.xlu0 %v4958_v19, %s6040_s28  ;;  %5135 = vrot.lane.b32.xlu2 %v4960_v32, %s6040_s28  ;;  %v4639_v32 = vmul.f32 %v9323_v33, %v4632_v54 }
 0xbba   : > { %5133 = vrot.lane.b32.xlu1 %v4959_v16, %s6040_s28 }
 0xbbd   : > { %v4947_v38 = vpop.permute.xlu1 %4946 }
 0xbbe   : > { %v4945_v21 = vpop.permute.xlu0 %4944 }
 0xbbf   : > { %v4950_v42 = vsel %vm3736_vm12, %v4943_v59, %v4945_v21  ;;  %v4951_v12 = vsel %vm3736_vm12, %v4945_v21, %v4947_v38 }
 0xbc0   : > { %v4961_v15 = vadd.f32 %v4950_v42, %v4637_v48  ;;  %v4962_v3 = vadd.f32 %v4951_v12, %v4638_v52  ;;  %v9451_v12 = vpop.permute.xlu2 %4745 }
 0xbc1   : > { %4817 = vrot.lane.b32.xlu2 %v4560_v51, %s6039_s17  ;;  %v4532_v51 = vmul.f32 %v9288_v26, %v9269_v29 }
 0xbc2   : > { %5137 = vrot.lane.b32.xlu0 %v4961_v15, %s6040_s28  ;;  %5139 = vrot.lane.b32.xlu1 %v4962_v3, %s6040_s28  ;;  %v4530_v3 = vmul.f32 %v9323_v33, %v9288_v26 }
 0xbc5   : > { %v4718_v19 = vpop.permute.xlu1 %4717 }
 0xbc6   : > { %v4716_v55 = vpop.permute.xlu0 %4715  ;;  %v4725_v59 = vsel %vm3736_vm12, %v4718_v19, %v4720_v14 }
 0xbc7   : > { %v9428_v21 = vsel %vm3736_vm12, %v4714_v31, %v4716_v55  ;;  %v9431_v42 = vsel %vm3736_vm12, %v4716_v55, %v4718_v19  ;;  %v9433_v52 = vadd.f32 %v4725_v59, %v4479_v46  ;;  %v4581_v19 = vmul.f32 %v9294_v23, %v9269_v29 }
 0xbc8   : > { %10521 = vst [vmem:[#allocation59_spill] sm:$0xff] %v9428_v21  ;;  %v4533_v55 = vmul.f32 %v9288_v26, %v9272_v60 }
 0xbc9   : > { %10522 = vst [vmem:[#allocation51_spill] sm:$0xff] %v9431_v42  ;;  %5010 = vrot.lane.b32.xlu2 %v4690_v28, %s6039_s17  ;;  %v4963_v28 = vadd.f32 %v4947_v38, %v4639_v32  ;;  %v4531_v38 = vmul.f32 %v9288_v26, %v9302_v11 }
 0xbca   : > { %10523 = vst [vmem:[#allocation42_spill] sm:$0xff] %v9433_v52  ;;  %4882 = vrot.lane.b32.xlu0 %v9318_v18, %s6039_s17  ;;  %4916 = vrot.lane.b32.xlu1 %v4629_v17, %s6039_s17  ;;  %v4513_v18 = vmul.f32 %v9284_v44, %v9302_v11  ;;  %v4547_v52 = vmul.f32 %v9296_v0, %v9269_v29 }
 0xbcd   : > { %v9443_v31 = vpop.permute.xlu1 %4743 }
 0xbce   : > { %v9441_v16 = vpop.permute.xlu0 %4721 }
 0xbcf   : > { %10524 = vst [vmem:[#allocation45_spill] sm:$0xff] %v9441_v16  ;;  %v9447_v48 = vsel %vm3736_vm12, %v4720_v14, %v9441_v16  ;;  %v4812_v14 = vpop.permute.xlu2 %4811  ;;  %v4546_v16 = vmul.f32 %v9296_v0, %v9302_v11 }
 0xbd0   : > { %10525 = vst [vmem:[#allocation28_spill] sm:$0xff] %v9447_v48  ;;  %v4545_v48 = vmul.f32 %v9323_v33, %v9296_v0 }
 0xbd1   : > { %4749 = vrot.lane.b32.xlu2 %v4514_v63, %s6039_s17  ;;  %v4668_v63 = vmul.f32 %v9376_v35, %v9272_v60 }
 0xbd2   : > { %5141 = vrot.lane.b32.xlu0 %v4963_v28, %s6040_s28  ;;  %4747 = vrot.lane.b32.xlu1 %v4513_v18, %s6039_s17  ;;  %v4582_v28 = vmul.f32 %v9294_v23, %v9272_v60  ;;  %v4583_v18 = vmul.f32 %v9294_v23, %v9274_v47 }
 0xbd5   : > { %v4810_v15 = vpop.permute.xlu1 %4809 }
 0xbd6   : > { %v4808_v54 = vpop.permute.xlu0 %4807 }
 0xbd7   : > { %v4875_v17 = vpop.permute.xlu2 %4874 }
 0xbd9   : > { %4781 = vrot.lane.b32.xlu2 %v4532_v51, %s6039_s17 }
 0xbda   : > { %4777 = vrot.lane.b32.xlu0 %v4530_v3, %s6039_s17  ;;  %4779 = vrot.lane.b32.xlu1 %v4531_v38, %s6039_s17  ;;  %v4671_v38 = vmul.f32 %v9376_v35, %v9308_v53 }
 0xbdd   : > { %v9473_v59 = vpop.permute.xlu1 %4815 }
 0xbde   : > { %v4814_v46 = vpop.permute.xlu0 %4813 }
 0xbdf   : > { %v9487_v3 = vpop.permute.xlu2 %4880 }
 0xbe1   : > { %4844 = vrot.lane.b32.xlu2 %v4581_v19, %s6039_s17  ;;  %v4669_v19 = vmul.f32 %v9376_v35, %v9274_v47 }
 0xbe2   : > { %4783 = vrot.lane.b32.xlu0 %v4533_v55, %s6039_s17  ;;  %4842 = vrot.lane.b32.xlu1 %v9335_v2, %s6039_s17  ;;  %v4670_v55 = vmul.f32 %v9376_v35, %v9276_v39 }
 0xbe5   : > { %v4879_v51 = vpop.permute.xlu1 %4878 }
 0xbe6   : > { %v4877_v32 = vpop.permute.xlu0 %4876 }
 0xbe7   : > { %v4911_v58 = vpop.permute.xlu2 %4910 }
 0xbe9   : > { %4970 = vrot.lane.b32.xlu2 %v4668_v63, %s6039_s17  ;;  %v4821_v63 = vsel %vm3736_vm12, %v4812_v14, %v4814_v46 }
 0xbea   : > { %4846 = vrot.lane.b32.xlu0 %v4582_v28, %s6039_s17  ;;  %4848 = vrot.lane.b32.xlu1 %v4583_v18, %s6039_s17  ;;  %v4819_v28 = vsel %vm3736_vm12, %v4808_v54, %v4810_v15  ;;  %v4820_v18 = vsel %vm3736_vm12, %v4810_v15, %v4812_v14  ;;  %v4832_v42 = vadd.f32 %v4821_v63, %v4547_v52 }
 0xbeb   : > { %v4830_v21 = vadd.f32 %v4819_v28, %v4545_v48  ;;  %v4884_v54 = vsel %vm3736_vm12, %v4875_v17, %v4877_v32  ;;  %v4822_v15 = vsel %vm3736_vm12, %v4814_v46, %v9473_v59  ;;  %v4591_v14 = vmul.f32 %v9298_v6, %v9269_v29 }
 0xbec   : > { %v4548_v52 = vmul.f32 %v9296_v0, %v9272_v60 }
 0xbed   : > { %v4895_v48 = vadd.f32 %v4884_v54, %v4591_v14  ;;  %v4593_v54 = vmul.f32 %v9298_v6, %v9274_v47 }
 0xbee   : > { %v4907_v2 = vpop.permute.xlu0 %4906  ;;  %v4833_v63 = vadd.f32 %v4822_v15, %v4548_v52 }
 0xbef   : > { %v5003_v28 = vpop.permute.xlu2 %5002 }
 0xbf1   : > { %4976 = vrot.lane.b32.xlu2 %v4671_v38, %s6039_s17  ;;  %v4909_v38 = vpop.permute.xlu1 %4908 }
 0xbf2   : > { %4972 = vrot.lane.b32.xlu0 %v4669_v19, %s6039_s17  ;;  %4974 = vrot.lane.b32.xlu1 %v4670_v55, %s6039_s17  ;;  %v4831_v55 = vadd.f32 %v4820_v18, %v4546_v16  ;;  %v4894_v16 = vadd.f32 %v4875_v17, %v9306_v9  ;;  %v4885_v18 = vsel %vm3736_vm12, %v4877_v32, %v4879_v51 }
 0xbf3   : > { %v4678_v9 = vmul.f32 %v9399_v5, %v9274_v47  ;;  %v4592_v17 = vmul.f32 %v9298_v6, %v9272_v60 }
 0xbf5   : > { %v4896_v14 = vadd.f32 %v4885_v18, %v4592_v17 }
 0xbf6   : > { %v4913_v19 = vpop.permute.xlu0 %4912 }
 0xbf9   : > { %5069 = vrot.lane.b32.xlu2 %v4832_v42, %s6040_s28  ;;  %v9518_v42 = vpop.permute.xlu1 %4914 }
 0xbfa   : > { %5065 = vrot.lane.b32.xlu0 %v4830_v21, %s6040_s28  ;;  %5067 = vrot.lane.b32.xlu1 %v4831_v55, %s6040_s28  ;;  %v4886_v55 = vsel %vm3736_vm12, %v4879_v51, %v9487_v3 }
 0xbfb   : > { %v4897_v52 = vadd.f32 %v4886_v55, %v4593_v54  ;;  %v4609_v54 = vmul.f32 %v9300_v25, %v9269_v29 }
 0xbfe   : > { %v5005_v21 = vpop.permute.xlu0 %5004 }
 0xbff   : > { %v5012_v46 = vsel %vm3736_vm12, %v5003_v28, %v5005_v21  ;;  %v4680_v28 = vmul.f32 %v9399_v5, %v9308_v53 }
 0xc00   : > { %v5021_v15 = vadd.f32 %v5012_v46, %v4678_v9  ;;  %v4918_v9 = vsel %vm3736_vm12, %v4907_v2, %v4909_v38 }
 0xc01   : > { %5100 = vrot.lane.b32.xlu2 %v4895_v48, %s6040_s28  ;;  %v5007_v48 = vpop.permute.xlu1 %5006 }
 0xc02   : > { %5071 = vrot.lane.b32.xlu0 %v4833_v63, %s6040_s28  ;;  %5098 = vrot.lane.b32.xlu1 %v4894_v16, %s6040_s28  ;;  %v9534_v16 = vpop.permute.xlu2 %5008  ;;  %v5013_v32 = vsel %vm3736_vm12, %v5005_v21, %v5007_v48  ;;  %v4679_v63 = vmul.f32 %v9399_v5, %v9276_v39  ;;  %v4919_v21 = vsel %vm3736_vm12, %v4909_v38, %v4911_v58 }
 0xc03   : > { %v5014_v51 = vsel %vm3736_vm12, %v5007_v48, %v9534_v16  ;;  %v4920_v38 = vsel %vm3736_vm12, %v4911_v58, %v4913_v19 }
 0xc04   : > { %v5022_v46 = vadd.f32 %v5013_v32, %v4679_v63  ;;  %v5023_v18 = vadd.f32 %v5014_v51, %v4680_v28 }
 0xc09   : > { %5163 = vrot.lane.b32.xlu2 %v5021_v15, %s6040_s28  ;;  %v4610_v15 = vmul.f32 %v9300_v25, %v9272_v60 }
 0xc0a   : > { %5102 = vrot.lane.b32.xlu0 %v4896_v14, %s6040_s28  ;;  %5104 = vrot.lane.b32.xlu1 %v4897_v52, %s6040_s28  ;;  %v4928_v52 = vadd.f32 %v4918_v9, %v4609_v54  ;;  %v4612_v9 = vmul.f32 %v9300_v25, %v9276_v39 }
 0xc0b   : > { %v4929_v48 = vadd.f32 %v4919_v21, %v4610_v15 }
 0xc12   : > { %5165 = vrot.lane.b32.xlu0 %v5022_v46, %s6040_s28  ;;  %5167 = vrot.lane.b32.xlu1 %v5023_v18, %s6040_s28  ;;  %v4921_v46 = vsel %vm3736_vm12, %v4913_v19, %v9518_v42  ;;  %v4611_v18 = vmul.f32 %v9300_v25, %v9274_v47 }
 0xc13   : > { %v5136_v55 = vpop.permute.xlu2 %5135  ;;  %v4931_v15 = vadd.f32 %v4921_v46, %v4612_v9  ;;  %v4516_v9 = vmul.f32 %v9284_v44, %v9274_v47 }
 0xc14   : > { %v4930_v54 = vadd.f32 %v4920_v38, %v4611_v18  ;;  %v4705_v38 = vmul.f32 %v9323_v33, %v9403_v22 }
 0xc1b   : > { %v9549_v17 = vpop.permute.xlu2 %4817 }
 0xc23   : > { %v9566_v21 = vpop.permute.xlu2 %5010 }
 0xc2b   : > { %v5132_v14 = vpop.permute.xlu0 %5131 }
 0xc2c   : > { %v5134_v32 = vpop.permute.xlu1 %5133 }
 0xc2d   : > { %v5143_v51 = vsel %vm3835_vm13, %v5132_v14, %v5134_v32  ;;  %v5144_v63 = vsel %vm3835_vm13, %v5134_v32, %v5136_v55 }
 0xc2e   : > { %v5153_v28 = vadd.f32 %v5143_v51, %v4928_v52  ;;  %v5154_v2 = vadd.f32 %v5144_v63, %v4929_v48  ;;  %v4702_v51 = vmul.f32 %v9403_v22, %v9274_v47 }
 0xc30   : > { %5221 = vrot.lane.b32.xlu2 %v5153_v28, %s6037_s21  ;;  %5223 = vrot.lane.b32.xlu0 %v5154_v2, %s6037_s21  ;;  %v9578_v28 = vpop.permute.xlu2 %4749  ;;  %v4703_v2 = vmul.f32 %v9403_v22, %v9276_v39 }
 0xc34   : > { %v5138_v14 = vpop.permute.xlu0 %5137  ;;  %v9568_v52 = vpop.permute.xlu1 %5139 }
 0xc35   : > { %v5145_v48 = vsel %vm3835_vm13, %v5136_v55, %v5138_v14  ;;  %v5146_v58 = vsel %vm3835_vm13, %v5138_v14, %v9568_v52  ;;  %v4704_v55 = vmul.f32 %v9403_v22, %v9308_v53  ;;  %v4534_v14 = vmul.f32 %v9288_v26, %v9274_v47 }
 0xc36   : > { %v5155_v32 = vadd.f32 %v5145_v48, %v4930_v54  ;;  %v5156_v19 = vadd.f32 %v5146_v58, %v4931_v15  ;;  %v4515_v54 = vmul.f32 %v9284_v44, %v9272_v60  ;;  %v4672_v44 = vmul.f32 %v9323_v33, %v9376_v35 }
 0xc38   : > { %5227 = vrot.lane.b32.xlu2 %v5156_v19, %s6037_s21  ;;  %5225 = vrot.lane.b32.xlu1 %v5155_v32, %s6037_s21  ;;  %v9595_v15 = vpop.permute.xlu2 %4781  ;;  %v4584_v32 = vmul.f32 %v9294_v23, %v9276_v39  ;;  %v4823_v19 = vsel %vm3736_vm12, %v9473_v59, %v9549_v17  ;;  %v4565_v23 = vmul.f32 %v9292_v43, %v9302_v11 }
 0xc39   : > { %5251 = vrot.lane.b32.xlu0 %v4702_v51, %s6037_s21  ;;  %v4549_v51 = vmul.f32 %v9296_v0, %v9274_v47 }
 0xc3c   : > { %v4883_v25 = vpop.permute.xlu0 %4882  ;;  %v4917_v63 = vpop.permute.xlu1 %4916 }
 0xc3d   : > { %v4887_v59 = vsel %vm3736_vm12, %v9487_v3, %v4883_v25 }
 0xc40   : > { %5255 = vrot.lane.b32.xlu2 %v4704_v55, %s6037_s21  ;;  %5253 = vrot.lane.b32.xlu1 %v4703_v2, %s6037_s21  ;;  %v4845_v26 = vpop.permute.xlu2 %4844 }
 0xc41   : > { %5257 = vrot.lane.b32.xlu0 %v4705_v38, %s6037_s21 }
 0xc44   : > { %v5142_v46 = vpop.permute.xlu0 %5141  ;;  %v9589_v18 = vpop.permute.xlu1 %4747 }
 0xc48   : > { %4753 = vrot.lane.b32.xlu2 %v4516_v9, %s6039_s17  ;;  %4751 = vrot.lane.b32.xlu1 %v4515_v54, %s6039_s17  ;;  %v4834_v9 = vadd.f32 %v4823_v19, %v4549_v51  ;;  %v4594_v19 = vmul.f32 %v9298_v6, %v9276_v39  ;;  %v4922_v6 = vsel %vm3736_vm12, %v9518_v42, %v4917_v63 }
 0xc49   : > { %4785 = vrot.lane.b32.xlu0 %v4534_v14, %s6039_s17 }
 0xc4a   : > { %v4898_v3 = vadd.f32 %v4887_v59, %v4594_v19 }
 0xc4c   : > { %v4778_v48 = vpop.permute.xlu0 %4777  ;;  %v9602_v58 = vpop.permute.xlu1 %4779 }
 0xc50   : > { %4852 = vrot.lane.b32.xlu2 %v9339_v34, %s6039_s17  ;;  %4850 = vrot.lane.b32.xlu1 %v4584_v32, %s6039_s17  ;;  %v4550_v34 = vmul.f32 %v9296_v0, %v9276_v39  ;;  %v4971_v32 = vpop.permute.xlu2 %4970  ;;  %v5015_v0 = vsel %vm3736_vm12, %v9534_v16, %v9566_v21  ;;  %v4932_v16 = vadd.f32 %v4922_v6, %v9351_v36 }
 0xc51   : > { %4978 = vrot.lane.b32.xlu0 %v4672_v44, %s6039_s17  ;;  %v4755_v36 = vsel %vm3736_vm12, %v9443_v31, %v9451_v12  ;;  %v4787_v31 = vsel %vm3736_vm12, %v4778_v48, %v9602_v58  ;;  %v4503_v48 = vmul.f32 %v9282_v57, %v9302_v11 }
 0xc52   : > { %v4835_v14 = vadd.f32 %v9549_v17, %v4550_v34 }
 0xc54   : > { %v9617_v55 = vpop.permute.xlu0 %4783  ;;  %v4843_v35 = vpop.permute.xlu1 %4842 }
 0xc55   : > { %v4854_v2 = vsel %vm3736_vm12, %v4843_v35, %v4845_v26  ;;  %v4899_v35 = vadd.f32 %v4883_v25, %v9312_v49 }
 0xc56   : > { %v9624_v54 = vadd.f32 %v4854_v2, %v4565_v23 }
 0xc58   : > { %4980 = vrot.lane.b32.xlu1 %v4672_v44, %s6039_s17  ;;  %5073 = vrot.lane.b32.xlu2 %v4834_v9, %s6040_s28  ;;  %v4681_v44 = vmul.f32 %v9323_v33, %v9399_v5  ;;  %v5147_v5 = vsel %vm3835_vm13, %v9568_v52, %v5142_v46  ;;  %v9666_v63 = vpop.permute.xlu2 %4976  ;;  %v4697_v52 = vld [vmem:[#allocation2 + $0x50] sm:$0xff]  ;;  %v4501_v46 = vmul.f32 %v9323_v33, %v9282_v57  ;;  %s6043_s17 = smov 64  }
 0xc59   : > { %5075 = vrot.lane.b32.xlu0 %v4835_v14, %s6040_s28  ;;  %v5157_v42 = vadd.f32 %v5147_v5, %v4932_v16 }
 0xc5a   : > { %v5024_v34 = vadd.f32 %v5015_v0, %v4681_v44  ;;  %v5025_v9 = vadd.f32 %v9566_v21, %v4681_v44  ;;  %v4756_v21 = vsel %vm3736_vm12, %v9451_v12, %v9589_v18  ;;  %v4766_v14 = vadd.f32 %v4755_v36, %v4501_v46 }
 0xc5b   : > { %v4767_v0 = vadd.f32 %v4756_v21, %v4501_v46  ;;  %v4788_v12 = vsel %vm3736_vm12, %v9602_v58, %v9595_v15 }
 0xc5c   : > { %v9637_v51 = vpop.permute.xlu0 %4846  ;;  %v9639_v17 = vpop.permute.xlu1 %4848 }
 0xc5d   : > { %v9645_v23 = vsel %vm3736_vm12, %v4845_v26, %v9637_v51 }
 0xc60   : > { %5106 = vrot.lane.b32.xlu1 %v4898_v3, %s6040_s28  ;;  %5108 = vrot.lane.b32.xlu2 %v4899_v35, %s6040_s28  ;;  %v5070_v19 = vpop.permute.xlu2 %5069  ;;  %v4522_v3 = vmul.f32 %v9286_v45, %v9302_v11  ;;  %v4523_v11 = vmul.f32 %v9286_v45, %v9269_v29 }
 0xc61   : > { %5169 = vrot.lane.b32.xlu0 %v5024_v34, %s6040_s28 }
 0xc62   : > { %v4797_v5 = vadd.f32 %v4788_v12, %v4522_v3 }
 0xc64   : > { %v4973_v26 = vpop.permute.xlu0 %4972  ;;  %v9656_v2 = vpop.permute.xlu1 %4974 }
 0xc65   : > { %v9659_v49 = vsel %vm3736_vm12, %v4971_v32, %v4973_v26  ;;  %v9663_v25 = vsel %vm3736_vm12, %v4973_v26, %v9656_v2  ;;  %v4707_v32 = vmul.f32 %v9403_v22, %v4697_v52  ;;  %v4757_v22 = vsel %vm3736_vm12, %v9589_v18, %v9578_v28 }
 0xc66   : > { %v4768_v16 = vadd.f32 %v4757_v22, %v4503_v48  ;;  %v4789_v18 = vsel %vm3736_vm12, %v9595_v15, %v9617_v55  ;;  %v4856_v48 = vsel %vm3736_vm12, %v9637_v51, %v9639_v17 }
 0xc67   : > { %v4798_v52 = vadd.f32 %v4789_v18, %v4523_v11 }
 0xc68   : > { %5229 = vrot.lane.b32.xlu2 %v5157_v42, %s6037_s21  ;;  %5171 = vrot.lane.b32.xlu1 %v5025_v9, %s6040_s28  ;;  %v5101_v42 = vpop.permute.xlu2 %5100 }
 0xc69   : > { %5259 = vrot.lane.b32.xlu0 %v4705_v38, %s6037_s21  ;;  %v4521_v38 = vmul.f32 %v9323_v33, %v9286_v45 }
 0xc6b   : > { %v4796_v34 = vadd.f32 %v4787_v31, %v4521_v38 }
 0xc6c   : > { %v5066_v59 = vpop.permute.xlu0 %5065  ;;  %v5068_v44 = vpop.permute.xlu1 %5067 }
 0xc6d   : > { %v5077_v35 = vsel %vm3835_vm13, %v5066_v59, %v5068_v44  ;;  %v5078_v6 = vsel %vm3835_vm13, %v5068_v44, %v5070_v19 }
 0xc6e   : > { %v5087_v26 = vadd.f32 %v5077_v35, %v4796_v34  ;;  %v5088_v9 = vadd.f32 %v5078_v6, %v4797_v5  ;;  %v4566_v34 = vmul.f32 %v9292_v43, %v9269_v29  ;;  %v4567_v6 = vmul.f32 %v9292_v43, %v9272_v60 }
 0xc70   : > { %5032 = vrot.lane.b32.xlu2 %v4766_v14, %s6040_s28  ;;  %5261 = vrot.lane.b32.xlu1 %v4707_v32, %s6037_s21  ;;  %v5164_v21 = vpop.permute.xlu2 %5163 }
 0xc71   : > { %5034 = vrot.lane.b32.xlu0 %v4767_v0, %s6040_s28 }
 0xc74   : > { %v9699_v58 = vpop.permute.xlu0 %5071  ;;  %v5099_v59 = vpop.permute.xlu1 %5098 }
 0xc75   : > { %v5079_v36 = vsel %vm3835_vm13, %v5070_v19, %v9699_v58  ;;  %v5110_v31 = vsel %vm3835_vm13, %v5099_v59, %v5101_v42 }
 0xc76   : > { %v5089_v46 = vadd.f32 %v5079_v36, %v4798_v52  ;;  %v5120_v12 = vadd.f32 %v5110_v31, %v9624_v54  ;;  %v4984_v31 = vsel %vm3736_vm12, %v9656_v2, %v9666_v63 }
 0xc78   : > { %5192 = vrot.lane.b32.xlu2 %v5087_v26, %s6037_s21  ;;  %5036 = vrot.lane.b32.xlu1 %v4768_v16, %s6040_s28  ;;  %v4865_v16 = vadd.f32 %v9645_v23, %v4566_v34  ;;  %v4866_v26 = vadd.f32 %v4856_v48, %v4567_v6  ;;  %v4654_v23 = vmul.f32 %v9397_v20, %v9274_v47 }
 0xc79   : > { %5194 = vrot.lane.b32.xlu0 %v5088_v9, %s6037_s21 }
 0xc7c   : > { %v5103_v32 = vpop.permute.xlu0 %5102  ;;  %v9714_v15 = vpop.permute.xlu1 %5104 }
 0xc7d   : > { %v5111_v54 = vsel %vm3835_vm13, %v5101_v42, %v5103_v32  ;;  %v5112_v5 = vsel %vm3835_vm13, %v5103_v32, %v9714_v15 }
 0xc7e   : > { %v5121_v9 = vadd.f32 %v5111_v54, %v4865_v16  ;;  %v5122_v18 = vadd.f32 %v5112_v5, %v4866_v26 }
 0xc80   : > { %5196 = vrot.lane.b32.xlu1 %v5089_v46, %s6037_s21 }
 0xc84   : > { %v5166_v44 = vpop.permute.xlu0 %5165  ;;  %v9718_v22 = vpop.permute.xlu1 %5167 }
 0xc8a   : > { %v5222_v14 = vpop.permute.xlu2 %5221 }
 0xc92   : > { %v9712_v0 = vpop.permute.xlu2 %5227 }
 0xc9a   : > { %v5256_v38 = vpop.permute.xlu2 %5255 }
 0xca2   : > { %v5224_v19 = vpop.permute.xlu0 %5223  ;;  %v4754_v11 = vpop.permute.xlu2 %4753 }
 0xca3   : > { %v5231_v3 = vsel %vm3568_vm0, %v5222_v14, %v5224_v19  ;;  %v4653_v14 = vmul.f32 %v9397_v20, %v9272_v60 }
 0xca4   : > { %v5240_v35 = vadd.f32 %v5231_v3, %v5120_v12  ;;  %v4655_v12 = vmul.f32 %v9397_v20, %v9276_v39  ;;  %v4993_v3 = vadd.f32 %v9663_v25, %v4654_v23  ;;  %v4524_v23 = vmul.f32 %v9286_v45, %v9272_v60 }
 0xca5   : > { %v4992_v32 = vadd.f32 %v9659_v49, %v4653_v14  ;;  %v5174_v49 = vsel %vm3835_vm13, %v5166_v44, %v9718_v22  ;;  %v5337_v14 = vld [vmem:[%s10526_s16] sm:$0xff] }
 0xca6   : > { %5283 = vrot.lane.b32.xlu2 %v5240_v35, %s6026_s20  ;;  %v4994_v35 = vadd.f32 %v4984_v31, %v4655_v12  ;;  %v4506_v31 = vmul.f32 %v9282_v57, %v9274_v47 }
 0xca7   : > { %v5182_v48 = vadd.f32 %v5164_v21, %v4992_v32 }
 0xca8   : > { %v5184_v54 = vadd.f32 %v5174_v49, %v4994_v35  ;;  %v4771_v49 = vadd.f32 %v4754_v11, %v4506_v31  ;;  %v4525_v35 = vmul.f32 %v9286_v45, %v9274_v47  ;;  %v4569_v45 = vmul.f32 %v9292_v43, %v9276_v39 }
 0xcaa   : > { %v5226_v51 = vpop.permute.xlu1 %5225  ;;  %v4853_v26 = vpop.permute.xlu2 %4852 }
 0xcab   : > { %v5232_v36 = vsel %vm3568_vm0, %v5224_v19, %v5226_v51  ;;  %v5233_v52 = vsel %vm3568_vm0, %v5226_v51, %v9712_v0  ;;  %v5252_v46 = vpop.permute.xlu0 %5251  ;;  %v5173_v19 = vsel %vm3835_vm13, %v5164_v21, %v5166_v44  ;;  %v4504_v21 = vmul.f32 %v9282_v57, %v9269_v29 }
 0xcac   : > { %v5241_v42 = vadd.f32 %v5232_v36, %v5121_v9  ;;  %v5242_v59 = vadd.f32 %v5233_v52, %v5122_v18  ;;  %v5183_v34 = vadd.f32 %v5173_v19, %v4993_v3  ;;  %v4505_v44 = vmul.f32 %v9282_v57, %v9272_v60 }
 0xcae   : > { %5285 = vrot.lane.b32.xlu0 %v5241_v42, %s6026_s20  ;;  %5287 = vrot.lane.b32.xlu1 %v5242_v59, %s6026_s20 }
 0xcb2   : > { %v5254_v6 = vpop.permute.xlu1 %5253  ;;  %v5074_v29 = vpop.permute.xlu2 %5073 }
 0xcb3   : > { %v5263_v2 = vsel %vm3568_vm0, %v5252_v46, %v5254_v6  ;;  %v5264_v5 = vsel %vm3568_vm0, %v5254_v6, %v5256_v38  ;;  %v9754_v16 = vpop.permute.xlu0 %5257  ;;  %v5080_v19 = vsel %vm3835_vm13, %v9699_v58, %v5074_v29  ;;  %v3646_v58 = vmul.f32 %v9323_v33, %v9401_v62 }
 0xcb4   : > { %v5273_v9 = vadd.f32 %v5263_v2, %v5182_v48  ;;  %v5274_v18 = vadd.f32 %v5264_v5, %v5183_v34  ;;  %v5265_v25 = vsel %vm3568_vm0, %v5256_v38, %v9754_v16  ;;  %v4568_v5 = vmul.f32 %v9292_v43, %v9274_v47  ;;  %v10529_v47 = vld [vmem:[#allocation63_spill] sm:$0xff] }
 0xcb5   : > { %v5275_v51 = vadd.f32 %v5265_v25, %v5184_v54 }
 0xcb6   : > { %5312 = vrot.lane.b32.xlu2 %v5273_v9, %s6043_s17  ;;  %5314 = vrot.lane.b32.xlu0 %v5274_v18, %s6043_s17  ;;  %v3976_v9 = vmul.f32 %v9323_v33, %v9405_v61 }
 0xcb7   : > { %5316 = vrot.lane.b32.xlu1 %v5275_v51, %s6043_s17 }
 0xcba   : > { %v4752_v36 = vpop.permute.xlu1 %4751  ;;  %v5109_v60 = vpop.permute.xlu2 %5108 }
 0xcbb   : > { %v4758_v52 = vsel %vm3736_vm12, %v9578_v28, %v4752_v36  ;;  %v4759_v38 = vsel %vm3736_vm12, %v4752_v36, %v4754_v11  ;;  %v4786_v46 = vpop.permute.xlu0 %4785 }
 0xcbc   : > { %v4769_v42 = vadd.f32 %v4758_v52, %v4504_v21  ;;  %v4770_v59 = vadd.f32 %v4759_v38, %v4505_v44  ;;  %v4790_v32 = vsel %vm3736_vm12, %v9617_v55, %v4786_v46  ;;  %v4800_v34 = vadd.f32 %v4786_v46, %v4525_v35  ;;  %v10527_v44 = vld [vmem:[#allocation21_spill] sm:$0xff]  ;;  %v10528_v38 = vld [vmem:[#allocation40_spill] sm:$0xff] }
 0xcbd   : > { %v4799_v28 = vadd.f32 %v4790_v32, %v4524_v23  ;;  %v3747_v36 = vadd.f32 %v10527_v44, %v3646_v58  ;;  %v4113_v46 = vsel %vm3736_vm12, %v10529_v47, %v10528_v38  ;;  %v3977_v35 = vmul.f32 %v8875_v8, %v9405_v61  ;;  %v10539_v47 = vld [vmem:[#allocation41_spill] sm:$0xff] }
 0xcbe   : > { %5340 = vperm.xlu2 %5884, %v5337_v14   ;;  %5038 = vrot.lane.b32.xlu0 %v4769_v42, %s6040_s28  ;;  %v10530_v14 = vld [vmem:[#allocation37_spill] sm:$0xff]  ;;  %v4371_v8 = vsel %vm3568_vm0, %v9247_v41, %v9232_v40 }
 0xcbf   : > { %5040 = vrot.lane.b32.xlu1 %v4770_v59, %s6040_s28  ;;  %v5090_v55 = vadd.f32 %v5080_v19, %v4799_v28  ;;  %v3647_v42 = vmul.f32 %v9401_v62, %v10530_v14  ;;  %v4123_v59 = vadd.f32 %v4113_v46, %v3976_v9  ;;  %v10531_v28 = vld [vmem:[#allocation75_spill] sm:$0xff]  ;;  %v10532_v19 = vld [vmem:[#allocation36_spill] sm:$0xff] }
 0xcc0   : > { %v3847_v31 = vadd.f32 %v10531_v28, %v3747_v36 }
 0xcc2   : > { %v4851_v12 = vpop.permute.xlu1 %4850  ;;  %v5230_v51 = vpop.permute.xlu2 %5229 }
 0xcc3   : > { %v4979_v3 = vpop.permute.xlu0 %4978  ;;  %v4857_v11 = vsel %vm3736_vm12, %v9639_v17, %v4851_v12  ;;  %v4858_v2 = vsel %vm3736_vm12, %v4851_v12, %v4853_v26  ;;  %v5234_v32 = vsel %vm3568_vm0, %v9712_v0, %v5230_v51  ;;  %v4656_v12 = vmul.f32 %v9397_v20, %v9308_v53  ;;  %v10533_v0 = vld [vmem:[#allocation44_spill] sm:$0xff] }
 0xcc4   : > { %v4867_v18 = vadd.f32 %v4857_v11, %v4568_v5  ;;  %v4868_v25 = vadd.f32 %v4858_v2, %v4569_v45  ;;  %v10536_v11 = vld [vmem:[#allocation77_spill] sm:$0xff] }
 0xcc5   : > { %v10537_v45 = vld [vmem:[#allocation61_spill] sm:$0xff] }
 0xcc6   : > { %5042 = vrot.lane.b32.xlu2 %v4771_v49, %s6040_s28  ;;  %5198 = vrot.lane.b32.xlu0 %v5090_v55, %s6037_s21  ;;  %v3737_v49 = vsel %vm3736_vm12, %v10527_v44, %v10532_v19  ;;  %v4114_v9 = vsel %vm3736_vm12, %v10528_v38, %v10537_v45 }
 0xcc7   : > { %v3748_v53 = vadd.f32 %v3737_v49, %v3647_v42  ;;  %v4372_v49 = vsel %vm3568_vm0, %v9232_v40, %v9245_v56  ;;  %v4405_v40 = vsel %vm10548_vm7, %v9241_v30, %v9261_v37 }
 0xcca   : > { %v4981_v48 = vpop.permute.xlu1 %4980 }
 0xccb   : > { %v5076_v6 = vpop.permute.xlu0 %5075  ;;  %v4986_v44 = vsel %vm3736_vm12, %v4979_v3, %v4981_v48 }
 0xccc   : > { %v5081_v57 = vsel %vm3835_vm13, %v5074_v29, %v5076_v6  ;;  %v4985_v29 = vsel %vm3736_vm12, %v9666_v63, %v4979_v3  ;;  %v10534_v63 = vld [vmem:[#allocation57_spill] sm:$0xff]  ;;  %v10542_v3 = vld [vmem:[#allocation54_spill] sm:$0xff] }
 0xccd   : > { %v5091_v54 = vadd.f32 %v5081_v57, %v4800_v34  ;;  %v4995_v34 = vadd.f32 %v4985_v29, %v4656_v12  ;;  %v4277_v48 = vsel %vm3835_vm13, %v10533_v0, %v10542_v3  ;;  %v10545_v12 = vld [vmem:[#allocation53_spill] sm:$0xff] }
 0xccf   : > { %5200 = vrot.lane.b32.xlu1 %v5091_v54, %s6037_s21  ;;  %v10535_v54 = vld [vmem:[#allocation38_spill] sm:$0xff]  ;;  %s6045_s21 = smov 106  }
 0xcd0   : > { %v3911_v58 = vadd.f32 %v10535_v54, %v3847_v31 }
 0xcd2   : > { %v5107_v21 = vpop.permute.xlu1 %5106  ;;  %v3923_v38 = vadd.f32 %v10539_v47, %v3911_v58 }
 0xcd3   : > { %v5113_v17 = vsel %vm3835_vm13, %v9714_v15, %v5107_v21  ;;  %v5114_v26 = vsel %vm3835_vm13, %v5107_v21, %v5109_v60  ;;  %v5170_v52 = vpop.permute.xlu0 %5169  ;;  %v4276_v60 = vsel %vm3835_vm13, %v10534_v63, %v10533_v0  ;;  %v4124_v21 = vadd.f32 %v4114_v9, %v3977_v35 }
 0xcd4   : > { %v5123_v39 = vadd.f32 %v5113_v17, %v4867_v18  ;;  %v5124_v43 = vadd.f32 %v5114_v26, %v4868_v25  ;;  %v5175_v55 = vsel %vm3835_vm13, %v9718_v22, %v5170_v52  ;;  %v4286_v6 = vadd.f32 %v4276_v60, %v4123_v59  ;;  %v10538_v18 = vld [vmem:[#allocation22_spill] sm:$0xff] }
 0xcd5   : > { %v3836_v22 = vsel %vm3835_vm13, %v10531_v28, %v10536_v11  ;;  %v5185_v2 = vadd.f32 %v5175_v55, %v4995_v34  ;;  %v3648_v25 = vmul.f32 %v9401_v62, %v10538_v18  ;;  %v4657_v26 = vmul.f32 %v9323_v33, %v9397_v20  ;;  %v10544_v28 = vld [vmem:[#allocation76_spill] sm:$0xff] }
 0xcd6   : > { %v5243_v15 = vadd.f32 %v5234_v32, %v5123_v39  ;;  %v5244_v23 = vadd.f32 %v5230_v51, %v5124_v43  ;;  %v3848_v17 = vadd.f32 %v3836_v22, %v3748_v53  ;;  %v4381_v46 = vadd.f32 %v4371_v8, %v4286_v6  ;;  %v10540_v39 = vld [vmem:[#allocation35_spill] sm:$0xff]  ;;  %v10541_v43 = vld [vmem:[#allocation30_spill] sm:$0xff]  ;;  %v10546_v34 = vld [vmem:[#allocation24_spill] sm:$0xff] }
 0xcd7   : > { %v3738_v41 = vsel %vm3736_vm12, %v10532_v19, %v10540_v39  ;;  %v3901_v14 = vsel %vm3568_vm0, %v10535_v54, %v10541_v43  ;;  %v3978_v33 = vmul.f32 %v9405_v61, %v8884_v1  ;;  %v4996_v20 = vadd.f32 %v4986_v44, %v4657_v26  ;;  %v10547_v6 = vld [vmem:[#allocation58_spill] sm:$0xff] }
 0xcd8   : > { %5291 = vrot.lane.b32.xlu0 %v5244_v23, %s6026_s20  ;;  %5289 = vrot.lane.b32.xlu2 %v5243_v15, %s6026_s20  ;;  %s6044_s20 = smov 34   ;;  %v3749_v42 = vadd.f32 %v3738_v41, %v3648_v25  ;;  %v4404_v59 = vsel %vm10543_vm3, %v9259_v7, %v9241_v30  ;;  %v4287_v32 = vadd.f32 %v4277_v48, %v4124_v21  ;;  %v10550_v30 = vld [vmem:[#allocation33_spill] sm:$0xff]  ;;  %v10552_v44 = vld [vmem:[#allocation78_spill] sm:$0xff]  ;;  %v10555_v41 = vld [vmem:[#allocation55_spill] sm:$0xff] }
 0xcd9   : > { %v4414_v23 = vadd.f32 %v4404_v59, %v4381_v46  ;;  %v3837_v31 = vsel %vm3835_vm13, %v10536_v11, %v10544_v28  ;;  %v4115_v1 = vsel %vm3736_vm12, %v10537_v45, %v10545_v12  ;;  %v3902_v53 = vsel %vm3568_vm0, %v10541_v43, %v10546_v34 }
 0xcda   : > { %v5172_v57 = vpop.permute.xlu1 %5171  ;;  %v4125_v7 = vadd.f32 %v4115_v1, %v3978_v33  ;;  %v3849_v0 = vadd.f32 %v3837_v31, %v3749_v42  ;;  %v4382_v60 = vadd.f32 %v4372_v49, %v4287_v32  ;;  %v4373_v22 = vsel %vm3568_vm0, %v9245_v56, %v9253_v10  ;;  %v5033_v32 = vpop.permute.xlu2 %5032  ;;  %v5893_v31 = vld [vmem:[#allocation2] sm:$0xff] }
 0xcdb   : > { %v5260_v5 = vpop.permute.xlu0 %5259  ;;  %v4425_v35 = vadd.f32 %v9267_v24, %v4414_v23  ;;  %v3739_v18 = vsel %vm3736_vm12, %v10540_v39, %v10550_v30  ;;  %v4406_v25 = vsel %vm10551_vm1, %v9261_v37, %v9263_v50  ;;  %v3979_v56 = vmul.f32 %v9405_v61, %v8887_v27  ;;  %v10554_v37 = vld [vmem:[#allocation52_spill] sm:$0xff] }
 0xcdc   : > { %v5266_v51 = vsel %vm3568_vm0, %v9754_v16, %v5260_v5  ;;  %v5176_v16 = vsel %vm3835_vm13, %v5170_v52, %v5172_v57  ;;  %v3912_v52 = vadd.f32 %v3901_v14, %v3848_v17  ;;  %v4278_v57 = vsel %vm3835_vm13, %v10542_v3, %v10547_v6  ;;  %v10553_v17 = vld [vmem:[#allocation62_spill] sm:$0xff] }
 0xcdd   : > { %v5276_v36 = vadd.f32 %v5266_v51, %v5185_v2  ;;  %v5186_v29 = vadd.f32 %v5176_v16, %v4996_v20  ;;  %v4288_v54 = vadd.f32 %v4278_v57, %v4125_v7  ;;  %v3913_v58 = vadd.f32 %v3902_v53, %v3849_v0  ;;  %v10549_v2 = vld [vmem:[#allocation31_spill] sm:$0xff]  ;;  %v10560_v53 = vld [vmem:[#allocation34_spill] sm:$0xff] }
 0xcde   : > { %v3924_v63 = vadd.f32 %v10539_v47, %v3912_v52  ;;  %v4415_v11 = vadd.f32 %v4405_v40, %v4382_v60  ;;  %v4116_v26 = vsel %vm3736_vm12, %v10545_v12, %v10553_v17  ;;  %v3903_v27 = vsel %vm3568_vm0, %v10546_v34, %v10554_v37  ;;  %v10557_v12 = vld [vmem:[#allocation46_spill] sm:$0xff]  ;;  %v10559_v60 = vld [vmem:[#allocation51_spill] sm:$0xff] }
 0xcdf   : > { %5318 = vrot.lane.b32.xlu1 %v5276_v36, %s6043_s17  ;;  %v3925_v45 = vadd.f32 %v10539_v47, %v3913_v58  ;;  %v4383_v9 = vadd.f32 %v4373_v22, %v4288_v54  ;;  %v3838_v36 = vsel %vm3835_vm13, %v10544_v28, %v10552_v44  ;;  %v4279_v43 = vsel %vm3835_vm13, %v10547_v6, %v10555_v41  ;;  %v10561_v54 = vld [vmem:[#allocation29_spill] sm:$0xff] }
 0xce0   : > { %5354 = vrot.lane.b32.xlu0 %v3923_v38, %s6044_s20  ;;  %v4426_v8 = vadd.f32 %v9267_v24, %v4415_v11  ;;  %v4126_v38 = vadd.f32 %v4116_v26, %v3979_v56  ;;  %v4374_v3 = vsel %vm3568_vm0, %v9253_v10, %v9237_v4  ;;  %v4407_v20 = vsel %vm10556_vm5, %v9263_v50, %v9249_v13 }
 0xce1   : > { %v4416_v51 = vadd.f32 %v4406_v25, %v4383_v9  ;;  %v4477_v1 = vmul.f32 %v5893_v31, %v10557_v12  ;;  %v3650_v6 = vmul.f32 %v9401_v62, %v10560_v53  ;;  %v3651_v58 = vmul.f32 %v9401_v62, %v10561_v54  ;;  %v5894_v53 = vld [vmem:[#allocation2 + $0x20] sm:$0xff] }
 0xce2   : > { %v5262_v15 = vpop.permute.xlu1 %5261  ;;  %v4289_v14 = vadd.f32 %v4279_v43, %v4126_v38  ;;  %v10567_v43 = vld [vmem:[#allocation64_spill] sm:$0xff] }
 0xce3   : > { %v5267_v19 = vsel %vm3568_vm0, %v5260_v5, %v5262_v15  ;;  %v3649_v5 = vmul.f32 %v9401_v62, %v10549_v2  ;;  %v4427_v46 = vadd.f32 %v9267_v24, %v4416_v51  ;;  %v5035_v52 = vpop.permute.xlu0 %5034  ;;  %v5193_v15 = vpop.permute.xlu2 %5192 }
 0xce4   : > { %v5277_v55 = vadd.f32 %v5267_v19, %v5186_v29  ;;  %v4384_v33 = vadd.f32 %v4374_v3, %v4289_v14  ;;  %v5044_v50 = vsel %vm3835_vm13, %v5033_v32, %v5035_v52  ;;  %v10568_v3 = vld [vmem:[#allocation79_spill] sm:$0xff] }
 0xce5   : > { %v3750_v21 = vadd.f32 %v3739_v18, %v3649_v5  ;;  %v10565_v18 = vld [vmem:[#allocation32_spill] sm:$0xff] }
 0xce6   : > { %5320 = vrot.lane.b32.xlu2 %v5277_v55, %s6043_s17  ;;  %v4417_v42 = vadd.f32 %v4407_v20, %v4384_v33  ;;  %v10558_v55 = vld [vmem:[#allocation59_spill] sm:$0xff]  ;;  %v3980_v25 = vmul.f32 %v9405_v61, %v10565_v18  ;;  %v4117_v61 = vsel %vm3736_vm12, %v10553_v17, %v10567_v43  ;;  %s10586_s17 = sld [smem:[#allocation11_spill]] }
 0xce7   : > { %5356 = vrot.lane.b32.xlu1 %v3924_v63, %s6044_s20  ;;  %v3850_v39 = vadd.f32 %v3838_v36, %v3750_v21  ;;  %v4732_v0 = vadd.f32 %v10558_v55, %v4477_v1 }
 0xce8   : > { %5387 = vrot.lane.b32.xlu0 %v4425_v35, %s6045_s21  ;;  %v4428_v59 = vadd.f32 %v9267_v24, %v4417_v42  ;;  %v4733_v35 = vadd.f32 %v10559_v60, %v4477_v1  ;;  %v4127_v33 = vadd.f32 %v4117_v61, %v3980_v25  ;;  %v10571_v1 = vld [vmem:[#allocation65_spill] sm:$0xff]  ;;  %v10576_v25 = vld [vmem:[#allocation42_spill] sm:$0xff] }
 0xce9   : > { %v3914_v16 = vadd.f32 %v3903_v27, %v3850_v39  ;;  %v5054_v57 = vadd.f32 %v5044_v50, %v4732_v0  ;;  %v10566_v27 = vld [vmem:[#allocation80_spill] sm:$0xff] }
 0xcea   : > { %v9926_v29 = vpop.permute.xlu1 %5036 }
 0xceb   : > { %v3926_v48 = vadd.f32 %v10539_v47, %v3914_v16  ;;  %v5195_v10 = vpop.permute.xlu0 %5194  ;;  %v5045_v63 = vsel %vm3835_vm13, %v5035_v52, %v9926_v29  ;;  %v10570_v52 = vld [vmem:[#allocation56_spill] sm:$0xff] }
 0xcec   : > { %v5202_v34 = vsel %vm3568_vm0, %v5193_v15, %v5195_v10  ;;  %v5055_v11 = vadd.f32 %v5045_v63, %v4733_v35  ;;  %v4280_v15 = vsel %vm3835_vm13, %v10555_v41, %v10570_v52  ;;  %s5676_s23 = smul.u32 40, %s10586_s17 }
 0xced   : > { %v5211_v2 = vadd.f32 %v5202_v34, %v5054_v57 }
 0xcee   : > { %5358 = vrot.lane.b32.xlu2 %v3925_v45, %s6044_s20  ;;  %v10564_v45 = vld [vmem:[#allocation23_spill] sm:$0xff] }
 0xcef   : > { %5389 = vrot.lane.b32.xlu1 %v4426_v8, %s6045_s21  ;;  %v3740_v9 = vsel %vm3736_vm12, %v10550_v30, %v10564_v45  ;;  %v3752_v38 = vadd.f32 %v10564_v45, %v3651_v58  ;;  %v3839_v30 = vsel %vm3835_vm13, %v10552_v44, %v10566_v27  ;;  %v10569_v44 = vld [vmem:[#allocation50_spill] sm:$0xff]  ;;  %vm10577_vm12 = vmmov %vm10551_vm1 }
 0xcf0   : > { %v3751_v21 = vadd.f32 %v3740_v9, %v3650_v6  ;;  %v3904_v17 = vsel %vm3568_vm0, %v10554_v37, %v10569_v44  ;;  %v10572_v37 = vld [vmem:[#allocation60_spill] sm:$0xff] }
 0xcf1   : > { %v4408_v41 = vsel %vm10573_vm11, %v9249_v13, %v10572_v37 }
 0xcf2   : > { %v9928_v23 = vpop.permute.xlu1 %5196  ;;  %v3851_v42 = vadd.f32 %v3839_v30, %v3751_v21 }
 0xcf3   : > { %v5203_v40 = vsel %vm3568_vm0, %v5195_v10, %v9928_v23  ;;  %v4290_v10 = vadd.f32 %v4280_v15, %v4127_v33 }
 0xcf4   : > { %v5212_v8 = vadd.f32 %v5203_v40, %v5055_v11  ;;  %v10574_v40 = vld [vmem:[#allocation45_spill] sm:$0xff] }
 0xcf6   : > { %5391 = vrot.lane.b32.xlu2 %v4427_v46, %s6045_s21 }
 0xcfe   : > { %5360 = vrot.lane.b32.xlu2 %v3926_v48, %s6044_s20  ;;  %v3840_v48 = vsel %vm3835_vm13, %v10566_v27, %v10568_v3 }
 0xcff   : > { %v3852_v32 = vadd.f32 %v3840_v48, %v3752_v38 }
 0xd00   : > { %v5284_v28 = vpop.permute.xlu2 %5283 }
 0xd01   : > { %v3916_v31 = vadd.f32 %v10569_v44, %v3852_v32 }
 0xd03   : > { %v3928_v55 = vadd.f32 %v10539_v47, %v3916_v31  ;;  %v10580_v31 = vld [vmem:[#allocation19_spill] sm:$0xff] }
 0xd06   : > { %5393 = vrot.lane.b32.xlu2 %v4428_v59, %s6045_s21 }
 0xd10   : > { %v5313_v7 = vpop.permute.xlu2 %5312 }
 0xd18   : > { %v9965_v14 = vpop.permute.xlu2 %5340 }
 0xd20   : > { %v5286_v19 = vpop.permute.xlu0 %5285  ;;  %v9931_v49 = vpop.permute.xlu1 %5287 }
 0xd21   : > { %v5293_v22 = vsel %vm10562_vm6, %v5284_v28, %v5286_v19  ;;  %v5294_v5 = vsel %vm10563_vm8, %v5286_v19, %v9931_v49  ;;  %v3915_v28 = vadd.f32 %v3904_v17, %v3851_v42  ;;  %v4375_v19 = vsel %vm3568_vm0, %v9237_v4, %v10571_v1  ;;  %v5043_v60 = vpop.permute.xlu2 %5042 }
 0xd22   : > { %v5302_v56 = vadd.f32 %v5293_v22, %v5211_v2  ;;  %v5303_v62 = vadd.f32 %v5294_v5, %v5212_v8  ;;  %v5895_v22 = vld [vmem:[#allocation2 + $0x18] sm:$0xff] }
 0xd23   : > { %v3927_v50 = vadd.f32 %v10539_v47, %v3915_v28  ;;  %v4481_v47 = vmul.f32 %v5894_v53, %v10557_v12  ;;  %v10575_v8 = vld [vmem:[#allocation28_spill] sm:$0xff] }
 0xd25   : > { %v4736_v54 = vadd.f32 %v10574_v40, %v4481_v47 }
 0xd28   : > { %v5315_v51 = vpop.permute.xlu0 %5314 }
 0xd29   : > { %v9953_v36 = vpop.permute.xlu1 %5316  ;;  %v5323_v26 = vsel %vm5322_vm10, %v5313_v7, %v5315_v51  ;;  %v4385_v7 = vadd.f32 %v4375_v19, %v4290_v10  ;;  %v10579_v10 = vld [vmem:[#allocation16_spill] sm:$0xff] }
 0xd2a   : > { %v5324_v46 = vsel %vm5322_vm10, %v5315_v51, %v9953_v36  ;;  %v5332_v39 = vadd.f32 %v5323_v26, %v5302_v56 }
 0xd2b   : > { %v5333_v16 = vadd.f32 %v5324_v46, %v5303_v62  ;;  %v4418_v63 = vadd.f32 %v4408_v41, %v4385_v7 }
 0xd2c   : > { %v5343_v20 = vadd.f32 %v9965_v14, %v5332_v39 }
 0xd2d   : > { %v5344_v59 = vadd.f32 %v9965_v14, %v5333_v16  ;;  %v4429_v35 = vadd.f32 %v9267_v24, %v4418_v63  ;;  %v4480_v24 = vmul.f32 %v5895_v22, %v10557_v12 }
 0xd2e   : > { %5417 = vrot.lane.b32.xlu0 %v5343_v20, %s6033_s18 }
 0xd2f   : > { %5419 = vrot.lane.b32.xlu1 %v5344_v59, %s6033_s18  ;;  %v4735_v18 = vadd.f32 %v10575_v8, %v4480_v24 }
 0xd30   : > { %v5039_v0 = vpop.permute.xlu0 %5038 }
 0xd31   : > { %v5041_v34 = vpop.permute.xlu1 %5040  ;;  %v5046_v11 = vsel %vm3835_vm13, %v9926_v29, %v5039_v0 }
 0xd32   : > { %v5048_v6 = vsel %vm3835_vm13, %v5041_v34, %v5043_v60  ;;  %v5290_v57 = vpop.permute.xlu2 %5289  ;;  %v5047_v5 = vsel %vm3835_vm13, %v5039_v0, %v5041_v34  ;;  %v5056_v56 = vadd.f32 %v5046_v11, %v10576_v25  ;;  %vm10578_vm13 = vmmov %vm10551_vm1 }
 0xd33   : > { %v5058_v58 = vadd.f32 %v5048_v6, %v4736_v54  ;;  %v5057_v26 = vadd.f32 %v5047_v5, %v4735_v18  ;;  %v10583_v18 = vld [vmem:[#allocation18_spill] sm:$0xff] }
 0xd36   : > { %5362 = vrot.lane.b32.xlu0 %v3927_v50, %s6044_s20 }
 0xd37   : > { %5364 = vrot.lane.b32.xlu1 %v3928_v55, %s6044_s20 }
 0xd38   : > { %v5199_v4 = vpop.permute.xlu0 %5198 }
 0xd39   : > { %v5204_v45 = vsel %vm3568_vm0, %v9928_v23, %v5199_v4  ;;  %v5295_v23 = vsel %vm10578_vm13, %v9931_v49, %v5290_v57 }
 0xd3a   : > { %v5213_v29 = vadd.f32 %v5204_v45, %v5056_v56 }
 0xd3c   : > { %v5304_v43 = vadd.f32 %v5295_v23, %v5213_v29  ;;  %v5447_v23 = vld [vmem:[%s10584_s1] sm:$0xff]  ;;  %s5569_s1 = scalar_lea.sflag [#allocation5], %s6213_s24 }
 0xd3e   : > { %5395 = vrot.lane.b32.xlu0 %v4429_v35, %s6045_s21  ;;  %s10587_s21 = sld [smem:[#allocation86_spill]] }
 0xd40   : > { %v5321_v62 = vpop.permute.xlu2 %5320 }
 0xd41   : > { %v5201_v13 = vpop.permute.xlu1 %5200 }
 0xd42   : > { %v5215_v2 = vadd.f32 %v5201_v13, %v5058_v58  ;;  %v5205_v21 = vsel %vm3568_vm0, %v5199_v4, %v5201_v13  ;;  %vm5468_vm0 = vcmask 801792  }
 0xd43   : > { %v5214_v46 = vadd.f32 %v5205_v21, %v5057_v26 }
 0xd44   : > { %s5580_s14 = scalar_lea.hbm %s10587_s21, %s5676_s23  ;;  %s5951_s23 = scalar_lea.hbm %s10587_s21, 80 }
 0xd45   : > { %s5584_s28 = sshll.u32 %s5580_s14, 4  ;;  %s5585_s28 = int_to_ptr.hbm [resolvable:$true] %s5584_s28 }
 0xd46   : > { %s5945_s30 = sshra.s32 %s5585_s28, 4  ;;  %s5946_s30 = int_to_ptr.hbm [resolvable:$true] %s5945_s30 }
 0xd47   : > { %s5947_s19 = scalar_lea.hbm %s5946_s30, 40  ;;  %p5952_p3 = scmp.lt.s32.totalorder %s5946_s30, %s10587_s21 }
 0xd48   : > { %v5359_v59 = vpop.permute.xlu2 %5358  ;;  %p5948_p6 = scmp.ne.s32.totalorder %s5946_s30, %s5947_s19  ;;  %p5953_p4 = scmp.lt.s32.totalorder %s5951_s23, %s5947_s19 }
 0xd4a   : > { %v5292_v9 = vpop.permute.xlu0 %5291  ;;  %p5949_p13 = pnand %p5948_p6, %p6183_p11  ;;  %p5954_p5 = por %p5953_p4, %p5952_p3 }
 0xd4b   : > { %v5306_v51 = vadd.f32 %v5292_v9, %v5215_v2  ;;  %v5296_v12 = vsel %vm10577_vm12, %v5290_v57, %v5292_v9  ;;  %v10581_v57 = vld [vmem:[#allocation20_spill] sm:$0xff]  ;;  %v10582_v9 = vld [vmem:[#allocation17_spill] sm:$0xff] }
 0xd4c   : > { %v5305_v27 = vadd.f32 %v5296_v12, %v5214_v46  ;;  %p5950_p2 = pneg %p5949_p13 }
 0xd4d   : > { %v5336_v38 = vadd.f32 %v5321_v62, %v5306_v51 }
 0xd4e   : > { %p5955_p7 = pnand %p5954_p5, %p5950_p2 }
 0xd4f   : > { %v5347_v39 = vadd.f32 %v9965_v14, %v5336_v38 }
 0xd50   : > { %v5392_v15 = vpop.permute.xlu2 %5391 }
 0xd51   : > { %v5319_v30 = vpop.permute.xlu1 %5318  ;;  %5425 = vrot.lane.b32.xlu0 %v5347_v39, %s6033_s18 }
 0xd52   : > { %v5325_v61 = vsel %vm5322_vm10, %v9953_v36, %v5319_v30  ;;  %v5326_v16 = vsel %vm5322_vm10, %v5319_v30, %v5321_v62  ;;  %v5355_v49 = vpop.permute.xlu0 %5354 }
 0xd53   : > { %v5334_v3 = vadd.f32 %v5325_v61, %v5304_v43  ;;  %v5335_v48 = vadd.f32 %v5326_v16, %v5305_v27  ;;  %v5441_v16 = vld [vmem:[%s10585_s22] sm:$0xf] }
 0xd55   : > { %v5345_v33 = vadd.f32 %v9965_v14, %v5334_v3  ;;  %v5346_v20 = vadd.f32 %v9965_v14, %v5335_v48 }
 0xd57   : > { %5421 = vrot.lane.b32.xlu1 %v5345_v33, %s6033_s18  ;;  %5423 = vrot.lane.b32.xlu2 %v5346_v20, %s6033_s18  ;;  %s6046_s18 = smov 98  }
 0xd58   : > { %v5361_v35 = vpop.permute.xlu2 %5360 }
 0xd59   : > { %v5357_v42 = vpop.permute.xlu1 %5356  ;;  %v5369_v11 = vsel %vm5366_vm14, %v5359_v59, %v5361_v35 }
 0xd5a   : > { %v5388_v32 = vpop.permute.xlu0 %5387  ;;  %v5367_v36 = vsel %vm5366_vm14, %v5355_v49, %v5357_v42  ;;  %v5368_v17 = vsel %vm5366_vm14, %v5357_v42, %v5359_v59  ;;  %v5379_v8 = vadd.f32 %v5369_v11, %v10582_v9 }
 0xd5b   : > { %v5377_v14 = vadd.f32 %v5367_v36, %v10579_v10  ;;  %v5378_v1 = vadd.f32 %v5368_v17, %v10580_v31  ;;  %v5896_v10 = vld [vmem:[%s6219_s26] sm:$0xff] }
 0xd60   : > { %v5394_v4 = vpop.permute.xlu2 %5393 }
 0xd61   : > { %v5390_v44 = vpop.permute.xlu1 %5389  ;;  %v5400_v5 = vsel %vm5397_vm15, %v5392_v15, %v5394_v4 }
 0xd62   : > { %v5398_v52 = vsel %vm5397_vm15, %v5388_v32, %v5390_v44  ;;  %v5399_v28 = vsel %vm5397_vm15, %v5390_v44, %v5392_v15  ;;  %v5409_v51 = vadd.f32 %v5400_v5, %v5379_v8 }
 0xd63   : > { %v5407_v19 = vadd.f32 %v5398_v52, %v5377_v14  ;;  %v5408_v7 = vadd.f32 %v5399_v28, %v5378_v1 }
 0xda0   : > { %v5418_v50 = vpop.permute.xlu0 %5417 }
 0xda1   : > { %v5420_v55 = vpop.permute.xlu1 %5419  ;;  %v5436_v37 = vadd.f32 %v5418_v50, %v5407_v19  ;;  %v5897_v19 = vld [vmem:[%s6219_s26 + $0x20] sm:$0xff] }
 0xda2   : > { %v5427_v41 = vsel %vm1851_vm9, %v5418_v50, %v5420_v55 }
 0xda3   : > { %v5437_v0 = vadd.f32 %v5427_v41, %v5408_v7  ;;  %v5442_v63 = vpack.c.bf16 %v5436_v37, %v5436_v37  ;;  %v5898_v41 = vld [vmem:[%s6219_s26 + $0x8] sm:$0xff] }
 0xda5   : > { %v5443_v60 = vpack.c.bf16 %v5437_v0, %v5437_v0  ;;  %5458 = vrot.lane.b32.xlu1 %v5442_v63, %s6046_s18 }
 0xda7   : > { %5460 = vrot.lane.b32.xlu2 %v5443_v60, %s6046_s18 }
 0xda8   : > { %v5363_v34 = vpop.permute.xlu0 %5362 }
 0xda9   : > { %v5365_v53 = vpop.permute.xlu1 %5364  ;;  %v5370_v22 = vsel %vm5366_vm14, %v5361_v35, %v5363_v34 }
 0xdaa   : > { %v5371_v6 = vsel %vm5366_vm14, %v5363_v34, %v5365_v53  ;;  %v5380_v25 = vadd.f32 %v5370_v22, %v10583_v18  ;;  %v5899_v53 = vld [vmem:[%s6219_s26 + $0x10] sm:$0xff] }
 0xdab   : > { %v5381_v40 = vadd.f32 %v5371_v6, %v10581_v57  ;;  %v5900_v6 = vld [vmem:[%s6219_s26 + $0x18] sm:$0xff] }
 0xdb0   : > { %v5396_v47 = vpop.permute.xlu0 %5395 }
 0xdb1   : > { %v5424_v54 = vpop.permute.xlu2 %5423  ;;  %v5411_v13 = vadd.f32 %v5396_v47, %v5381_v40  ;;  %v5401_v45 = vsel %vm5397_vm15, %v5394_v4, %v5396_v47 }
 0xdb2   : > { %v5410_v21 = vadd.f32 %v5401_v45, %v5380_v25 }
 0xdc3   : > { %v5426_v58 = vpop.permute.xlu0 %5425 }
 0xdc4   : > { %v5430_v24 = vsel %vm1851_vm9, %v5424_v54, %v5426_v58 }
 0xdc5   : > { %v5440_v2 = vadd.f32 %v5430_v24, %v5411_v13 }
 0xdc7   : > { %v5446_v56 = vpack.c.bf16 %v5440_v2, %v5440_v2 }
 0xdc9   : > { %v5422_v62 = vpop.permute.xlu1 %5421  ;;  %5466 = vrot.lane.b32.xlu2 %v5446_v56, %s6046_s18 }
 0xdca   : > { %v5428_v26 = vsel %vm1851_vm9, %v5420_v55, %v5422_v62  ;;  %v5429_v29 = vsel %vm1851_vm9, %v5422_v62, %v5424_v54  ;;  %vm5473_vm9 = vcmask 64512  }
 0xdcb   : > { %v5438_v38 = vadd.f32 %v5428_v26, %v5409_v51  ;;  %v5439_v12 = vadd.f32 %v5429_v29, %v5410_v21 }
 0xdcd   : > { %v5444_v46 = vpack.c.bf16 %v5438_v38, %v5438_v38  ;;  %v5445_v39 = vpack.c.bf16 %v5439_v12, %v5439_v12 }
 0xdcf   : > { %5462 = vrot.lane.b32.xlu0 %v5444_v46, %s6046_s18  ;;  %5464 = vrot.lane.b32.xlu1 %v5445_v39, %s6046_s18  ;;  %s5582_s18 = sshll.u32 %s566_s29, 4  ;;  %s5583_s18 = int_to_ptr.vmem [resolvable:$true] %s5582_s18 }
 0xdd7   : > { %5450 = vperm.xlu0 %5879, %v5447_v23  }
 0xe01   : > { %v5461_v27 = vpop.permute.xlu2 %5460 }
 0xe17   : > { %v5459_v30 = vpop.permute.xlu1 %5458 }
 0xe18   : > { %v5469_v43 = vsel %vm5468_vm0, %v5459_v30, %v5461_v27 }
 0xe19   : > { %v5479_v61 = vsel %vm5477_vm4, %v5469_v43, 0 }
 0xe1a   : > { %5500 = vmatpush.bf16.msra.mxu0 %v5479_v61 }
 0xe1d   : > { %5665 = vmatmul.msk.bf16.vlgmr.msra.gmra.mxu0 %vm5473_vm9, %v5441_v16 }
 0xe23   : > { %v5467_v3 = vpop.permute.xlu2 %5466 }
 0xe24   : > { %v5491_v48 = vsel %vm5477_vm4, %v5467_v3, 0 }
 0xe25   : > { %5552 = vmatpush.bf16.msrb.mxu0 %v5491_v48 }
 0xe2d   : > { %5669 = vmatmul.msk.bf16.vlgmr.msrb.gmra.mxu0 %vm5473_vm9, %v5441_v16 }
 0xe41   : > { %v5465_v33 = vpop.permute.xlu1 %5464  ;;  %v5463_v20 = vpop.permute.xlu0 %5462 }
 0xe42   : > { %v5470_v49 = vsel %vm5468_vm0, %v5461_v27, %v5463_v20  ;;  %v5471_v42 = vsel %vm5468_vm0, %v5463_v20, %v5465_v33  ;;  %v5472_v59 = vsel %vm5468_vm0, %v5465_v33, %v5467_v3 }
 0xe43   : > { %v5482_v32 = vsel %vm5477_vm4, %v5470_v49, 0  ;;  %v5485_v44 = vsel %vm5477_vm4, %v5471_v42, 0  ;;  %v5488_v36 = vsel %vm5477_vm4, %v5472_v59, 0 }
 0xe44   : > { %5513 = vmatpush.bf16.msra.mxu1 %v5482_v32  ;;  %5526 = vmatpush.bf16.msra.mxu2 %v5485_v44 }
 0xe45   : > { %5539 = vmatpush.bf16.msra.mxu3 %v5488_v36 }
 0xe47   : > { %5666 = vmatmul.msk.bf16.vlgmr.msra.gmra.mxu1 %vm5473_vm9, %v5441_v16  ;;  %5667 = vmatmul.msk.bf16.vlgmr.msra.gmra.mxu2 %vm5473_vm9, %v5441_v16 }
 0xe48   : > { %5668 = vmatmul.msk.bf16.vlgmr.msra.gmra.mxu3 %vm5473_vm9, %v5441_v16 }
 0xe49   : > { %v5451_v17 = vpop.permute.xlu0 %5450 }
 0xe9a   : > { %v5502_v52 = vpop.f32.mrf.mxu0 }
 0xe9b   : > { %v5503_v15 = vadd.f32 %v5502_v52, %v5451_v17 }
 0xe9d   : > { %v5558_v14 = vmul.f32 %v5896_v10, %v5503_v15 }
 0xe9f   : > { %5563 = vst [vmem:[%s566_s29] sm:$0xff] %v5558_v14 }
 0xea2   : > { %v5504_v28 = vpop.f32.mrf.mxu0 }
 0xeaa   : > { %v5554_v31 = vpop.f32.mrf.mxu0 }
 0xeab   : > { %v5555_v1 = vadd.f32 %v5554_v31, %v5451_v17 }
 0xead   : > { %v5562_v50 = vmul.f32 %v5897_v19, %v5555_v1 }
 0xeaf   : > { %5567 = vst.msk [vmem:[%s566_s29 + $0x20] sm:$0xff] %vm5322_vm10, %v5562_v50 }
 0xeb2   : > { %v5556_v7 = vpop.f32.mrf.mxu0 }
 0xec4   : > { %v5515_v55 = vpop.f32.mrf.mxu1 }
 0xec5   : > { %v5516_v37 = vadd.f32 %v5515_v55, %v5451_v17 }
 0xec7   : > { %v5559_v0 = vmul.f32 %v5898_v41, %v5516_v37 }
 0xec9   : > { %5564 = vst [vmem:[%s566_s29 + $0x8] sm:$0xff] %v5559_v0 }
 0xeca   : > { %v5528_v63 = vpop.f32.mrf.mxu2 }
 0xecb   : > { %v5529_v60 = vadd.f32 %v5528_v63, %v5451_v17  ;;  %v5541_v35 = vpop.f32.mrf.mxu3 }
 0xecc   : > { %v5542_v34 = vadd.f32 %v5541_v35, %v5451_v17  ;;  %v5517_v4 = vpop.f32.mrf.mxu1 }
 0xecd   : > { %v5560_v47 = vmul.f32 %v5899_v53, %v5529_v60 }
 0xece   : > { %v5561_v57 = vmul.f32 %v5900_v6, %v5542_v34 }
 0xecf   : > { %5565 = vst [vmem:[%s566_s29 + $0x10] sm:$0xff] %v5560_v47 }
 0xed0   : > { %5566 = vst [vmem:[%s566_s29 + $0x18] sm:$0xff] %v5561_v57 }
 0xed1   : > { %5958 = shalt.err (!%p5955_p7)
}
 0xed2   : > { %5679 = dma.vmem_to_hbm [thread:$0]  (%p6183_p11), %s5583_s18, 640, %s5585_s28, %s5569_s1   ;;  %v5530_v40 = vpop.f32.mrf.mxu2 }
 0xed3   : > { %v5543_v54 = vpop.f32.mrf.mxu3 }
 0xed4 PF: > { %s10589_s24 = sld [smem:[#allocation9_spill]]  ;;  %p5686_p8 = pnand %p5657_p9, %p6187_p12 }
 0xed6   : > { %p5687_p10 = pneg %p5686_p8 }
 0xeda   : > { %s5596_s29 = sand.u32 1, %s10589_s24  }
 0xedb   : > { %s5597_s14 = scalar_lea.sflag [#allocation5], %s5596_s29 }
 0xedc   : > { %5980 = dma.done.wait (%p5687_p10), %s5597_s14, 640  }
 0xedd   : > { %5982 = vsyncadd (%p5687_p10), %s5597_s14, 4294966656  ;;  %s10591_s27 = sld [smem:[#allocation12_spill]]  ;;  %s10594_s24 = smov %s5989_s25 }
 0xede   : > { %s10592_s30 = sld [smem:[#allocation10_spill]] }
 0xedf   : > { %s10593_s26 = sld [smem:[#allocation13_spill]] }
 0xee3   : > { %p30_p11 = scmp.ge.s32.totalorder %s10591_s27, 4  }
 0xee4   : > { %s10595_s25 = smov %s10592_s30 }
 0xee5   :  { %32 = sbr.rel (!%p30_p11) target bundleno = 12 (0xc), region = 133 }
 0xeea   :  { %5603 = vsyncpa [#allocation4], 1 }
 0xeeb   :  { %5605 = vsyncpa [#allocation4 + $0x1], 1 }
 0xeec   :  { %5606 = vsyncpa [#allocation5], 1 }
 0xeed   :  { %5608 = vsyncpa [#allocation5 + $0x1], 1 }

</bundles_post_ra>
